<compile_context>
chip_gen: v7x
topology: tpu7x:2x2x1
jax: 0.10.0
libtpu: 0.0.40
codegen_flags: <defaults>
</compile_context>

<pallas_src>
import math
import jax
import jax.numpy as jnp
from jax.experimental import pallas as pl
from jax.experimental.pallas import tpu as pltpu

# ---------------- static configuration ----------------
B = 2            # batch
C_IN = 4         # enc_in (n_vars)
SEQ_LEN = 16     # context window
PATCH_LEN = 4
STRIDE = 4
PATCH_NUM = (SEQ_LEN - PATCH_LEN) // STRIDE + 1 + 1   # +1 from padding_patch='end' -> 5
D_MODEL = 32
N_HEADS = 4
D_HEAD = D_MODEL // N_HEADS
D_FF = 64
N_LAYERS = 2
N_CLASSES = 6
BN_EPS = 1e-5

N_SEQ = B * C_IN               # channel-independent sequences (bs * nvars) = 8
NP = N_SEQ * PATCH_NUM         # total patch tokens = 40

assert STRIDE == PATCH_LEN, "patchify() below assumes non-overlapping patches"


def _gelu_exact(x):
    # PyTorch nn.GELU() default = exact erf-based GELU
    return 0.5 * x * (1.0 + jax.lax.erf(x * (1.0 / math.sqrt(2.0))))


def _batchnorm(x2, gamma, beta):
    # nn.BatchNorm1d in training mode: biased batch statistics per d_model feature over
    # all (bs*nvars, patch_num) tokens == axis 0 of the [NP, D] view.  Single pass:
    # var = E[x^2] - mean^2 (kept in f32).
    # TODO(synk): PyTorch eval() would use running statistics instead of batch stats.
    mean = jnp.mean(x2, axis=0, keepdims=True)
    msq = jnp.mean(x2 * x2, axis=0, keepdims=True)
    var = msq - mean * mean
    return (x2 - mean) * jax.lax.rsqrt(var + BN_EPS) * gamma + beta


def patchtst_kernel(xp_ref, wp_ref, posb_ref,
                    wqkv_ref, bqkv_ref, wof1_ref, bf1_ref, wf2_ref, vec_ref,
                    wh_ref, bh_ref,
                    out_ref,
                    prev_ref):
    """Everything lives in VMEM.  prev_ref is a VMEM scratch holding the residual-
    attention pre-softmax scores between layers: (N_HEADS*N_SEQ, PATCH_NUM, PATCH_NUM)."""
    scale = 1.0 / math.sqrt(D_HEAD)

    # ---- patch embedding: [NP, patch_len] @ [patch_len, d_model], then add
    #      (learned positional encoding + W_P bias), broadcast over the N_SEQ sequences.
    u = jnp.dot(xp_ref[...], wp_ref[...], preferred_element_type=jnp.float32)   # (40,32)
    u = (u.reshape(N_SEQ, PATCH_NUM, D_MODEL) + posb_ref[...]).reshape(NP, D_MODEL)

    for l in range(N_LAYERS):
        vrow = vec_ref[l]              # (6, 32): [b_o, g1, be1, b_f2, g2, be2]
        b_o, g1, be1 = vrow[0:1, :], vrow[1:2, :], vrow[2:3, :]
        b_f2, g2, be2 = vrow[3:4, :], vrow[4:5, :], vrow[5:6, :]
        wof1 = wof1_ref[l]             # (32, 96): [W_o | W_ff1]
        w_o, w_f1 = wof1[:, :D_MODEL], wof1[:, D_MODEL:]

        # ---- fused Q/K/V projection: one (40,32)@(32,96) MXU op ----
        qkv = jnp.dot(u, wqkv_ref[l], preferred_element_type=jnp.float32) + bqkv_ref[l]
        qkv3 = qkv.reshape(N_SEQ, PATCH_NUM, 3 * D_MODEL)

        # ---- multi-head self-attention (res_attention=True, post-norm) ----
        ctx_heads = []
        for h in range(N_HEADS):
            qh = qkv3[:, :, h * D_HEAD:(h + 1) * D_HEAD]
            kh = qkv3[:, :, D_MODEL + h * D_HEAD:D_MODEL + (h + 1) * D_HEAD]
            vh = qkv3[:, :, 2 * D_MODEL + h * D_HEAD:2 * D_MODEL + (h + 1) * D_HEAD]
            sc = jnp.einsum('npd,nqd->npq', qh, kh,
                            preferred_element_type=jnp.float32) * scale
            if l > 0:                                   # add previous layer's scores
                sc = sc + prev_ref[h * N_SEQ:(h + 1) * N_SEQ]
            prev_ref[h * N_SEQ:(h + 1) * N_SEQ] = sc    # carry to next layer (scratch)
            e = jnp.exp(sc - jnp.max(sc, axis=-1, keepdims=True))
            attn = e * pl.reciprocal(jnp.sum(e, axis=-1, keepdims=True), approx=True)
            ctx_heads.append(jnp.einsum('npq,nqd->npd', attn, vh,
                                        preferred_element_type=jnp.float32))
        # concat heads along lanes -> one output-projection matmul
        ctx = jnp.concatenate(ctx_heads, axis=-1).reshape(NP, D_MODEL)     # (40, 32)
        o = jnp.dot(ctx, w_o, preferred_element_type=jnp.float32) + b_o

        src = _batchnorm(u + o, g1, be1)                # dropout p=0 -> identity

        # ---- position-wise feed-forward (Linear -> GELU -> Linear) ----
        ff = jnp.dot(src, w_f1, preferred_element_type=jnp.float32) + bf1_ref[l]
        ff = _gelu_exact(ff)
        ff = jnp.dot(ff, wf2_ref[l], preferred_element_type=jnp.float32) + b_f2
        u = _batchnorm(src + ff, g2, be2)

    # ---- classification head: last patch token, flatten (nvars, d_model), one Linear ----
    last = u.reshape(N_SEQ, PATCH_NUM, D_MODEL)[:, PATCH_NUM - 1, :]   # (bs*nvars, d_model)
    last3 = last.reshape(B, C_IN, D_MODEL)
    # nvars-major flatten -> (B, C_IN*D_MODEL) via lane-concat, then a single 128-deep dot
    feat = jnp.concatenate([last3[:, c, :] for c in range(C_IN)], axis=-1)   # (2, 128)
    out_ref[...] = (jnp.dot(feat, wh_ref[...], preferred_element_type=jnp.float32)
                    + bh_ref[...])


def patchify(x):
    # Model.forward: permute(0,2,1) -> [B, C, S]; padding_patch='end' (ReplicationPad1d
    # by `stride` at the end); stride == patch_len so unfold is a plain reshape.
    z = jnp.transpose(x, (0, 2, 1)).astype(jnp.float32)
    z = jnp.concatenate([z, jnp.repeat(z[:, :, -1:], STRIDE, axis=-1)], axis=-1)
    return z.reshape(B, C_IN, PATCH_NUM, PATCH_LEN).reshape(NP, PATCH_LEN)


def patchtst_forward(x, params):
    xp = patchify(x)
    args = (xp,
            params['w_p'], params['pos_b'],
            params['w_qkv'], params['b_qkv'],
            params['w_of1'], params['b_f1'], params['w_f2'], params['vec32'],
            params['w_h'], params['b_h'])
    vmem = pl.BlockSpec(memory_space=pltpu.MemorySpace.VMEM)
    return pl.pallas_call(
        patchtst_kernel,
        out_shape=jax.ShapeDtypeStruct((B, N_CLASSES), jnp.float32),
        in_specs=[vmem] * len(args),
        out_specs=vmem,
        scratch_shapes=[pltpu.VMEM((N_HEADS * N_SEQ, PATCH_NUM, PATCH_NUM), jnp.float32)],
    )(*args)


def init_params(key):
    ks = jax.random.split(key, 8)

    def nrm(k, shape):
        return (0.02 * jax.random.normal(k, shape)).astype(jnp.float32)

    zeros = lambda *s: jnp.zeros(s, jnp.float32)
    ones = lambda *s: jnp.ones(s, jnp.float32)

    wq = nrm(ks[1], (N_LAYERS, D_MODEL, D_MODEL))
    wk = nrm(ks[2], (N_LAYERS, D_MODEL, D_MODEL))
    wv = nrm(ks[3], (N_LAYERS, D_MODEL, D_MODEL))
    wo = nrm(ks[4], (N_LAYERS, D_MODEL, D_MODEL))
    wf1 = nrm(ks[5], (N_LAYERS, D_MODEL, D_FF))
    wf2 = nrm(ks[6], (N_LAYERS, D_FF, D_MODEL))

    params = {
        'w_p': nrm(ks[0], (PATCH_LEN, D_MODEL)),
        # pe='zeros', learn_pe=True (zero-init) with the W_P bias (zero-init) folded in:
        # u = x@W_P + b_P + W_pos  ==  x@W_P + (b_P + W_pos)
        'pos_b': zeros(PATCH_NUM, D_MODEL),
        # fused [W_q | W_k | W_v] and its bias
        'w_qkv': jnp.concatenate([wq, wk, wv], axis=-1),           # (L, 32, 96)
        'b_qkv': zeros(N_LAYERS, 1, 3 * D_MODEL),
        # packed [W_o | W_ff1]
        'w_of1': jnp.concatenate([wo, wf1], axis=-1),              # (L, 32, 96)
        'b_f1': zeros(N_LAYERS, 1, D_FF),
        'w_f2': wf2,                                               # (L, 64, 32)
        # all 32-wide per-layer vectors, rows = [b_o, g1, be1, b_f2, g2, be2]
        'vec32': jnp.stack([zeros(N_LAYERS, D_MODEL),              # b_o
                            ones(N_LAYERS, D_MODEL),               # gamma1
                            zeros(N_LAYERS, D_MODEL),              # beta1
                            zeros(N_LAYERS, D_MODEL),              # b_f2
                            ones(N_LAYERS, D_MODEL),               # gamma2
                            zeros(N_LAYERS, D_MODEL)], axis=1),    # beta2  -> (L, 6, 32)
        # head Linear(n_vars*d_model, class_num) stored as W.T with nvars-major rows
        'w_h': nrm(ks[7], (C_IN * D_MODEL, N_CLASSES)),
        'b_h': zeros(1, N_CLASSES),
    }
    return params


# TODO(synk): decomposition=True branch (series_decomp + two backbones) and RevIN are not
# exercised by this config (decomposition=0, revin=0); dropout layers are identity (p=0).

if __name__ == "__main__":
    key = jax.random.PRNGKey(0)
    kx, kp = jax.random.split(key)
    x = jax.random.normal(kx, (B, SEQ_LEN, C_IN), dtype=jnp.float32)
    params = init_params(kp)
    out = patchtst_forward(x, params)
    jax.block_until_ready(out)
    assert out.shape == (B, N_CLASSES), out.shape
    assert bool(jnp.all(jnp.isfinite(out)))
    print("KERNEL_OK")
</pallas_src>

<mosaic_0001>
module attributes {stable_mosaic.version = 11 : i64} {
  func.func @patchtst_kernel(%arg0: memref<40x4xf32, #tpu.memory_space<vmem>>, %arg1: memref<4x32xf32, #tpu.memory_space<vmem>>, %arg2: memref<5x32xf32, #tpu.memory_space<vmem>>, %arg3: memref<2x32x96xf32, #tpu.memory_space<vmem>>, %arg4: memref<2x1x96xf32, #tpu.memory_space<vmem>>, %arg5: memref<2x32x96xf32, #tpu.memory_space<vmem>>, %arg6: memref<2x1x64xf32, #tpu.memory_space<vmem>>, %arg7: memref<2x64x32xf32, #tpu.memory_space<vmem>>, %arg8: memref<2x6x32xf32, #tpu.memory_space<vmem>>, %arg9: memref<128x6xf32, #tpu.memory_space<vmem>>, %arg10: memref<1x6xf32, #tpu.memory_space<vmem>>, %arg11: memref<2x6xf32, #tpu.memory_space<vmem>>, %arg12: memref<32x5x5xf32, #tpu.memory_space<vmem>>) attributes {dimension_semantics = [], scalar_prefetch = 0 : i64, scratch_operands = 1 : i64, tpu.core_type = #tpu.core_type<tc>} {
    %c0 = arith.constant 0 : index
    %c0_0 = arith.constant 0 : index
    %0 = vector.load %arg0[%c0, %c0_0] : memref<40x4xf32, #tpu.memory_space<vmem>>, vector<40x4xf32>
    %c0_1 = arith.constant 0 : index
    %c0_2 = arith.constant 0 : index
    %1 = vector.load %arg1[%c0_1, %c0_2] : memref<4x32xf32, #tpu.memory_space<vmem>>, vector<4x32xf32>
    %cst = arith.constant dense<0.000000e+00> : vector<40x32xf32>
    %2 = tpu.matmul %0, %1, %cst {dimension_numbers = #tpu.dot_dimension_numbers<[1], [0], [0], [1], [0, 0, 1, 1], [], []>} : vector<40x4xf32>, vector<4x32xf32>, vector<40x32xf32> -> vector<40x32xf32>
    %3 = vector.shape_cast %2 : vector<40x32xf32> to vector<8x5x32xf32>
    %c0_3 = arith.constant 0 : index
    %c0_4 = arith.constant 0 : index
    %4 = vector.load %arg2[%c0_3, %c0_4] : memref<5x32xf32, #tpu.memory_space<vmem>>, vector<5x32xf32>
    %5 = vector.shape_cast %4 : vector<5x32xf32> to vector<1x5x32xf32>
    %6 = vector.broadcast %5 : vector<1x5x32xf32> to vector<8x5x32xf32>
    %7 = arith.addf %3, %6 : vector<8x5x32xf32>
    %8 = vector.shape_cast %7 : vector<8x5x32xf32> to vector<40x32xf32>
    %c0_5 = arith.constant 0 : index
    %c0_6 = arith.constant 0 : index
    %c0_7 = arith.constant 0 : index
    %9 = vector.load %arg8[%c0_5, %c0_6, %c0_7] : memref<2x6x32xf32, #tpu.memory_space<vmem>>, vector<1x6x32xf32>
    %10 = vector.shape_cast %9 : vector<1x6x32xf32> to vector<6x32xf32>
    %11 = vector.extract_strided_slice %10 {offsets = [0, 0], sizes = [1, 32], strides = [1, 1]} : vector<6x32xf32> to vector<1x32xf32>
    %12 = vector.extract_strided_slice %10 {offsets = [1, 0], sizes = [1, 32], strides = [1, 1]} : vector<6x32xf32> to vector<1x32xf32>
    %13 = vector.extract_strided_slice %10 {offsets = [2, 0], sizes = [1, 32], strides = [1, 1]} : vector<6x32xf32> to vector<1x32xf32>
    %14 = vector.extract_strided_slice %10 {offsets = [3, 0], sizes = [1, 32], strides = [1, 1]} : vector<6x32xf32> to vector<1x32xf32>
    %15 = vector.extract_strided_slice %10 {offsets = [4, 0], sizes = [1, 32], strides = [1, 1]} : vector<6x32xf32> to vector<1x32xf32>
    %16 = vector.extract_strided_slice %10 {offsets = [5, 0], sizes = [1, 32], strides = [1, 1]} : vector<6x32xf32> to vector<1x32xf32>
    %c0_8 = arith.constant 0 : index
    %c0_9 = arith.constant 0 : index
    %c0_10 = arith.constant 0 : index
    %17 = vector.load %arg5[%c0_8, %c0_9, %c0_10] : memref<2x32x96xf32, #tpu.memory_space<vmem>>, vector<1x32x96xf32>
    %18 = vector.shape_cast %17 : vector<1x32x96xf32> to vector<32x96xf32>
    %19 = vector.extract_strided_slice %18 {offsets = [0, 0], sizes = [32, 32], strides = [1, 1]} : vector<32x96xf32> to vector<32x32xf32>
    %20 = vector.extract_strided_slice %18 {offsets = [0, 32], sizes = [32, 64], strides = [1, 1]} : vector<32x96xf32> to vector<32x64xf32>
    %c0_11 = arith.constant 0 : index
    %c0_12 = arith.constant 0 : index
    %c0_13 = arith.constant 0 : index
    %21 = vector.load %arg3[%c0_11, %c0_12, %c0_13] : memref<2x32x96xf32, #tpu.memory_space<vmem>>, vector<1x32x96xf32>
    %22 = vector.shape_cast %21 : vector<1x32x96xf32> to vector<32x96xf32>
    %cst_14 = arith.constant dense<0.000000e+00> : vector<40x96xf32>
    %23 = tpu.matmul %8, %22, %cst_14 {dimension_numbers = #tpu.dot_dimension_numbers<[1], [0], [0], [1], [0, 0, 1, 1], [], []>} : vector<40x32xf32>, vector<32x96xf32>, vector<40x96xf32> -> vector<40x96xf32>
    %c0_15 = arith.constant 0 : index
    %c0_16 = arith.constant 0 : index
    %c0_17 = arith.constant 0 : index
    %24 = vector.load %arg4[%c0_15, %c0_16, %c0_17] : memref<2x1x96xf32, #tpu.memory_space<vmem>>, vector<1x1x96xf32>
    %25 = vector.shape_cast %24 : vector<1x1x96xf32> to vector<1x96xf32>
    %26 = vector.broadcast %25 : vector<1x96xf32> to vector<40x96xf32>
    %27 = arith.addf %23, %26 : vector<40x96xf32>
    %28 = vector.shape_cast %27 : vector<40x96xf32> to vector<8x5x96xf32>
    %29 = vector.extract_strided_slice %28 {offsets = [0, 0, 0], sizes = [8, 5, 8], strides = [1, 1, 1]} : vector<8x5x96xf32> to vector<8x5x8xf32>
    %30 = vector.extract_strided_slice %28 {offsets = [0, 0, 32], sizes = [8, 5, 8], strides = [1, 1, 1]} : vector<8x5x96xf32> to vector<8x5x8xf32>
    %31 = vector.extract_strided_slice %28 {offsets = [0, 0, 64], sizes = [8, 5, 8], strides = [1, 1, 1]} : vector<8x5x96xf32> to vector<8x5x8xf32>
    "tpu.trace_start"() <{level = 10 : i32, message = "npd,nqd->npq"}> : () -> ()
    %cst_18 = arith.constant dense<0.000000e+00> : vector<8x5x5xf32>
    %32 = tpu.matmul %29, %30, %cst_18 {dimension_numbers = #tpu.dot_dimension_numbers<[2], [2], [1], [1], [0, 0, 0, 1, 1, 1], [0], [0]>} : vector<8x5x8xf32>, vector<8x5x8xf32>, vector<8x5x5xf32> -> vector<8x5x5xf32>
    "tpu.trace_stop"() : () -> ()
    %cst_19 = arith.constant 0.353553385 : f32
    %33 = vector.broadcast %cst_19 : f32 to vector<8x5x5xf32>
    %34 = arith.mulf %32, %33 : vector<8x5x5xf32>
    %c0_20 = arith.constant 0 : index
    %c0_21 = arith.constant 0 : index
    %c0_22 = arith.constant 0 : index
    %35 = vector.load %arg12[%c0_20, %c0_21, %c0_22] : memref<32x5x5xf32, #tpu.memory_space<vmem>>, vector<8x5x5xf32>
    tpu.vector_store %arg12[%c0_20, %c0_21, %c0_22], %34 {strides = array<i32>} : memref<32x5x5xf32, #tpu.memory_space<vmem>>, vector<8x5x5xf32>,
    %cst_23 = arith.constant dense<0xFF800000> : vector<8x5xf32>
    %36 = vector.multi_reduction <maximumf>, %34, %cst_23 [2] : vector<8x5x5xf32> to vector<8x5xf32>
    %37 = vector.shape_cast %36 : vector<8x5xf32> to vector<8x5x1xf32>
    %38 = vector.broadcast %37 : vector<8x5x1xf32> to vector<8x5x5xf32>
    %39 = arith.subf %34, %38 : vector<8x5x5xf32>
    %40 = math.exp %39 : vector<8x5x5xf32>
    %cst_24 = arith.constant dense<0.000000e+00> : vector<8x5xf32>
    %41 = vector.multi_reduction <add>, %40, %cst_24 [2] : vector<8x5x5xf32> to vector<8x5xf32>
    %42 = vector.shape_cast %41 : vector<8x5xf32> to vector<8x5x1xf32>
    %43 = tpu.reciprocal %42 {approx = true} : vector<8x5x1xf32> -> vector<8x5x1xf32>
    %44 = vector.broadcast %43 : vector<8x5x1xf32> to vector<8x5x5xf32>
    %45 = arith.mulf %40, %44 : vector<8x5x5xf32>
    "tpu.trace_start"() <{level = 10 : i32, message = "npq,nqd->npd"}> : () -> ()
    %cst_25 = arith.constant dense<0.000000e+00> : vector<8x5x8xf32>
    %46 = tpu.matmul %45, %31, %cst_25 {dimension_numbers = #tpu.dot_dimension_numbers<[2], [1], [1], [2], [0, 0, 0, 1, 1, 2], [0], [0]>} : vector<8x5x5xf32>, vector<8x5x8xf32>, vector<8x5x8xf32> -> vector<8x5x8xf32>
    "tpu.trace_stop"() : () -> ()
    %47 = vector.extract_strided_slice %28 {offsets = [0, 0, 8], sizes = [8, 5, 8], strides = [1, 1, 1]} : vector<8x5x96xf32> to vector<8x5x8xf32>
    %48 = vector.extract_strided_slice %28 {offsets = [0, 0, 40], sizes = [8, 5, 8], strides = [1, 1, 1]} : vector<8x5x96xf32> to vector<8x5x8xf32>
    %49 = vector.extract_strided_slice %28 {offsets = [0, 0, 72], sizes = [8, 5, 8], strides = [1, 1, 1]} : vector<8x5x96xf32> to vector<8x5x8xf32>
    "tpu.trace_start"() <{level = 10 : i32, message = "npd,nqd->npq"}> : () -> ()
    %cst_26 = arith.constant dense<0.000000e+00> : vector<8x5x5xf32>
    %50 = tpu.matmul %47, %48, %cst_26 {dimension_numbers = #tpu.dot_dimension_numbers<[2], [2], [1], [1], [0, 0, 0, 1, 1, 1], [0], [0]>} : vector<8x5x8xf32>, vector<8x5x8xf32>, vector<8x5x5xf32> -> vector<8x5x5xf32>
    "tpu.trace_stop"() : () -> ()
    %cst_27 = arith.constant 0.353553385 : f32
    %51 = vector.broadcast %cst_27 : f32 to vector<8x5x5xf32>
    %52 = arith.mulf %50, %51 : vector<8x5x5xf32>
    %c8 = arith.constant 8 : index
    %c0_28 = arith.constant 0 : index
    %c0_29 = arith.constant 0 : index
    %53 = vector.load %arg12[%c8, %c0_28, %c0_29] : memref<32x5x5xf32, #tpu.memory_space<vmem>>, vector<8x5x5xf32>
    tpu.vector_store %arg12[%c8, %c0_28, %c0_29], %52 {strides = array<i32>} : memref<32x5x5xf32, #tpu.memory_space<vmem>>, vector<8x5x5xf32>,
    %cst_30 = arith.constant dense<0xFF800000> : vector<8x5xf32>
    %54 = vector.multi_reduction <maximumf>, %52, %cst_30 [2] : vector<8x5x5xf32> to vector<8x5xf32>
    %55 = vector.shape_cast %54 : vector<8x5xf32> to vector<8x5x1xf32>
    %56 = vector.broadcast %55 : vector<8x5x1xf32> to vector<8x5x5xf32>
    %57 = arith.subf %52, %56 : vector<8x5x5xf32>
    %58 = math.exp %57 : vector<8x5x5xf32>
    %cst_31 = arith.constant dense<0.000000e+00> : vector<8x5xf32>
    %59 = vector.multi_reduction <add>, %58, %cst_31 [2] : vector<8x5x5xf32> to vector<8x5xf32>
    %60 = vector.shape_cast %59 : vector<8x5xf32> to vector<8x5x1xf32>
    %61 = tpu.reciprocal %60 {approx = true} : vector<8x5x1xf32> -> vector<8x5x1xf32>
    %62 = vector.broadcast %61 : vector<8x5x1xf32> to vector<8x5x5xf32>
    %63 = arith.mulf %58, %62 : vector<8x5x5xf32>
    "tpu.trace_start"() <{level = 10 : i32, message = "npq,nqd->npd"}> : () -> ()
    %cst_32 = arith.constant dense<0.000000e+00> : vector<8x5x8xf32>
    %64 = tpu.matmul %63, %49, %cst_32 {dimension_numbers = #tpu.dot_dimension_numbers<[2], [1], [1], [2], [0, 0, 0, 1, 1, 2], [0], [0]>} : vector<8x5x5xf32>, vector<8x5x8xf32>, vector<8x5x8xf32> -> vector<8x5x8xf32>
    "tpu.trace_stop"() : () -> ()
    %65 = vector.extract_strided_slice %28 {offsets = [0, 0, 16], sizes = [8, 5, 8], strides = [1, 1, 1]} : vector<8x5x96xf32> to vector<8x5x8xf32>
    %66 = vector.extract_strided_slice %28 {offsets = [0, 0, 48], sizes = [8, 5, 8], strides = [1, 1, 1]} : vector<8x5x96xf32> to vector<8x5x8xf32>
    %67 = vector.extract_strided_slice %28 {offsets = [0, 0, 80], sizes = [8, 5, 8], strides = [1, 1, 1]} : vector<8x5x96xf32> to vector<8x5x8xf32>
    "tpu.trace_start"() <{level = 10 : i32, message = "npd,nqd->npq"}> : () -> ()
    %cst_33 = arith.constant dense<0.000000e+00> : vector<8x5x5xf32>
    %68 = tpu.matmul %65, %66, %cst_33 {dimension_numbers = #tpu.dot_dimension_numbers<[2], [2], [1], [1], [0, 0, 0, 1, 1, 1], [0], [0]>} : vector<8x5x8xf32>, vector<8x5x8xf32>, vector<8x5x5xf32> -> vector<8x5x5xf32>
    "tpu.trace_stop"() : () -> ()
    %cst_34 = arith.constant 0.353553385 : f32
    %69 = vector.broadcast %cst_34 : f32 to vector<8x5x5xf32>
    %70 = arith.mulf %68, %69 : vector<8x5x5xf32>
    %c16 = arith.constant 16 : index
    %c0_35 = arith.constant 0 : index
    %c0_36 = arith.constant 0 : index
    %71 = vector.load %arg12[%c16, %c0_35, %c0_36] : memref<32x5x5xf32, #tpu.memory_space<vmem>>, vector<8x5x5xf32>
    tpu.vector_store %arg12[%c16, %c0_35, %c0_36], %70 {strides = array<i32>} : memref<32x5x5xf32, #tpu.memory_space<vmem>>, vector<8x5x5xf32>,
    %cst_37 = arith.constant dense<0xFF800000> : vector<8x5xf32>
    %72 = vector.multi_reduction <maximumf>, %70, %cst_37 [2] : vector<8x5x5xf32> to vector<8x5xf32>
    %73 = vector.shape_cast %72 : vector<8x5xf32> to vector<8x5x1xf32>
    %74 = vector.broadcast %73 : vector<8x5x1xf32> to vector<8x5x5xf32>
    %75 = arith.subf %70, %74 : vector<8x5x5xf32>
    %76 = math.exp %75 : vector<8x5x5xf32>
    %cst_38 = arith.constant dense<0.000000e+00> : vector<8x5xf32>
    %77 = vector.multi_reduction <add>, %76, %cst_38 [2] : vector<8x5x5xf32> to vector<8x5xf32>
    %78 = vector.shape_cast %77 : vector<8x5xf32> to vector<8x5x1xf32>
    %79 = tpu.reciprocal %78 {approx = true} : vector<8x5x1xf32> -> vector<8x5x1xf32>
    %80 = vector.broadcast %79 : vector<8x5x1xf32> to vector<8x5x5xf32>
    %81 = arith.mulf %76, %80 : vector<8x5x5xf32>
    "tpu.trace_start"() <{level = 10 : i32, message = "npq,nqd->npd"}> : () -> ()
    %cst_39 = arith.constant dense<0.000000e+00> : vector<8x5x8xf32>
    %82 = tpu.matmul %81, %67, %cst_39 {dimension_numbers = #tpu.dot_dimension_numbers<[2], [1], [1], [2], [0, 0, 0, 1, 1, 2], [0], [0]>} : vector<8x5x5xf32>, vector<8x5x8xf32>, vector<8x5x8xf32> -> vector<8x5x8xf32>
    "tpu.trace_stop"() : () -> ()
    %83 = vector.extract_strided_slice %28 {offsets = [0, 0, 24], sizes = [8, 5, 8], strides = [1, 1, 1]} : vector<8x5x96xf32> to vector<8x5x8xf32>
    %84 = vector.extract_strided_slice %28 {offsets = [0, 0, 56], sizes = [8, 5, 8], strides = [1, 1, 1]} : vector<8x5x96xf32> to vector<8x5x8xf32>
    %85 = vector.extract_strided_slice %28 {offsets = [0, 0, 88], sizes = [8, 5, 8], strides = [1, 1, 1]} : vector<8x5x96xf32> to vector<8x5x8xf32>
    "tpu.trace_start"() <{level = 10 : i32, message = "npd,nqd->npq"}> : () -> ()
    %cst_40 = arith.constant dense<0.000000e+00> : vector<8x5x5xf32>
    %86 = tpu.matmul %83, %84, %cst_40 {dimension_numbers = #tpu.dot_dimension_numbers<[2], [2], [1], [1], [0, 0, 0, 1, 1, 1], [0], [0]>} : vector<8x5x8xf32>, vector<8x5x8xf32>, vector<8x5x5xf32> -> vector<8x5x5xf32>
    "tpu.trace_stop"() : () -> ()
    %cst_41 = arith.constant 0.353553385 : f32
    %87 = vector.broadcast %cst_41 : f32 to vector<8x5x5xf32>
    %88 = arith.mulf %86, %87 : vector<8x5x5xf32>
    %c24 = arith.constant 24 : index
    %c0_42 = arith.constant 0 : index
    %c0_43 = arith.constant 0 : index
    %89 = vector.load %arg12[%c24, %c0_42, %c0_43] : memref<32x5x5xf32, #tpu.memory_space<vmem>>, vector<8x5x5xf32>
    tpu.vector_store %arg12[%c24, %c0_42, %c0_43], %88 {strides = array<i32>} : memref<32x5x5xf32, #tpu.memory_space<vmem>>, vector<8x5x5xf32>,
    %cst_44 = arith.constant dense<0xFF800000> : vector<8x5xf32>
    %90 = vector.multi_reduction <maximumf>, %88, %cst_44 [2] : vector<8x5x5xf32> to vector<8x5xf32>
    %91 = vector.shape_cast %90 : vector<8x5xf32> to vector<8x5x1xf32>
    %92 = vector.broadcast %91 : vector<8x5x1xf32> to vector<8x5x5xf32>
    %93 = arith.subf %88, %92 : vector<8x5x5xf32>
    %94 = math.exp %93 : vector<8x5x5xf32>
    %cst_45 = arith.constant dense<0.000000e+00> : vector<8x5xf32>
    %95 = vector.multi_reduction <add>, %94, %cst_45 [2] : vector<8x5x5xf32> to vector<8x5xf32>
    %96 = vector.shape_cast %95 : vector<8x5xf32> to vector<8x5x1xf32>
    %97 = tpu.reciprocal %96 {approx = true} : vector<8x5x1xf32> -> vector<8x5x1xf32>
    %98 = vector.broadcast %97 : vector<8x5x1xf32> to vector<8x5x5xf32>
    %99 = arith.mulf %94, %98 : vector<8x5x5xf32>
    "tpu.trace_start"() <{level = 10 : i32, message = "npq,nqd->npd"}> : () -> ()
    %cst_46 = arith.constant dense<0.000000e+00> : vector<8x5x8xf32>
    %100 = tpu.matmul %99, %85, %cst_46 {dimension_numbers = #tpu.dot_dimension_numbers<[2], [1], [1], [2], [0, 0, 0, 1, 1, 2], [0], [0]>} : vector<8x5x5xf32>, vector<8x5x8xf32>, vector<8x5x8xf32> -> vector<8x5x8xf32>
    "tpu.trace_stop"() : () -> ()
    %101 = tpu.concatenate %46, %64, %82, %100 in 2 : vector<8x5x8xf32>, vector<8x5x8xf32>, vector<8x5x8xf32>, vector<8x5x8xf32> -> vector<8x5x32xf32>
    %102 = vector.shape_cast %101 : vector<8x5x32xf32> to vector<40x32xf32>
    %cst_47 = arith.constant dense<0.000000e+00> : vector<40x32xf32>
    %103 = tpu.matmul %102, %19, %cst_47 {dimension_numbers = #tpu.dot_dimension_numbers<[1], [0], [0], [1], [0, 0, 1, 1], [], []>} : vector<40x32xf32>, vector<32x32xf32>, vector<40x32xf32> -> vector<40x32xf32>
    %104 = vector.broadcast %11 : vector<1x32xf32> to vector<40x32xf32>
    %105 = arith.addf %103, %104 : vector<40x32xf32>
    %106 = arith.addf %8, %105 : vector<40x32xf32>
    %cst_48 = arith.constant dense<0.000000e+00> : vector<32xf32>
    %107 = vector.multi_reduction <add>, %106, %cst_48 [0] : vector<40x32xf32> to vector<32xf32>
    %108 = vector.shape_cast %107 : vector<32xf32> to vector<1x32xf32>
    %cst_49 = arith.constant 4.000000e+01 : f32
    %109 = vector.broadcast %cst_49 : f32 to vector<1x32xf32>
    %110 = arith.divf %108, %109 : vector<1x32xf32>
    %111 = arith.mulf %106, %106 : vector<40x32xf32>
    %cst_50 = arith.constant dense<0.000000e+00> : vector<32xf32>
    %112 = vector.multi_reduction <add>, %111, %cst_50 [0] : vector<40x32xf32> to vector<32xf32>
    %113 = vector.shape_cast %112 : vector<32xf32> to vector<1x32xf32>
    %cst_51 = arith.constant 4.000000e+01 : f32
    %114 = vector.broadcast %cst_51 : f32 to vector<1x32xf32>
    %115 = arith.divf %113, %114 : vector<1x32xf32>
    %116 = arith.mulf %110, %110 : vector<1x32xf32>
    %117 = arith.subf %115, %116 : vector<1x32xf32>
    %118 = vector.broadcast %110 : vector<1x32xf32> to vector<40x32xf32>
    %119 = arith.subf %106, %118 : vector<40x32xf32>
    %cst_52 = arith.constant 9.99999974E-6 : f32
    %120 = vector.broadcast %cst_52 : f32 to vector<1x32xf32>
    %121 = arith.addf %117, %120 : vector<1x32xf32>
    %122 = math.rsqrt %121 : vector<1x32xf32>
    %123 = vector.broadcast %122 : vector<1x32xf32> to vector<40x32xf32>
    %124 = arith.mulf %119, %123 : vector<40x32xf32>
    %125 = vector.broadcast %12 : vector<1x32xf32> to vector<40x32xf32>
    %126 = arith.mulf %124, %125 : vector<40x32xf32>
    %127 = vector.broadcast %13 : vector<1x32xf32> to vector<40x32xf32>
    %128 = arith.addf %126, %127 : vector<40x32xf32>
    %cst_53 = arith.constant dense<0.000000e+00> : vector<40x64xf32>
    %129 = tpu.matmul %128, %20, %cst_53 {dimension_numbers = #tpu.dot_dimension_numbers<[1], [0], [0], [1], [0, 0, 1, 1], [], []>} : vector<40x32xf32>, vector<32x64xf32>, vector<40x64xf32> -> vector<40x64xf32>
    %c0_54 = arith.constant 0 : index
    %c0_55 = arith.constant 0 : index
    %c0_56 = arith.constant 0 : index
    %130 = vector.load %arg6[%c0_54, %c0_55, %c0_56] : memref<2x1x64xf32, #tpu.memory_space<vmem>>, vector<1x1x64xf32>
    %131 = vector.shape_cast %130 : vector<1x1x64xf32> to vector<1x64xf32>
    %132 = vector.broadcast %131 : vector<1x64xf32> to vector<40x64xf32>
    %133 = arith.addf %129, %132 : vector<40x64xf32>
    %cst_57 = arith.constant 5.000000e-01 : f32
    %134 = vector.broadcast %cst_57 : f32 to vector<40x64xf32>
    %135 = arith.mulf %134, %133 : vector<40x64xf32>
    %cst_58 = arith.constant 0.707106769 : f32
    %136 = vector.broadcast %cst_58 : f32 to vector<40x64xf32>
    %137 = arith.mulf %133, %136 : vector<40x64xf32>
    %138 = math.erf %137 : vector<40x64xf32>
    %cst_59 = arith.constant 1.000000e+00 : f32
    %139 = vector.broadcast %cst_59 : f32 to vector<40x64xf32>
    %140 = arith.addf %139, %138 : vector<40x64xf32>
    %141 = arith.mulf %135, %140 : vector<40x64xf32>
    %c0_60 = arith.constant 0 : index
    %c0_61 = arith.constant 0 : index
    %c0_62 = arith.constant 0 : index
    %142 = vector.load %arg7[%c0_60, %c0_61, %c0_62] : memref<2x64x32xf32, #tpu.memory_space<vmem>>, vector<1x64x32xf32>
    %143 = vector.shape_cast %142 : vector<1x64x32xf32> to vector<64x32xf32>
    %cst_63 = arith.constant dense<0.000000e+00> : vector<40x32xf32>
    %144 = tpu.matmul %141, %143, %cst_63 {dimension_numbers = #tpu.dot_dimension_numbers<[1], [0], [0], [1], [0, 0, 1, 1], [], []>} : vector<40x64xf32>, vector<64x32xf32>, vector<40x32xf32> -> vector<40x32xf32>
    %145 = vector.broadcast %14 : vector<1x32xf32> to vector<40x32xf32>
    %146 = arith.addf %144, %145 : vector<40x32xf32>
    %147 = arith.addf %128, %146 : vector<40x32xf32>
    %cst_64 = arith.constant dense<0.000000e+00> : vector<32xf32>
    %148 = vector.multi_reduction <add>, %147, %cst_64 [0] : vector<40x32xf32> to vector<32xf32>
    %149 = vector.shape_cast %148 : vector<32xf32> to vector<1x32xf32>
    %cst_65 = arith.constant 4.000000e+01 : f32
    %150 = vector.broadcast %cst_65 : f32 to vector<1x32xf32>
    %151 = arith.divf %149, %150 : vector<1x32xf32>
    %152 = arith.mulf %147, %147 : vector<40x32xf32>
    %cst_66 = arith.constant dense<0.000000e+00> : vector<32xf32>
    %153 = vector.multi_reduction <add>, %152, %cst_66 [0] : vector<40x32xf32> to vector<32xf32>
    %154 = vector.shape_cast %153 : vector<32xf32> to vector<1x32xf32>
    %cst_67 = arith.constant 4.000000e+01 : f32
    %155 = vector.broadcast %cst_67 : f32 to vector<1x32xf32>
    %156 = arith.divf %154, %155 : vector<1x32xf32>
    %157 = arith.mulf %151, %151 : vector<1x32xf32>
    %158 = arith.subf %156, %157 : vector<1x32xf32>
    %159 = vector.broadcast %151 : vector<1x32xf32> to vector<40x32xf32>
    %160 = arith.subf %147, %159 : vector<40x32xf32>
    %cst_68 = arith.constant 9.99999974E-6 : f32
    %161 = vector.broadcast %cst_68 : f32 to vector<1x32xf32>
    %162 = arith.addf %158, %161 : vector<1x32xf32>
    %163 = math.rsqrt %162 : vector<1x32xf32>
    %164 = vector.broadcast %163 : vector<1x32xf32> to vector<40x32xf32>
    %165 = arith.mulf %160, %164 : vector<40x32xf32>
    %166 = vector.broadcast %15 : vector<1x32xf32> to vector<40x32xf32>
    %167 = arith.mulf %165, %166 : vector<40x32xf32>
    %168 = vector.broadcast %16 : vector<1x32xf32> to vector<40x32xf32>
    %169 = arith.addf %167, %168 : vector<40x32xf32>
    %c1 = arith.constant 1 : index
    %c0_69 = arith.constant 0 : index
    %c0_70 = arith.constant 0 : index
    %170 = vector.load %arg8[%c1, %c0_69, %c0_70] : memref<2x6x32xf32, #tpu.memory_space<vmem>>, vector<1x6x32xf32>
    %171 = vector.shape_cast %170 : vector<1x6x32xf32> to vector<6x32xf32>
    %172 = vector.extract_strided_slice %171 {offsets = [0, 0], sizes = [1, 32], strides = [1, 1]} : vector<6x32xf32> to vector<1x32xf32>
    %173 = vector.extract_strided_slice %171 {offsets = [1, 0], sizes = [1, 32], strides = [1, 1]} : vector<6x32xf32> to vector<1x32xf32>
    %174 = vector.extract_strided_slice %171 {offsets = [2, 0], sizes = [1, 32], strides = [1, 1]} : vector<6x32xf32> to vector<1x32xf32>
    %175 = vector.extract_strided_slice %171 {offsets = [3, 0], sizes = [1, 32], strides = [1, 1]} : vector<6x32xf32> to vector<1x32xf32>
    %176 = vector.extract_strided_slice %171 {offsets = [4, 0], sizes = [1, 32], strides = [1, 1]} : vector<6x32xf32> to vector<1x32xf32>
    %177 = vector.extract_strided_slice %171 {offsets = [5, 0], sizes = [1, 32], strides = [1, 1]} : vector<6x32xf32> to vector<1x32xf32>
    %c1_71 = arith.constant 1 : index
    %c0_72 = arith.constant 0 : index
    %c0_73 = arith.constant 0 : index
    %178 = vector.load %arg5[%c1_71, %c0_72, %c0_73] : memref<2x32x96xf32, #tpu.memory_space<vmem>>, vector<1x32x96xf32>
    %179 = vector.shape_cast %178 : vector<1x32x96xf32> to vector<32x96xf32>
    %180 = vector.extract_strided_slice %179 {offsets = [0, 0], sizes = [32, 32], strides = [1, 1]} : vector<32x96xf32> to vector<32x32xf32>
    %181 = vector.extract_strided_slice %179 {offsets = [0, 32], sizes = [32, 64], strides = [1, 1]} : vector<32x96xf32> to vector<32x64xf32>
    %c1_74 = arith.constant 1 : index
    %c0_75 = arith.constant 0 : index
    %c0_76 = arith.constant 0 : index
    %182 = vector.load %arg3[%c1_74, %c0_75, %c0_76] : memref<2x32x96xf32, #tpu.memory_space<vmem>>, vector<1x32x96xf32>
    %183 = vector.shape_cast %182 : vector<1x32x96xf32> to vector<32x96xf32>
    %cst_77 = arith.constant dense<0.000000e+00> : vector<40x96xf32>
    %184 = tpu.matmul %169, %183, %cst_77 {dimension_numbers = #tpu.dot_dimension_numbers<[1], [0], [0], [1], [0, 0, 1, 1], [], []>} : vector<40x32xf32>, vector<32x96xf32>, vector<40x96xf32> -> vector<40x96xf32>
    %c1_78 = arith.constant 1 : index
    %c0_79 = arith.constant 0 : index
    %c0_80 = arith.constant 0 : index
    %185 = vector.load %arg4[%c1_78, %c0_79, %c0_80] : memref<2x1x96xf32, #tpu.memory_space<vmem>>, vector<1x1x96xf32>
    %186 = vector.shape_cast %185 : vector<1x1x96xf32> to vector<1x96xf32>
    %187 = vector.broadcast %186 : vector<1x96xf32> to vector<40x96xf32>
    %188 = arith.addf %184, %187 : vector<40x96xf32>
    %189 = vector.shape_cast %188 : vector<40x96xf32> to vector<8x5x96xf32>
    %190 = vector.extract_strided_slice %189 {offsets = [0, 0, 0], sizes = [8, 5, 8], strides = [1, 1, 1]} : vector<8x5x96xf32> to vector<8x5x8xf32>
    %191 = vector.extract_strided_slice %189 {offsets = [0, 0, 32], sizes = [8, 5, 8], strides = [1, 1, 1]} : vector<8x5x96xf32> to vector<8x5x8xf32>
    %192 = vector.extract_strided_slice %189 {offsets = [0, 0, 64], sizes = [8, 5, 8], strides = [1, 1, 1]} : vector<8x5x96xf32> to vector<8x5x8xf32>
    "tpu.trace_start"() <{level = 10 : i32, message = "npd,nqd->npq"}> : () -> ()
    %cst_81 = arith.constant dense<0.000000e+00> : vector<8x5x5xf32>
    %193 = tpu.matmul %190, %191, %cst_81 {dimension_numbers = #tpu.dot_dimension_numbers<[2], [2], [1], [1], [0, 0, 0, 1, 1, 1], [0], [0]>} : vector<8x5x8xf32>, vector<8x5x8xf32>, vector<8x5x5xf32> -> vector<8x5x5xf32>
    "tpu.trace_stop"() : () -> ()
    %cst_82 = arith.constant 0.353553385 : f32
    %194 = vector.broadcast %cst_82 : f32 to vector<8x5x5xf32>
    %195 = arith.mulf %193, %194 : vector<8x5x5xf32>
    %c0_83 = arith.constant 0 : index
    %c0_84 = arith.constant 0 : index
    %c0_85 = arith.constant 0 : index
    %196 = vector.load %arg12[%c0_83, %c0_84, %c0_85] : memref<32x5x5xf32, #tpu.memory_space<vmem>>, vector<8x5x5xf32>
    %197 = arith.addf %195, %196 : vector<8x5x5xf32>
    %c0_86 = arith.constant 0 : index
    %c0_87 = arith.constant 0 : index
    %c0_88 = arith.constant 0 : index
    %198 = vector.load %arg12[%c0_86, %c0_87, %c0_88] : memref<32x5x5xf32, #tpu.memory_space<vmem>>, vector<8x5x5xf32>
    tpu.vector_store %arg12[%c0_86, %c0_87, %c0_88], %197 {strides = array<i32>} : memref<32x5x5xf32, #tpu.memory_space<vmem>>, vector<8x5x5xf32>,
    %cst_89 = arith.constant dense<0xFF800000> : vector<8x5xf32>
    %199 = vector.multi_reduction <maximumf>, %197, %cst_89 [2] : vector<8x5x5xf32> to vector<8x5xf32>
    %200 = vector.shape_cast %199 : vector<8x5xf32> to vector<8x5x1xf32>
    %201 = vector.broadcast %200 : vector<8x5x1xf32> to vector<8x5x5xf32>
    %202 = arith.subf %197, %201 : vector<8x5x5xf32>
    %203 = math.exp %202 : vector<8x5x5xf32>
    %cst_90 = arith.constant dense<0.000000e+00> : vector<8x5xf32>
    %204 = vector.multi_reduction <add>, %203, %cst_90 [2] : vector<8x5x5xf32> to vector<8x5xf32>
    %205 = vector.shape_cast %204 : vector<8x5xf32> to vector<8x5x1xf32>
    %206 = tpu.reciprocal %205 {approx = true} : vector<8x5x1xf32> -> vector<8x5x1xf32>
    %207 = vector.broadcast %206 : vector<8x5x1xf32> to vector<8x5x5xf32>
    %208 = arith.mulf %203, %207 : vector<8x5x5xf32>
    "tpu.trace_start"() <{level = 10 : i32, message = "npq,nqd->npd"}> : () -> ()
    %cst_91 = arith.constant dense<0.000000e+00> : vector<8x5x8xf32>
    %209 = tpu.matmul %208, %192, %cst_91 {dimension_numbers = #tpu.dot_dimension_numbers<[2], [1], [1], [2], [0, 0, 0, 1, 1, 2], [0], [0]>} : vector<8x5x5xf32>, vector<8x5x8xf32>, vector<8x5x8xf32> -> vector<8x5x8xf32>
    "tpu.trace_stop"() : () -> ()
    %210 = vector.extract_strided_slice %189 {offsets = [0, 0, 8], sizes = [8, 5, 8], strides = [1, 1, 1]} : vector<8x5x96xf32> to vector<8x5x8xf32>
    %211 = vector.extract_strided_slice %189 {offsets = [0, 0, 40], sizes = [8, 5, 8], strides = [1, 1, 1]} : vector<8x5x96xf32> to vector<8x5x8xf32>
    %212 = vector.extract_strided_slice %189 {offsets = [0, 0, 72], sizes = [8, 5, 8], strides = [1, 1, 1]} : vector<8x5x96xf32> to vector<8x5x8xf32>
    "tpu.trace_start"() <{level = 10 : i32, message = "npd,nqd->npq"}> : () -> ()
    %cst_92 = arith.constant dense<0.000000e+00> : vector<8x5x5xf32>
    %213 = tpu.matmul %210, %211, %cst_92 {dimension_numbers = #tpu.dot_dimension_numbers<[2], [2], [1], [1], [0, 0, 0, 1, 1, 1], [0], [0]>} : vector<8x5x8xf32>, vector<8x5x8xf32>, vector<8x5x5xf32> -> vector<8x5x5xf32>
    "tpu.trace_stop"() : () -> ()
    %cst_93 = arith.constant 0.353553385 : f32
    %214 = vector.broadcast %cst_93 : f32 to vector<8x5x5xf32>
    %215 = arith.mulf %213, %214 : vector<8x5x5xf32>
    %c8_94 = arith.constant 8 : index
    %c0_95 = arith.constant 0 : index
    %c0_96 = arith.constant 0 : index
    %216 = vector.load %arg12[%c8_94, %c0_95, %c0_96] : memref<32x5x5xf32, #tpu.memory_space<vmem>>, vector<8x5x5xf32>
    %217 = arith.addf %215, %216 : vector<8x5x5xf32>
    %c8_97 = arith.constant 8 : index
    %c0_98 = arith.constant 0 : index
    %c0_99 = arith.constant 0 : index
    %218 = vector.load %arg12[%c8_97, %c0_98, %c0_99] : memref<32x5x5xf32, #tpu.memory_space<vmem>>, vector<8x5x5xf32>
    tpu.vector_store %arg12[%c8_97, %c0_98, %c0_99], %217 {strides = array<i32>} : memref<32x5x5xf32, #tpu.memory_space<vmem>>, vector<8x5x5xf32>,
    %cst_100 = arith.constant dense<0xFF800000> : vector<8x5xf32>
    %219 = vector.multi_reduction <maximumf>, %217, %cst_100 [2] : vector<8x5x5xf32> to vector<8x5xf32>
    %220 = vector.shape_cast %219 : vector<8x5xf32> to vector<8x5x1xf32>
    %221 = vector.broadcast %220 : vector<8x5x1xf32> to vector<8x5x5xf32>
    %222 = arith.subf %217, %221 : vector<8x5x5xf32>
    %223 = math.exp %222 : vector<8x5x5xf32>
    %cst_101 = arith.constant dense<0.000000e+00> : vector<8x5xf32>
    %224 = vector.multi_reduction <add>, %223, %cst_101 [2] : vector<8x5x5xf32> to vector<8x5xf32>
    %225 = vector.shape_cast %224 : vector<8x5xf32> to vector<8x5x1xf32>
    %226 = tpu.reciprocal %225 {approx = true} : vector<8x5x1xf32> -> vector<8x5x1xf32>
    %227 = vector.broadcast %226 : vector<8x5x1xf32> to vector<8x5x5xf32>
    %228 = arith.mulf %223, %227 : vector<8x5x5xf32>
    "tpu.trace_start"() <{level = 10 : i32, message = "npq,nqd->npd"}> : () -> ()
    %cst_102 = arith.constant dense<0.000000e+00> : vector<8x5x8xf32>
    %229 = tpu.matmul %228, %212, %cst_102 {dimension_numbers = #tpu.dot_dimension_numbers<[2], [1], [1], [2], [0, 0, 0, 1, 1, 2], [0], [0]>} : vector<8x5x5xf32>, vector<8x5x8xf32>, vector<8x5x8xf32> -> vector<8x5x8xf32>
    "tpu.trace_stop"() : () -> ()
    %230 = vector.extract_strided_slice %189 {offsets = [0, 0, 16], sizes = [8, 5, 8], strides = [1, 1, 1]} : vector<8x5x96xf32> to vector<8x5x8xf32>
    %231 = vector.extract_strided_slice %189 {offsets = [0, 0, 48], sizes = [8, 5, 8], strides = [1, 1, 1]} : vector<8x5x96xf32> to vector<8x5x8xf32>
    %232 = vector.extract_strided_slice %189 {offsets = [0, 0, 80], sizes = [8, 5, 8], strides = [1, 1, 1]} : vector<8x5x96xf32> to vector<8x5x8xf32>
    "tpu.trace_start"() <{level = 10 : i32, message = "npd,nqd->npq"}> : () -> ()
    %cst_103 = arith.constant dense<0.000000e+00> : vector<8x5x5xf32>
    %233 = tpu.matmul %230, %231, %cst_103 {dimension_numbers = #tpu.dot_dimension_numbers<[2], [2], [1], [1], [0, 0, 0, 1, 1, 1], [0], [0]>} : vector<8x5x8xf32>, vector<8x5x8xf32>, vector<8x5x5xf32> -> vector<8x5x5xf32>
    "tpu.trace_stop"() : () -> ()
    %cst_104 = arith.constant 0.353553385 : f32
    %234 = vector.broadcast %cst_104 : f32 to vector<8x5x5xf32>
    %235 = arith.mulf %233, %234 : vector<8x5x5xf32>
    %c16_105 = arith.constant 16 : index
    %c0_106 = arith.constant 0 : index
    %c0_107 = arith.constant 0 : index
    %236 = vector.load %arg12[%c16_105, %c0_106, %c0_107] : memref<32x5x5xf32, #tpu.memory_space<vmem>>, vector<8x5x5xf32>
    %237 = arith.addf %235, %236 : vector<8x5x5xf32>
    %c16_108 = arith.constant 16 : index
    %c0_109 = arith.constant 0 : index
    %c0_110 = arith.constant 0 : index
    %238 = vector.load %arg12[%c16_108, %c0_109, %c0_110] : memref<32x5x5xf32, #tpu.memory_space<vmem>>, vector<8x5x5xf32>
    tpu.vector_store %arg12[%c16_108, %c0_109, %c0_110], %237 {strides = array<i32>} : memref<32x5x5xf32, #tpu.memory_space<vmem>>, vector<8x5x5xf32>,
    %cst_111 = arith.constant dense<0xFF800000> : vector<8x5xf32>
    %239 = vector.multi_reduction <maximumf>, %237, %cst_111 [2] : vector<8x5x5xf32> to vector<8x5xf32>
    %240 = vector.shape_cast %239 : vector<8x5xf32> to vector<8x5x1xf32>
    %241 = vector.broadcast %240 : vector<8x5x1xf32> to vector<8x5x5xf32>
    %242 = arith.subf %237, %241 : vector<8x5x5xf32>
    %243 = math.exp %242 : vector<8x5x5xf32>
    %cst_112 = arith.constant dense<0.000000e+00> : vector<8x5xf32>
    %244 = vector.multi_reduction <add>, %243, %cst_112 [2] : vector<8x5x5xf32> to vector<8x5xf32>
    %245 = vector.shape_cast %244 : vector<8x5xf32> to vector<8x5x1xf32>
    %246 = tpu.reciprocal %245 {approx = true} : vector<8x5x1xf32> -> vector<8x5x1xf32>
    %247 = vector.broadcast %246 : vector<8x5x1xf32> to vector<8x5x5xf32>
    %248 = arith.mulf %243, %247 : vector<8x5x5xf32>
    "tpu.trace_start"() <{level = 10 : i32, message = "npq,nqd->npd"}> : () -> ()
    %cst_113 = arith.constant dense<0.000000e+00> : vector<8x5x8xf32>
    %249 = tpu.matmul %248, %232, %cst_113 {dimension_numbers = #tpu.dot_dimension_numbers<[2], [1], [1], [2], [0, 0, 0, 1, 1, 2], [0], [0]>} : vector<8x5x5xf32>, vector<8x5x8xf32>, vector<8x5x8xf32> -> vector<8x5x8xf32>
    "tpu.trace_stop"() : () -> ()
    %250 = vector.extract_strided_slice %189 {offsets = [0, 0, 24], sizes = [8, 5, 8], strides = [1, 1, 1]} : vector<8x5x96xf32> to vector<8x5x8xf32>
    %251 = vector.extract_strided_slice %189 {offsets = [0, 0, 56], sizes = [8, 5, 8], strides = [1, 1, 1]} : vector<8x5x96xf32> to vector<8x5x8xf32>
    %252 = vector.extract_strided_slice %189 {offsets = [0, 0, 88], sizes = [8, 5, 8], strides = [1, 1, 1]} : vector<8x5x96xf32> to vector<8x5x8xf32>
    "tpu.trace_start"() <{level = 10 : i32, message = "npd,nqd->npq"}> : () -> ()
    %cst_114 = arith.constant dense<0.000000e+00> : vector<8x5x5xf32>
    %253 = tpu.matmul %250, %251, %cst_114 {dimension_numbers = #tpu.dot_dimension_numbers<[2], [2], [1], [1], [0, 0, 0, 1, 1, 1], [0], [0]>} : vector<8x5x8xf32>, vector<8x5x8xf32>, vector<8x5x5xf32> -> vector<8x5x5xf32>
    "tpu.trace_stop"() : () -> ()
    %cst_115 = arith.constant 0.353553385 : f32
    %254 = vector.broadcast %cst_115 : f32 to vector<8x5x5xf32>
    %255 = arith.mulf %253, %254 : vector<8x5x5xf32>
    %c24_116 = arith.constant 24 : index
    %c0_117 = arith.constant 0 : index
    %c0_118 = arith.constant 0 : index
    %256 = vector.load %arg12[%c24_116, %c0_117, %c0_118] : memref<32x5x5xf32, #tpu.memory_space<vmem>>, vector<8x5x5xf32>
    %257 = arith.addf %255, %256 : vector<8x5x5xf32>
    %c24_119 = arith.constant 24 : index
    %c0_120 = arith.constant 0 : index
    %c0_121 = arith.constant 0 : index
    %258 = vector.load %arg12[%c24_119, %c0_120, %c0_121] : memref<32x5x5xf32, #tpu.memory_space<vmem>>, vector<8x5x5xf32>
    tpu.vector_store %arg12[%c24_119, %c0_120, %c0_121], %257 {strides = array<i32>} : memref<32x5x5xf32, #tpu.memory_space<vmem>>, vector<8x5x5xf32>,
    %cst_122 = arith.constant dense<0xFF800000> : vector<8x5xf32>
    %259 = vector.multi_reduction <maximumf>, %257, %cst_122 [2] : vector<8x5x5xf32> to vector<8x5xf32>
    %260 = vector.shape_cast %259 : vector<8x5xf32> to vector<8x5x1xf32>
    %261 = vector.broadcast %260 : vector<8x5x1xf32> to vector<8x5x5xf32>
    %262 = arith.subf %257, %261 : vector<8x5x5xf32>
    %263 = math.exp %262 : vector<8x5x5xf32>
    %cst_123 = arith.constant dense<0.000000e+00> : vector<8x5xf32>
    %264 = vector.multi_reduction <add>, %263, %cst_123 [2] : vector<8x5x5xf32> to vector<8x5xf32>
    %265 = vector.shape_cast %264 : vector<8x5xf32> to vector<8x5x1xf32>
    %266 = tpu.reciprocal %265 {approx = true} : vector<8x5x1xf32> -> vector<8x5x1xf32>
    %267 = vector.broadcast %266 : vector<8x5x1xf32> to vector<8x5x5xf32>
    %268 = arith.mulf %263, %267 : vector<8x5x5xf32>
    "tpu.trace_start"() <{level = 10 : i32, message = "npq,nqd->npd"}> : () -> ()
    %cst_124 = arith.constant dense<0.000000e+00> : vector<8x5x8xf32>
    %269 = tpu.matmul %268, %252, %cst_124 {dimension_numbers = #tpu.dot_dimension_numbers<[2], [1], [1], [2], [0, 0, 0, 1, 1, 2], [0], [0]>} : vector<8x5x5xf32>, vector<8x5x8xf32>, vector<8x5x8xf32> -> vector<8x5x8xf32>
    "tpu.trace_stop"() : () -> ()
    %270 = tpu.concatenate %209, %229, %249, %269 in 2 : vector<8x5x8xf32>, vector<8x5x8xf32>, vector<8x5x8xf32>, vector<8x5x8xf32> -> vector<8x5x32xf32>
    %271 = vector.shape_cast %270 : vector<8x5x32xf32> to vector<40x32xf32>
    %cst_125 = arith.constant dense<0.000000e+00> : vector<40x32xf32>
    %272 = tpu.matmul %271, %180, %cst_125 {dimension_numbers = #tpu.dot_dimension_numbers<[1], [0], [0], [1], [0, 0, 1, 1], [], []>} : vector<40x32xf32>, vector<32x32xf32>, vector<40x32xf32> -> vector<40x32xf32>
    %273 = vector.broadcast %172 : vector<1x32xf32> to vector<40x32xf32>
    %274 = arith.addf %272, %273 : vector<40x32xf32>
    %275 = arith.addf %169, %274 : vector<40x32xf32>
    %cst_126 = arith.constant dense<0.000000e+00> : vector<32xf32>
    %276 = vector.multi_reduction <add>, %275, %cst_126 [0] : vector<40x32xf32> to vector<32xf32>
    %277 = vector.shape_cast %276 : vector<32xf32> to vector<1x32xf32>
    %cst_127 = arith.constant 4.000000e+01 : f32
    %278 = vector.broadcast %cst_127 : f32 to vector<1x32xf32>
    %279 = arith.divf %277, %278 : vector<1x32xf32>
    %280 = arith.mulf %275, %275 : vector<40x32xf32>
    %cst_128 = arith.constant dense<0.000000e+00> : vector<32xf32>
    %281 = vector.multi_reduction <add>, %280, %cst_128 [0] : vector<40x32xf32> to vector<32xf32>
    %282 = vector.shape_cast %281 : vector<32xf32> to vector<1x32xf32>
    %cst_129 = arith.constant 4.000000e+01 : f32
    %283 = vector.broadcast %cst_129 : f32 to vector<1x32xf32>
    %284 = arith.divf %282, %283 : vector<1x32xf32>
    %285 = arith.mulf %279, %279 : vector<1x32xf32>
    %286 = arith.subf %284, %285 : vector<1x32xf32>
    %287 = vector.broadcast %279 : vector<1x32xf32> to vector<40x32xf32>
    %288 = arith.subf %275, %287 : vector<40x32xf32>
    %cst_130 = arith.constant 9.99999974E-6 : f32
    %289 = vector.broadcast %cst_130 : f32 to vector<1x32xf32>
    %290 = arith.addf %286, %289 : vector<1x32xf32>
    %291 = math.rsqrt %290 : vector<1x32xf32>
    %292 = vector.broadcast %291 : vector<1x32xf32> to vector<40x32xf32>
    %293 = arith.mulf %288, %292 : vector<40x32xf32>
    %294 = vector.broadcast %173 : vector<1x32xf32> to vector<40x32xf32>
    %295 = arith.mulf %293, %294 : vector<40x32xf32>
    %296 = vector.broadcast %174 : vector<1x32xf32> to vector<40x32xf32>
    %297 = arith.addf %295, %296 : vector<40x32xf32>
    %cst_131 = arith.constant dense<0.000000e+00> : vector<40x64xf32>
    %298 = tpu.matmul %297, %181, %cst_131 {dimension_numbers = #tpu.dot_dimension_numbers<[1], [0], [0], [1], [0, 0, 1, 1], [], []>} : vector<40x32xf32>, vector<32x64xf32>, vector<40x64xf32> -> vector<40x64xf32>
    %c1_132 = arith.constant 1 : index
    %c0_133 = arith.constant 0 : index
    %c0_134 = arith.constant 0 : index
    %299 = vector.load %arg6[%c1_132, %c0_133, %c0_134] : memref<2x1x64xf32, #tpu.memory_space<vmem>>, vector<1x1x64xf32>
    %300 = vector.shape_cast %299 : vector<1x1x64xf32> to vector<1x64xf32>
    %301 = vector.broadcast %300 : vector<1x64xf32> to vector<40x64xf32>
    %302 = arith.addf %298, %301 : vector<40x64xf32>
    %cst_135 = arith.constant 5.000000e-01 : f32
    %303 = vector.broadcast %cst_135 : f32 to vector<40x64xf32>
    %304 = arith.mulf %303, %302 : vector<40x64xf32>
    %cst_136 = arith.constant 0.707106769 : f32
    %305 = vector.broadcast %cst_136 : f32 to vector<40x64xf32>
    %306 = arith.mulf %302, %305 : vector<40x64xf32>
    %307 = math.erf %306 : vector<40x64xf32>
    %cst_137 = arith.constant 1.000000e+00 : f32
    %308 = vector.broadcast %cst_137 : f32 to vector<40x64xf32>
    %309 = arith.addf %308, %307 : vector<40x64xf32>
    %310 = arith.mulf %304, %309 : vector<40x64xf32>
    %c1_138 = arith.constant 1 : index
    %c0_139 = arith.constant 0 : index
    %c0_140 = arith.constant 0 : index
    %311 = vector.load %arg7[%c1_138, %c0_139, %c0_140] : memref<2x64x32xf32, #tpu.memory_space<vmem>>, vector<1x64x32xf32>
    %312 = vector.shape_cast %311 : vector<1x64x32xf32> to vector<64x32xf32>
    %cst_141 = arith.constant dense<0.000000e+00> : vector<40x32xf32>
    %313 = tpu.matmul %310, %312, %cst_141 {dimension_numbers = #tpu.dot_dimension_numbers<[1], [0], [0], [1], [0, 0, 1, 1], [], []>} : vector<40x64xf32>, vector<64x32xf32>, vector<40x32xf32> -> vector<40x32xf32>
    %314 = vector.broadcast %175 : vector<1x32xf32> to vector<40x32xf32>
    %315 = arith.addf %313, %314 : vector<40x32xf32>
    %316 = arith.addf %297, %315 : vector<40x32xf32>
    %cst_142 = arith.constant dense<0.000000e+00> : vector<32xf32>
    %317 = vector.multi_reduction <add>, %316, %cst_142 [0] : vector<40x32xf32> to vector<32xf32>
    %318 = vector.shape_cast %317 : vector<32xf32> to vector<1x32xf32>
    %cst_143 = arith.constant 4.000000e+01 : f32
    %319 = vector.broadcast %cst_143 : f32 to vector<1x32xf32>
    %320 = arith.divf %318, %319 : vector<1x32xf32>
    %321 = arith.mulf %316, %316 : vector<40x32xf32>
    %cst_144 = arith.constant dense<0.000000e+00> : vector<32xf32>
    %322 = vector.multi_reduction <add>, %321, %cst_144 [0] : vector<40x32xf32> to vector<32xf32>
    %323 = vector.shape_cast %322 : vector<32xf32> to vector<1x32xf32>
    %cst_145 = arith.constant 4.000000e+01 : f32
    %324 = vector.broadcast %cst_145 : f32 to vector<1x32xf32>
    %325 = arith.divf %323, %324 : vector<1x32xf32>
    %326 = arith.mulf %320, %320 : vector<1x32xf32>
    %327 = arith.subf %325, %326 : vector<1x32xf32>
    %328 = vector.broadcast %320 : vector<1x32xf32> to vector<40x32xf32>
    %329 = arith.subf %316, %328 : vector<40x32xf32>
    %cst_146 = arith.constant 9.99999974E-6 : f32
    %330 = vector.broadcast %cst_146 : f32 to vector<1x32xf32>
    %331 = arith.addf %327, %330 : vector<1x32xf32>
    %332 = math.rsqrt %331 : vector<1x32xf32>
    %333 = vector.broadcast %332 : vector<1x32xf32> to vector<40x32xf32>
    %334 = arith.mulf %329, %333 : vector<40x32xf32>
    %335 = vector.broadcast %176 : vector<1x32xf32> to vector<40x32xf32>
    %336 = arith.mulf %334, %335 : vector<40x32xf32>
    %337 = vector.broadcast %177 : vector<1x32xf32> to vector<40x32xf32>
    %338 = arith.addf %336, %337 : vector<40x32xf32>
    %339 = vector.shape_cast %338 : vector<40x32xf32> to vector<8x5x32xf32>
    %340 = vector.extract_strided_slice %339 {offsets = [0, 4, 0], sizes = [8, 1, 32], strides = [1, 1, 1]} : vector<8x5x32xf32> to vector<8x1x32xf32>
    %341 = vector.shape_cast %340 : vector<8x1x32xf32> to vector<8x32xf32>
    %342 = vector.shape_cast %341 : vector<8x32xf32> to vector<2x4x32xf32>
    %343 = vector.extract_strided_slice %342 {offsets = [0, 0, 0], sizes = [2, 1, 32], strides = [1, 1, 1]} : vector<2x4x32xf32> to vector<2x1x32xf32>
    %344 = vector.shape_cast %343 : vector<2x1x32xf32> to vector<2x32xf32>
    %345 = vector.extract_strided_slice %342 {offsets = [0, 1, 0], sizes = [2, 1, 32], strides = [1, 1, 1]} : vector<2x4x32xf32> to vector<2x1x32xf32>
    %346 = vector.shape_cast %345 : vector<2x1x32xf32> to vector<2x32xf32>
    %347 = vector.extract_strided_slice %342 {offsets = [0, 2, 0], sizes = [2, 1, 32], strides = [1, 1, 1]} : vector<2x4x32xf32> to vector<2x1x32xf32>
    %348 = vector.shape_cast %347 : vector<2x1x32xf32> to vector<2x32xf32>
    %349 = vector.extract_strided_slice %342 {offsets = [0, 3, 0], sizes = [2, 1, 32], strides = [1, 1, 1]} : vector<2x4x32xf32> to vector<2x1x32xf32>
    %350 = vector.shape_cast %349 : vector<2x1x32xf32> to vector<2x32xf32>
    %351 = tpu.concatenate %344, %346, %348, %350 in 1 : vector<2x32xf32>, vector<2x32xf32>, vector<2x32xf32>, vector<2x32xf32> -> vector<2x128xf32>
    %c0_147 = arith.constant 0 : index
    %c0_148 = arith.constant 0 : index
    %352 = vector.load %arg9[%c0_147, %c0_148] : memref<128x6xf32, #tpu.memory_space<vmem>>, vector<128x6xf32>
    %cst_149 = arith.constant dense<0.000000e+00> : vector<2x6xf32>
    %353 = tpu.matmul %351, %352, %cst_149 {dimension_numbers = #tpu.dot_dimension_numbers<[1], [0], [0], [1], [0, 0, 1, 1], [], []>} : vector<2x128xf32>, vector<128x6xf32>, vector<2x6xf32> -> vector<2x6xf32>
    %c0_150 = arith.constant 0 : index
    %c0_151 = arith.constant 0 : index
    %354 = vector.load %arg10[%c0_150, %c0_151] : memref<1x6xf32, #tpu.memory_space<vmem>>, vector<1x6xf32>
    %355 = vector.broadcast %354 : vector<1x6xf32> to vector<2x6xf32>
    %356 = arith.addf %353, %355 : vector<2x6xf32>
    %c0_152 = arith.constant 0 : index
    %c0_153 = arith.constant 0 : index
    %357 = vector.load %arg11[%c0_152, %c0_153] : memref<2x6xf32, #tpu.memory_space<vmem>>, vector<2x6xf32>
    tpu.vector_store %arg11[%c0_152, %c0_153], %356 {strides = array<i32>} : memref<2x6xf32, #tpu.memory_space<vmem>>, vector<2x6xf32>,
    return
  }
}

</mosaic_0001>

<bundles_post_ra>
// kernel: tpu_custom_call.1
= control target key start
LH: loop header
LB: loop body
LE: loop exit
PB: predicated region body
PF: predicated region fallthrough
CT: control target
= control target key end

     0   :  { %vm61_vm0 = vcmask 1043456   ;;  %v29859_v2 = vmov 0.0   ;;  %vm23573_vm1 = vmmov 0   ;;  %vm45_vm2 = vcmask 31744   ;;  %s29845_s0 = inlined_call_operand.vmem [shape: f32[40,4], index: 0, kind: input, shape index: {}]   ;;  %s29846_s1 = inlined_call_operand.vmem [shape: f32[4,32], index: 1, kind: input, shape index: {}]   ;;  %s29847_s2 = inlined_call_operand.vmem [shape: f32[5,32], index: 2, kind: input, shape index: {}]   ;;  %s29848_s3 = inlined_call_operand.vmem [shape: f32[2,32,96], index: 3, kind: input, shape index: {}]   ;;  %s29849_s4 = inlined_call_operand.vmem [shape: f32[2,1,96], index: 4, kind: input, shape index: {}]   ;;  %s29850_s5 = inlined_call_operand.vmem [shape: f32[2,32,96], index: 5, kind: input, shape index: {}]   ;;  %s29851_s6 = inlined_call_operand.vmem [shape: f32[2,1,64], index: 6, kind: input, shape index: {}]   ;;  %s29852_s7 = inlined_call_operand.vmem [shape: f32[2,64,32], index: 7, kind: input, shape index: {}]   ;;  %s29853_s8 = inlined_call_operand.vmem [shape: f32[2,6,32], index: 8, kind: input, shape index: {}]   ;;  %s29854_s9 = inlined_call_operand.vmem [shape: f32[128,6], index: 9, kind: input, shape index: {}]   ;;  %s29855_s10 = inlined_call_operand.vmem [shape: f32[1,6], index: 10, kind: input, shape index: {}]   ;;  %s29856_s11 = inlined_call_operand.hbm [shape: f32[2,6], index: 11, kind: output, shape index: {}]  }
   0x1   :  { %v44_v0 = vld [vmem:[%s29846_s1] sm:$0xf]  ;;  %22245 = vmatprep.subr.mxu0 %v29859_v2  ;;  %22247 = vmatprep.mubr.msk.f32.mxu0 %vm23573_vm1, %v29859_v2 }
   0x2   :  { %v39_v1 = vld [vmem:[%s29845_s0] sm:$0xff]  ;;  %22246 = vmatpush3.msk.msra.mxu0 %vm61_vm0, %v44_v0  ;;  %22270 = vmatprep.mubr.msk.f32.mxu1 %vm23573_vm1, %v29859_v2 }
   0x3   :  { %16 = vsyncpa [#allocation4], 0  ;;  %22248 = vmatmul.mubr.msk.f32.vlgmr.msra.gmra.mrb[0].mxu0 %vm45_vm2, %v39_v1  ;;  %22285 = vmatprep.subr.mxu0 %v29859_v2  ;;  %v40_v3 = vld [vmem:[%s29845_s0 + $0x8] sm:$0xff]  ;;  %v41_v4 = vld [vmem:[%s29845_s0 + $0x10] sm:$0xff]  ;;  %v29857_v7 = vmov 0.0|0.0   ;;  %v164_v16 = vlaneseq  ;;  %vm832_vm3 = vcmask 261120  }
   0x4   :  { %22250 = vmatprep.mubr.msk.f32.mxu0 %vm23573_vm1, %v29859_v2  ;;  %v42_v5 = vld [vmem:[%s29845_s0 + $0x18] sm:$0xff]  ;;  %v43_v6 = vld [vmem:[%s29845_s0 + $0x20] sm:$0xff]  ;;  %23137 = vmatprep.subr.bf16.mxu1 %v29857_v7  ;;  %v537_v9 = vld [vmem:[%s29848_s3 + $0x8] sm:$0xff]  ;;  %v23575_v14 = vmov 1966171168   ;;  %s23576_s19 = smov 96  }
   0x5   :  { %v536_v8 = vld [vmem:[%s29848_s3] sm:$0xff]  ;;  %v538_v11 = vld [vmem:[%s29848_s3 + $0x10] sm:$0xff]  ;;  %v539_v12 = vld [vmem:[%s29848_s3 + $0x18] sm:$0xff]  ;;  %v162_v15 = vunpack.c.l.s4 %v23575_v14  ;;  %v23706_v18 = vshrl.u32 %v164_v16, 7  ;;  %vm1224_vm4 = vcmask 64512   ;;  %vm2112_vm5 = vcmask 36864  }
   0x6   :  { %v23138_v10 = vpack.c.bf16 %v537_v9, %v536_v8  ;;  %v23141_v13 = vpack.c.bf16 %v539_v12, %v538_v11  ;;  %v445_v20 = vld [vmem:[%s29847_s2] sm:$0x1f]  ;;  %s23577_s20 = smov 64   ;;  %s23578_s1 = smov 88   ;;  %vm2215_vm6 = vcmask 1044480   ;;  %vm2211_vm7 = vcmask 39936  }
   0x7   :  { %22251 = vmatmul.mubr.msk.f32.gmra.mrb[2].mxu0 %vm45_vm2, %v40_v3  ;;  %v163_v17 = vunpack.c.0.s8 %v162_v15  ;;  %30070 = vst [vmem:[#allocation6_spill] sm:$0xff] %v23706_v18  ;;  %v447_v22 = vcombine.high %v445_v20, %v445_v20  ;;  %s23579_s21 = smov 120   ;;  %s23580_s22 = smov 56   ;;  %vm6975_vm8 = vcmask 195584   ;;  %vm6966_vm9 = vcmask 130048  }
   0x8   :  { %22253 = vmatprep.mubr.msk.f32.mxu0 %vm23573_vm1, %v29859_v2  ;;  %23139 = vmatpush3.bf16.msra.mxu1 %v23138_v10  ;;  %s23581_s23 = smov 80   ;;  %s23582_s24 = smov 112   ;;  %vm9485_vm10 = vcmask 523264   ;;  %vm21433_vm11 = vcmask 785408   ;;  %vm21528_vm12 = vcmask 41984  }
   0x9   :  { %23140 = vmatprep.subr.bf16.mxu1 %v29857_v7  ;;  %v23709_v19 = vsub.s32 %v163_v17, %v23706_v18  ;;  %s23583_s25 = smov 48   ;;  %s23584_s26 = smov 72  }
   0xa   :  { %s23585_s27 = smov 104   ;;  %s23586_s28 = smov 40  }
   0xb   :  { %22254 = vmatmul.mubr.msk.f32.gmra.mrb[4].mxu0 %vm45_vm2, %v41_v4  ;;  %v454_v21 = vrot.slane %v445_v20, %v23709_v19  ;;  %v461_v25 = vrot.slane %v447_v22, %v23709_v19  ;;  %s23587_s29 = smov 8   ;;  %s23588_s30 = smov 16  }
   0xc   :  { %22256 = vmatprep.mubr.msk.f32.mxu0 %vm23573_vm1, %v29859_v2  ;;  %23142 = vmatpush3.bf16.msra.mxu1 %v23141_v13  ;;  %s23589_s12 = smov 24  }
   0xd   :  { %22295 = vmatprep.subr.mxu1 %v29859_v2  ;;  %v462_v23 = vcombine.high %v454_v21, %v454_v21  ;;  %v23717_v26 = vrot.slane %v454_v21, %v23709_v19  ;;  %v23726_v34 = vrot.slane %v461_v25, %v23709_v19 }
   0xf   :  { %22257 = vmatmul.mubr.msk.f32.gmra.mrb[6].mxu0 %vm45_vm2, %v42_v5  ;;  %v23720_v27 = vrot.slane %v462_v23, %v23709_v19  ;;  %v23730_v35 = vcombine.high %v23717_v26, %v23717_v26 }
  0x10   :  { %22259 = vmatprep.mubr.msk.f32.mxu0 %vm23573_vm1, %v29859_v2 }
  0x11   :  { %v23734_v36 = vcombine.high %v23720_v27, %v23720_v27 }
  0x13   :  { %22260 = vmatmul.mubr.msk.f32.gmra.mrb[8].mxu0 %vm45_vm2, %v43_v6 }
  0x14   :  { %22287 = vmatprep.mubr.msk.f32.mxu0 %vm23573_vm1, %v29859_v2 }
  0xd6   :  { %v131_v24 = vpop.f32.mrb[0].mxu0 }
  0xd7   :  { %v160_v28 = vcombine.high %v131_v24, %v131_v24  ;;  %v167_v29 = vrot.slane %v131_v24, %v23709_v19  ;;  %v22249_v30 = vpop.f32.mrb[1].mxu0 }
  0xd9   :  { %v174_v31 = vrot.slane %v160_v28, %v23709_v19  ;;  %v175_v32 = vcombine.high %v167_v29, %v167_v29  ;;  %v183_v33 = vrot.slane %v167_v29, %v23709_v19 }
  0xda   :  { %v136_v37 = vpop.f32.mrb[2].mxu0 }
  0xdb   :  { %v176_v38 = vcombine.high %v174_v31, %v174_v31  ;;  %v190_v39 = vrot.slane %v174_v31, %v23709_v19  ;;  %v197_v40 = vrot.slane %v175_v32, %v23709_v19  ;;  %v205_v41 = vcombine.high %v183_v33, %v183_v33  ;;  %v22252_v42 = vpop.f32.mrb[3].mxu0 }
  0xdc   :  { %v209_v43 = vcombine.high %v136_v37, %v136_v37  ;;  %v216_v44 = vrot.slane %v136_v37, %v23709_v19  ;;  %v23744_v49 = vadd.f32 %v23717_v26, %v183_v33 }
  0xdd   :  { %v204_v45 = vrot.slane %v176_v38, %v23709_v19  ;;  %v206_v46 = vcombine.high %v190_v39, %v190_v39  ;;  %v207_v47 = vcombine.high %v197_v40, %v197_v40  ;;  %v23741_v48 = vadd.f32 %v23720_v27, %v197_v40 }
  0xde   :  { %v23747_v50 = vadd.f32 %v23730_v35, %v205_v41  ;;  %v223_v51 = vrot.slane %v209_v43, %v23709_v19  ;;  %v224_v52 = vcombine.high %v216_v44, %v216_v44  ;;  %v141_v53 = vpop.f32.mrb[4].mxu0  ;;  %v23754_v56 = vadd.f32 %v23726_v34, %v190_v39 }
  0xdf   :  { %v208_v54 = vcombine.high %v204_v45, %v204_v45  ;;  %v23751_v55 = vadd.f32 %v23734_v36, %v207_v47  ;;  %v23757_v57 = vadd.f32 %v23717_v26, %v204_v45  ;;  %v22255_v58 = vpop.f32.mrb[5].mxu0  ;;  %v587_v59 = vcombine.low %v23744_v49, %v23741_v48 }
  0xe0   :  { %30071 = vst [vmem:[#allocation7_spill] sm:$0xff] %v23747_v50  ;;  %30073 = vst [vmem:[#allocation9_spill] sm:$0xff] %v23754_v56  ;;  %v225_v60 = vcombine.high %v223_v51, %v223_v51  ;;  %v232_v61 = vrot.slane %v216_v44, %v23709_v19  ;;  %v239_v62 = vrot.slane %v223_v51, %v23709_v19 }
  0xe1   :  { %30072 = vst [vmem:[#allocation8_spill] sm:$0xff] %v23751_v55  ;;  %30074 = vst [vmem:[#allocation10_spill] sm:$0xff] %v23757_v57  ;;  %v23764_v63 = vadd.f32 %v23720_v27, %v206_v46  ;;  %v23767_v0 = vadd.f32 %v23730_v35, %v208_v54  ;;  %v588_v1 = vcombine.low %v23747_v50, %v23751_v55 }
  0xe2   :  { %v246_v3 = vrot.slane %v224_v52, %v23709_v19  ;;  %v589_v4 = vcombine.low %v23754_v56, %v23757_v57  ;;  %v253_v5 = vrot.slane %v225_v60, %v23709_v19  ;;  %v254_v6 = vcombine.high %v232_v61, %v232_v61  ;;  %v146_v9 = vpop.f32.mrb[6].mxu0 }
  0xe3   :  { %30075 = vst [vmem:[#allocation11_spill] sm:$0xff] %v23764_v63  ;;  %30076 = vst [vmem:[#allocation12_spill] sm:$0xff] %v23767_v0  ;;  %v255_v8 = vcombine.high %v239_v62, %v239_v62  ;;  %v590_v10 = vcombine.low %v23764_v63, %v23767_v0  ;;  %v23778_v11 = vrot.slane %v587_v59, %v23709_v19  ;;  %v22258_v14 = vpop.f32.mrb[7].mxu0 }
  0xe4   :  { %v23781_v12 = vrot.slane %v588_v1, %v23709_v19  ;;  %v256_v13 = vcombine.high %v246_v3, %v246_v3  ;;  %v257_v15 = vcombine.high %v253_v5, %v253_v5  ;;  %v23784_v16 = vadd.f32 %v23734_v36, %v232_v61 }
  0xe5   :  { %v23787_v17 = vadd.f32 %v23726_v34, %v246_v3  ;;  %v23790_v20 = vadd.f32 %v23717_v26, %v254_v6  ;;  %v23796_v22 = vadd.f32 %v23730_v35, %v239_v62  ;;  %v23799_v23 = vadd.f32 %v23734_v36, %v253_v5 }
  0xe6   :  { %30077 = vst [vmem:[#allocation13_spill] sm:$0xff] %v23784_v16  ;;  %v23793_v21 = vadd.f32 %v23720_v27, %v256_v13  ;;  %v23802_v24 = vadd.f32 %v23726_v34, %v255_v8  ;;  %v23805_v25 = vadd.f32 %v23717_v26, %v257_v15  ;;  %v258_v29 = vcombine.high %v141_v53, %v141_v53  ;;  %v23810_v31 = vpop.f32.mrb[8].mxu0 }
  0xe7   :  { %30078 = vst [vmem:[#allocation14_spill] sm:$0xff] %v23787_v17  ;;  %30079 = vst [vmem:[#allocation15_spill] sm:$0xff] %v23790_v20  ;;  %v636_v28 = vcombine.low %v23784_v16, %v23787_v17  ;;  %v265_v30 = vrot.slane %v141_v53, %v23709_v19  ;;  %v638_v33 = vcombine.low %v23796_v22, %v23799_v23  ;;  %v22261_v39 = vpop.f32.mrb[9].mxu0 }
  0xe8   :  { %30080 = vst [vmem:[#allocation16_spill] sm:$0xff] %v23793_v21  ;;  %30081 = vst [vmem:[#allocation17_spill] sm:$0xff] %v23796_v22  ;;  %v637_v32 = vcombine.low %v23790_v20, %v23793_v21  ;;  %v307_v37 = vcombine.high %v146_v9, %v146_v9  ;;  %v314_v38 = vrot.slane %v146_v9, %v23709_v19 }
  0xe9   :  { %30082 = vst [vmem:[#allocation18_spill] sm:$0xff] %v23799_v23  ;;  %30083 = vst [vmem:[#allocation19_spill] sm:$0xff] %v23802_v24  ;;  %v23818_v40 = vrot.slane %v589_v4, %v23709_v19  ;;  %v272_v42 = vrot.slane %v258_v29, %v23709_v19  ;;  %v273_v43 = vcombine.high %v265_v30, %v265_v30 }
  0xea   :  { %30084 = vst [vmem:[#allocation20_spill] sm:$0xff] %v23805_v25  ;;  %v23824_v44 = vrot.slane %v636_v28, %v23709_v19  ;;  %v23827_v45 = vrot.slane %v637_v32, %v23709_v19  ;;  %v281_v46 = vrot.slane %v265_v30, %v23709_v19  ;;  %v321_v47 = vrot.slane %v307_v37, %v23709_v19 }
  0xeb   :  { %v274_v51 = vcombine.high %v272_v42, %v272_v42  ;;  %v288_v52 = vrot.slane %v272_v42, %v23709_v19  ;;  %v295_v53 = vrot.slane %v273_v43, %v23709_v19  ;;  %v322_v54 = vcombine.high %v314_v38, %v314_v38 }
  0xec   :  { %v23834_v58 = vrot.slane %v638_v33, %v23709_v19  ;;  %v303_v59 = vcombine.high %v281_v46, %v281_v46  ;;  %v323_v60 = vcombine.high %v321_v47, %v321_v47  ;;  %v330_v61 = vrot.slane %v314_v38, %v23709_v19 }
  0xed   :  { %v302_v62 = vrot.slane %v274_v51, %v23709_v19  ;;  %v304_v1 = vcombine.high %v288_v52, %v288_v52  ;;  %v305_v3 = vcombine.high %v295_v53, %v295_v53  ;;  %v23839_v4 = vadd.f32 %v23730_v35, %v295_v53 }
  0xee   :  { %v23842_v5 = vadd.f32 %v23720_v27, %v281_v46  ;;  %v23845_v6 = vadd.f32 %v23734_v36, %v303_v59  ;;  %v337_v8 = vrot.slane %v321_v47, %v23709_v19  ;;  %v344_v9 = vrot.slane %v322_v54, %v23709_v19 }
  0xef   :  { %30085 = vst [vmem:[#allocation21_spill] sm:$0xff] %v23839_v4  ;;  %v306_v13 = vcombine.high %v302_v62, %v302_v62  ;;  %v23850_v14 = vadd.f32 %v23726_v34, %v305_v3  ;;  %v23853_v15 = vadd.f32 %v23717_v26, %v288_v52  ;;  %v23856_v28 = vadd.f32 %v23720_v27, %v302_v62 }
  0xf0   :  { %30086 = vst [vmem:[#allocation22_spill] sm:$0xff] %v23842_v5  ;;  %30087 = vst [vmem:[#allocation23_spill] sm:$0xff] %v23845_v6  ;;  %v685_v29 = vcombine.low %v23842_v5, %v23839_v4  ;;  %v351_v30 = vrot.slane %v323_v60, %v23709_v19  ;;  %v352_v32 = vcombine.high %v330_v61, %v330_v61 }
  0xf1   :  { %30088 = vst [vmem:[#allocation24_spill] sm:$0xff] %v23850_v14  ;;  %30089 = vst [vmem:[#allocation25_spill] sm:$0xff] %v23853_v15  ;;  %v353_v33 = vcombine.high %v337_v8, %v337_v8  ;;  %v23862_v37 = vadd.f32 %v23730_v35, %v304_v1  ;;  %v23865_v38 = vadd.f32 %v23734_v36, %v306_v13 }
  0xf2   :  { %30090 = vst [vmem:[#allocation26_spill] sm:$0xff] %v23856_v28  ;;  %v686_v39 = vcombine.low %v23845_v6, %v23850_v14  ;;  %v354_v42 = vcombine.high %v344_v9, %v344_v9  ;;  %v687_v43 = vcombine.low %v23853_v15, %v23856_v28  ;;  %v23872_v46 = vrot.slane %v685_v29, %v23709_v19 }
  0xf3   :  { %30091 = vst [vmem:[#allocation27_spill] sm:$0xff] %v23862_v37  ;;  %30092 = vst [vmem:[#allocation28_spill] sm:$0xff] %v23865_v38  ;;  %v355_v47 = vcombine.high %v351_v30, %v351_v30  ;;  %v23875_v51 = vadd.f32 %v23717_v26, %v344_v9  ;;  %v688_v52 = vcombine.low %v23862_v37, %v23865_v38 }
  0xf4   :  { %v702_v53 = vrot.slane %v686_v39, %v23709_v19  ;;  %v23881_v54 = vadd.f32 %v23726_v34, %v330_v61  ;;  %v23884_v59 = vadd.f32 %v23720_v27, %v352_v32  ;;  %v23887_v60 = vadd.f32 %v23730_v35, %v354_v42 }
  0xf5   :  { %30093 = vst [vmem:[#allocation29_spill] sm:$0xff] %v23875_v51  ;;  %v23890_v62 = vadd.f32 %v23734_v36, %v337_v8  ;;  %v23893_v1 = vadd.f32 %v23726_v34, %v351_v30  ;;  %v23896_v3 = vadd.f32 %v23717_v26, %v353_v33  ;;  %v23899_v9 = vadd.f32 %v23720_v27, %v355_v47 }
  0xf6   :  { %30094 = vst [vmem:[#allocation30_spill] sm:$0xff] %v23881_v54  ;;  %30095 = vst [vmem:[#allocation31_spill] sm:$0xff] %v23884_v59  ;;  %v734_v61 = vcombine.low %v23881_v54, %v23875_v51  ;;  %v356_v13 = vcombine.high %v23810_v31, %v23810_v31  ;;  %v363_v29 = vrot.slane %v23810_v31, %v23709_v19 }
  0xf7   :  { %30096 = vst [vmem:[#allocation32_spill] sm:$0xff] %v23887_v60  ;;  %30097 = vst [vmem:[#allocation33_spill] sm:$0xff] %v23890_v62  ;;  %v735_v8 = vcombine.low %v23884_v59, %v23887_v60  ;;  %v736_v30 = vcombine.low %v23890_v62, %v23893_v1  ;;  %v618_v32 = vrot.slane %v590_v10, %v23709_v19 }
  0xf8   :  { %30098 = vst [vmem:[#allocation34_spill] sm:$0xff] %v23893_v1  ;;  %30099 = vst [vmem:[#allocation35_spill] sm:$0xff] %v23896_v3  ;;  %v619_v33 = vcombine.low %v23778_v11, %v23781_v12  ;;  %v709_v39 = vrot.slane %v687_v43, %v23709_v19  ;;  %v737_v42 = vcombine.low %v23896_v3, %v23899_v9 }
  0xf9   :  { %30100 = vst [vmem:[#allocation36_spill] sm:$0xff] %v23899_v9  ;;  %v370_v31 = vrot.slane %v356_v13, %v23709_v19  ;;  %v371_v47 = vcombine.high %v363_v29, %v363_v29  ;;  %v744_v7 = vrot.slane %v734_v61, %v23709_v19  ;;  %v751_v2 = vrot.slane %v735_v8, %v23709_v19 }
  0xfa   :  { %v379_v41 = vrot.slane %v363_v29, %v23709_v19  ;;  %v620_v1 = vcombine.low %v23818_v40, %v618_v32  ;;  %v758_v10 = vrot.slane %v736_v30, %v23709_v19  ;;  %v627_v9 = vrot.slane %v619_v33, %v23709_v19 }
  0xfb   :  { %v372_v62 = vcombine.high %v370_v31, %v370_v31  ;;  %v386_v11 = vrot.slane %v370_v31, %v23709_v19  ;;  %v393_v12 = vrot.slane %v371_v47, %v23709_v19  ;;  %v30101_v61 = vcombine.low %v23802_v24, %v23805_v25 }
  0xfc   :  { %v401_v43 = vcombine.high %v379_v41, %v379_v41  ;;  %v634_v13 = vrot.slane %v620_v1, %v23709_v19  ;;  %v23939_v31 = vadd.f32 %v23730_v35, %v379_v41  ;;  %v668_v1 = vcombine.low %v23824_v44, %v23827_v45 }
  0xfd   :  { %v667_v8 = vrot.slane %v30101_v61, %v23709_v19  ;;  %v400_v29 = vrot.slane %v372_v62, %v23709_v19  ;;  %v402_v40 = vcombine.high %v386_v11, %v386_v11  ;;  %v403_v32 = vcombine.high %v393_v12, %v393_v12 }
  0xfe   :  { %v23936_v30 = vadd.f32 %v23734_v36, %v393_v12  ;;  %30103 = vst [vmem:[#allocation38_spill] sm:$0xff] %v23939_v31  ;;  %v23942_v47 = vadd.f32 %v23726_v34, %v401_v43  ;;  %v635_v33 = vcombine.low %v627_v9, %v634_v13  ;;  %v23950_v62 = vadd.f32 %v23720_v27, %v386_v11 }
  0xff   :  { %v404_v3 = vcombine.high %v400_v29, %v400_v29  ;;  %v23947_v61 = vadd.f32 %v23717_v26, %v403_v32  ;;  %v23953_v12 = vadd.f32 %v23730_v35, %v400_v29  ;;  %v23956_v41 = vadd.f32 %v23734_v36, %v402_v40 }
 0x100   :  { %30102 = vst [vmem:[#allocation37_spill] sm:$0xff] %v23936_v30  ;;  %30104 = vst [vmem:[#allocation39_spill] sm:$0xff] %v23942_v47  ;;  %v783_v43 = vcombine.low %v23939_v31, %v23936_v30  ;;  %22271 = vmatmul.mubr.msk.f32.vlgmr.msra.gmra.mrb[0].mxu1 %vm832_vm3, %v635_v33  ;;  %v669_v44 = vcombine.low %v23834_v58, %v667_v8  ;;  %v716_v45 = vrot.slane %v688_v52, %v23709_v19  ;;  %v30110_v36 = vmov 0.0  }
 0x101   :  { %30105 = vst [vmem:[#allocation40_spill] sm:$0xff] %v23947_v61  ;;  %30106 = vst [vmem:[#allocation41_spill] sm:$0xff] %v23950_v62  ;;  %v23964_v26 = vadd.f32 %v23726_v34, %v404_v3  ;;  %v784_v27 = vcombine.low %v23942_v47, %v23947_v61  ;;  %v785_v35 = vcombine.low %v23950_v62, %v23953_v12  ;;  %22273 = vmatprep.mubr.msk.f32.mxu1 %vm23573_vm1, %v30110_v36 }
 0x102   :  { %30107 = vst [vmem:[#allocation42_spill] sm:$0xff] %v23953_v12  ;;  %30108 = vst [vmem:[#allocation43_spill] sm:$0xff] %v23956_v41  ;;  %v717_v9 = vcombine.low %v23872_v46, %v702_v53  ;;  %v676_v11 = vrot.slane %v668_v1, %v23709_v19  ;;  %v683_v58 = vrot.slane %v669_v44, %v23709_v19 }
 0x103   :  { %30109 = vst [vmem:[#allocation44_spill] sm:$0xff] %v23964_v26  ;;  %v718_v13 = vcombine.low %v709_v39, %v716_v45  ;;  %v765_v52 = vrot.slane %v737_v42, %v23709_v19  ;;  %v786_v34 = vcombine.low %v23956_v41, %v23964_v26  ;;  %v800_v3 = vrot.slane %v784_v27, %v23709_v19 }
 0x104   :  { %v725_v8 = vrot.slane %v717_v9, %v23709_v19  ;;  %v684_v29 = vcombine.low %v676_v11, %v683_v58  ;;  %v766_v32 = vcombine.low %v744_v7, %v751_v2  ;;  %v807_v46 = vrot.slane %v785_v35, %v23709_v19  ;;  %v24003_v35 = vld [vmem:[%s29849_s4] ss:$0 sm:$0xff] }
 0x105   :  { %v732_v40 = vrot.slane %v718_v13, %v23709_v19  ;;  %v767_v33 = vcombine.low %v758_v10, %v765_v52  ;;  %v814_v53 = vrot.slane %v786_v34, %v23709_v19  ;;  %v793_v39 = vrot.slane %v783_v43, %v23709_v19 }
 0x106   :  { %22274 = vmatmul.mubr.msk.f32.gmra.mrb[2].mxu1 %vm832_vm3, %v684_v29  ;;  %v774_v45 = vrot.slane %v766_v32, %v23709_v19 }
 0x107   :  { %v733_v42 = vcombine.low %v725_v8, %v732_v40  ;;  %v781_v1 = vrot.slane %v767_v33, %v23709_v19  ;;  %22276 = vmatprep.mubr.msk.f32.mxu1 %vm23573_vm1, %v30110_v36  ;;  %v816_v44 = vcombine.low %v807_v46, %v814_v53  ;;  %v815_v27 = vcombine.low %v793_v39, %v800_v3 }
 0x109   :  { %v782_v2 = vcombine.low %v774_v45, %v781_v1  ;;  %v830_v7 = vrot.slane %v816_v44, %v23709_v19  ;;  %v823_v10 = vrot.slane %v815_v27, %v23709_v19 }
 0x10a   :  { %22277 = vmatmul.mubr.msk.f32.gmra.mrb[4].mxu1 %vm832_vm3, %v733_v42 }
 0x10b   :  { %22279 = vmatprep.mubr.msk.f32.mxu1 %vm23573_vm1, %v30110_v36  ;;  %v831_v43 = vcombine.low %v823_v10, %v830_v7 }
 0x10e   :  { %22280 = vmatmul.mubr.msk.f32.gmra.mrb[6].mxu1 %vm832_vm3, %v782_v2 }
 0x10f   :  { %22282 = vmatprep.mubr.msk.f32.mxu1 %vm23573_vm1, %v30110_v36 }
 0x112   :  { %22283 = vmatmul.mubr.msk.f32.gmra.mrb[8].mxu1 %vm832_vm3, %v831_v43 }
 0x113   :  { %22297 = vmatprep.mubr.msk.f32.mxu1 %vm23573_vm1, %v30110_v36 }
 0x1d3   :  { %v909_v9 = vpop.f32.mrb[0].mxu1 }
 0x1d4   :  { %v910_v11 = vadd.f32 %v24003_v35, %v909_v9  ;;  %v22272_v58 = vpop.f32.mrb[1].mxu1 }
 0x1d6   :  { %v938_v13 = vcombine.high %v910_v11, %v910_v11  ;;  %v945_v52 = vrot.slane %v910_v11, %v23709_v19 }
 0x1d8   :  { %v952_v34 = vrot.slane %v938_v13, %v23709_v19  ;;  %v953_v3 = vcombine.high %v945_v52, %v945_v52  ;;  %v961_v8 = vrot.slane %v945_v52, %v23709_v19 }
 0x1d9   :  { %v914_v29 = vpop.f32.mrb[2].mxu1 }
 0x1da   :  { %v954_v40 = vcombine.high %v952_v34, %v952_v34  ;;  %v968_v32 = vrot.slane %v952_v34, %v23709_v19  ;;  %v975_v33 = vrot.slane %v953_v3, %v23709_v19  ;;  %v915_v46 = vadd.f32 %v24003_v35, %v914_v29  ;;  %v22275_v53 = vpop.f32.mrb[3].mxu1 }
 0x1dc   :  { %v982_v39 = vrot.slane %v954_v40, %v23709_v19  ;;  %v984_v42 = vcombine.high %v968_v32, %v968_v32  ;;  %v1183_v1 = vcombine.low %v961_v8, %v975_v33  ;;  %v21556_v44 = vcombine.high %v961_v8, %v975_v33 }
 0x1dd   :  { %v1205_v45 = vrot.slane %v968_v32, %v23709_v19  ;;  %v987_v27 = vcombine.high %v915_v46, %v915_v46  ;;  %v994_v2 = vrot.slane %v915_v46, %v23709_v19  ;;  %v919_v7 = vpop.f32.mrb[4].mxu1 }
 0x1de   :  { %v1191_v10 = vrot.slane %v1183_v1, %v23709_v19  ;;  %v1198_v43 = vrot.slane %v21556_v44, %v23709_v19  ;;  %v1299_v9 = vcombine.low %v982_v39, %v984_v42  ;;  %v986_v11 = vcombine.high %v982_v39, %v982_v39  ;;  %v22278_v58 = vpop.f32.mrb[5].mxu1 }
 0x1df   :  { %v1001_v13 = vrot.slane %v987_v27, %v23709_v19  ;;  %v1002_v52 = vcombine.high %v994_v2, %v994_v2  ;;  %v1010_v34 = vrot.slane %v994_v2, %v23709_v19  ;;  %v1220_v8 = vrot.slane %v1205_v45, %v23709_v19 }
 0x1e0   :  { %v1206_v3 = vcombine.low %v1191_v10, %v1198_v43  ;;  %v1307_v29 = vrot.slane %v1299_v9, %v23709_v19  ;;  %v920_v40 = vadd.f32 %v24003_v35, %v919_v7 }
 0x1e1   :  { %v1003_v32 = vcombine.high %v1001_v13, %v1001_v13  ;;  %v1017_v33 = vrot.slane %v1001_v13, %v23709_v19  ;;  %v1024_v46 = vrot.slane %v1002_v52, %v23709_v19  ;;  %v1300_v53 = vcombine.low %v986_v11, %v1010_v34  ;;  %v924_v39 = vpop.f32.mrb[6].mxu1 }
 0x1e2   :  { %v1213_v42 = vrot.slane %v1206_v3, %v23709_v19  ;;  %v1036_v1 = vcombine.high %v920_v40, %v920_v40  ;;  %v1043_v44 = vrot.slane %v920_v40, %v23709_v19  ;;  %v925_v27 = vadd.f32 %v24003_v35, %v924_v39  ;;  %v22281_v2 = vpop.f32.mrb[7].mxu1 }
 0x1e3   :  { %v1031_v45 = vrot.slane %v1003_v32, %v23709_v19  ;;  %v1033_v10 = vcombine.high %v1017_v33, %v1017_v33  ;;  %v1314_v7 = vrot.slane %v1300_v53, %v23709_v19  ;;  %v1321_v43 = vrot.slane %v1024_v46, %v23709_v19 }
 0x1e4   :  { %v24030_v9 = vcombine.low %v1213_v42, %v1220_v8  ;;  %v21561_v58 = vcombine.high %v1010_v34, %v1024_v46  ;;  %v1050_v11 = vrot.slane %v1036_v1, %v23709_v19  ;;  %v1051_v13 = vcombine.high %v1043_v44, %v1043_v44 }
 0x1e5   :  { %v1322_v52 = vcombine.low %v1307_v29, %v1314_v7  ;;  %v1336_v3 = vrot.slane %v1321_v43, %v23709_v19  ;;  %v1415_v40 = vcombine.low %v1017_v33, %v1031_v45  ;;  %v1436_v39 = vrot.slane %v1033_v10, %v23709_v19  ;;  %v929_v2 = vpop.f32.mrb[8].mxu1 }
 0x1e6   :  { %v1422_v32 = vrot.slane %v21561_v58, %v23709_v19  ;;  %v1035_v26 = vcombine.high %v1031_v45, %v1031_v45  ;;  %v1052_v41 = vcombine.high %v1050_v11, %v1050_v11  ;;  %v1059_v53 = vrot.slane %v1043_v44, %v23709_v19  ;;  %v22284_v61 = vpop.f32.mrb[9].mxu1  ;;  %1222 = vrot.lane.b32.xlu0 %v24030_v9, %s23576_s19 }
 0x1e7   :  { %v1329_v34 = vrot.slane %v1322_v52, %v23709_v19  ;;  %v1429_v8 = vrot.slane %v1415_v40, %v23709_v19  ;;  %v1451_v29 = vrot.slane %v1436_v39, %v23709_v19  ;;  %v1066_v33 = vrot.slane %v1050_v11, %v23709_v19 }
 0x1e8   :  { %v1073_v46 = vrot.slane %v1051_v13, %v23709_v19  ;;  %v1080_v42 = vrot.slane %v1052_v41, %v23709_v19  ;;  %v1081_v1 = vcombine.high %v1059_v53, %v1059_v53  ;;  %v1529_v45 = vcombine.low %v1035_v26, %v1059_v53 }
 0x1e9   :  { %v24045_v44 = vcombine.low %v1329_v34, %v1336_v3  ;;  %v1437_v61 = vcombine.low %v1422_v32, %v1429_v8  ;;  %v1085_v10 = vcombine.high %v925_v27, %v925_v27  ;;  %v1092_v7 = vrot.slane %v925_v27, %v23709_v19 }
 0x1ea   :  { %v1083_v43 = vcombine.high %v1073_v46, %v1073_v46  ;;  %v1530_v58 = vcombine.low %v1073_v46, %v1081_v1  ;;  %v1537_v52 = vrot.slane %v1529_v45, %v23709_v19  ;;  %v1644_v40 = vcombine.low %v1066_v33, %v1080_v42 }
 0x1eb   :  { %v1444_v39 = vrot.slane %v1437_v61, %v23709_v19  ;;  %v21566_v11 = vcombine.high %v1066_v33, %v1080_v42  ;;  %v1099_v13 = vrot.slane %v1085_v10, %v23709_v19  ;;  %v1100_v12 = vcombine.high %v1092_v7, %v1092_v7  ;;  %1338 = vrot.lane.b32.xlu0 %v24045_v44, %s23576_s19 }
 0x1ec   :  { %v1544_v41 = vrot.slane %v1530_v58, %v23709_v19  ;;  %v1551_v26 = vrot.slane %v1083_v43, %v23709_v19  ;;  %v1652_v27 = vrot.slane %v1644_v40, %v23709_v19  ;;  %v1108_v3 = vrot.slane %v1092_v7, %v23709_v19 }
 0x1ed   :  { %v24057_v32 = vcombine.low %v1444_v39, %v1451_v29  ;;  %v1659_v53 = vrot.slane %v21566_v11, %v23709_v19  ;;  %v1101_v34 = vcombine.high %v1099_v13, %v1099_v13  ;;  %v1115_v33 = vrot.slane %v1099_v13, %v23709_v19 }
 0x1ee   :  { %v1552_v8 = vcombine.low %v1537_v52, %v1544_v41  ;;  %v1122_v46 = vrot.slane %v1100_v12, %v23709_v19  ;;  %v1130_v42 = vcombine.high %v1108_v3, %v1108_v3  ;;  %v1566_v1 = vrot.slane %v1551_v26, %v23709_v19 }
 0x1ef   :  { %v1667_v45 = vcombine.low %v1652_v27, %v1659_v53  ;;  %v1666_v61 = vrot.slane %v1108_v3, %v23709_v19  ;;  %v930_v10 = vadd.f32 %v24003_v35, %v929_v2  ;;  %1453 = vrot.lane.b32.xlu1 %v24057_v32, %s23576_s19  ;;  %v1129_v7 = vrot.slane %v1101_v34, %v23709_v19 }
 0x1f0   :  { %v1559_v29 = vrot.slane %v1552_v8, %v23709_v19  ;;  %v1132_v43 = vcombine.high %v1122_v46, %v1122_v46  ;;  %v1759_v58 = vcombine.low %v1122_v46, %v1130_v42 }
 0x1f1   :  { %v1674_v52 = vrot.slane %v1667_v45, %v23709_v19  ;;  %v1681_v12 = vrot.slane %v1666_v61, %v23709_v19  ;;  %v1134_v11 = vcombine.high %v930_v10, %v930_v10  ;;  %v1141_v35 = vrot.slane %v930_v10, %v23709_v19 }
 0x1f2   :  { %v24071_v40 = vcombine.low %v1559_v29, %v1566_v1  ;;  %v1760_v39 = vcombine.low %v1132_v43, %v1115_v33  ;;  %v1767_v2 = vrot.slane %v1759_v58, %v23709_v19  ;;  %v1781_v26 = vrot.slane %v1129_v7, %v23709_v19 }
 0x1f3   :  { %v24073_v13 = vcombine.low %v1674_v52, %v1681_v12  ;;  %v1148_v27 = vrot.slane %v1134_v11, %v23709_v19  ;;  %v1149_v3 = vcombine.high %v1141_v35, %v1141_v35  ;;  %v1157_v53 = vrot.slane %v1141_v35, %v23709_v19 }
 0x1f4   :  { %v1774_v41 = vrot.slane %v1760_v39, %v23709_v19  ;;  %1568 = vrot.lane.b32.xlu1 %v24071_v40, %s23576_s19  ;;  %v21571_v42 = vcombine.high %v1115_v33, %v1129_v7  ;;  %v1796_v10 = vrot.slane %v1781_v26, %v23709_v19 }
 0x1f5   :  { %1683 = vrot.lane.b32.xlu0 %v24073_v13, %s23576_s19  ;;  %v1150_v8 = vcombine.high %v1148_v27, %v1148_v27  ;;  %v1164_v46 = vrot.slane %v1148_v27, %v23709_v19  ;;  %v1171_v1 = vrot.slane %v1149_v3, %v23709_v19  ;;  %v1179_v45 = vcombine.high %v1157_v53, %v1157_v53 }
 0x1f6   :  { %v1782_v34 = vcombine.low %v1767_v2, %v1774_v41  ;;  %v1882_v35 = vrot.slane %v21571_v42, %v23709_v19 }
 0x1f7   :  { %v1178_v29 = vrot.slane %v1150_v8, %v23709_v19  ;;  %v1180_v43 = vcombine.high %v1164_v46, %v1164_v46  ;;  %v1181_v58 = vcombine.high %v1171_v1, %v1171_v1  ;;  %v1875_v52 = vcombine.low %v1157_v53, %v1171_v1 }
 0x1f8   :  { %v1789_v61 = vrot.slane %v1782_v34, %v23709_v19  ;;  %v1896_v7 = vrot.slane %v1179_v45, %v23709_v19 }
 0x1f9   :  { %v1182_v39 = vcombine.high %v1178_v29, %v1178_v29  ;;  %v1990_v11 = vcombine.low %v1178_v29, %v1180_v43  ;;  %v1889_v33 = vrot.slane %v1875_v52, %v23709_v19  ;;  %v1989_v2 = vcombine.low %v1181_v58, %v1164_v46 }
 0x1fa   :  { %v24090_v12 = vcombine.low %v1789_v61, %v1796_v10  ;;  %v1911_v34 = vrot.slane %v1896_v7, %v23709_v19 }
 0x1fb   :  { %v2004_v41 = vrot.slane %v1990_v11, %v23709_v19  ;;  %v1897_v26 = vcombine.low %v1882_v35, %v1889_v33  ;;  %v1997_v27 = vrot.slane %v1989_v2, %v23709_v19  ;;  %v2011_v3 = vrot.slane %v1182_v39, %v23709_v19 }
 0x1fc   :  { %1798 = vrot.lane.b32.xlu1 %v24090_v12, %s23576_s19 }
 0x1fd   :  { %v1904_v53 = vrot.slane %v1897_v26, %v23709_v19  ;;  %v2012_v8 = vcombine.low %v1997_v27, %v2004_v41  ;;  %v2026_v46 = vrot.slane %v2011_v3, %v23709_v19 }
 0x1ff   :  { %v24102_v42 = vcombine.low %v1904_v53, %v1911_v34  ;;  %v2019_v1 = vrot.slane %v2012_v8, %v23709_v19 }
 0x201   :  { %v24106_v45 = vcombine.low %v2019_v1, %v2026_v46  ;;  %1913 = vrot.lane.b32.xlu0 %v24102_v42, %s23576_s19 }
 0x203   :  { %2028 = vrot.lane.b32.xlu1 %v24106_v45, %s23576_s19 }
 0x258   :  { %v1223_v61 = vpop.permute.xlu0 %1222 }
 0x259   :  { %22286 = vmatpush3.xpose.msk.msra.mxu0 %vm1224_vm4, %v1223_v61 }
 0x25a   :  { %22290 = vmatprep.subr.mxu0 %v30110_v36 }
 0x25c   :  { %22288 = vmatmul.mubr.msk.f32.vlgmr.msra.gmra.mrb[10].mxu0 %vm1224_vm4, %v24030_v9 }
 0x25d   :  { %v1339_v10 = vpop.permute.xlu0 %1338  ;;  %22292 = vmatprep.mubr.msk.f32.mxu0 %vm23573_vm1, %v30110_v36 }
 0x25e   :  { %22291 = vmatpush3.xpose.msk.msra.mxu0 %vm1224_vm4, %v1339_v10 }
 0x25f   :  { %22300 = vmatprep.subr.mxu0 %v30110_v36 }
 0x261   :  { %v1454_v29 = vpop.permute.xlu1 %1453  ;;  %22293 = vmatmul.mubr.msk.f32.vlgmr.msra.gmra.mrb[12].mxu0 %vm1224_vm4, %v24045_v44 }
 0x262   :  { %22296 = vmatpush3.xpose.msk.msra.mxu1 %vm1224_vm4, %v1454_v29  ;;  %22302 = vmatprep.mubr.msk.f32.mxu0 %vm23573_vm1, %v30110_v36 }
 0x263   :  { %22305 = vmatprep.subr.mxu1 %v30110_v36 }
 0x265   :  { %22298 = vmatmul.mubr.msk.f32.vlgmr.msra.gmra.mrb[10].mxu1 %vm1224_vm4, %v24057_v32 }
 0x266   :  { %v1569_v43 = vpop.permute.xlu1 %1568  ;;  %22307 = vmatprep.mubr.msk.f32.mxu1 %vm23573_vm1, %v30110_v36 }
 0x267   :  { %v1684_v58 = vpop.permute.xlu0 %1683  ;;  %22301 = vmatpush3.xpose.msk.msra.mxu0 %vm1224_vm4, %v1569_v43 }
 0x268   :  { %22306 = vmatpush3.xpose.msk.msra.mxu1 %vm1224_vm4, %v1684_v58  ;;  %22310 = vmatprep.subr.mxu0 %v30110_v36 }
 0x269   :  { %22315 = vmatprep.subr.mxu1 %v30110_v36 }
 0x26a   :  { %22303 = vmatmul.mubr.msk.f32.vlgmr.msra.gmra.mrb[14].mxu0 %vm1224_vm4, %v24071_v40 }
 0x26b   :  { %22308 = vmatmul.mubr.msk.f32.vlgmr.msra.gmra.mrb[12].mxu1 %vm1224_vm4, %v24073_v13  ;;  %22312 = vmatprep.mubr.msk.f32.mxu0 %vm23573_vm1, %v30110_v36 }
 0x26c   :  { %22317 = vmatprep.mubr.msk.f32.mxu1 %vm23573_vm1, %v30110_v36 }
 0x26e   :  { %v1799_v52 = vpop.permute.xlu1 %1798 }
 0x26f   :  { %22311 = vmatpush3.xpose.msk.msra.mxu0 %vm1224_vm4, %v1799_v52 }
 0x270   :  { %22320 = vmatprep.subr.mxu0 %v30110_v36 }
 0x272   :  { %22313 = vmatmul.mubr.msk.f32.vlgmr.msra.gmra.mrb[16].mxu0 %vm1224_vm4, %v24090_v12 }
 0x273   :  { %22322 = vmatprep.mubr.msk.f32.mxu0 %vm23573_vm1, %v30110_v36  ;;  %v1914_v39 = vpop.permute.xlu0 %1913 }
 0x274   :  { %22316 = vmatpush3.xpose.msk.msra.mxu1 %vm1224_vm4, %v1914_v39 }
 0x275   :  { %v2029_v11 = vpop.permute.xlu1 %2028  ;;  %22325 = vmatprep.subr.mxu1 %v30110_v36 }
 0x276   :  { %22321 = vmatpush3.xpose.msk.msra.mxu0 %vm1224_vm4, %v2029_v11 }
 0x277   :  { %22318 = vmatmul.mubr.msk.f32.vlgmr.msra.gmra.mrb[14].mxu1 %vm1224_vm4, %v24102_v42  ;;  %22330 = vmatprep.subr.mxu0 %v30110_v36 }
 0x278   :  { %22327 = vmatprep.mubr.msk.f32.mxu1 %vm23573_vm1, %v30110_v36 }
 0x279   :  { %22323 = vmatmul.mubr.msk.f32.vlgmr.msra.gmra.mrb[18].mxu0 %vm1224_vm4, %v24106_v45 }
 0x27a   :  { %22332 = vmatprep.mubr.msk.f32.mxu0 %vm23573_vm1, %v30110_v36 }
 0x32f   :  { %v1295_v35 = vpop.f32.mrb[10].mxu0 }
 0x330   :  { %v24160_v33 = vmul.f32 0.35355338, %v1295_v35  ;;  %v22289_v7 = vpop.f32.mrb[11].mxu0 }
 0x332   :  { %2113 = vst.msk [vmem:[#allocation2] sm:$0x1f] %vm2112_vm5, %v24160_v33  ;;  %v2121_v2 = vsel %vm2112_vm5, %v24160_v33, -inf }
 0x333   :  { %2122 = vmax.xlane.f32.xlu0 %v2121_v2 }
 0x334   :  { %v1410_v41 = vpop.f32.mrb[12].mxu0 }
 0x335   :  { %v24166_v26 = vmul.f32 0.35355338, %v1410_v41  ;;  %v22294_v27 = vpop.f32.mrb[13].mxu0 }
 0x337   :  { %2114 = vst.msk [vmem:[#allocation2 + $0x8] sm:$0x1f] %vm2112_vm5, %v24166_v26  ;;  %v2124_v3 = vsel %vm2112_vm5, %v24166_v26, -inf }
 0x338   :  { %v1525_v53 = vpop.f32.mrb[10].mxu1  ;;  %2125 = vmax.xlane.f32.xlu1 %v2124_v3 }
 0x339   :  { %v2106_v34 = vmul.f32 0.35355338, %v1525_v53  ;;  %v22299_v8 = vpop.f32.mrb[11].mxu1 }
 0x33b   :  { %2115 = vst.msk [vmem:[#allocation2 + $0x10] sm:$0x1f] %vm2112_vm5, %v2106_v34  ;;  %v2127_v1 = vsel %vm2112_vm5, %v2106_v34, -inf }
 0x33c   :  { %2128 = vmax.xlane.f32.xlu0 %v2127_v1 }
 0x33d   :  { %v1640_v46 = vpop.f32.mrb[14].mxu0 }
 0x33e   :  { %v1755_v61 = vpop.f32.mrb[12].mxu1  ;;  %v24174_v10 = vmul.f32 0.35355338, %v1640_v46  ;;  %v22304_v29 = vpop.f32.mrb[15].mxu0 }
 0x33f   :  { %v24176_v43 = vmul.f32 0.35355338, %v1755_v61  ;;  %v22309_v58 = vpop.f32.mrb[13].mxu1 }
 0x340   :  { %2116 = vst.msk [vmem:[#allocation2 + $0x18] sm:$0x1f] %vm2112_vm5, %v24174_v10  ;;  %v2130_v52 = vsel %vm2112_vm5, %v24174_v10, -inf }
 0x341   :  { %2117 = vst.msk [vmem:[#allocation2 + $0x20] sm:$0x1f] %vm2112_vm5, %v24176_v43  ;;  %v2133_v39 = vsel %vm2112_vm5, %v24176_v43, -inf  ;;  %2131 = vmax.xlane.f32.xlu0 %v2130_v52 }
 0x342   :  { %2134 = vmax.xlane.f32.xlu1 %v2133_v39 }
 0x345   :  { %v1870_v11 = vpop.f32.mrb[16].mxu0 }
 0x346   :  { %v24186_v35 = vmul.f32 0.35355338, %v1870_v11  ;;  %v22314_v7 = vpop.f32.mrb[17].mxu0 }
 0x348   :  { %2118 = vst.msk [vmem:[#allocation2 + $0x28] sm:$0x1f] %vm2112_vm5, %v24186_v35  ;;  %v2136_v2 = vsel %vm2112_vm5, %v24186_v35, -inf }
 0x349   :  { %2137 = vmax.xlane.f32.xlu0 %v2136_v2 }
 0x34a   :  { %v1985_v41 = vpop.f32.mrb[14].mxu1 }
 0x34b   :  { %v24192_v27 = vmul.f32 0.35355338, %v1985_v41  ;;  %v22319_v3 = vpop.f32.mrb[15].mxu1 }
 0x34c   :  { %v2100_v53 = vpop.f32.mrb[18].mxu0 }
 0x34d   :  { %2119 = vst.msk [vmem:[#allocation2 + $0x30] sm:$0x1f] %vm2112_vm5, %v24192_v27  ;;  %v24196_v8 = vmul.f32 0.35355338, %v2100_v53  ;;  %v22324_v1 = vpop.f32.mrb[19].mxu0  ;;  %v2139_v46 = vsel %vm2112_vm5, %v24192_v27, -inf }
 0x34e   :  { %2140 = vmax.xlane.f32.xlu1 %v2139_v46 }
 0x34f   :  { %2120 = vst.msk [vmem:[#allocation2 + $0x38] sm:$0x1f] %vm2112_vm5, %v24196_v8  ;;  %v2142_v61 = vsel %vm2112_vm5, %v24196_v8, -inf }
 0x350   :  { %2143 = vmax.xlane.f32.xlu0 %v2142_v61 }
 0x35f   :  { %2209 = vrot.lane.b32.xlu1 %v24030_v9, %s23577_s20 }
 0x363   :  { %2365 = vrot.lane.b32.xlu1 %v24057_v32, %s23577_s20 }
 0x366   :  { %2288 = vrot.lane.b32.xlu0 %v24045_v44, %s23577_s20 }
 0x367   :  { %2442 = vrot.lane.b32.xlu1 %v24071_v40, %s23577_s20 }
 0x36a   :  { %2519 = vrot.lane.b32.xlu0 %v24073_v13, %s23577_s20 }
 0x36b   :  { %2596 = vrot.lane.b32.xlu1 %v24090_v12, %s23577_s20 }
 0x36e   :  { %2673 = vrot.lane.b32.xlu0 %v24102_v42, %s23577_s20 }
 0x36f   :  { %2750 = vrot.lane.b32.xlu1 %v24106_v45, %s23577_s20 }
 0x372   :  { %2829 = vrot.lane.b32.xlu0 %v24030_v9, %s23578_s1 }
 0x373   :  { %2907 = vrot.lane.b32.xlu1 %v24045_v44, %s23578_s1 }
 0x376   :  { %2827 = vrot.lane.b32.xlu0 %v24030_v9, %s23579_s21 }
 0x377   :  { %2905 = vrot.lane.b32.xlu1 %v24045_v44, %s23579_s21 }
 0x37a   :  { %2985 = vrot.lane.b32.xlu0 %v24057_v32, %s23578_s1 }
 0x37b   :  { %3063 = vrot.lane.b32.xlu1 %v24071_v40, %s23578_s1 }
 0x3c0   :  { %v2123_v29 = vpop.xlane.xlu0 %2122 }
 0x3c1   :  { %v2145_v58 = vsub.f32 %v24160_v33, %v2123_v29 }
 0x3c3   :  { %v2153_v52 = vmul.f32 1.442695, %v2145_v58 }
 0x3c5   :  { %23262 = vpow2.f32 %v2153_v52  ;;  %v2126_v39 = vpop.xlane.xlu1 %2125 }
 0x3c6   :  { %v2146_v11 = vsub.f32 %v24166_v26, %v2126_v39 }
 0x3c8   :  { %v2155_v7 = vmul.f32 1.442695, %v2146_v11 }
 0x3c9   :  { %v2129_v2 = vpop.xlane.xlu0 %2128 }
 0x3ca   :  { %23264 = vpow2.f32 %v2155_v7  ;;  %v2147_v41 = vsub.f32 %v2106_v34, %v2129_v2 }
 0x3cc   :  { %v2157_v3 = vmul.f32 1.442695, %v2147_v41 }
 0x3ce   :  { %23266 = vpow2.f32 %v2157_v3  ;;  %v2132_v53 = vpop.xlane.xlu0 %2131 }
 0x3cf   :  { %v24234_v1 = vpop.eup %23262  ;;  %v2135_v46 = vpop.xlane.xlu1 %2134  ;;  %v2148_v61 = vsub.f32 %v24174_v10, %v2132_v53 }
 0x3d0   :  { %v2149_v62 = vsub.f32 %v24176_v43, %v2135_v46  ;;  %v2169_v33 = vsel %vm2112_vm5, %v24234_v1, 0.0 }
 0x3d1   :  { %v2159_v29 = vmul.f32 1.442695, %v2148_v61  ;;  %2170 = vadd.xlane.f32.xlu1 %v2169_v33 }
 0x3d2   :  { %v2161_v26 = vmul.f32 1.442695, %v2149_v62 }
 0x3d3   :  { %23268 = vpow2.f32 %v2159_v29 }
 0x3d4   :  { %v24240_v58 = vpop.eup %23264  ;;  %23270 = vpow2.f32 %v2161_v26 }
 0x3d5   :  { %v2172_v34 = vsel %vm2112_vm5, %v24240_v58, 0.0 }
 0x3d6   :  { %v2138_v52 = vpop.xlane.xlu0 %2137  ;;  %2173 = vadd.xlane.f32.xlu0 %v2172_v34 }
 0x3d7   :  { %v2150_v39 = vsub.f32 %v24186_v35, %v2138_v52 }
 0x3d8   :  { %v24245_v10 = vpop.eup %23266 }
 0x3d9   :  { %v2163_v43 = vmul.f32 1.442695, %v2150_v39  ;;  %v2175_v11 = vsel %vm2112_vm5, %v24245_v10, 0.0 }
 0x3da   :  { %2176 = vadd.xlane.f32.xlu1 %v2175_v11 }
 0x3db   :  { %23272 = vpow2.f32 %v2163_v43  ;;  %v2141_v7 = vpop.xlane.xlu1 %2140 }
 0x3dc   :  { %v2151_v41 = vsub.f32 %v24192_v27, %v2141_v7 }
 0x3dd   :  { %v24249_v62 = vpop.eup %23268  ;;  %v2144_v53 = vpop.xlane.xlu0 %2143 }
 0x3de   :  { %v24251_v2 = vpop.eup %23270  ;;  %v2178_v3 = vsel %vm2112_vm5, %v24249_v62, 0.0  ;;  %v2165_v46 = vmul.f32 1.442695, %v2151_v41  ;;  %v2152_v61 = vsub.f32 %v24196_v8, %v2144_v53 }
 0x3df   :  { %v2181_v35 = vsel %vm2112_vm5, %v24251_v2, 0.0  ;;  %2179 = vadd.xlane.f32.xlu0 %v2178_v3  ;;  %v2210_v33 = vpop.permute.xlu1 %2209 }
 0x3e0   :  { %2182 = vadd.xlane.f32.xlu1 %v2181_v35  ;;  %23274 = vpow2.f32 %v2165_v46  ;;  %v2167_v29 = vmul.f32 1.442695, %v2152_v61  ;;  %22326 = vmatpush3.msk.msra.mxu1 %vm2215_vm6, %v2210_v33 }
 0x3e1   :  { %v2289_v26 = vpop.permute.xlu0 %2288  ;;  %22335 = vmatprep.subr.mxu1 %v30110_v36 }
 0x3e2   :  { %23276 = vpow2.f32 %v2167_v29  ;;  %22331 = vmatpush3.msk.msra.mxu0 %vm2215_vm6, %v2289_v26 }
 0x3e3   :  { %22340 = vmatprep.subr.mxu0 %v30110_v36  ;;  %v2366_v11 = vpop.permute.xlu1 %2365 }
 0x3e5   :  { %v24262_v27 = vpop.eup %23272  ;;  %v2520_v3 = vpop.permute.xlu0 %2519 }
 0x3e6   :  { %v2184_v34 = vsel %vm2112_vm5, %v24262_v27, 0.0 }
 0x3e7   :  { %2185 = vadd.xlane.f32.xlu0 %v2184_v34  ;;  %v2443_v7 = vpop.permute.xlu1 %2442 }
 0x3e9   :  { %v2674_v35 = vpop.permute.xlu0 %2673 }
 0x3ea   :  { %v24267_v8 = vpop.eup %23274 }
 0x3eb   :  { %v2187_v52 = vsel %vm2112_vm5, %v24267_v8, 0.0  ;;  %v2597_v41 = vpop.permute.xlu1 %2596 }
 0x3ec   :  { %v24271_v39 = vpop.eup %23276  ;;  %2188 = vadd.xlane.f32.xlu1 %v2187_v52 }
 0x3ed   :  { %v2190_v43 = vsel %vm2112_vm5, %v24271_v39, 0.0  ;;  %v24297_v61 = vpop.permute.xlu0 %2829 }
 0x3ee   :  { %2191 = vadd.xlane.f32.xlu0 %v2190_v43 }
 0x3ef   :  { %v2751_v53 = vpop.permute.xlu1 %2750 }
 0x3f1   :  { %v24301_v29 = vpop.permute.xlu0 %2827 }
 0x3f3   :  { %v24295_v46 = vpop.permute.xlu1 %2907 }
 0x3f5   :  { %v24305_v52 = vpop.permute.xlu0 %2985 }
 0x3f7   :  { %v24299_v33 = vpop.permute.xlu1 %2905 }
 0x3fb   :  { %v24303_v26 = vpop.permute.xlu1 %3063 }
 0x3fd   :  { %3061 = vrot.lane.b32.xlu1 %v24071_v40, %s23579_s21 }
 0x401   :  { %3219 = vrot.lane.b32.xlu1 %v24090_v12, %s23578_s1 }
 0x404   :  { %2983 = vrot.lane.b32.xlu0 %v24057_v32, %s23579_s21 }
 0x405   :  { %3217 = vrot.lane.b32.xlu1 %v24090_v12, %s23579_s21 }
 0x408   :  { %3141 = vrot.lane.b32.xlu0 %v24073_v13, %s23578_s1 }
 0x409   :  { %3375 = vrot.lane.b32.xlu1 %v24106_v45, %s23578_s1 }
 0x40c   :  { %3139 = vrot.lane.b32.xlu0 %v24073_v13, %s23579_s21 }
 0x40d   :  { %3373 = vrot.lane.b32.xlu1 %v24106_v45, %s23579_s21 }
 0x410   :  { %3297 = vrot.lane.b32.xlu0 %v24102_v42, %s23578_s1 }
 0x414   :  { %3295 = vrot.lane.b32.xlu0 %v24102_v42, %s23579_s21 }
 0x45e   :  { %v2171_v34 = vpop.xlane.xlu1 %2170 }
 0x45f   :  { %23278 = vrcp.f32 %v2171_v34 }
 0x463   :  { %v2174_v43 = vpop.xlane.xlu0 %2173 }
 0x464   :  { %23280 = vrcp.f32 %v2174_v43 }
 0x467   :  { %v2177_v47 = vpop.xlane.xlu1 %2176 }
 0x468   :  { %23282 = vrcp.f32 %v2177_v47 }
 0x469   :  { %v23279_v30 = vpop.eup %23278 }
 0x46a   :  { %v2201_v31 = vmul.f32 %v23279_v30, %v24234_v1 }
 0x46c   :  { %v2180_v60 = vpop.xlane.xlu0 %2179  ;;  %22328 = vmatmul.mubr.msk.f32.vlgmr.msra.gmra.mrb[16].mxu1 %vm2211_vm7, %v2201_v31 }
 0x46d   :  { %v2183_v59 = vpop.xlane.xlu1 %2182  ;;  %23284 = vrcp.f32 %v2180_v60  ;;  %22336 = vmatpush3.msk.msra.mxu1 %vm2215_vm6, %v2366_v11  ;;  %22337 = vmatprep.mubr.msk.f32.mxu1 %vm23573_vm1, %v30110_v36 }
 0x46e   :  { %v23281_v51 = vpop.eup %23280  ;;  %23286 = vrcp.f32 %v2183_v59  ;;  %22345 = vmatprep.subr.mxu1 %v30110_v36 }
 0x46f   :  { %v2202_v47 = vmul.f32 %v23281_v51, %v24240_v58 }
 0x471   :  { %22333 = vmatmul.mubr.msk.f32.vlgmr.msra.gmra.mrb[20].mxu0 %vm2211_vm7, %v2202_v47 }
 0x472   :  { %v23283_v34 = vpop.eup %23282  ;;  %22341 = vmatpush3.msk.msra.mxu0 %vm2215_vm6, %v2443_v7  ;;  %22342 = vmatprep.mubr.msk.f32.mxu0 %vm23573_vm1, %v30110_v36 }
 0x473   :  { %v2203_v60 = vmul.f32 %v23283_v34, %v24245_v10  ;;  %22350 = vmatprep.subr.mxu0 %v30110_v36 }
 0x474   :  { %v2186_v30 = vpop.xlane.xlu0 %2185 }
 0x475   :  { %23288 = vrcp.f32 %v2186_v30  ;;  %22338 = vmatmul.mubr.msk.f32.vlgmr.msra.gmra.mrb[18].mxu1 %vm2211_vm7, %v2203_v60 }
 0x476   :  { %22346 = vmatpush3.msk.msra.mxu1 %vm2215_vm6, %v2520_v3  ;;  %22347 = vmatprep.mubr.msk.f32.mxu1 %vm23573_vm1, %v30110_v36 }
 0x477   :  { %v23285_v51 = vpop.eup %23284  ;;  %22355 = vmatprep.subr.mxu1 %v30110_v36 }
 0x478   :  { %v23287_v59 = vpop.eup %23286  ;;  %v2204_v31 = vmul.f32 %v23285_v51, %v24249_v62 }
 0x479   :  { %v2205_v1 = vmul.f32 %v23287_v59, %v24251_v2  ;;  %v2189_v58 = vpop.xlane.xlu1 %2188 }
 0x47a   :  { %22343 = vmatmul.mubr.msk.f32.vlgmr.msra.gmra.mrb[22].mxu0 %vm2211_vm7, %v2204_v31  ;;  %23290 = vrcp.f32 %v2189_v58 }
 0x47b   :  { %22348 = vmatmul.mubr.msk.f32.vlgmr.msra.gmra.mrb[20].mxu1 %vm2211_vm7, %v2205_v1  ;;  %22351 = vmatpush3.msk.msra.mxu0 %vm2215_vm6, %v2597_v41  ;;  %v2192_v10 = vpop.xlane.xlu0 %2191 }
 0x47c   :  { %22356 = vmatpush3.msk.msra.mxu1 %vm2215_vm6, %v2674_v35  ;;  %22352 = vmatprep.mubr.msk.f32.mxu0 %vm23573_vm1, %v30110_v36  ;;  %23292 = vrcp.f32 %v2192_v10 }
 0x47d   :  { %22360 = vmatprep.subr.mxu0 %v30110_v36  ;;  %22357 = vmatprep.mubr.msk.f32.mxu1 %vm23573_vm1, %v30110_v36  ;;  %v3062_v7 = vpop.permute.xlu1 %3061 }
 0x47e   :  { %22365 = vmatprep.subr.mxu1 %v30110_v36 }
 0x47f   :  { %v23289_v62 = vpop.eup %23288  ;;  %v2984_v11 = vpop.permute.xlu0 %2983 }
 0x480   :  { %v2206_v2 = vmul.f32 %v23289_v62, %v24262_v27 }
 0x481   :  { %v3220_v47 = vpop.permute.xlu1 %3219 }
 0x482   :  { %22353 = vmatmul.mubr.msk.f32.vlgmr.msra.gmra.mrb[24].mxu0 %vm2211_vm7, %v2206_v2 }
 0x483   :  { %22361 = vmatpush3.msk.msra.mxu0 %vm2215_vm6, %v2751_v53  ;;  %22362 = vmatprep.mubr.msk.f32.mxu0 %vm23573_vm1, %v30110_v36  ;;  %v3142_v3 = vpop.permute.xlu0 %3141 }
 0x484   :  { %22370 = vmatprep.subr.mxu0 %v30110_v36  ;;  %v23291_v41 = vpop.eup %23290 }
 0x485   :  { %v2207_v35 = vmul.f32 %v23291_v41, %v24267_v8  ;;  %v3218_v8 = vpop.permute.xlu1 %3217 }
 0x486   :  { %v23293_v43 = vpop.eup %23292 }
 0x487   :  { %22358 = vmatmul.mubr.msk.f32.vlgmr.msra.gmra.mrb[22].mxu1 %vm2211_vm7, %v2207_v35  ;;  %v2208_v27 = vmul.f32 %v23293_v43, %v24271_v39  ;;  %v3140_v53 = vpop.permute.xlu0 %3139 }
 0x488   :  { %22366 = vmatpush3.xpose.msk.msra.mxu1 %vm1224_vm4, %v24297_v61  ;;  %22367 = vmatprep.mubr.msk.f32.mxu1 %vm23573_vm1, %v30110_v36 }
 0x489   :  { %22363 = vmatmul.mubr.msk.f32.vlgmr.msra.gmra.mrb[26].mxu0 %vm2211_vm7, %v2208_v27  ;;  %22375 = vmatprep.subr.mxu1 %v30110_v36 }
 0x48a   :  { %22371 = vmatpush3.xpose.msk.msra.mxu0 %vm1224_vm4, %v24295_v46  ;;  %22372 = vmatprep.mubr.msk.f32.mxu0 %vm23573_vm1, %v30110_v36  ;;  %v3376_v46 = vpop.permute.xlu1 %3375 }
 0x48b   :  { %22368 = vmatmul.mubr.msk.f32.vlgmr.msra.gmra.mrb[24].mxu1 %vm1224_vm4, %v24301_v29  ;;  %22380 = vmatprep.subr.mxu0 %v30110_v36  ;;  %v3298_v39 = vpop.permute.xlu0 %3297 }
 0x48c   :  { %22376 = vmatpush3.xpose.msk.msra.mxu1 %vm1224_vm4, %v24305_v52  ;;  %22377 = vmatprep.mubr.msk.f32.mxu1 %vm23573_vm1, %v30110_v36 }
 0x48d   :  { %22373 = vmatmul.mubr.msk.f32.vlgmr.msra.gmra.mrb[28].mxu0 %vm1224_vm4, %v24299_v33  ;;  %22385 = vmatprep.subr.mxu1 %v30110_v36 }
 0x48e   :  { %22381 = vmatpush3.xpose.msk.msra.mxu0 %vm1224_vm4, %v24303_v26  ;;  %22382 = vmatprep.mubr.msk.f32.mxu0 %vm23573_vm1, %v30110_v36  ;;  %v3374_v33 = vpop.permute.xlu1 %3373 }
 0x48f   :  { %22378 = vmatmul.mubr.msk.f32.vlgmr.msra.gmra.mrb[26].mxu1 %vm1224_vm4, %v2984_v11  ;;  %22390 = vmatprep.subr.mxu0 %v30110_v36  ;;  %v3296_v61 = vpop.permute.xlu0 %3295 }
 0x490   :  { %22386 = vmatpush3.xpose.msk.msra.mxu1 %vm1224_vm4, %v3142_v3  ;;  %22387 = vmatprep.mubr.msk.f32.mxu1 %vm23573_vm1, %v30110_v36 }
 0x491   :  { %22383 = vmatmul.mubr.msk.f32.vlgmr.msra.gmra.mrb[30].mxu0 %vm1224_vm4, %v3062_v7  ;;  %22395 = vmatprep.subr.mxu1 %v30110_v36 }
 0x492   :  { %22391 = vmatpush3.xpose.msk.msra.mxu0 %vm1224_vm4, %v3220_v47  ;;  %22392 = vmatprep.mubr.msk.f32.mxu0 %vm23573_vm1, %v30110_v36 }
 0x493   :  { %22388 = vmatmul.mubr.msk.f32.vlgmr.msra.gmra.mrb[28].mxu1 %vm1224_vm4, %v3140_v53  ;;  %22400 = vmatprep.subr.mxu0 %v30110_v36 }
 0x494   :  { %22396 = vmatpush3.xpose.msk.msra.mxu1 %vm1224_vm4, %v3298_v39  ;;  %22397 = vmatprep.mubr.msk.f32.mxu1 %vm23573_vm1, %v30110_v36 }
 0x495   :  { %22393 = vmatmul.mubr.msk.f32.vlgmr.msra.gmra.mrb[32].mxu0 %vm1224_vm4, %v3218_v8  ;;  %22405 = vmatprep.subr.mxu1 %v30110_v36 }
 0x496   :  { %22401 = vmatpush3.xpose.msk.msra.mxu0 %vm1224_vm4, %v3376_v46  ;;  %22402 = vmatprep.mubr.msk.f32.mxu0 %vm23573_vm1, %v30110_v36 }
 0x497   :  { %22398 = vmatmul.mubr.msk.f32.vlgmr.msra.gmra.mrb[30].mxu1 %vm1224_vm4, %v3296_v61  ;;  %22410 = vmatprep.subr.mxu0 %v30110_v36 }
 0x498   :  { %22407 = vmatprep.mubr.msk.f32.mxu1 %vm23573_vm1, %v30110_v36 }
 0x499   :  { %22403 = vmatmul.mubr.msk.f32.vlgmr.msra.gmra.mrb[34].mxu0 %vm1224_vm4, %v3374_v33 }
 0x49a   :  { %22412 = vmatprep.mubr.msk.f32.mxu0 %vm23573_vm1, %v30110_v36 }
 0x53f   :  { %v24397_v29 = vpop.f32.mrb[16].mxu1 }
 0x540   :  { %v22329_v26 = vpop.f32.mrb[17].mxu1 }
 0x544   :  { %v24399_v52 = vpop.f32.mrb[20].mxu0 }
 0x545   :  { %v22334_v34 = vpop.f32.mrb[21].mxu0 }
 0x548   :  { %v24401_v60 = vpop.f32.mrb[18].mxu1 }
 0x549   :  { %v22339_v30 = vpop.f32.mrb[19].mxu1 }
 0x54d   :  { %v24403_v51 = vpop.f32.mrb[22].mxu0 }
 0x54e   :  { %v24405_v59 = vpop.f32.mrb[20].mxu1  ;;  %v22344_v31 = vpop.f32.mrb[23].mxu0 }
 0x54f   :  { %v22349_v1 = vpop.f32.mrb[21].mxu1 }
 0x555   :  { %v24407_v58 = vpop.f32.mrb[24].mxu0 }
 0x556   :  { %v22354_v10 = vpop.f32.mrb[25].mxu0 }
 0x55a   :  { %v24409_v62 = vpop.f32.mrb[22].mxu1 }
 0x55b   :  { %v22359_v2 = vpop.f32.mrb[23].mxu1 }
 0x55c   :  { %v24411_v11 = vpop.f32.mrb[26].mxu0 }
 0x55d   :  { %v22364_v7 = vpop.f32.mrb[27].mxu0 }
 0x55e   :  { %v2901_v41 = vpop.f32.mrb[24].mxu1 }
 0x55f   :  { %v24413_v3 = vmul.f32 0.35355338, %v2901_v41  ;;  %v22369_v35 = vpop.f32.mrb[25].mxu1 }
 0x560   :  { %v2979_v43 = vpop.f32.mrb[28].mxu0 }
 0x561   :  { %3460 = vst.msk [vmem:[#allocation2 + $0x40] sm:$0x1f] %vm2112_vm5, %v24413_v3  ;;  %v3468_v47 = vsel %vm2112_vm5, %v24413_v3, -inf  ;;  %v24419_v27 = vmul.f32 0.35355338, %v2979_v43  ;;  %v22374_v53 = vpop.f32.mrb[29].mxu0 }
 0x562   :  { %3469 = vmax.xlane.f32.xlu0 %v3468_v47  ;;  %v3057_v8 = vpop.f32.mrb[26].mxu1 }
 0x563   :  { %3461 = vst.msk [vmem:[#allocation2 + $0x48] sm:$0x1f] %vm2112_vm5, %v24419_v27  ;;  %v24423_v39 = vmul.f32 0.35355338, %v3057_v8  ;;  %v22379_v46 = vpop.f32.mrb[27].mxu1  ;;  %v3471_v61 = vsel %vm2112_vm5, %v24419_v27, -inf }
 0x564   :  { %3472 = vmax.xlane.f32.xlu1 %v3471_v61  ;;  %v3135_v33 = vpop.f32.mrb[30].mxu0 }
 0x565   :  { %3462 = vst.msk [vmem:[#allocation2 + $0x50] sm:$0x1f] %vm2112_vm5, %v24423_v39  ;;  %v3474_v26 = vsel %vm2112_vm5, %v24423_v39, -inf  ;;  %v24431_v34 = vmul.f32 0.35355338, %v3135_v33  ;;  %v22384_v30 = vpop.f32.mrb[31].mxu0 }
 0x566   :  { %3475 = vmax.xlane.f32.xlu0 %v3474_v26  ;;  %v3213_v31 = vpop.f32.mrb[28].mxu1 }
 0x567   :  { %v3455_v1 = vmul.f32 0.35355338, %v3213_v31  ;;  %3463 = vst.msk [vmem:[#allocation2 + $0x58] sm:$0x1f] %vm2112_vm5, %v24431_v34  ;;  %v22389_v10 = vpop.f32.mrb[29].mxu1  ;;  %v3477_v2 = vsel %vm2112_vm5, %v24431_v34, -inf }
 0x568   :  { %v3291_v7 = vpop.f32.mrb[32].mxu0 }
 0x569   :  { %3464 = vst.msk [vmem:[#allocation2 + $0x60] sm:$0x1f] %vm2112_vm5, %v3455_v1  ;;  %v3480_v41 = vsel %vm2112_vm5, %v3455_v1, -inf  ;;  %v3456_v35 = vmul.f32 0.35355338, %v3291_v7  ;;  %v22394_v43 = vpop.f32.mrb[33].mxu0 }
 0x56a   :  { %v3369_v47 = vpop.f32.mrb[30].mxu1  ;;  %3481 = vmax.xlane.f32.xlu1 %v3480_v41  ;;  %3478 = vmax.xlane.f32.xlu0 %v3477_v2 }
 0x56b   :  { %v3457_v53 = vmul.f32 0.35355338, %v3369_v47  ;;  %3465 = vst.msk [vmem:[#allocation2 + $0x68] sm:$0x1f] %vm2112_vm5, %v3456_v35  ;;  %v22399_v8 = vpop.f32.mrb[31].mxu1  ;;  %v3483_v46 = vsel %vm2112_vm5, %v3456_v35, -inf }
 0x56c   :  { %v3447_v61 = vpop.f32.mrb[34].mxu0 }
 0x56d   :  { %3466 = vst.msk [vmem:[#allocation2 + $0x70] sm:$0x1f] %vm2112_vm5, %v3457_v53  ;;  %v3486_v33 = vsel %vm2112_vm5, %v3457_v53, -inf  ;;  %v24443_v26 = vmul.f32 0.35355338, %v3447_v61  ;;  %v22404_v30 = vpop.f32.mrb[35].mxu0 }
 0x56e   :  { %3487 = vmax.xlane.f32.xlu1 %v3486_v33  ;;  %3484 = vmax.xlane.f32.xlu0 %v3483_v46 }
 0x56f   :  { %3467 = vst.msk [vmem:[#allocation2 + $0x78] sm:$0x1f] %vm2112_vm5, %v24443_v26  ;;  %v3489_v31 = vsel %vm2112_vm5, %v24443_v26, -inf }
 0x572   :  { %3490 = vmax.xlane.f32.xlu0 %v3489_v31 }
 0x57f   :  { %3556 = vrot.lane.b32.xlu1 %v24030_v9, %s23580_s22 }
 0x583   :  { %3710 = vrot.lane.b32.xlu1 %v24057_v32, %s23580_s22 }
 0x587   :  { %3787 = vrot.lane.b32.xlu1 %v24071_v40, %s23580_s22 }
 0x588   :  { %3633 = vrot.lane.b32.xlu0 %v24045_v44, %s23580_s22 }
 0x58b   :  { %3941 = vrot.lane.b32.xlu1 %v24090_v12, %s23580_s22 }
 0x58c   :  { %3864 = vrot.lane.b32.xlu0 %v24073_v13, %s23580_s22 }
 0x58f   :  { %4095 = vrot.lane.b32.xlu1 %v24106_v45, %s23580_s22 }
 0x590   :  { %4018 = vrot.lane.b32.xlu0 %v24102_v42, %s23580_s22 }
 0x593   :  { %4252 = vrot.lane.b32.xlu1 %v24045_v44, %s23581_s23 }
 0x594   :  { %4174 = vrot.lane.b32.xlu0 %v24030_v9, %s23581_s23 }
 0x597   :  { %4250 = vrot.lane.b32.xlu1 %v24045_v44, %s23582_s24 }
 0x598   :  { %4172 = vrot.lane.b32.xlu0 %v24030_v9, %s23582_s24 }
 0x59b   :  { %4408 = vrot.lane.b32.xlu1 %v24071_v40, %s23581_s23 }
 0x59c   :  { %4330 = vrot.lane.b32.xlu0 %v24057_v32, %s23581_s23 }
 0x5ef   :  { %v3470_v10 = vpop.xlane.xlu0 %3469 }
 0x5f0   :  { %v3492_v2 = vsub.f32 %v24413_v3, %v3470_v10 }
 0x5f1   :  { %v3473_v7 = vpop.xlane.xlu1 %3472 }
 0x5f2   :  { %v3500_v41 = vmul.f32 1.442695, %v3492_v2  ;;  %v3493_v43 = vsub.f32 %v24419_v27, %v3473_v7 }
 0x5f3   :  { %v3476_v47 = vpop.xlane.xlu0 %3475 }
 0x5f4   :  { %23294 = vpow2.f32 %v3500_v41  ;;  %v3494_v8 = vsub.f32 %v24423_v39, %v3476_v47  ;;  %v3502_v46 = vmul.f32 1.442695, %v3493_v43 }
 0x5f6   :  { %v3504_v61 = vmul.f32 1.442695, %v3494_v8  ;;  %23296 = vpow2.f32 %v3502_v46 }
 0x5f7   :  { %v3482_v33 = vpop.xlane.xlu1 %3481  ;;  %v3479_v30 = vpop.xlane.xlu0 %3478 }
 0x5f8   :  { %23298 = vpow2.f32 %v3504_v61  ;;  %v3496_v31 = vsub.f32 %v3455_v1, %v3482_v33  ;;  %v3495_v54 = vsub.f32 %v24431_v34, %v3479_v30 }
 0x5fa   :  { %v3508_v38 = vmul.f32 1.442695, %v3496_v31  ;;  %v3506_v14 = vmul.f32 1.442695, %v3495_v54 }
 0x5fb   :  { %v3488_v3 = vpop.xlane.xlu1 %3487  ;;  %v3485_v10 = vpop.xlane.xlu0 %3484 }
 0x5fc   :  { %23300 = vpow2.f32 %v3508_v38  ;;  %v3498_v2 = vsub.f32 %v3457_v53, %v3488_v3  ;;  %v3497_v27 = vsub.f32 %v3456_v35, %v3485_v10 }
 0x5fd   :  { %23302 = vpow2.f32 %v3506_v14 }
 0x5fe   :  { %v24481_v7 = vpop.eup %23294  ;;  %v3512_v39 = vmul.f32 1.442695, %v3498_v2  ;;  %v3510_v41 = vmul.f32 1.442695, %v3497_v27 }
 0x5ff   :  { %v3557_v43 = vpop.permute.xlu1 %3556  ;;  %v3491_v47 = vpop.xlane.xlu0 %3490  ;;  %v3516_v8 = vsel %vm2112_vm5, %v24481_v7, 0.0 }
 0x600   :  { %v24485_v1 = vpop.eup %23296  ;;  %23304 = vpow2.f32 %v3512_v39  ;;  %v3499_v54 = vsub.f32 %v24443_v26, %v3491_v47  ;;  %3517 = vadd.xlane.f32.xlu1 %v3516_v8  ;;  %22406 = vmatpush3.msk.msra.mxu1 %vm2215_vm6, %v3557_v43 }
 0x601   :  { %23306 = vpow2.f32 %v3510_v41  ;;  %v3519_v14 = vsel %vm2112_vm5, %v24485_v1, 0.0  ;;  %22415 = vmatprep.subr.mxu1 %v30110_v36 }
 0x602   :  { %v24492_v38 = vpop.eup %23298  ;;  %v3514_v34 = vmul.f32 1.442695, %v3499_v54  ;;  %3520 = vadd.xlane.f32.xlu0 %v3519_v14 }
 0x603   :  { %v3634_v35 = vpop.permute.xlu0 %3633  ;;  %v3522_v53 = vsel %vm2112_vm5, %v24492_v38, 0.0  ;;  %v3711_v39 = vpop.permute.xlu1 %3710 }
 0x604   :  { %23308 = vpow2.f32 %v3514_v34  ;;  %3523 = vadd.xlane.f32.xlu1 %v3522_v53  ;;  %22411 = vmatpush3.msk.msra.mxu0 %vm2215_vm6, %v3634_v35 }
 0x605   :  { %22420 = vmatprep.subr.mxu0 %v30110_v36 }
 0x606   :  { %v24498_v26 = vpop.eup %23300 }
 0x607   :  { %v24500_v46 = vpop.eup %23302  ;;  %v3528_v61 = vsel %vm2112_vm5, %v24498_v26, 0.0  ;;  %v3788_v41 = vpop.permute.xlu1 %3787 }
 0x608   :  { %3529 = vadd.xlane.f32.xlu1 %v3528_v61  ;;  %v3525_v33 = vsel %vm2112_vm5, %v24500_v46, 0.0  ;;  %v3865_v47 = vpop.permute.xlu0 %3864 }
 0x609   :  { %3526 = vadd.xlane.f32.xlu0 %v3525_v33 }
 0x60a   :  { %v24506_v30 = vpop.eup %23304 }
 0x60b   :  { %v24508_v31 = vpop.eup %23306  ;;  %v3534_v3 = vsel %vm2112_vm5, %v24506_v30, 0.0  ;;  %v3942_v43 = vpop.permute.xlu1 %3941 }
 0x60c   :  { %3535 = vadd.xlane.f32.xlu1 %v3534_v3  ;;  %v3531_v10 = vsel %vm2112_vm5, %v24508_v31, 0.0  ;;  %v4019_v54 = vpop.permute.xlu0 %4018 }
 0x60d   :  { %3532 = vadd.xlane.f32.xlu0 %v3531_v10 }
 0x60e   :  { %v24514_v2 = vpop.eup %23308 }
 0x60f   :  { %v3537_v27 = vsel %vm2112_vm5, %v24514_v2, 0.0  ;;  %v24562_v8 = vpop.permute.xlu1 %4095 }
 0x610   :  { %v24566_v34 = vpop.permute.xlu0 %4174 }
 0x611   :  { %3538 = vadd.xlane.f32.xlu0 %v3537_v27 }
 0x613   :  { %v24564_v14 = vpop.permute.xlu1 %4252 }
 0x614   :  { %v24570_v53 = vpop.permute.xlu0 %4172 }
 0x617   :  { %v24568_v35 = vpop.permute.xlu1 %4250 }
 0x618   :  { %v24574_v33 = vpop.permute.xlu0 %4330 }
 0x61b   :  { %v24572_v61 = vpop.permute.xlu1 %4408 }
 0x61d   :  { %4406 = vrot.lane.b32.xlu1 %v24071_v40, %s23582_s24 }
 0x621   :  { %4564 = vrot.lane.b32.xlu1 %v24090_v12, %s23581_s23 }
 0x625   :  { %4562 = vrot.lane.b32.xlu1 %v24090_v12, %s23582_s24 }
 0x627   :  { %4328 = vrot.lane.b32.xlu0 %v24057_v32, %s23582_s24 }
 0x629   :  { %4720 = vrot.lane.b32.xlu1 %v24106_v45, %s23581_s23 }
 0x62b   :  { %4486 = vrot.lane.b32.xlu0 %v24073_v13, %s23581_s23 }
 0x62d   :  { %4718 = vrot.lane.b32.xlu1 %v24106_v45, %s23582_s24 }
 0x62f   :  { %4484 = vrot.lane.b32.xlu0 %v24073_v13, %s23582_s24 }
 0x631   :  { %4901 = vrot.lane.b32.xlu1 %v24030_v9, %s23583_s25 }
 0x633   :  { %4642 = vrot.lane.b32.xlu0 %v24102_v42, %s23581_s23 }
 0x635   :  { %5055 = vrot.lane.b32.xlu1 %v24057_v32, %s23583_s25 }
 0x637   :  { %4640 = vrot.lane.b32.xlu0 %v24102_v42, %s23582_s24 }
 0x639   :  { %5132 = vrot.lane.b32.xlu1 %v24071_v40, %s23583_s25 }
 0x63b   :  { %4978 = vrot.lane.b32.xlu0 %v24045_v44, %s23583_s25 }
 0x63d   :  { %5286 = vrot.lane.b32.xlu1 %v24090_v12, %s23583_s25 }
 0x63f   :  { %5209 = vrot.lane.b32.xlu0 %v24073_v13, %s23583_s25 }
 0x641   :  { %5440 = vrot.lane.b32.xlu1 %v24106_v45, %s23583_s25 }
 0x643   :  { %5363 = vrot.lane.b32.xlu0 %v24102_v42, %s23583_s25 }
 0x645   :  { %5597 = vrot.lane.b32.xlu1 %v24045_v44, %s23584_s26 }
 0x647   :  { %5519 = vrot.lane.b32.xlu0 %v24030_v9, %s23584_s26 }
 0x649   :  { %5595 = vrot.lane.b32.xlu1 %v24045_v44, %s23585_s27 }
 0x64b   :  { %5517 = vrot.lane.b32.xlu0 %v24030_v9, %s23585_s27 }
 0x68d   :  { %v3518_v3 = vpop.xlane.xlu1 %3517 }
 0x68e   :  { %23310 = vrcp.f32 %v3518_v3 }
 0x68f   :  { %v3521_v10 = vpop.xlane.xlu0 %3520 }
 0x690   :  { %23312 = vrcp.f32 %v3521_v10 }
 0x691   :  { %v3524_v27 = vpop.xlane.xlu1 %3523 }
 0x692   :  { %23314 = vrcp.f32 %v3524_v27 }
 0x695   :  { %v3530_v37 = vpop.xlane.xlu1 %3529 }
 0x696   :  { %23316 = vrcp.f32 %v3530_v37  ;;  %v3527_v28 = vpop.xlane.xlu0 %3526 }
 0x697   :  { %23318 = vrcp.f32 %v3527_v28 }
 0x698   :  { %v23311_v6 = vpop.eup %23310 }
 0x699   :  { %v3536_v4 = vpop.xlane.xlu1 %3535  ;;  %v3548_v15 = vmul.f32 %v23311_v6, %v24481_v7 }
 0x69a   :  { %v23313_v5 = vpop.eup %23312  ;;  %23320 = vrcp.f32 %v3536_v4  ;;  %v3533_v25 = vpop.xlane.xlu0 %3532 }
 0x69b   :  { %23322 = vrcp.f32 %v3533_v25  ;;  %22408 = vmatmul.mubr.msk.f32.vlgmr.msra.gmra.mrb[32].mxu1 %vm2211_vm7, %v3548_v15  ;;  %v3549_v3 = vmul.f32 %v23313_v5, %v24485_v1 }
 0x69c   :  { %v23315_v24 = vpop.eup %23314  ;;  %22416 = vmatpush3.msk.msra.mxu1 %vm2215_vm6, %v3711_v39  ;;  %22417 = vmatprep.mubr.msk.f32.mxu1 %vm23573_vm1, %v30110_v36 }
 0x69d   :  { %v24582_v37 = vpop.permute.xlu1 %4406  ;;  %22425 = vmatprep.subr.mxu1 %v30110_v36  ;;  %22413 = vmatmul.mubr.msk.f32.vlgmr.msra.gmra.mrb[36].mxu0 %vm2211_vm7, %v3549_v3  ;;  %v3550_v4 = vmul.f32 %v23315_v24, %v24492_v38 }
 0x69e   :  { %v3539_v6 = vpop.xlane.xlu0 %3538  ;;  %22421 = vmatpush3.msk.msra.mxu0 %vm2215_vm6, %v3788_v41  ;;  %22422 = vmatprep.mubr.msk.f32.mxu0 %vm23573_vm1, %v30110_v36 }
 0x69f   :  { %23324 = vrcp.f32 %v3539_v6  ;;  %22418 = vmatmul.mubr.msk.f32.vlgmr.msra.gmra.mrb[34].mxu1 %vm2211_vm7, %v3550_v4  ;;  %22430 = vmatprep.subr.mxu0 %v30110_v36 }
 0x6a0   :  { %v23317_v25 = vpop.eup %23316  ;;  %22426 = vmatpush3.msk.msra.mxu1 %vm2215_vm6, %v3865_v47  ;;  %22427 = vmatprep.mubr.msk.f32.mxu1 %vm23573_vm1, %v30110_v36 }
 0x6a1   :  { %v23319_v5 = vpop.eup %23318  ;;  %22435 = vmatprep.subr.mxu1 %v30110_v36  ;;  %v3552_v24 = vmul.f32 %v23317_v25, %v24498_v26  ;;  %v4565_v15 = vpop.permute.xlu1 %4564 }
 0x6a2   :  { %v4329_v28 = vpop.permute.xlu0 %4328  ;;  %v3551_v7 = vmul.f32 %v23319_v5, %v24500_v46 }
 0x6a3   :  { %22428 = vmatmul.mubr.msk.f32.vlgmr.msra.gmra.mrb[36].mxu1 %vm2211_vm7, %v3552_v24 }
 0x6a4   :  { %v23321_v1 = vpop.eup %23320  ;;  %22423 = vmatmul.mubr.msk.f32.vlgmr.msra.gmra.mrb[38].mxu0 %vm2211_vm7, %v3551_v7  ;;  %22436 = vmatpush3.msk.msra.mxu1 %vm2215_vm6, %v4019_v54 }
 0x6a5   :  { %v23323_v38 = vpop.eup %23322  ;;  %22431 = vmatpush3.msk.msra.mxu0 %vm2215_vm6, %v3942_v43  ;;  %22432 = vmatprep.mubr.msk.f32.mxu0 %vm23573_vm1, %v30110_v36  ;;  %v3554_v39 = vmul.f32 %v23321_v1, %v24506_v30  ;;  %v4563_v41 = vpop.permute.xlu1 %4562 }
 0x6a6   :  { %22437 = vmatprep.mubr.msk.f32.mxu1 %vm23573_vm1, %v30110_v36  ;;  %22440 = vmatprep.subr.mxu0 %v30110_v36  ;;  %v3553_v26 = vmul.f32 %v23323_v38, %v24508_v31  ;;  %v4487_v46 = vpop.permute.xlu0 %4486 }
 0x6a7   :  { %22438 = vmatmul.mubr.msk.f32.vlgmr.msra.gmra.mrb[38].mxu1 %vm2211_vm7, %v3554_v39  ;;  %22445 = vmatprep.subr.mxu1 %v30110_v36 }
 0x6a8   :  { %22433 = vmatmul.mubr.msk.f32.vlgmr.msra.gmra.mrb[40].mxu0 %vm2211_vm7, %v3553_v26  ;;  %22447 = vmatprep.mubr.msk.f32.mxu1 %vm23573_vm1, %v30110_v36 }
 0x6a9   :  { %v23325_v43 = vpop.eup %23324  ;;  %22441 = vmatpush3.msk.msra.mxu0 %vm2215_vm6, %v24562_v8  ;;  %22442 = vmatprep.mubr.msk.f32.mxu0 %vm23573_vm1, %v30110_v36  ;;  %v4721_v47 = vpop.permute.xlu1 %4720 }
 0x6aa   :  { %v3555_v30 = vmul.f32 %v23325_v43, %v24514_v2  ;;  %22450 = vmatprep.subr.mxu0 %v30110_v36  ;;  %v4485_v31 = vpop.permute.xlu0 %4484 }
 0x6ab   :  { %22446 = vmatpush3.xpose.msk.msra.mxu1 %vm1224_vm4, %v24566_v34 }
 0x6ac   :  { %22443 = vmatmul.mubr.msk.f32.vlgmr.msra.gmra.mrb[42].mxu0 %vm2211_vm7, %v3555_v30  ;;  %22455 = vmatprep.subr.mxu1 %v30110_v36 }
 0x6ad   :  { %22452 = vmatprep.mubr.msk.f32.mxu0 %vm23573_vm1, %v30110_v36  ;;  %v4719_v8 = vpop.permute.xlu1 %4718 }
 0x6ae   :  { %22448 = vmatmul.mubr.msk.f32.vlgmr.msra.gmra.mrb[40].mxu1 %vm1224_vm4, %v24570_v53  ;;  %v4643_v2 = vpop.permute.xlu0 %4642 }
 0x6af   :  { %22456 = vmatpush3.xpose.msk.msra.mxu1 %vm1224_vm4, %v24574_v33  ;;  %22457 = vmatprep.mubr.msk.f32.mxu1 %vm23573_vm1, %v30110_v36 }
 0x6b0   :  { %22451 = vmatpush3.xpose.msk.msra.mxu0 %vm1224_vm4, %v24564_v14  ;;  %22465 = vmatprep.subr.mxu1 %v30110_v36 }
 0x6b1   :  { %22460 = vmatprep.subr.mxu0 %v30110_v36  ;;  %v4902_v14 = vpop.permute.xlu1 %4901 }
 0x6b2   :  { %22458 = vmatmul.mubr.msk.f32.vlgmr.msra.gmra.mrb[42].mxu1 %vm1224_vm4, %v4329_v28  ;;  %v4641_v54 = vpop.permute.xlu0 %4640 }
 0x6b3   :  { %22453 = vmatmul.mubr.msk.f32.vlgmr.msra.gmra.mrb[44].mxu0 %vm1224_vm4, %v24568_v35  ;;  %22466 = vmatpush3.xpose.msk.msra.mxu1 %vm1224_vm4, %v4487_v46 }
 0x6b4   :  { %22461 = vmatpush3.xpose.msk.msra.mxu0 %vm1224_vm4, %v24572_v61  ;;  %22462 = vmatprep.mubr.msk.f32.mxu0 %vm23573_vm1, %v30110_v36 }
 0x6b5   :  { %22467 = vmatprep.mubr.msk.f32.mxu1 %vm23573_vm1, %v30110_v36  ;;  %22470 = vmatprep.subr.mxu0 %v30110_v36 }
 0x6b6   :  { %22468 = vmatmul.mubr.msk.f32.vlgmr.msra.gmra.mrb[44].mxu1 %vm1224_vm4, %v4485_v31  ;;  %22475 = vmatprep.subr.mxu1 %v30110_v36  ;;  %v4979_v34 = vpop.permute.xlu0 %4978 }
 0x6b7   :  { %22463 = vmatmul.mubr.msk.f32.vlgmr.msra.gmra.mrb[46].mxu0 %vm1224_vm4, %v24582_v37  ;;  %22476 = vmatpush3.xpose.msk.msra.mxu1 %vm1224_vm4, %v4643_v2 }
 0x6b8   :  { %22471 = vmatpush3.xpose.msk.msra.mxu0 %vm1224_vm4, %v4565_v15  ;;  %22472 = vmatprep.mubr.msk.f32.mxu0 %vm23573_vm1, %v30110_v36 }
 0x6b9   :  { %22477 = vmatprep.mubr.msk.f32.mxu1 %vm23573_vm1, %v30110_v36  ;;  %22480 = vmatprep.subr.mxu0 %v30110_v36 }
 0x6ba   :  { %22478 = vmatmul.mubr.msk.f32.vlgmr.msra.gmra.mrb[46].mxu1 %vm1224_vm4, %v4641_v54  ;;  %22485 = vmatprep.subr.mxu1 %v30110_v36 }
 0x6bb   :  { %22473 = vmatmul.mubr.msk.f32.vlgmr.msra.gmra.mrb[48].mxu0 %vm1224_vm4, %v4563_v41  ;;  %22486 = vmatpush3.msk.msra.mxu1 %vm2215_vm6, %v4902_v14 }
 0x6bc   :  { %22481 = vmatpush3.xpose.msk.msra.mxu0 %vm1224_vm4, %v4721_v47  ;;  %22482 = vmatprep.mubr.msk.f32.mxu0 %vm23573_vm1, %v30110_v36 }
 0x6bd   :  { %22490 = vmatprep.subr.mxu0 %v30110_v36  ;;  %22487 = vmatprep.mubr.msk.f32.mxu1 %vm23573_vm1, %v30110_v36 }
 0x6be   :  { %22495 = vmatprep.subr.mxu1 %v30110_v36 }
 0x6bf   :  { %22483 = vmatmul.mubr.msk.f32.vlgmr.msra.gmra.mrb[50].mxu0 %vm1224_vm4, %v4719_v8 }
 0x6c0   :  { %22491 = vmatpush3.msk.msra.mxu0 %vm2215_vm6, %v4979_v34  ;;  %22492 = vmatprep.mubr.msk.f32.mxu0 %vm23573_vm1, %v30110_v36 }
 0x6c1   :  { %22500 = vmatprep.subr.mxu0 %v30110_v36 }
 0x76e   :  { %v24674_v35 = vpop.f32.mrb[32].mxu1 }
 0x76f   :  { %v22409_v53 = vpop.f32.mrb[33].mxu1 }
 0x770   :  { %v24676_v61 = vpop.f32.mrb[36].mxu0 }
 0x771   :  { %v22414_v33 = vpop.f32.mrb[37].mxu0 }
 0x772   :  { %v24678_v10 = vpop.f32.mrb[34].mxu1 }
 0x773   :  { %v22419_v27 = vpop.f32.mrb[35].mxu1 }
 0x776   :  { %v24680_v3 = vpop.f32.mrb[36].mxu1 }
 0x777   :  { %v24682_v37 = vpop.f32.mrb[38].mxu0  ;;  %v22429_v4 = vpop.f32.mrb[37].mxu1 }
 0x778   :  { %v22424_v6 = vpop.f32.mrb[39].mxu0 }
 0x77a   :  { %v24684_v25 = vpop.f32.mrb[38].mxu1 }
 0x77b   :  { %v24686_v5 = vpop.f32.mrb[40].mxu0  ;;  %v22439_v24 = vpop.f32.mrb[39].mxu1 }
 0x77c   :  { %v22434_v15 = vpop.f32.mrb[41].mxu0 }
 0x77f   :  { %v24688_v28 = vpop.f32.mrb[42].mxu0 }
 0x780   :  { %v22444_v7 = vpop.f32.mrb[43].mxu0 }
 0x781   :  { %v4246_v1 = vpop.f32.mrb[40].mxu1 }
 0x782   :  { %v4796_v38 = vmul.f32 0.35355338, %v4246_v1  ;;  %v22449_v39 = vpop.f32.mrb[41].mxu1 }
 0x784   :  { %4805 = vst.msk [vmem:[#allocation2 + $0x80] sm:$0x1f] %vm2112_vm5, %v4796_v38  ;;  %v4813_v26 = vsel %vm2112_vm5, %v4796_v38, -inf }
 0x785   :  { %4814 = vmax.xlane.f32.xlu0 %v4813_v26  ;;  %v4402_v46 = vpop.f32.mrb[42].mxu1 }
 0x786   :  { %v4324_v41 = vpop.f32.mrb[44].mxu0  ;;  %v4798_v43 = vmul.f32 0.35355338, %v4402_v46  ;;  %v22459_v30 = vpop.f32.mrb[43].mxu1 }
 0x787   :  { %v4797_v31 = vmul.f32 0.35355338, %v4324_v41  ;;  %v22454_v47 = vpop.f32.mrb[45].mxu0 }
 0x788   :  { %4807 = vst.msk [vmem:[#allocation2 + $0x90] sm:$0x1f] %vm2112_vm5, %v4798_v43  ;;  %v4819_v2 = vsel %vm2112_vm5, %v4798_v43, -inf }
 0x789   :  { %4806 = vst.msk [vmem:[#allocation2 + $0x88] sm:$0x1f] %vm2112_vm5, %v4797_v31  ;;  %4820 = vmax.xlane.f32.xlu0 %v4819_v2  ;;  %v4558_v8 = vpop.f32.mrb[44].mxu1  ;;  %v4816_v54 = vsel %vm2112_vm5, %v4797_v31, -inf }
 0x78a   :  { %v4800_v14 = vmul.f32 0.35355338, %v4558_v8  ;;  %4817 = vmax.xlane.f32.xlu1 %v4816_v54  ;;  %v4480_v34 = vpop.f32.mrb[46].mxu0  ;;  %v22469_v53 = vpop.f32.mrb[45].mxu1 }
 0x78b   :  { %v4799_v33 = vmul.f32 0.35355338, %v4480_v34  ;;  %v22464_v27 = vpop.f32.mrb[47].mxu0  ;;  %v24718_v54 = vpop.permute.xlu1 %5055 }
 0x78c   :  { %4809 = vst.msk [vmem:[#allocation2 + $0xa0] sm:$0x1f] %vm2112_vm5, %v4800_v14  ;;  %v4825_v4 = vsel %vm2112_vm5, %v4800_v14, -inf  ;;  %v24722_v53 = vpop.permute.xlu0 %5209 }
 0x78d   :  { %4808 = vst.msk [vmem:[#allocation2 + $0x98] sm:$0x1f] %vm2112_vm5, %v4799_v33  ;;  %v4714_v6 = vpop.f32.mrb[46].mxu1  ;;  %v4822_v24 = vsel %vm2112_vm5, %v4799_v33, -inf }
 0x78e   :  { %v24700_v15 = vmul.f32 0.35355338, %v4714_v6  ;;  %4826 = vmax.xlane.f32.xlu1 %v4825_v4  ;;  %4823 = vmax.xlane.f32.xlu0 %v4822_v24  ;;  %v4636_v7 = vpop.f32.mrb[48].mxu0  ;;  %v22479_v1 = vpop.f32.mrb[47].mxu1 }
 0x78f   :  { %v4801_v39 = vmul.f32 0.35355338, %v4636_v7  ;;  %v22474_v26 = vpop.f32.mrb[49].mxu0  ;;  %v24720_v34 = vpop.permute.xlu1 %5132 }
 0x790   :  { %4811 = vst.msk [vmem:[#allocation2 + $0xb0] sm:$0x1f] %vm2112_vm5, %v24700_v15  ;;  %v4831_v46 = vsel %vm2112_vm5, %v24700_v15, -inf  ;;  %v24726_v4 = vpop.permute.xlu0 %5363 }
 0x791   :  { %4810 = vst.msk [vmem:[#allocation2 + $0xa8] sm:$0x1f] %vm2112_vm5, %v4801_v39  ;;  %v4828_v41 = vsel %vm2112_vm5, %v4801_v39, -inf }
 0x792   :  { %4832 = vmax.xlane.f32.xlu1 %v4831_v46  ;;  %4829 = vmax.xlane.f32.xlu0 %v4828_v41  ;;  %v4792_v30 = vpop.f32.mrb[50].mxu0 }
 0x793   :  { %v24708_v47 = vmul.f32 0.35355338, %v4792_v30  ;;  %v22484_v2 = vpop.f32.mrb[51].mxu0  ;;  %v24724_v27 = vpop.permute.xlu1 %5286 }
 0x794   :  { %v24730_v24 = vpop.permute.xlu0 %5519 }
 0x795   :  { %4812 = vst.msk [vmem:[#allocation2 + $0xb8] sm:$0x1f] %vm2112_vm5, %v24708_v47  ;;  %v4834_v8 = vsel %vm2112_vm5, %v24708_v47, -inf }
 0x796   :  { %4835 = vmax.xlane.f32.xlu0 %v4834_v8 }
 0x797   :  { %v24728_v6 = vpop.permute.xlu1 %5440 }
 0x798   :  { %v24734_v1 = vpop.permute.xlu0 %5517 }
 0x79b   :  { %v24732_v7 = vpop.permute.xlu1 %5597 }
 0x79f   :  { %v24736_v46 = vpop.permute.xlu1 %5595 }
 0x7a3   :  { %5753 = vrot.lane.b32.xlu1 %v24071_v40, %s23584_s26 }
 0x7ac   :  { %5675 = vrot.lane.b32.xlu0 %v24057_v32, %s23584_s26 }
 0x812   :  { %v4815_v26 = vpop.xlane.xlu0 %4814 }
 0x813   :  { %v4837_v41 = vsub.f32 %v4796_v38, %v4815_v26 }
 0x815   :  { %v4845_v30 = vmul.f32 1.442695, %v4837_v41 }
 0x816   :  { %v4821_v2 = vpop.xlane.xlu0 %4820 }
 0x817   :  { %23326 = vpow2.f32 %v4845_v30  ;;  %v4839_v8 = vsub.f32 %v4798_v43, %v4821_v2  ;;  %v4818_v23 = vpop.xlane.xlu1 %4817 }
 0x818   :  { %v4838_v22 = vsub.f32 %v4797_v31, %v4818_v23 }
 0x819   :  { %v4849_v21 = vmul.f32 1.442695, %v4839_v8 }
 0x81a   :  { %v4847_v20 = vmul.f32 1.442695, %v4838_v22 }
 0x81b   :  { %23328 = vpow2.f32 %v4849_v21  ;;  %v4827_v17 = vpop.xlane.xlu1 %4826  ;;  %v4824_v16 = vpop.xlane.xlu0 %4823 }
 0x81c   :  { %23330 = vpow2.f32 %v4847_v20  ;;  %v4841_v0 = vsub.f32 %v4800_v14, %v4827_v17  ;;  %v4840_v63 = vsub.f32 %v4799_v33, %v4824_v16 }
 0x81e   :  { %v4853_v57 = vmul.f32 1.442695, %v4841_v0  ;;  %v4851_v55 = vmul.f32 1.442695, %v4840_v63 }
 0x81f   :  { %v4830_v56 = vpop.xlane.xlu0 %4829  ;;  %v4833_v16 = vpop.xlane.xlu1 %4832 }
 0x820   :  { %23332 = vpow2.f32 %v4853_v57  ;;  %v4842_v50 = vsub.f32 %v4801_v39, %v4830_v56  ;;  %v4843_v20 = vsub.f32 %v24700_v15, %v4833_v16 }
 0x821   :  { %v23327_v38 = vpop.eup %23326  ;;  %23334 = vpow2.f32 %v4851_v55 }
 0x822   :  { %v4855_v26 = vmul.f32 1.442695, %v4842_v50  ;;  %v4861_v43 = vsel %vm2112_vm5, %v23327_v38, 0.0  ;;  %v4857_v14 = vmul.f32 1.442695, %v4843_v20 }
 0x823   :  { %4862 = vadd.xlane.f32.xlu1 %v4861_v43  ;;  %v4836_v31 = vpop.xlane.xlu0 %4835  ;;  %v24783_v15 = vpop.permute.xlu1 %5753 }
 0x824   :  { %23336 = vpow2.f32 %v4855_v26  ;;  %v4844_v33 = vsub.f32 %v24708_v47, %v4836_v31 }
 0x825   :  { %v23329_v23 = vpop.eup %23328  ;;  %23338 = vpow2.f32 %v4857_v14 }
 0x826   :  { %v23331_v22 = vpop.eup %23330  ;;  %v4867_v21 = vsel %vm2112_vm5, %v23329_v23, 0.0  ;;  %v4859_v39 = vmul.f32 1.442695, %v4844_v33 }
 0x827   :  { %4868 = vadd.xlane.f32.xlu1 %v4867_v21  ;;  %v4864_v17 = vsel %vm2112_vm5, %v23331_v22, 0.0  ;;  %v24785_v26 = vpop.permute.xlu0 %5675 }
 0x828   :  { %4865 = vadd.xlane.f32.xlu0 %v4864_v17  ;;  %23340 = vpow2.f32 %v4859_v39 }
 0x82a   :  { %v24741_v0 = vpop.eup %23332 }
 0x82b   :  { %v24743_v63 = vpop.eup %23334  ;;  %v4873_v55 = vsel %vm2112_vm5, %v24741_v0, 0.0 }
 0x82c   :  { %4874 = vadd.xlane.f32.xlu1 %v4873_v55  ;;  %v4870_v50 = vsel %vm2112_vm5, %v24743_v63, 0.0 }
 0x82d   :  { %4871 = vadd.xlane.f32.xlu0 %v4870_v50 }
 0x82e   :  { %v24749_v56 = vpop.eup %23336 }
 0x82f   :  { %v4876_v57 = vsel %vm2112_vm5, %v24749_v56, 0.0  ;;  %v24759_v41 = vpop.eup %23338 }
 0x830   :  { %v4879_v30 = vsel %vm2112_vm5, %v24759_v41, 0.0 }
 0x831   :  { %4877 = vadd.xlane.f32.xlu0 %v4876_v57 }
 0x832   :  { %v24763_v2 = vpop.eup %23340 }
 0x833   :  { %v4882_v8 = vsel %vm2112_vm5, %v24763_v2, 0.0 }
 0x83d   :  { %5831 = vrot.lane.b32.xlu1 %v24073_v13, %s23584_s26 }
 0x847   :  { %5673 = vrot.lane.b32.xlu0 %v24057_v32, %s23585_s27 }
 0x861   :  { %4880 = vadd.xlane.f32.xlu1 %v4879_v30 }
 0x866   :  { %4883 = vadd.xlane.f32.xlu0 %v4882_v8 }
 0x872   :  { %5909 = vrot.lane.b32.xlu1 %v24090_v12, %s23584_s26 }
 0x876   :  { %5987 = vrot.lane.b32.xlu1 %v24102_v42, %s23584_s26 }
 0x87a   :  { %6065 = vrot.lane.b32.xlu1 %v24106_v45, %s23584_s26 }
 0x87c   :  { %5751 = vrot.lane.b32.xlu0 %v24071_v40, %s23585_s27 }
 0x87e   :  { %6063 = vrot.lane.b32.xlu1 %v24106_v45, %s23585_s27 }
 0x880   :  { %5829 = vrot.lane.b32.xlu0 %v24073_v13, %s23585_s27 }
 0x884   :  { %5907 = vrot.lane.b32.xlu0 %v24090_v12, %s23585_s27 }
 0x888   :  { %5985 = vrot.lane.b32.xlu0 %v24102_v42, %s23585_s27 }
 0x8b0   :  { %v4863_v47 = vpop.xlane.xlu1 %4862 }
 0x8b1   :  { %23342 = vrcp.f32 %v4863_v47 }
 0x8b4   :  { %v4869_v43 = vpop.xlane.xlu1 %4868 }
 0x8b5   :  { %23344 = vrcp.f32 %v4869_v43  ;;  %v4866_v21 = vpop.xlane.xlu0 %4865 }
 0x8b6   :  { %23346 = vrcp.f32 %v4866_v21 }
 0x8b9   :  { %v4875_v17 = vpop.xlane.xlu1 %4874 }
 0x8ba   :  { %23348 = vrcp.f32 %v4875_v17  ;;  %v4872_v55 = vpop.xlane.xlu0 %4871 }
 0x8bb   :  { %v23343_v50 = vpop.eup %23342  ;;  %23350 = vrcp.f32 %v4872_v55 }
 0x8bc   :  { %v4893_v57 = vmul.f32 %v23343_v50, %v23327_v38 }
 0x8be   :  { %v4878_v16 = vpop.xlane.xlu0 %4877  ;;  %22488 = vmatmul.mubr.msk.f32.vlgmr.msra.gmra.mrb[48].mxu1 %vm2211_vm7, %v4893_v57 }
 0x8bf   :  { %v23345_v20 = vpop.eup %23344  ;;  %23352 = vrcp.f32 %v4878_v16  ;;  %22496 = vmatpush3.msk.msra.mxu1 %vm2215_vm6, %v24718_v54  ;;  %22497 = vmatprep.mubr.msk.f32.mxu1 %vm23573_vm1, %v30110_v36 }
 0x8c0   :  { %v23347_v31 = vpop.eup %23346  ;;  %22505 = vmatprep.subr.mxu1 %v30110_v36  ;;  %v4895_v14 = vmul.f32 %v23345_v20, %v23329_v23 }
 0x8c1   :  { %v4894_v33 = vmul.f32 %v23347_v31, %v23331_v22 }
 0x8c2   :  { %22498 = vmatmul.mubr.msk.f32.vlgmr.msra.gmra.mrb[50].mxu1 %vm2211_vm7, %v4895_v14 }
 0x8c3   :  { %22493 = vmatmul.mubr.msk.f32.vlgmr.msra.gmra.mrb[52].mxu0 %vm2211_vm7, %v4894_v33  ;;  %22506 = vmatpush3.msk.msra.mxu1 %vm2215_vm6, %v24722_v53 }
 0x8c4   :  { %v23349_v38 = vpop.eup %23348  ;;  %22501 = vmatpush3.msk.msra.mxu0 %vm2215_vm6, %v24720_v34  ;;  %22502 = vmatprep.mubr.msk.f32.mxu0 %vm23573_vm1, %v30110_v36 }
 0x8c5   :  { %v23351_v54 = vpop.eup %23350  ;;  %22507 = vmatprep.mubr.msk.f32.mxu1 %vm23573_vm1, %v30110_v36  ;;  %22510 = vmatprep.subr.mxu0 %v30110_v36  ;;  %v4897_v23 = vmul.f32 %v23349_v38, %v24741_v0  ;;  %v5674_v0 = vpop.permute.xlu0 %5673 }
 0x8c6   :  { %22515 = vmatprep.subr.mxu1 %v30110_v36  ;;  %v4896_v22 = vmul.f32 %v23351_v54, %v24743_v63 }
 0x8c7   :  { %22508 = vmatmul.mubr.msk.f32.vlgmr.msra.gmra.mrb[52].mxu1 %vm2211_vm7, %v4897_v23 }
 0x8c8   :  { %22503 = vmatmul.mubr.msk.f32.vlgmr.msra.gmra.mrb[54].mxu0 %vm2211_vm7, %v4896_v22  ;;  %22516 = vmatpush3.msk.msra.mxu1 %vm2215_vm6, %v24726_v4 }
 0x8c9   :  { %v23353_v34 = vpop.eup %23352  ;;  %22511 = vmatpush3.msk.msra.mxu0 %vm2215_vm6, %v24724_v27  ;;  %22512 = vmatprep.mubr.msk.f32.mxu0 %vm23573_vm1, %v30110_v36  ;;  %v5832_v27 = vpop.permute.xlu1 %5831 }
 0x8ca   :  { %22520 = vmatprep.subr.mxu0 %v30110_v36  ;;  %v4898_v53 = vmul.f32 %v23353_v34, %v24749_v56  ;;  %22517 = vmatprep.mubr.msk.f32.mxu1 %vm23573_vm1, %v30110_v36 }
 0x8cb   :  { %22525 = vmatprep.subr.mxu1 %v30110_v36 }
 0x8cc   :  { %22513 = vmatmul.mubr.msk.f32.vlgmr.msra.gmra.mrb[56].mxu0 %vm2211_vm7, %v4898_v53 }
 0x8cd   :  { %22521 = vmatpush3.msk.msra.mxu0 %vm2215_vm6, %v24728_v6  ;;  %22522 = vmatprep.mubr.msk.f32.mxu0 %vm23573_vm1, %v30110_v36 }
 0x8ce   :  { %22530 = vmatprep.subr.mxu0 %v30110_v36 }
 0x8ee   :  { %v4881_v4 = vpop.xlane.xlu1 %4880 }
 0x8ef   :  { %23354 = vrcp.f32 %v4881_v4 }
 0x8f2   :  { %v5910_v8 = vpop.permute.xlu1 %5909 }
 0x8f3   :  { %v4884_v63 = vpop.xlane.xlu0 %4883 }
 0x8f4   :  { %23356 = vrcp.f32 %v4884_v63 }
 0x8f7   :  { %v5752_v39 = vpop.permute.xlu0 %5751 }
 0x8f9   :  { %v23355_v56 = vpop.eup %23354 }
 0x8fa   :  { %v4899_v30 = vmul.f32 %v23355_v56, %v24759_v41 }
 0x8fb   :  { %v5830_v47 = vpop.permute.xlu0 %5829 }
 0x8fc   :  { %22518 = vmatmul.mubr.msk.f32.vlgmr.msra.gmra.mrb[54].mxu1 %vm2211_vm7, %v4899_v30 }
 0x8fd   :  { %22526 = vmatpush3.xpose.msk.msra.mxu1 %vm1224_vm4, %v24730_v24  ;;  %22527 = vmatprep.mubr.msk.f32.mxu1 %vm23573_vm1, %v30110_v36  ;;  %v5988_v24 = vpop.permute.xlu1 %5987 }
 0x8fe   :  { %v23357_v6 = vpop.eup %23356  ;;  %22535 = vmatprep.subr.mxu1 %v30110_v36 }
 0x8ff   :  { %v4900_v43 = vmul.f32 %v23357_v6, %v24763_v2 }
 0x900   :  { %22528 = vmatmul.mubr.msk.f32.vlgmr.msra.gmra.mrb[56].mxu1 %vm1224_vm4, %v24734_v1  ;;  %v5908_v1 = vpop.permute.xlu0 %5907 }
 0x901   :  { %22523 = vmatmul.mubr.msk.f32.vlgmr.msra.gmra.mrb[58].mxu0 %vm2211_vm7, %v4900_v43  ;;  %22536 = vmatpush3.xpose.msk.msra.mxu1 %vm1224_vm4, %v24785_v26 }
 0x902   :  { %22531 = vmatpush3.xpose.msk.msra.mxu0 %vm1224_vm4, %v24732_v7  ;;  %22532 = vmatprep.mubr.msk.f32.mxu0 %vm23573_vm1, %v30110_v36  ;;  %v6066_v7 = vpop.permute.xlu1 %6065 }
 0x903   :  { %22537 = vmatprep.mubr.msk.f32.mxu1 %vm23573_vm1, %v30110_v36  ;;  %22540 = vmatprep.subr.mxu0 %v30110_v36 }
 0x904   :  { %22545 = vmatprep.subr.mxu1 %v30110_v36  ;;  %22538 = vmatmul.mubr.msk.f32.vlgmr.msra.gmra.mrb[58].mxu1 %vm1224_vm4, %v5674_v0 }
 0x905   :  { %22533 = vmatmul.mubr.msk.f32.vlgmr.msra.gmra.mrb[60].mxu0 %vm1224_vm4, %v24736_v46  ;;  %22546 = vmatpush3.xpose.msk.msra.mxu1 %vm1224_vm4, %v5832_v27  ;;  %v5986_v46 = vpop.permute.xlu0 %5985 }
 0x906   :  { %22541 = vmatpush3.xpose.msk.msra.mxu0 %vm1224_vm4, %v24783_v15  ;;  %22542 = vmatprep.mubr.msk.f32.mxu0 %vm23573_vm1, %v30110_v36  ;;  %v6064_v41 = vpop.permute.xlu1 %6063 }
 0x907   :  { %22547 = vmatprep.mubr.msk.f32.mxu1 %vm23573_vm1, %v30110_v36  ;;  %22550 = vmatprep.subr.mxu0 %v30110_v36 }
 0x908   :  { %22555 = vmatprep.subr.mxu1 %v30110_v36  ;;  %22548 = vmatmul.mubr.msk.f32.vlgmr.msra.gmra.mrb[60].mxu1 %vm1224_vm4, %v5830_v47 }
 0x909   :  { %22543 = vmatmul.mubr.msk.f32.vlgmr.msra.gmra.mrb[62].mxu0 %vm1224_vm4, %v5752_v39  ;;  %22556 = vmatpush3.xpose.msk.msra.mxu1 %vm1224_vm4, %v5988_v24 }
 0x90a   :  { %22551 = vmatpush3.xpose.msk.msra.mxu0 %vm1224_vm4, %v5910_v8  ;;  %22552 = vmatprep.mubr.msk.f32.mxu0 %vm23573_vm1, %v30110_v36 }
 0x90b   :  { %22557 = vmatprep.mubr.msk.f32.mxu1 %vm23573_vm1, %v30110_v36  ;;  %22560 = vmatprep.subr.mxu0 %v30110_v36 }
 0x90c   :  { %22558 = vmatmul.mubr.msk.f32.vlgmr.msra.gmra.mrb[62].mxu1 %vm1224_vm4, %v5986_v46  ;;  %22565 = vmatprep.subr.mxu1 %v30110_v36 }
 0x90d   :  { %22553 = vmatmul.mubr.msk.f32.vlgmr.msra.gmra.mrb[64].mxu0 %vm1224_vm4, %v5908_v1  ;;  %22567 = vmatprep.mubr.msk.f32.mxu1 %vm23573_vm1, %v30110_v36 }
 0x90e   :  { %22561 = vmatpush3.xpose.msk.msra.mxu0 %vm1224_vm4, %v6066_v7  ;;  %22562 = vmatprep.mubr.msk.f32.mxu0 %vm23573_vm1, %v30110_v36 }
 0x90f   :  { %22570 = vmatprep.subr.mxu0 %v30110_v36 }
 0x911   :  { %22563 = vmatmul.mubr.msk.f32.vlgmr.msra.gmra.mrb[66].mxu0 %vm1224_vm4, %v6064_v41 }
 0x912   :  { %22572 = vmatprep.mubr.msk.f32.mxu0 %vm23573_vm1, %v30110_v36 }
 0x991   :  { %v24880_v2 = vpop.f32.mrb[48].mxu1 }
 0x992   :  { %v22489_v15 = vpop.f32.mrb[49].mxu1 }
 0x995   :  { %v24882_v26 = vpop.f32.mrb[50].mxu1 }
 0x996   :  { %v24884_v21 = vpop.f32.mrb[52].mxu0  ;;  %v22499_v17 = vpop.f32.mrb[51].mxu1 }
 0x997   :  { %v22494_v55 = vpop.f32.mrb[53].mxu0 }
 0x99a   :  { %v24886_v50 = vpop.f32.mrb[52].mxu1 }
 0x99b   :  { %v24888_v57 = vpop.f32.mrb[54].mxu0  ;;  %v22509_v16 = vpop.f32.mrb[53].mxu1 }
 0x99c   :  { %v22504_v20 = vpop.f32.mrb[55].mxu0 }
 0x99f   :  { %v24890_v31 = vpop.f32.mrb[56].mxu0 }
 0x9a0   :  { %v22514_v14 = vpop.f32.mrb[57].mxu0 }
 0x9cf   :  { %v24892_v33 = vpop.f32.mrb[54].mxu1 }
 0x9d0   :  { %v22519_v38 = vpop.f32.mrb[55].mxu1 }
 0x9d3   :  { %v5591_v54 = vpop.f32.mrb[56].mxu1 }
 0x9d4   :  { %v24894_v23 = vpop.f32.mrb[58].mxu0  ;;  %v6141_v22 = vmul.f32 0.35355338, %v5591_v54  ;;  %v22529_v34 = vpop.f32.mrb[57].mxu1 }
 0x9d5   :  { %v22524_v53 = vpop.f32.mrb[59].mxu0 }
 0x9d6   :  { %6150 = vst.msk [vmem:[#allocation2 + $0xc0] sm:$0x1f] %vm2112_vm5, %v6141_v22  ;;  %v6158_v27 = vsel %vm2112_vm5, %v6141_v22, -inf }
 0x9d7   :  { %6159 = vmax.xlane.f32.xlu0 %v6158_v27  ;;  %v5747_v4 = vpop.f32.mrb[58].mxu1 }
 0x9d8   :  { %v5669_v0 = vpop.f32.mrb[60].mxu0  ;;  %v6143_v63 = vmul.f32 0.35355338, %v5747_v4  ;;  %v22539_v56 = vpop.f32.mrb[59].mxu1 }
 0x9d9   :  { %v6142_v39 = vmul.f32 0.35355338, %v5669_v0  ;;  %v22534_v30 = vpop.f32.mrb[61].mxu0 }
 0x9da   :  { %6152 = vst.msk [vmem:[#allocation2 + $0xd0] sm:$0x1f] %vm2112_vm5, %v6143_v63  ;;  %v6164_v6 = vsel %vm2112_vm5, %v6143_v63, -inf }
 0x9db   :  { %6151 = vst.msk [vmem:[#allocation2 + $0xc8] sm:$0x1f] %vm2112_vm5, %v6142_v39  ;;  %6165 = vmax.xlane.f32.xlu0 %v6164_v6  ;;  %v5903_v8 = vpop.f32.mrb[60].mxu1  ;;  %v6161_v47 = vsel %vm2112_vm5, %v6142_v39, -inf }
 0x9dc   :  { %v6145_v43 = vmul.f32 0.35355338, %v5903_v8  ;;  %6162 = vmax.xlane.f32.xlu1 %v6161_v47  ;;  %v5825_v24 = vpop.f32.mrb[62].mxu0  ;;  %v22549_v1 = vpop.f32.mrb[61].mxu1 }
 0x9dd   :  { %v6144_v7 = vmul.f32 0.35355338, %v5825_v24  ;;  %v22544_v46 = vpop.f32.mrb[63].mxu0 }
 0x9de   :  { %6154 = vst.msk [vmem:[#allocation2 + $0xe0] sm:$0x1f] %vm2112_vm5, %v6145_v43  ;;  %v6170_v41 = vsel %vm2112_vm5, %v6145_v43, -inf }
 0x9df   :  { %6153 = vst.msk [vmem:[#allocation2 + $0xd8] sm:$0x1f] %vm2112_vm5, %v6144_v7  ;;  %v6059_v15 = vpop.f32.mrb[62].mxu1  ;;  %v6167_v17 = vsel %vm2112_vm5, %v6144_v7, -inf }
 0x9e0   :  { %v6147_v55 = vmul.f32 0.35355338, %v6059_v15  ;;  %6171 = vmax.xlane.f32.xlu1 %v6170_v41  ;;  %6168 = vmax.xlane.f32.xlu0 %v6167_v17  ;;  %v5981_v16 = vpop.f32.mrb[64].mxu0  ;;  %v22559_v20 = vpop.f32.mrb[63].mxu1 }
 0x9e1   :  { %v6146_v14 = vmul.f32 0.35355338, %v5981_v16  ;;  %v22554_v38 = vpop.f32.mrb[65].mxu0 }
 0x9e2   :  { %6156 = vst.msk [vmem:[#allocation2 + $0xf0] sm:$0x1f] %vm2112_vm5, %v6147_v55  ;;  %v6176_v54 = vsel %vm2112_vm5, %v6147_v55, -inf }
 0x9e3   :  { %6155 = vst.msk [vmem:[#allocation2 + $0xe8] sm:$0x1f] %vm2112_vm5, %v6146_v14  ;;  %v6173_v34 = vsel %vm2112_vm5, %v6146_v14, -inf }
 0x9e4   :  { %6177 = vmax.xlane.f32.xlu1 %v6176_v54  ;;  %6174 = vmax.xlane.f32.xlu0 %v6173_v34  ;;  %v6137_v53 = vpop.f32.mrb[66].mxu0 }
 0x9e5   :  { %v6148_v27 = vmul.f32 0.35355338, %v6137_v53  ;;  %v22564_v4 = vpop.f32.mrb[67].mxu0 }
 0x9e7   :  { %6157 = vst.msk [vmem:[#allocation2 + $0xf8] sm:$0x1f] %vm2112_vm5, %v6148_v27  ;;  %v6179_v0 = vsel %vm2112_vm5, %v6148_v27, -inf }
 0x9e8   :  { %6180 = vmax.xlane.f32.xlu0 %v6179_v0 }
 0x9f5   :  { %6246 = vrot.lane.b32.xlu1 %v24030_v9, %s23586_s28 }
 0x9f9   :  { %6400 = vrot.lane.b32.xlu1 %v24057_v32, %s23586_s28 }
 0x9fd   :  { %6477 = vrot.lane.b32.xlu1 %v24071_v40, %s23586_s28 }
 0x9fe   :  { %6323 = vrot.lane.b32.xlu0 %v24045_v44, %s23586_s28 }
 0xa01   :  { %6631 = vrot.lane.b32.xlu1 %v24090_v12, %s23586_s28 }
 0xa02   :  { %6554 = vrot.lane.b32.xlu0 %v24073_v13, %s23586_s28 }
 0xa64   :  { %v6160_v56 = vpop.xlane.xlu0 %6159 }
 0xa65   :  { %v6182_v30 = vsub.f32 %v6141_v22, %v6160_v56 }
 0xa67   :  { %v6190_v6 = vmul.f32 1.442695, %v6182_v30 }
 0xa68   :  { %v6166_v8 = vpop.xlane.xlu0 %6165 }
 0xa69   :  { %23358 = vpow2.f32 %v6190_v6  ;;  %v6184_v9 = vsub.f32 %v6143_v63, %v6166_v8  ;;  %v6163_v47 = vpop.xlane.xlu1 %6162 }
 0xa6a   :  { %v6183_v32 = vsub.f32 %v6142_v39, %v6163_v47 }
 0xa6b   :  { %v6194_v24 = vmul.f32 1.442695, %v6184_v9 }
 0xa6c   :  { %v6192_v1 = vmul.f32 1.442695, %v6183_v32 }
 0xa6d   :  { %23360 = vpow2.f32 %v6194_v24  ;;  %v6172_v40 = vpop.xlane.xlu1 %6171  ;;  %v6169_v46 = vpop.xlane.xlu0 %6168 }
 0xa6e   :  { %23362 = vpow2.f32 %v6192_v1  ;;  %v6186_v44 = vsub.f32 %v6145_v43, %v6172_v40  ;;  %v6185_v41 = vsub.f32 %v6144_v7, %v6169_v46 }
 0xa70   :  { %v6198_v12 = vmul.f32 1.442695, %v6186_v44  ;;  %v6196_v15 = vmul.f32 1.442695, %v6185_v41 }
 0xa71   :  { %v6178_v17 = vpop.xlane.xlu1 %6177  ;;  %v6175_v13 = vpop.xlane.xlu0 %6174 }
 0xa72   :  { %23364 = vpow2.f32 %v6198_v12  ;;  %v6188_v22 = vsub.f32 %v6147_v55, %v6178_v17  ;;  %v6187_v16 = vsub.f32 %v6146_v14, %v6175_v13 }
 0xa73   :  { %v24924_v20 = vpop.eup %23358  ;;  %23366 = vpow2.f32 %v6196_v15 }
 0xa74   :  { %v6202_v63 = vmul.f32 1.442695, %v6188_v22  ;;  %v6200_v39 = vmul.f32 1.442695, %v6187_v16  ;;  %v6206_v38 = vsel %vm2112_vm5, %v24924_v20, 0.0 }
 0xa75   :  { %v6247_v54 = vpop.permute.xlu1 %6246  ;;  %v6181_v34 = vpop.xlane.xlu0 %6180  ;;  %6207 = vadd.xlane.f32.xlu1 %v6206_v38 }
 0xa76   :  { %23368 = vpow2.f32 %v6202_v63  ;;  %v6189_v43 = vsub.f32 %v6148_v27, %v6181_v34  ;;  %22566 = vmatpush3.msk.msra.mxu1 %vm2215_vm6, %v6247_v54  ;;  %v30111_v63 = vmov 0.0|0.0  }
 0xa77   :  { %v24929_v7 = vpop.eup %23360  ;;  %23370 = vpow2.f32 %v6200_v39  ;;  %22575 = vmatprep.subr.mxu1 %v30110_v36 }
 0xa78   :  { %v24932_v55 = vpop.eup %23362  ;;  %v6204_v14 = vmul.f32 1.442695, %v6189_v43  ;;  %v6212_v53 = vsel %vm2112_vm5, %v24929_v7, 0.0 }
 0xa79   :  { %v6324_v4 = vpop.permute.xlu0 %6323  ;;  %6213 = vadd.xlane.f32.xlu1 %v6212_v53  ;;  %v6209_v0 = vsel %vm2112_vm5, %v24932_v55, 0.0 }
 0xa7a   :  { %23372 = vpow2.f32 %v6204_v14  ;;  %6210 = vadd.xlane.f32.xlu0 %v6209_v0  ;;  %22571 = vmatpush3.msk.msra.mxu0 %vm2215_vm6, %v6324_v4  ;;  %v532_v4 = vld [vmem:[%s29850_s5] sm:$0xff]  ;;  %v533_v0 = vld [vmem:[%s29850_s5 + $0x8] sm:$0xff] }
 0xa7b   :  { %22580 = vmatprep.subr.mxu0 %v30110_v36 }
 0xa7c   :  { %v24940_v27 = vpop.eup %23364 }
 0xa7d   :  { %v24942_v56 = vpop.eup %23366  ;;  %v6218_v30 = vsel %vm2112_vm5, %v24940_v27, 0.0 }
 0xa7e   :  { %6219 = vadd.xlane.f32.xlu1 %v6218_v30  ;;  %v6215_v6 = vsel %vm2112_vm5, %v24942_v56, 0.0 }
 0xa7f   :  { %6216 = vadd.xlane.f32.xlu0 %v6215_v6 }
 0xa80   :  { %v24948_v8 = vpop.eup %23368 }
 0xa81   :  { %v24950_v9 = vpop.eup %23370  ;;  %v6224_v47 = vsel %vm2112_vm5, %v24948_v8, 0.0 }
 0xa82   :  { %6225 = vadd.xlane.f32.xlu1 %v6224_v47  ;;  %v6221_v32 = vsel %vm2112_vm5, %v24950_v9, 0.0 }
 0xa83   :  { %6222 = vadd.xlane.f32.xlu0 %v6221_v32 }
 0xa84   :  { %v24956_v24 = vpop.eup %23372 }
 0xa85   :  { %v6227_v1 = vsel %vm2112_vm5, %v24956_v24, 0.0 }
 0xa87   :  { %6228 = vadd.xlane.f32.xlu0 %v6227_v1 }
 0xa93   :  { %6785 = vrot.lane.b32.xlu1 %v24106_v45, %s23586_s28 }
 0xa97   :  { %6872 = vrot.lane.b32.xlu1 %v24676_v61, %s23587_s29 }
 0xa9b   :  { %6904 = vrot.lane.b32.xlu1 %v24884_v21, %s23588_s30 }
 0xa9d   :  { %6708 = vrot.lane.b32.xlu0 %v24102_v42, %s23586_s28  ;;  %v6401_v42 = vpop.permute.xlu1 %6400 }
 0xa9f   :  { %6906 = vrot.lane.b32.xlu1 %v24882_v26, %s23588_s30 }
 0xaa1   :  { %6870 = vrot.lane.b32.xlu0 %v24674_v35, %s23587_s29  ;;  %v6478_v45 = vpop.permute.xlu1 %6477 }
 0xaa3   :  { %6878 = vrot.lane.b32.xlu1 %v24680_v3, %s23587_s29 }
 0xaa5   :  { %6902 = vrot.lane.b32.xlu0 %v24880_v2, %s23588_s30  ;;  %v6632_v35 = vpop.permute.xlu1 %6631 }
 0xaa7   :  { %6910 = vrot.lane.b32.xlu1 %v24886_v50, %s23588_s30 }
 0xaa9   :  { %6874 = vrot.lane.b32.xlu0 %v24678_v10, %s23587_s29  ;;  %v6555_v10 = vpop.permute.xlu0 %6554 }
 0xaab   :  { %6882 = vrot.lane.b32.xlu1 %v24684_v25, %s23587_s29 }
 0xaad   :  { %6876 = vrot.lane.b32.xlu0 %v24682_v37, %s23587_s29 }
 0xaaf   :  { %6914 = vrot.lane.b32.xlu1 %v24892_v33, %s23588_s30 }
 0xab1   :  { %6908 = vrot.lane.b32.xlu0 %v24888_v57, %s23588_s30 }
 0xab5   :  { %6880 = vrot.lane.b32.xlu0 %v24686_v5, %s23587_s29 }
 0xab9   :  { %6912 = vrot.lane.b32.xlu0 %v24890_v31, %s23588_s30 }
 0xb02   :  { %v6208_v61 = vpop.xlane.xlu1 %6207 }
 0xb03   :  { %23374 = vrcp.f32 %v6208_v61  ;;  %v23241_v61 = vpack.i.bf16 %v533_v0, %v532_v4 }
 0xb06   :  { %v6214_v3 = vpop.xlane.xlu1 %6213 }
 0xb07   :  { %23376 = vrcp.f32 %v6214_v3  ;;  %v6211_v37 = vpop.xlane.xlu0 %6210 }
 0xb08   :  { %23378 = vrcp.f32 %v6211_v37 }
 0xb0b   :  { %v6220_v25 = vpop.xlane.xlu1 %6219 }
 0xb0c   :  { %23380 = vrcp.f32 %v6220_v25  ;;  %v6217_v2 = vpop.xlane.xlu0 %6216 }
 0xb0d   :  { %v23375_v26 = vpop.eup %23374  ;;  %23382 = vrcp.f32 %v6217_v2 }
 0xb0e   :  { %v6238_v5 = vmul.f32 %v23375_v26, %v24924_v20 }
 0xb0f   :  { %v6226_v21 = vpop.xlane.xlu1 %6225 }
 0xb10   :  { %23384 = vrcp.f32 %v6226_v21  ;;  %v6223_v50 = vpop.xlane.xlu0 %6222  ;;  %22568 = vmatmul.mubr.msk.f32.vlgmr.msra.gmra.mrb[64].mxu1 %vm2211_vm7, %v6238_v5 }
 0xb11   :  { %v23377_v57 = vpop.eup %23376  ;;  %23386 = vrcp.f32 %v6223_v50  ;;  %22576 = vmatpush3.msk.msra.mxu1 %vm2215_vm6, %v6401_v42  ;;  %22577 = vmatprep.mubr.msk.f32.mxu1 %vm23573_vm1, %v30110_v36 }
 0xb12   :  { %v23379_v31 = vpop.eup %23378  ;;  %22585 = vmatprep.subr.mxu1 %v30110_v36  ;;  %v6240_v33 = vmul.f32 %v23377_v57, %v24929_v7 }
 0xb13   :  { %v6239_v40 = vmul.f32 %v23379_v31, %v24932_v55  ;;  %v6786_v39 = vpop.permute.xlu1 %6785 }
 0xb14   :  { %v6229_v46 = vpop.xlane.xlu0 %6228  ;;  %22578 = vmatmul.mubr.msk.f32.vlgmr.msra.gmra.mrb[66].mxu1 %vm2211_vm7, %v6240_v33 }
 0xb15   :  { %23388 = vrcp.f32 %v6229_v46  ;;  %22573 = vmatmul.mubr.msk.f32.vlgmr.msra.gmra.mrb[68].mxu0 %vm2211_vm7, %v6239_v40  ;;  %22586 = vmatpush3.msk.msra.mxu1 %vm2215_vm6, %v6555_v10 }
 0xb16   :  { %v23381_v44 = vpop.eup %23380  ;;  %22581 = vmatpush3.msk.msra.mxu0 %vm2215_vm6, %v6478_v45  ;;  %22582 = vmatprep.mubr.msk.f32.mxu0 %vm23573_vm1, %v30110_v36 }
 0xb17   :  { %v23383_v41 = vpop.eup %23382  ;;  %22587 = vmatprep.mubr.msk.f32.mxu1 %vm23573_vm1, %v30110_v36  ;;  %22590 = vmatprep.subr.mxu0 %v30110_v36  ;;  %v6242_v12 = vmul.f32 %v23381_v44, %v24940_v27  ;;  %v6873_v37 = vpop.permute.xlu1 %6872 }
 0xb18   :  { %v6709_v15 = vpop.permute.xlu0 %6708  ;;  %22595 = vmatprep.subr.mxu1 %v30110_v36  ;;  %v6241_v17 = vmul.f32 %v23383_v41, %v24942_v56  ;;  %v23144_v56 = vpack.c.bf16 %v533_v0, %v532_v4 }
 0xb19   :  { %22588 = vmatmul.mubr.msk.f32.vlgmr.msra.gmra.mrb[68].mxu1 %vm2211_vm7, %v6242_v12 }
 0xb1a   :  { %v23385_v13 = vpop.eup %23384  ;;  %22583 = vmatmul.mubr.msk.f32.vlgmr.msra.gmra.mrb[70].mxu0 %vm2211_vm7, %v6241_v17  ;;  %22596 = vmatpush3.msk.msra.mxu1 %vm2215_vm6, %v6709_v15 }
 0xb1b   :  { %v23387_v22 = vpop.eup %23386  ;;  %22591 = vmatpush3.msk.msra.mxu0 %vm2215_vm6, %v6632_v35  ;;  %22592 = vmatprep.mubr.msk.f32.mxu0 %vm23573_vm1, %v30110_v36  ;;  %v6244_v16 = vmul.f32 %v23385_v13, %v24948_v8  ;;  %v534_v8 = vld [vmem:[%s29850_s5 + $0x10] sm:$0xff]  ;;  %v6905_v2 = vpop.permute.xlu1 %6904 }
 0xb1c   :  { %22597 = vmatprep.mubr.msk.f32.mxu1 %vm23573_vm1, %v30110_v36  ;;  %22600 = vmatprep.subr.mxu0 %v30110_v36  ;;  %v6243_v20 = vmul.f32 %v23387_v22, %v24950_v9  ;;  %v535_v9 = vld [vmem:[%s29850_s5 + $0x18] sm:$0xff]  ;;  %v6871_v3 = vpop.permute.xlu0 %6870 }
 0xb1d   :  { %22598 = vmatmul.mubr.msk.f32.vlgmr.msra.gmra.mrb[70].mxu1 %vm2211_vm7, %v6244_v16  ;;  %23143 = vmatprep.subr.bf16.mxu1 %v30111_v63  ;;  %v23147_v32 = vpack.c.bf16 %v535_v9, %v534_v8  ;;  %v23246_v10 = vpack.i.bf16 %v535_v9, %v534_v8  ;;  %v6958_v46 = vsel %vm1224_vm4, %v24397_v29, %v6871_v3 }
 0xb1e   :  { %22593 = vmatmul.mubr.msk.f32.vlgmr.msra.gmra.mrb[72].mxu0 %vm2211_vm7, %v6243_v20  ;;  %22613 = vmatprep.mubr.msk.f32.mxu1 %vm23573_vm1, %v30110_v36  ;;  %v6959_v16 = vsel %vm1224_vm4, %v24399_v52, %v6873_v37 }
 0xb1f   :  { %v23389_v38 = vpop.eup %23388  ;;  %22601 = vmatpush3.msk.msra.mxu0 %vm2215_vm6, %v6786_v39  ;;  %22602 = vmatprep.mubr.msk.f32.mxu0 %vm23573_vm1, %v30110_v36  ;;  %v6907_v5 = vpop.permute.xlu1 %6906 }
 0xb20   :  { %v6245_v54 = vmul.f32 %v23389_v38, %v24956_v24  ;;  %23149 = vmatprep.subr.bf16.mxu0 %v30111_v63  ;;  %23145 = vmatpush3.bf16.msra.mxu1 %v23144_v56  ;;  %v6903_v25 = vpop.permute.xlu0 %6902  ;;  %v6968_v38 = vsel %vm6966_vm9, %v6959_v16, %v6905_v2 }
 0xb21   :  { %23146 = vmatprep.subr.bf16.mxu1 %v30111_v63  ;;  %v6967_v44 = vsel %vm6966_vm9, %v6958_v46, %v6903_v25 }
 0xb22   :  { %22603 = vmatmul.mubr.msk.f32.vlgmr.msra.gmra.mrb[74].mxu0 %vm2211_vm7, %v6245_v54 }
 0xb23   :  { %22636 = vmatprep.mubr.msk.f32.mxu0 %vm23573_vm1, %v30110_v36  ;;  %v6879_v50 = vpop.permute.xlu1 %6878 }
 0xb24   :  { %23148 = vmatpush3.bf16.msra.mxu1 %v23147_v32  ;;  %v6875_v26 = vpop.permute.xlu0 %6874  ;;  %v6962_v20 = vsel %vm1224_vm4, %v24405_v59, %v6879_v50 }
 0xb25   :  { %23155 = vmatprep.subr.bf16.mxu1 %v30111_v63  ;;  %v6960_v17 = vsel %vm1224_vm4, %v24401_v60, %v6875_v26 }
 0xb26   :  { %v6969_v60 = vsel %vm6966_vm9, %v6960_v17, %v6907_v5 }
 0xb27   :  { %v6911_v31 = vpop.permute.xlu1 %6910 }
 0xb28   :  { %v6877_v21 = vpop.permute.xlu0 %6876  ;;  %v6971_v54 = vsel %vm6966_vm9, %v6962_v20, %v6911_v31 }
 0xb2b   :  { %v6883_v33 = vpop.permute.xlu1 %6882 }
 0xb2c   :  { %v6909_v57 = vpop.permute.xlu0 %6908 }
 0xb2f   :  { %v6915_v12 = vpop.permute.xlu1 %6914 }
 0xbe3   :  { %v6319_v34 = vpop.f32.mrb[64].mxu1 }
 0xbe4   :  { %v22569_v43 = vpop.f32.mrb[65].mxu1  ;;  %6934 = vrot.lane.b32.xlu0 %v6319_v34, %s23589_s12 }
 0xbe7   :  { %v6473_v7 = vpop.f32.mrb[66].mxu1 }
 0xbe8   :  { %v6396_v55 = vpop.f32.mrb[68].mxu0  ;;  %v22579_v14 = vpop.f32.mrb[67].mxu1  ;;  %6884 = vrot.lane.b32.xlu0 %v24688_v28, %s23587_s29 }
 0xbe9   :  { %6936 = vrot.lane.b32.xlu1 %v6396_v55, %s23589_s12  ;;  %v22574_v53 = vpop.f32.mrb[69].mxu0  ;;  %v6964_v14 = vsel %vm1224_vm4, %v24409_v62, %v6883_v33 }
 0xbec   :  { %v6627_v27 = vpop.f32.mrb[68].mxu1 }
 0xbed   :  { %v6550_v30 = vpop.f32.mrb[70].mxu0  ;;  %v22589_v6 = vpop.f32.mrb[69].mxu1  ;;  %6938 = vrot.lane.b32.xlu1 %v6473_v7, %s23589_s12  ;;  %v6961_v7 = vsel %vm1224_vm4, %v24403_v51, %v6877_v21 }
 0xbee   :  { %6940 = vrot.lane.b32.xlu0 %v6550_v30, %s23589_s12  ;;  %v22584_v28 = vpop.f32.mrb[71].mxu0  ;;  %v6970_v53 = vsel %vm6966_vm9, %v6961_v7, %v6909_v57 }
 0xbf0   :  { %v6781_v47 = vpop.f32.mrb[70].mxu1 }
 0xbf1   :  { %v6704_v24 = vpop.f32.mrb[72].mxu0  ;;  %v22599_v1 = vpop.f32.mrb[71].mxu1  ;;  %6942 = vrot.lane.b32.xlu1 %v6627_v27, %s23589_s12  ;;  %v25089_v27 = vsel %vm6966_vm9, %v6964_v14, %v6915_v12 }
 0xbf2   :  { %6944 = vrot.lane.b32.xlu0 %v6704_v24, %s23589_s12  ;;  %v22594_v42 = vpop.f32.mrb[73].mxu0 }
 0xbf5   :  { %v6858_v45 = vpop.f32.mrb[74].mxu0  ;;  %6946 = vrot.lane.b32.xlu1 %v6781_v47, %s23589_s12 }
 0xbf6   :  { %6916 = vrot.lane.b32.xlu0 %v24894_v23, %s23588_s30  ;;  %v22604_v35 = vpop.f32.mrb[75].mxu0  ;;  %v6881_v23 = vpop.permute.xlu0 %6880 }
 0xbf7   :  { %v6963_v51 = vsel %vm1224_vm4, %v24407_v58, %v6881_v23 }
 0xbf9   :  { %6948 = vrot.lane.b32.xlu1 %v6858_v45, %s23589_s12 }
 0xbfa   :  { %23242 = vrot.lane.b32.xlu0 %v23241_v61, %s23576_s19  ;;  %v6913_v40 = vpop.permute.xlu0 %6912 }
 0xbfb   :  { %v6972_v47 = vsel %vm6966_vm9, %v6963_v51, %v6913_v40 }
 0xbfd   :  { %23247 = vrot.lane.b32.xlu1 %v23246_v10, %s23576_s19 }
 0xc56   :  { %v6935_v41 = vpop.permute.xlu0 %6934 }
 0xc57   :  { %v6976_v15 = vsel %vm6975_vm8, %v6967_v44, %v6935_v41 }
 0xc58   :  { %v6992_v13 = vcombine.high %v6976_v15, %v6976_v15  ;;  %v6999_v22 = vrot.slane %v6976_v15, %v23709_v19 }
 0xc5a   :  { %v7007_v39 = vcombine.high %v6999_v22, %v6999_v22  ;;  %v6885_v29 = vpop.permute.xlu0 %6884  ;;  %v7006_v34 = vrot.slane %v6992_v13, %v23709_v19  ;;  %v7014_v55 = vrot.slane %v6999_v22, %v23709_v19 }
 0xc5b   :  { %v6937_v43 = vpop.permute.xlu1 %6936  ;;  %v25102_v58 = vsel %vm1224_vm4, %v24411_v11, %v6885_v29 }
 0xc5c   :  { %v7028_v52 = vrot.slane %v7007_v39, %v23709_v19  ;;  %v6977_v59 = vsel %vm6975_vm8, %v6968_v38, %v6937_v43  ;;  %v7021_v6 = vrot.slane %v7006_v34, %v23709_v19 }
 0xc5d   :  { %v7031_v4 = vcombine.high %v6977_v59, %v6977_v59  ;;  %v7038_v0 = vrot.slane %v6977_v59, %v23709_v19 }
 0xc5e   :  { %v7308_v56 = vcombine.low %v7014_v55, %v7028_v52  ;;  %v21688_v30 = vcombine.high %v7014_v55, %v7028_v52 }
 0xc5f   :  { %v7045_v28 = vrot.slane %v7031_v4, %v23709_v19  ;;  %v7046_v8 = vcombine.high %v7038_v0, %v7038_v0  ;;  %v7053_v62 = vrot.slane %v7038_v0, %v23709_v19  ;;  %v6939_v9 = vpop.permute.xlu1 %6938 }
 0xc60   :  { %v7318_v32 = vrot.slane %v7308_v56, %v23709_v19  ;;  %v7325_v24 = vrot.slane %v21688_v30, %v23709_v19  ;;  %v6978_v1 = vsel %vm6975_vm8, %v6969_v60, %v6939_v9  ;;  %v6941_v42 = vpop.permute.xlu0 %6940 }
 0xc61   :  { %v7067_v45 = vrot.slane %v7046_v8, %v23709_v19  ;;  %v7068_v35 = vcombine.high %v7053_v62, %v7053_v62  ;;  %v7310_v61 = vcombine.low %v7021_v6, %v7053_v62  ;;  %v7070_v3 = vcombine.high %v6978_v1, %v6978_v1 }
 0xc62   :  { %v7340_v10 = vcombine.low %v7318_v32, %v7325_v24  ;;  %v7077_v37 = vrot.slane %v6978_v1, %v23709_v19  ;;  %v6979_v25 = vsel %vm6975_vm8, %v6970_v53, %v6941_v42  ;;  %v7060_v2 = vrot.slane %v7045_v28, %v23709_v19 }
 0xc63   :  { %v7069_v26 = vcombine.high %v7067_v45, %v7067_v45  ;;  %v7311_v5 = vcombine.low %v7067_v45, %v7068_v35  ;;  %v7109_v21 = vcombine.high %v6979_v25, %v6979_v25  ;;  %v6943_v50 = vpop.permute.xlu1 %6942  ;;  %v7332_v11 = vrot.slane %v7310_v61, %v23709_v19 }
 0xc64   :  { %v25109_v57 = vrot.slane %v7340_v10, %v23709_v19  ;;  %v7084_v31 = vrot.slane %v7070_v3, %v23709_v19  ;;  %v7085_v23 = vcombine.high %v7077_v37, %v7077_v37  ;;  %v6945_v33 = vpop.permute.xlu0 %6944  ;;  %v7116_v44 = vrot.slane %v6979_v25, %v23709_v19 }
 0xc65   :  { %v7339_v40 = vrot.slane %v7311_v5, %v23709_v19  ;;  %v7357_v46 = vcombine.low %v7069_v26, %v7060_v2  ;;  %v7123_v41 = vrot.slane %v7109_v21, %v23709_v19  ;;  %v7092_v12 = vrot.slane %v7077_v37, %v23709_v19 }
 0xc66   :  { %v7099_v15 = vrot.slane %v7084_v31, %v23709_v19  ;;  %v7106_v17 = vrot.slane %v7085_v23, %v23709_v19  ;;  %v6980_v13 = vsel %vm6975_vm8, %v6971_v54, %v6943_v50  ;;  %v7124_v16 = vcombine.high %v7116_v44, %v7116_v44 }
 0xc67   :  { %v7341_v22 = vcombine.low %v7332_v11, %v7339_v40  ;;  %v7131_v20 = vrot.slane %v7116_v44, %v23709_v19  ;;  %v6981_v39 = vsel %vm6975_vm8, %v6972_v47, %v6945_v33  ;;  %v7367_v29 = vrot.slane %v7357_v46, %v23709_v19  ;;  %v6947_v30 = vpop.permute.xlu1 %6946 }
 0xc68   :  { %v7358_v38 = vcombine.low %v7092_v12, %v7106_v17  ;;  %v21689_v34 = vcombine.high %v7092_v12, %v7106_v17  ;;  %v7148_v43 = vcombine.high %v6980_v13, %v6980_v13  ;;  %v7138_v60 = vrot.slane %v7123_v41, %v23709_v19  ;;  %v6917_v9 = vpop.permute.xlu0 %6916 }
 0xc69   :  { %v7145_v7 = vrot.slane %v7124_v16, %v23709_v19  ;;  %v7146_v55 = vcombine.high %v7131_v20, %v7131_v20  ;;  %v7360_v52 = vcombine.low %v7099_v15, %v7131_v20  ;;  %v7155_v14 = vrot.slane %v6980_v13, %v23709_v19 }
 0xc6a   :  { %v7374_v59 = vrot.slane %v7358_v38, %v23709_v19  ;;  %v7381_v54 = vrot.slane %v21689_v34, %v23709_v19  ;;  %v7162_v53 = vrot.slane %v7148_v43, %v23709_v19  ;;  %v7187_v56 = vcombine.high %v6981_v39, %v6981_v39 }
 0xc6b   :  { %v7147_v4 = vcombine.high %v7145_v7, %v7145_v7  ;;  %v7388_v0 = vrot.slane %v7360_v52, %v23709_v19  ;;  %v7406_v51 = vcombine.low %v7145_v7, %v7146_v55  ;;  %v7355_v6 = vrot.slane %v7341_v22, %v23709_v19 }
 0xc6c   :  { %v7389_v28 = vcombine.low %v7367_v29, %v7374_v59  ;;  %v7163_v8 = vcombine.high %v7155_v14, %v7155_v14  ;;  %v7170_v62 = vrot.slane %v7155_v14, %v23709_v19  ;;  %v7177_v24 = vrot.slane %v7162_v53, %v23709_v19 }
 0xc6d   :  { %v7390_v47 = vcombine.low %v7381_v54, %v7388_v0  ;;  %v7407_v32 = vcombine.low %v7147_v4, %v7138_v60  ;;  %v7194_v1 = vrot.slane %v6981_v39, %v23709_v19  ;;  %v7416_v42 = vrot.slane %v7406_v51, %v23709_v19 }
 0xc6e   :  { %v7184_v45 = vrot.slane %v7163_v8, %v23709_v19  ;;  %v7201_v35 = vrot.slane %v7187_v56, %v23709_v19  ;;  %v6982_v61 = vsel %vm6975_vm8, %v25089_v27, %v6947_v30  ;;  %v6974_v25 = vsel %vm6966_vm9, %v25102_v58, %v6917_v9  ;;  %v6949_v27 = vpop.permute.xlu1 %6948 }
 0xc6f   :  { %v7202_v10 = vcombine.high %v7194_v1, %v7194_v1  ;;  %v7209_v3 = vrot.slane %v7194_v1, %v23709_v19  ;;  %v7226_v37 = vcombine.high %v6982_v61, %v6982_v61  ;;  %v7423_v2 = vrot.slane %v7407_v32, %v23709_v19 }
 0xc70   :  { %v7408_v26 = vcombine.low %v7170_v62, %v7184_v45  ;;  %v21690_v5 = vcombine.high %v7170_v62, %v7184_v45  ;;  %v7233_v21 = vrot.slane %v6982_v61, %v23709_v19  ;;  %v7216_v50 = vrot.slane %v7201_v35, %v23709_v19 }
 0xc71   :  { %v7223_v11 = vrot.slane %v7202_v10, %v23709_v19  ;;  %v7224_v31 = vcombine.high %v7209_v3, %v7209_v3  ;;  %v7455_v23 = vcombine.low %v7177_v24, %v7209_v3  ;;  %v7240_v46 = vrot.slane %v7226_v37, %v23709_v19 }
 0xc72   :  { %v7430_v33 = vrot.slane %v7408_v26, %v23709_v19  ;;  %v7437_v40 = vrot.slane %v21690_v5, %v23709_v19  ;;  %v7241_v58 = vcombine.high %v7233_v21, %v7233_v21  ;;  %v7248_v15 = vrot.slane %v7233_v21, %v23709_v19 }
 0xc73   :  { %v7225_v44 = vcombine.high %v7223_v11, %v7223_v11  ;;  %v7456_v41 = vcombine.low %v7223_v11, %v7224_v31  ;;  %v7465_v12 = vrot.slane %v7455_v23, %v23709_v19  ;;  %v6983_v22 = vsel %vm6975_vm8, %v6974_v25, %v6949_v27 }
 0xc74   :  { %v7439_v17 = vcombine.low %v7430_v33, %v7437_v40  ;;  %v7262_v13 = vrot.slane %v7241_v58, %v23709_v19  ;;  %v7356_v16 = vcombine.low %v25109_v57, %v7355_v6  ;;  %v7265_v29 = vcombine.high %v6983_v22, %v6983_v22  ;;  %v23243_v33 = vpop.permute.xlu0 %23242  ;;  %v23248_v58 = vpop.permute.xlu1 %23247 }
 0xc75   :  { %v7457_v20 = vcombine.low %v7225_v44, %v7216_v50  ;;  %v7472_v39 = vrot.slane %v7456_v41, %v23709_v19  ;;  %v7272_v38 = vrot.slane %v6983_v22, %v23709_v19  ;;  %v7255_v34 = vrot.slane %v7240_v46, %v23709_v19  ;;  %v25194_v50 = vld [vmem:[%s29853_s8] sm:$0x3f] }
 0xc76   :  { %v7458_v43 = vcombine.low %v7248_v15, %v7262_v13  ;;  %22614 = vmatmul.mubr.msk.f32.vlgmr.msra.gmra.mrb[72].mxu1 %vm832_vm3, %v7356_v16  ;;  %v7397_v60 = vrot.slane %v7389_v28, %v23709_v19  ;;  %v7404_v7 = vrot.slane %v7390_v47, %v23709_v19  ;;  %v21691_v52 = vcombine.high %v7248_v15, %v7262_v13 }
 0xc77   :  { %v7487_v55 = vcombine.low %v7465_v12, %v7472_v39  ;;  %v7279_v59 = vrot.slane %v7265_v29, %v23709_v19  ;;  %v7280_v57 = vcombine.high %v7272_v38, %v7272_v38  ;;  %22616 = vmatprep.mubr.msk.f32.mxu1 %vm23573_vm1, %v30110_v36  ;;  %v7479_v54 = vrot.slane %v7457_v20, %v23709_v19 }
 0xc78   :  { %v7486_v14 = vrot.slane %v7458_v43, %v23709_v19  ;;  %v7287_v53 = vrot.slane %v7272_v38, %v23709_v19  ;;  %v7405_v4 = vcombine.low %v7397_v60, %v7404_v7  ;;  %v7438_v51 = vcombine.low %v7416_v42, %v7423_v2 }
 0xc79   :  { %v7301_v0 = vrot.slane %v7280_v57, %v23709_v19  ;;  %v7453_v56 = vrot.slane %v7439_v17, %v23709_v19  ;;  %v7514_v8 = vrot.slane %v21691_v52, %v23709_v19  ;;  %v7294_v62 = vrot.slane %v7279_v59, %v23709_v19 }
 0xc7a   :  { %v7488_v30 = vcombine.low %v7479_v54, %v7486_v14  ;;  %v7302_v6 = vcombine.high %v7287_v53, %v7287_v53  ;;  %v7505_v28 = vcombine.low %v7255_v34, %v7287_v53  ;;  %22617 = vmatmul.mubr.msk.f32.gmra.mrb[74].mxu1 %vm832_vm3, %v7405_v4  ;;  %v7446_v47 = vrot.slane %v7438_v51, %v23709_v19 }
 0xc7b   :  { %v7303_v9 = vcombine.high %v7301_v0, %v7301_v0  ;;  %22619 = vmatprep.mubr.msk.f32.mxu1 %vm23573_vm1, %v30110_v36  ;;  %v7495_v1 = vrot.slane %v7487_v55, %v23709_v19  ;;  %v29899_v21 = vsub.s32 0, %v23706_v18  ;;  %v23245_v40 = vunpack.i.h.bf16 %v23243_v33 }
 0xc7c   :  { %v7506_v32 = vcombine.low %v7301_v0, %v7302_v6  ;;  %v7521_v24 = vrot.slane %v7505_v28, %v23709_v19  ;;  %v7502_v42 = vrot.slane %v7488_v30, %v23709_v19  ;;  %v7454_v35 = vcombine.low %v7446_v47, %v7453_v56  ;;  %v30112_v0 = vld [vmem:[#allocation7_spill] sm:$0xff]  ;;  %v30113_v56 = vld [vmem:[#allocation9_spill] sm:$0xff] }
 0xc7d   :  { %v7507_v45 = vcombine.low %v7303_v9, %v7294_v62  ;;  %v25199_v11 = vrot.slane %v25194_v50, %v29899_v21  ;;  %v23244_v46 = vunpack.i.l.bf16 %v23243_v33  ;;  %v23250_v12 = vunpack.i.h.bf16 %v23248_v58  ;;  %v30114_v62 = vld [vmem:[#allocation8_spill] sm:$0xff] }
 0xc7e   :  { %v7536_v61 = vcombine.low %v7514_v8, %v7521_v24  ;;  %v7503_v10 = vcombine.low %v7495_v1, %v7502_v42  ;;  %v7528_v3 = vrot.slane %v7506_v32, %v23709_v19  ;;  %22620 = vmatmul.mubr.msk.f32.gmra.mrb[76].mxu1 %vm832_vm3, %v7454_v35  ;;  %v23249_v15 = vunpack.i.l.bf16 %v23248_v58  ;;  %v30116_v32 = vld [vmem:[#allocation11_spill] sm:$0xff] }
 0xc7f   :  { %v7535_v37 = vrot.slane %v7507_v45, %v23709_v19  ;;  %22622 = vmatprep.mubr.msk.f32.mxu1 %vm23573_vm1, %v30110_v36  ;;  %v23150_v13 = vpack.c.bf16 %v23245_v40, %v23244_v46 }
 0xc80   :  { %v7544_v2 = vrot.slane %v7536_v61, %v23709_v19  ;;  %v23153_v38 = vpack.c.bf16 %v23250_v12, %v23249_v15  ;;  %v30117_v61 = vld [vmem:[#allocation12_spill] sm:$0xff] }
 0xc81   :  { %v7537_v25 = vcombine.low %v7528_v3, %v7535_v37  ;;  %23151 = vmatpush3.bf16.msra.mxu0 %v23150_v13 }
 0xc82   :  { %22623 = vmatmul.mubr.msk.f32.gmra.mrb[78].mxu1 %vm832_vm3, %v7503_v10  ;;  %23152 = vmatprep.subr.bf16.mxu0 %v30111_v63 }
 0xc83   :  { %v7551_v26 = vrot.slane %v7537_v25, %v23709_v19  ;;  %22625 = vmatprep.mubr.msk.f32.mxu1 %vm23573_vm1, %v30110_v36 }
 0xc85   :  { %v7552_v5 = vcombine.low %v7544_v2, %v7551_v26  ;;  %23154 = vmatpush3.bf16.msra.mxu0 %v23153_v38 }
 0xc86   :  { %23167 = vmatprep.subr.bf16.mxu0 %v30111_v63 }
 0xc87   :  { %22626 = vmatmul.mubr.msk.f32.gmra.mrb[80].mxu1 %vm832_vm3, %v7552_v5 }
 0xc88   :  { %22667 = vmatprep.mubr.msk.f32.mxu1 %vm23573_vm1, %v30110_v36 }
 0xd49   :  { %v7629_v31 = vpop.f32.mrb[72].mxu1 }
 0xd4a   :  { %v7630_v23 = vadd.f32 %v7629_v31, %v25199_v11  ;;  %v22615_v27 = vpop.f32.mrb[73].mxu1 }
 0xd4c   :  { %v7658_v44 = vcombine.high %v7630_v23, %v7630_v23  ;;  %v7665_v41 = vrot.slane %v7630_v23, %v23709_v19 }
 0xd4d   :  { %v7634_v17 = vpop.f32.mrb[74].mxu1 }
 0xd4e   :  { %v7672_v22 = vrot.slane %v7658_v44, %v23709_v19  ;;  %v7673_v16 = vcombine.high %v7665_v41, %v7665_v41  ;;  %v7681_v20 = vrot.slane %v7665_v41, %v23709_v19  ;;  %v7635_v39 = vadd.f32 %v7634_v17, %v25199_v11  ;;  %v22618_v29 = vpop.f32.mrb[75].mxu1 }
 0xd50   :  { %v7674_v34 = vcombine.high %v7672_v22, %v7672_v22  ;;  %v7688_v43 = vrot.slane %v7672_v22, %v23709_v19  ;;  %v7695_v60 = vrot.slane %v7673_v16, %v23709_v19  ;;  %v7703_v7 = vcombine.high %v7681_v20, %v7681_v20 }
 0xd51   :  { %v25210_v55 = vadd.f32 %v7681_v20, %v23744_v49  ;;  %v7707_v52 = vcombine.high %v7635_v39, %v7635_v39  ;;  %v7714_v59 = vrot.slane %v7635_v39, %v23709_v19  ;;  %v25217_v4 = vpop.f32.mrb[76].mxu1 }
 0xd52   :  { %v7702_v57 = vrot.slane %v7674_v34, %v23709_v19  ;;  %v7704_v54 = vcombine.high %v7688_v43, %v7688_v43  ;;  %v7705_v14 = vcombine.high %v7695_v60, %v7695_v60  ;;  %v25215_v53 = vadd.f32 %v7695_v60, %v23741_v48  ;;  %v22621_v28 = vpop.f32.mrb[77].mxu1  ;;  %v30115_v48 = vld [vmem:[#allocation10_spill] sm:$0xff] }
 0xd53   :  { %v25220_v51 = vadd.f32 %v7703_v7, %v30112_v0  ;;  %v25223_v30 = vadd.f32 %v7688_v43, %v30113_v56  ;;  %v8290_v49 = vmul.f32 %v25210_v55, %v25210_v55  ;;  %v7721_v6 = vrot.slane %v7707_v52, %v23709_v19 }
 0xd54   :  { %v7706_v8 = vcombine.high %v7702_v57, %v7702_v57  ;;  %v25229_v9 = vadd.f32 %v7705_v14, %v30114_v62  ;;  %v25232_v47 = vadd.f32 %v7702_v57, %v30115_v48  ;;  %v25235_v24 = vadd.f32 %v7704_v54, %v30116_v32  ;;  %v30119_v32 = vld [vmem:[#allocation14_spill] sm:$0xff] }
 0xd55   :  { %v8023_v1 = vcombine.low %v25210_v55, %v25215_v53  ;;  %v8291_v42 = vmul.f32 %v25215_v53, %v25215_v53  ;;  %v8292_v45 = vmul.f32 %v25220_v51, %v25220_v51  ;;  %v8294_v35 = vmul.f32 %v25223_v30, %v25223_v30  ;;  %v25255_v2 = vpop.f32.mrb[78].mxu1 }
 0xd56   :  { %v25247_v10 = vadd.f32 %v7706_v8, %v30117_v61  ;;  %v8024_v3 = vcombine.low %v25220_v51, %v25229_v9  ;;  %v8025_v37 = vcombine.low %v25223_v30, %v25232_v47  ;;  %v8293_v25 = vmul.f32 %v25229_v9, %v25229_v9  ;;  %v22624_v27 = vpop.f32.mrb[79].mxu1 }
 0xd57   :  { %v8033_v26 = vrot.slane %v8023_v1, %v23709_v19  ;;  %v8295_v5 = vmul.f32 %v25232_v47, %v25232_v47  ;;  %v8296_v31 = vmul.f32 %v25235_v24, %v25235_v24  ;;  %v8370_v23 = vcombine.low %v8290_v49, %v8291_v42  ;;  %v30120_v42 = vld [vmem:[#allocation15_spill] sm:$0xff] }
 0xd58   :  { %v8026_v33 = vcombine.low %v25235_v24, %v25247_v10  ;;  %v8040_v40 = vrot.slane %v8024_v3, %v23709_v19  ;;  %v8047_v46 = vrot.slane %v8025_v37, %v23709_v19  ;;  %v8297_v58 = vmul.f32 %v25247_v10, %v25247_v10  ;;  %v30121_v3 = vld [vmem:[#allocation16_spill] sm:$0xff] }
 0xd59   :  { %v8371_v44 = vcombine.low %v8292_v45, %v8293_v25  ;;  %v8372_v41 = vcombine.low %v8294_v35, %v8295_v5  ;;  %v8380_v12 = vrot.slane %v8370_v23, %v23709_v19  ;;  %v7722_v15 = vcombine.high %v7714_v59, %v7714_v59  ;;  %v30122_v25 = vld [vmem:[#allocation17_spill] sm:$0xff]  ;;  %v30123_v5 = vld [vmem:[#allocation18_spill] sm:$0xff]  ;;  %v30124_v23 = vld [vmem:[#allocation19_spill] sm:$0xff] }
 0xd5a   :  { %v8054_v17 = vrot.slane %v8026_v33, %v23709_v19  ;;  %v8055_v13 = vcombine.low %v8033_v26, %v8040_v40  ;;  %v8373_v22 = vcombine.low %v8296_v31, %v8297_v58  ;;  %v7723_v16 = vcombine.high %v7721_v6, %v7721_v6  ;;  %v25270_v20 = vpop.f32.mrb[80].mxu1  ;;  %v30126_v33 = vld [vmem:[#allocation20_spill] sm:$0xff] }
 0xd5b   :  { %v8387_v39 = vrot.slane %v8371_v44, %v23709_v19  ;;  %v8394_v29 = vrot.slane %v8372_v41, %v23709_v19  ;;  %v7730_v38 = vrot.slane %v7714_v59, %v23709_v19  ;;  %v7737_v34 = vrot.slane %v7721_v6, %v23709_v19  ;;  %v22627_v43 = vpop.f32.mrb[81].mxu1  ;;  %v30118_v59 = vld [vmem:[#allocation13_spill] sm:$0xff] }
 0xd5c   :  { %v8056_v60 = vcombine.low %v8047_v46, %v8054_v17  ;;  %v8063_v7 = vrot.slane %v8055_v13, %v23709_v19  ;;  %v8401_v52 = vrot.slane %v8373_v22, %v23709_v19  ;;  %v7744_v57 = vrot.slane %v7722_v15, %v23709_v19 }
 0xd5d   :  { %v8402_v54 = vcombine.low %v8380_v12, %v8387_v39  ;;  %v7751_v14 = vrot.slane %v7723_v16, %v23709_v19  ;;  %v7752_v0 = vcombine.high %v7730_v38, %v7730_v38  ;;  %v7753_v56 = vcombine.high %v7737_v34, %v7737_v34 }
 0xd5e   :  { %v8070_v49 = vrot.slane %v8056_v60, %v23709_v19  ;;  %v8403_v28 = vcombine.low %v8394_v29, %v8401_v52  ;;  %v7754_v8 = vcombine.high %v7744_v57, %v7744_v57  ;;  %v25282_v62 = vadd.f32 %v7730_v38, %v30118_v59 }
 0xd5f   :  { %v8410_v6 = vrot.slane %v8402_v54, %v23709_v19  ;;  %v7755_v48 = vcombine.high %v7751_v14, %v7751_v14  ;;  %v25286_v1 = vadd.f32 %v7744_v57, %v30119_v32  ;;  %v25289_v45 = vadd.f32 %v7752_v0, %v30120_v42 }
 0xd60   :  { %v8071_v35 = vcombine.low %v8063_v7, %v8070_v49  ;;  %v8417_v61 = vrot.slane %v8403_v28, %v23709_v19  ;;  %v25293_v37 = vadd.f32 %v7754_v8, %v30121_v3  ;;  %v25296_v26 = vadd.f32 %v7737_v34, %v30122_v25 }
 0xd61   :  { %v25299_v31 = vadd.f32 %v7751_v14, %v30123_v5  ;;  %v25302_v27 = vadd.f32 %v7753_v56, %v30124_v23  ;;  %v25305_v40 = vadd.f32 %v7755_v48, %v30126_v33  ;;  %v8072_v46 = vcombine.low %v25282_v62, %v25286_v1 }
 0xd62   :  { %v8273_v58 = vsel %vm832_vm3, %v8071_v35, 0.0  ;;  %v8418_v44 = vcombine.low %v8410_v6, %v8417_v61  ;;  %v8073_v41 = vcombine.low %v25289_v45, %v25293_v37  ;;  %v8298_v12 = vmul.f32 %v25282_v62, %v25282_v62 }
 0xd63   :  { %30125 = vst [vmem:[#allocation7_spill] sm:$0xff] %v25302_v27  ;;  %30127 = vst [vmem:[#allocation9_spill] sm:$0xff] %v25305_v40  ;;  %v8074_v15 = vcombine.low %v25296_v26, %v25299_v31  ;;  %v8075_v17 = vcombine.low %v25302_v27, %v25305_v40  ;;  %v8082_v13 = vrot.slane %v8072_v46, %v23709_v19 }
 0xd64   :  { %v8299_v22 = vmul.f32 %v25286_v1, %v25286_v1  ;;  %v8620_v16 = vsel %vm832_vm3, %v8418_v44, 0.0  ;;  %v8089_v39 = vrot.slane %v8073_v41, %v23709_v19  ;;  %v8300_v29 = vmul.f32 %v25289_v45, %v25289_v45 }
 0xd65   :  { %v8301_v38 = vmul.f32 %v25293_v37, %v25293_v37  ;;  %v8096_v34 = vrot.slane %v8074_v15, %v23709_v19  ;;  %v8103_v43 = vrot.slane %v8075_v17, %v23709_v19  ;;  %v8302_v60 = vmul.f32 %v25296_v26, %v25296_v26 }
 0xd66   :  { %v8303_v7 = vmul.f32 %v25299_v31, %v25299_v31  ;;  %v8104_v52 = vcombine.low %v8082_v13, %v8089_v39  ;;  %v8304_v57 = vmul.f32 %v25302_v27, %v25302_v27  ;;  %v8305_v54 = vmul.f32 %v25305_v40, %v25305_v40 }
 0xd67   :  { %v8419_v14 = vcombine.low %v8298_v12, %v8299_v22  ;;  %v8105_v0 = vcombine.low %v8096_v34, %v8103_v43  ;;  %v8420_v56 = vcombine.low %v8300_v29, %v8301_v38  ;;  %v7640_v28 = vadd.f32 %v25217_v4, %v25199_v11 }
 0xd68   :  { %v8421_v49 = vcombine.low %v8302_v60, %v8303_v7  ;;  %v8112_v8 = vrot.slane %v8104_v52, %v23709_v19  ;;  %v8422_v59 = vcombine.low %v8304_v57, %v8305_v54  ;;  %v7645_v48 = vadd.f32 %v25255_v2, %v25199_v11  ;;  %v30128_v60 = vld [vmem:[#allocation22_spill] sm:$0xff]  ;;  %v30129_v52 = vld [vmem:[#allocation25_spill] sm:$0xff] }
 0xd69   :  { %v8429_v6 = vrot.slane %v8419_v14, %v23709_v19  ;;  %v8119_v32 = vrot.slane %v8105_v0, %v23709_v19  ;;  %v8436_v42 = vrot.slane %v8420_v56, %v23709_v19  ;;  %v7756_v61 = vcombine.high %v7640_v28, %v7640_v28  ;;  %v30131_v0 = vld [vmem:[#allocation21_spill] sm:$0xff] }
 0xd6a   :  { %v8443_v35 = vrot.slane %v8421_v49, %v23709_v19  ;;  %v8450_v3 = vrot.slane %v8422_v59, %v23709_v19  ;;  %v7763_v25 = vrot.slane %v7640_v28, %v23709_v19  ;;  %v7805_v4 = vcombine.high %v7645_v48, %v7645_v48 }
 0xd6b   :  { %v25349_v5 = vrot.slane %v7645_v48, %v23709_v19  ;;  %v8120_v23 = vcombine.low %v8112_v8, %v8119_v32  ;;  %v8451_v33 = vcombine.low %v8429_v6, %v8436_v42  ;;  %v7770_v46 = vrot.slane %v7756_v61, %v23709_v19  ;;  %v30135_v8 = vld [vmem:[#allocation26_spill] sm:$0xff]  ;;  %v30137_v6 = vld [vmem:[#allocation27_spill] sm:$0xff] }
 0xd6c   :  { %v25354_v2 = vadd.f32 %v25270_v20, %v25199_v11  ;;  %v8452_v44 = vcombine.low %v8443_v35, %v8450_v3  ;;  %v7771_v41 = vcombine.high %v7763_v25, %v7763_v25  ;;  %v7779_v12 = vrot.slane %v7763_v25, %v23709_v19  ;;  %v30139_v35 = vld [vmem:[#allocation24_spill] sm:$0xff] }
 0xd6d   :  { %v7819_v15 = vrot.slane %v7805_v4, %v23709_v19  ;;  %v8274_v17 = vsel %vm832_vm3, %v8120_v23, 0.0  ;;  %v8459_v13 = vrot.slane %v8451_v33, %v23709_v19  ;;  %v7772_v22 = vcombine.high %v7770_v46, %v7770_v46  ;;  %v30141_v23 = vld [vmem:[#allocation28_spill] sm:$0xff] }
 0xd6e   :  { %v7786_v39 = vrot.slane %v7770_v46, %v23709_v19  ;;  %v25361_v29 = vadd.f32 %v8274_v17, %v8273_v58  ;;  %v8466_v38 = vrot.slane %v8452_v44, %v23709_v19  ;;  %v7793_v11 = vrot.slane %v7771_v41, %v23709_v19  ;;  %v30133_v58 = vld [vmem:[#allocation23_spill] sm:$0xff] }
 0xd6f   :  { %v7801_v20 = vcombine.high %v7779_v12, %v7779_v12  ;;  %v7800_v34 = vrot.slane %v7772_v22, %v23709_v19  ;;  %v25367_v7 = vadd.f32 %v7779_v12, %v30128_v60 }
 0xd70   :  { %v7802_v43 = vcombine.high %v7786_v39, %v7786_v39  ;;  %v25370_v57 = vadd.f32 %v7786_v39, %v30129_v52  ;;  %v8467_v54 = vcombine.low %v8459_v13, %v8466_v38  ;;  %v7803_v14 = vcombine.high %v7793_v11, %v7793_v11 }
 0xd71   :  { %v25373_v56 = vadd.f32 %v7793_v11, %v30131_v0  ;;  %v25376_v49 = vadd.f32 %v7801_v20, %v30133_v58  ;;  %v7804_v28 = vcombine.high %v7800_v34, %v7800_v34  ;;  %v25379_v59 = vadd.f32 %v7800_v34, %v30135_v8 }
 0xd72   :  { %30130 = vst [vmem:[#allocation8_spill] sm:$0xff] %v25370_v57  ;;  %v25382_v48 = vadd.f32 %v7802_v43, %v30137_v6  ;;  %v8306_v32 = vmul.f32 %v25367_v7, %v25367_v7  ;;  %v8621_v42 = vsel %vm832_vm3, %v8467_v54, 0.0  ;;  %v25388_v61 = vadd.f32 %v7803_v14, %v30139_v35 }
 0xd73   :  { %30132 = vst [vmem:[#allocation10_spill] sm:$0xff] %v25373_v56  ;;  %30134 = vst [vmem:[#allocation11_spill] sm:$0xff] %v25376_v49  ;;  %v8121_v3 = vcombine.low %v25367_v7, %v25373_v56  ;;  %v8307_v25 = vmul.f32 %v25373_v56, %v25373_v56  ;;  %v25394_v4 = vadd.f32 %v8621_v42, %v8620_v16 }
 0xd74   :  { %30136 = vst [vmem:[#allocation12_spill] sm:$0xff] %v25379_v59  ;;  %30138 = vst [vmem:[#allocation13_spill] sm:$0xff] %v25382_v48  ;;  %v25397_v33 = vadd.f32 %v7804_v28, %v30141_v23  ;;  %v8123_v46 = vcombine.low %v25370_v57, %v25379_v59  ;;  %v8308_v44 = vmul.f32 %v25376_v49, %v25376_v49 }
 0xd75   :  { %30140 = vst [vmem:[#allocation14_spill] sm:$0xff] %v25388_v61  ;;  %v8122_v41 = vcombine.low %v25376_v49, %v25388_v61  ;;  %v8131_v12 = vrot.slane %v8121_v3, %v23709_v19  ;;  %v8309_v17 = vmul.f32 %v25388_v61, %v25388_v61  ;;  %v8310_v16 = vmul.f32 %v25370_v57, %v25370_v57 }
 0xd76   :  { %30142 = vst [vmem:[#allocation15_spill] sm:$0xff] %v25397_v33  ;;  %v8124_v13 = vcombine.low %v25382_v48, %v25397_v33  ;;  %v8145_v22 = vrot.slane %v8123_v46, %v23709_v19  ;;  %v8311_v39 = vmul.f32 %v25379_v59, %v25379_v59  ;;  %v8312_v38 = vmul.f32 %v25382_v48, %v25382_v48 }
 0xd77   :  { %v8138_v11 = vrot.slane %v8122_v41, %v23709_v19  ;;  %v8313_v20 = vmul.f32 %v25397_v33, %v25397_v33  ;;  %v8468_v34 = vcombine.low %v8306_v32, %v8307_v25  ;;  %v8469_v43 = vcombine.low %v8308_v44, %v8309_v17 }
 0xd78   :  { %v8152_v60 = vrot.slane %v8124_v13, %v23709_v19  ;;  %v8470_v52 = vcombine.low %v8310_v16, %v8311_v39  ;;  %v7820_v54 = vcombine.high %v25349_v5, %v25349_v5  ;;  %v7821_v14 = vcombine.high %v7819_v15, %v7819_v15 }
 0xd79   :  { %v8153_v0 = vcombine.low %v8131_v12, %v8138_v11  ;;  %v8471_v58 = vcombine.low %v8312_v38, %v8313_v20  ;;  %v8478_v28 = vrot.slane %v8468_v34, %v23709_v19  ;;  %v8485_v8 = vrot.slane %v8469_v43, %v23709_v19  ;;  %v30145_v11 = vld [vmem:[#allocation29_spill] sm:$0xff]  ;;  %v30147_v34 = vld [vmem:[#allocation31_spill] sm:$0xff] }
 0xd7a   :  { %v8154_v6 = vcombine.low %v8145_v22, %v8152_v60  ;;  %v8492_v42 = vrot.slane %v8470_v52, %v23709_v19  ;;  %v7828_v32 = vrot.slane %v25349_v5, %v23709_v19  ;;  %v7835_v35 = vrot.slane %v7819_v15, %v23709_v19  ;;  %v30143_v5 = vld [vmem:[#allocation30_spill] sm:$0xff]  ;;  %v30149_v52 = vld [vmem:[#allocation32_spill] sm:$0xff] }
 0xd7b   :  { %v8161_v3 = vrot.slane %v8153_v0, %v23709_v19  ;;  %v8499_v25 = vrot.slane %v8471_v58, %v23709_v19  ;;  %v8500_v23 = vcombine.low %v8478_v28, %v8485_v8  ;;  %v7842_v46 = vrot.slane %v7820_v54, %v23709_v19  ;;  %v30153_v58 = vld [vmem:[#allocation34_spill] sm:$0xff] }
 0xd7c   :  { %v8168_v44 = vrot.slane %v8154_v6, %v23709_v19  ;;  %v7849_v41 = vrot.slane %v7821_v14, %v23709_v19  ;;  %v7850_v12 = vcombine.high %v7828_v32, %v7828_v32  ;;  %v7851_v17 = vcombine.high %v7835_v35, %v7835_v35  ;;  %v30151_v14 = vld [vmem:[#allocation33_spill] sm:$0xff]  ;;  %v30155_v6 = vld [vmem:[#allocation35_spill] sm:$0xff] }
 0xd7d   :  { %v8501_v16 = vcombine.low %v8492_v42, %v8499_v25  ;;  %v8508_v13 = vrot.slane %v8500_v23, %v23709_v19  ;;  %v7852_v22 = vcombine.high %v7842_v46, %v7842_v46  ;;  %v25436_v39 = vadd.f32 %v7828_v32, %v30143_v5  ;;  %v30157_v32 = vld [vmem:[#allocation36_spill] sm:$0xff] }
 0xd7e   :  { %v8169_v15 = vcombine.low %v8161_v3, %v8168_v44  ;;  %v7853_v38 = vcombine.high %v7849_v41, %v7849_v41  ;;  %v25439_v20 = vadd.f32 %v7842_v46, %v30145_v11  ;;  %v25442_v43 = vadd.f32 %v7850_v12, %v30147_v34 }
 0xd7f   :  { %30144 = vst [vmem:[#allocation16_spill] sm:$0xff] %v25436_v39  ;;  %v8515_v60 = vrot.slane %v8501_v16, %v23709_v19  ;;  %v25446_v54 = vadd.f32 %v7852_v22, %v30149_v52  ;;  %v25449_v0 = vadd.f32 %v7835_v35, %v30151_v14  ;;  %v25452_v28 = vadd.f32 %v7849_v41, %v30153_v58 }
 0xd80   :  { %30146 = vst [vmem:[#allocation17_spill] sm:$0xff] %v25439_v20  ;;  %30148 = vst [vmem:[#allocation18_spill] sm:$0xff] %v25442_v43  ;;  %v8276_v8 = vsel %vm832_vm3, %v8169_v15, 0.0  ;;  %v25456_v42 = vadd.f32 %v7851_v17, %v30155_v6  ;;  %v25459_v3 = vadd.f32 %v7853_v38, %v30157_v32  ;;  %v8170_v25 = vcombine.low %v25436_v39, %v25439_v20 }
 0xd81   :  { %30150 = vst [vmem:[#allocation19_spill] sm:$0xff] %v25446_v54  ;;  %30152 = vst [vmem:[#allocation20_spill] sm:$0xff] %v25449_v0  ;;  %v8277_v23 = vadd.f32 %v8276_v8, %v25361_v29  ;;  %v8516_v46 = vcombine.low %v8508_v13, %v8515_v60  ;;  %v8171_v35 = vcombine.low %v25442_v43, %v25446_v54 }
 0xd82   :  { %30154 = vst [vmem:[#allocation22_spill] sm:$0xff] %v25452_v28  ;;  %30156 = vst [vmem:[#allocation25_spill] sm:$0xff] %v25456_v42  ;;  %v8172_v44 = vcombine.low %v25449_v0, %v25452_v28  ;;  %v8173_v41 = vcombine.low %v25456_v42, %v25459_v3  ;;  %v8180_v12 = vrot.slane %v8170_v25, %v23709_v19 }
 0xd83   :  { %30158 = vst [vmem:[#allocation21_spill] sm:$0xff] %v25459_v3  ;;  %v8314_v17 = vmul.f32 %v25436_v39, %v25436_v39  ;;  %v8315_v16 = vmul.f32 %v25439_v20, %v25439_v20  ;;  %v8623_v29 = vsel %vm832_vm3, %v8516_v46, 0.0  ;;  %v8187_v13 = vrot.slane %v8171_v35, %v23709_v19 }
 0xd84   :  { %v8194_v22 = vrot.slane %v8172_v44, %v23709_v19  ;;  %v8316_v5 = vmul.f32 %v25442_v43, %v25442_v43  ;;  %v8624_v15 = vadd.f32 %v8623_v29, %v25394_v4  ;;  %v8201_v38 = vrot.slane %v8173_v41, %v23709_v19 }
 0xd85   :  { %v8317_v11 = vmul.f32 %v25446_v54, %v25446_v54  ;;  %v8318_v34 = vmul.f32 %v25449_v0, %v25449_v0  ;;  %v8202_v60 = vcombine.low %v8180_v12, %v8187_v13  ;;  %v8319_v52 = vmul.f32 %v25452_v28, %v25452_v28 }
 0xd86   :  { %v8320_v14 = vmul.f32 %v25456_v42, %v25456_v42  ;;  %v8321_v58 = vmul.f32 %v25459_v3, %v25459_v3  ;;  %v8203_v8 = vcombine.low %v8194_v22, %v8201_v38  ;;  %v8517_v4 = vcombine.low %v8314_v17, %v8315_v16 }
 0xd87   :  { %v8518_v6 = vcombine.low %v8316_v5, %v8317_v11  ;;  %v7854_v32 = vcombine.high %v25354_v2, %v25354_v2  ;;  %v8210_v25 = vrot.slane %v8202_v60, %v23709_v19  ;;  %v8519_v46 = vcombine.low %v8318_v34, %v8319_v52 }
 0xd88   :  { %v8520_v35 = vcombine.low %v8320_v14, %v8321_v58  ;;  %v7861_v44 = vrot.slane %v25354_v2, %v23709_v19  ;;  %v8217_v41 = vrot.slane %v8203_v8, %v23709_v19  ;;  %v8527_v12 = vrot.slane %v8517_v4, %v23709_v19  ;;  %v30159_v58 = vld [vmem:[#allocation38_spill] sm:$0xff] }
 0xd89   :  { %v8534_v29 = vrot.slane %v8518_v6, %v23709_v19  ;;  %v7868_v13 = vrot.slane %v7854_v32, %v23709_v19  ;;  %v8541_v17 = vrot.slane %v8519_v46, %v23709_v19 }
 0xd8a   :  { %v8548_v16 = vrot.slane %v8520_v35, %v23709_v19  ;;  %v7869_v22 = vcombine.high %v7861_v44, %v7861_v44  ;;  %v7877_v5 = vrot.slane %v7861_v44, %v23709_v19  ;;  %v8218_v38 = vcombine.low %v8210_v25, %v8217_v41  ;;  %v30160_v41 = vld [vmem:[#allocation37_spill] sm:$0xff] }
 0xd8b   :  { %v8549_v11 = vcombine.low %v8527_v12, %v8534_v29  ;;  %v7870_v34 = vcombine.high %v7868_v13, %v7868_v13  ;;  %v7884_v2 = vrot.slane %v7868_v13, %v23709_v19  ;;  %v30161_v13 = vld [vmem:[#allocation39_spill] sm:$0xff] }
 0xd8c   :  { %v8550_v60 = vcombine.low %v8541_v17, %v8548_v16  ;;  %v7891_v52 = vrot.slane %v7869_v22, %v23709_v19  ;;  %v7899_v14 = vcombine.high %v7877_v5, %v7877_v5  ;;  %v25507_v8 = vadd.f32 %v7877_v5, %v30159_v58  ;;  %v30162_v16 = vld [vmem:[#allocation41_spill] sm:$0xff]  ;;  %v30163_v5 = vld [vmem:[#allocation42_spill] sm:$0xff] }
 0xd8d   :  { %v8278_v4 = vsel %vm832_vm3, %v8218_v38, 0.0  ;;  %v8557_v6 = vrot.slane %v8549_v11, %v23709_v19  ;;  %v7898_v32 = vrot.slane %v7870_v34, %v23709_v19  ;;  %v7900_v46 = vcombine.high %v7884_v2, %v7884_v2  ;;  %v30164_v34 = vld [vmem:[#allocation40_spill] sm:$0xff] }
 0xd8e   :  { %v8279_v35 = vadd.f32 %v8278_v4, %v8277_v23  ;;  %v8564_v25 = vrot.slane %v8550_v60, %v23709_v19  ;;  %v7901_v44 = vcombine.high %v7891_v52, %v7891_v52  ;;  %v25514_v12 = vadd.f32 %v7891_v52, %v30160_v41  ;;  %v30165_v23 = vld [vmem:[#allocation43_spill] sm:$0xff]  ;;  %v30166_v4 = vld [vmem:[#allocation44_spill] sm:$0xff] }
 0xd8f   :  { %v7902_v29 = vcombine.high %v7898_v32, %v7898_v32  ;;  %v25517_v17 = vadd.f32 %v7899_v14, %v30161_v13  ;;  %v25520_v22 = vadd.f32 %v7884_v2, %v30162_v16  ;;  %v25523_v38 = vadd.f32 %v7898_v32, %v30163_v5 }
 0xd90   :  { %v8565_v11 = vcombine.low %v8557_v6, %v8564_v25  ;;  %v25526_v58 = vadd.f32 %v7901_v44, %v30164_v34  ;;  %v25529_v60 = vadd.f32 %v7900_v46, %v30165_v23  ;;  %v8219_v52 = vcombine.low %v25507_v8, %v25514_v12 }
 0xd91   :  { %v25534_v41 = vadd.f32 %v7902_v29, %v30166_v4  ;;  %v8221_v2 = vcombine.low %v25520_v22, %v25523_v38  ;;  %v8322_v14 = vmul.f32 %v25507_v8, %v25507_v8  ;;  %v8323_v6 = vmul.f32 %v25514_v12, %v25514_v12 }
 0xd92   :  { %v8625_v32 = vsel %vm832_vm3, %v8565_v11, 0.0  ;;  %v8220_v46 = vcombine.low %v25517_v17, %v25526_v58  ;;  %v8229_v25 = vrot.slane %v8219_v52, %v23709_v19  ;;  %v8324_v44 = vmul.f32 %v25517_v17, %v25517_v17 }
 0xd93   :  { %v8626_v29 = vadd.f32 %v8625_v32, %v8624_v15  ;;  %v8222_v13 = vcombine.low %v25529_v60, %v25534_v41  ;;  %v8243_v16 = vrot.slane %v8221_v2, %v23709_v19  ;;  %v8325_v5 = vmul.f32 %v25526_v58, %v25526_v58 }
 0xd94   :  { %v8236_v34 = vrot.slane %v8220_v46, %v23709_v19  ;;  %v8326_v11 = vmul.f32 %v25520_v22, %v25520_v22  ;;  %v8327_v23 = vmul.f32 %v25523_v38, %v25523_v38  ;;  %v8328_v52 = vmul.f32 %v25529_v60, %v25529_v60 }
 0xd95   :  { %v8250_v15 = vrot.slane %v8222_v13, %v23709_v19  ;;  %v8329_v4 = vmul.f32 %v25534_v41, %v25534_v41  ;;  %v8566_v2 = vcombine.low %v8322_v14, %v8323_v6  ;;  %v8567_v32 = vcombine.low %v8324_v44, %v8325_v5 }
 0xd96   :  { %v8251_v21 = vcombine.low %v8229_v25, %v8236_v34  ;;  %v8568_v63 = vcombine.low %v8326_v11, %v8327_v23  ;;  %v29916_v23 = vsub.s32 2, %v23706_v18 }
 0xd97   :  { %v8252_v36 = vcombine.low %v8243_v16, %v8250_v15  ;;  %v8569_v46 = vcombine.low %v8328_v52, %v8329_v4  ;;  %v8576_v33 = vrot.slane %v8566_v2, %v23709_v19  ;;  %v8583_v48 = vrot.slane %v8567_v32, %v23709_v19 }
 0xd98   :  { %v8259_v59 = vrot.slane %v8251_v21, %v23709_v19  ;;  %v8590_v61 = vrot.slane %v8568_v63, %v23709_v19  ;;  %v29917_v21 = vsub.s32 1, %v23706_v18 }
 0xd99   :  { %v8266_v57 = vrot.slane %v8252_v36, %v23709_v19  ;;  %v8597_v13 = vrot.slane %v8569_v46, %v23709_v19  ;;  %v8598_v49 = vcombine.low %v8576_v33, %v8583_v48 }
 0xd9b   :  { %v8267_v56 = vcombine.low %v8259_v59, %v8266_v57  ;;  %v8599_v14 = vcombine.low %v8590_v61, %v8597_v13  ;;  %v8606_v25 = vrot.slane %v8598_v49, %v23709_v19  ;;  %v8941_v61 = vrot.slane %v25194_v50, %v29916_v23 }
 0xd9d   :  { %v8280_v6 = vsel %vm832_vm3, %v8267_v56, 0.0  ;;  %v8613_v44 = vrot.slane %v8599_v14, %v23709_v19  ;;  %v8839_v56 = vrot.slane %v25194_v50, %v29917_v21  ;;  %v8950_v14 = vrot.slane %v8941_v61, %v23709_v19 }
 0xd9e   :  { %v8281_v16 = vadd.f32 %v8280_v6, %v8279_v35 }
 0xd9f   :  { %v8614_v5 = vcombine.low %v8606_v25, %v8613_v44  ;;  %v8841_v52 = vcombine.high %v8839_v56, %v8839_v56  ;;  %v8848_v46 = vrot.slane %v8839_v56, %v23709_v19 }
 0xda0   :  { %v8282_v34 = vrot.slane %v8281_v16, 4 }
 0xda1   :  { %v8627_v36 = vsel %vm832_vm3, %v8614_v5, 0.0  ;;  %v8855_v13 = vrot.slane %v8841_v52, %v23709_v19 }
 0xda2   :  { %v8283_v11 = vadd.f32 %v8282_v34, %v8281_v16  ;;  %v8628_v63 = vadd.f32 %v8627_v36, %v8626_v29  ;;  %v8943_v29 = vcombine.high %v8941_v61, %v8941_v61 }
 0xda3   :  { %v25651_v23 = vrot.slane %v8855_v13, %v23709_v19 }
 0xda4   :  { %v8284_v48 = vrot.slane %v8283_v11, 2  ;;  %v8629_v57 = vrot.slane %v8628_v63, 4  ;;  %v8957_v50 = vrot.slane %v8943_v29, %v23709_v19 }
 0xda6   :  { %v8285_v49 = vadd.f32 %v8284_v48, %v8283_v11  ;;  %v8630_v59 = vadd.f32 %v8629_v57, %v8628_v63  ;;  %v8856_v63 = vcombine.high %v8848_v46, %v8848_v46  ;;  %v8857_v48 = vcombine.high %v8855_v13, %v8855_v13 }
 0xda7   :  { %v8958_v57 = vcombine.high %v8950_v14, %v8950_v14 }
 0xda8   :  { %v8286_v33 = vrot.slane %v8285_v49, 1  ;;  %v8631_v35 = vrot.slane %v8630_v59, 2  ;;  %v25654_v21 = vrot.slane %v8856_v63, %v23709_v19 }
 0xdaa   :  { %v8287_v15 = vadd.f32 %v8286_v33, %v8285_v49  ;;  %v8632_v4 = vadd.f32 %v8631_v35, %v8630_v59  ;;  %v8959_v33 = vcombine.high %v8957_v50, %v8957_v50 }
 0xdac   :  { %v8289_v2 = vmul.f32 0.025, %v8287_v15  ;;  %v8633_v32 = vrot.slane %v8632_v4, 1 }
 0xdae   :  { %v8634_v6 = vadd.f32 %v8633_v32, %v8632_v4  ;;  %v8636_v25 = vmul.f32 %v8289_v2, %v8289_v2  ;;  %v8639_v44 = vcombine.high %v8289_v2, %v8289_v2  ;;  %v8646_v16 = vrot.slane %v8289_v2, %v23709_v19  ;;  %v30172_v32 = vld [vmem:[#allocation8_spill] sm:$0xff] }
 0xdb0   :  { %v8635_v5 = vmul.f32 0.025, %v8634_v6  ;;  %v8653_v34 = vrot.slane %v8639_v44, %v23709_v19  ;;  %v8654_v36 = vcombine.high %v8646_v16, %v8646_v16  ;;  %v25588_v11 = vrot.slane %v8646_v16, %v23709_v19 }
 0xdb1   :  { %v25657_v16 = vrot.slane %v8857_v48, %v23709_v19  ;;  %v25693_v48 = vcombine.high %v25651_v23, %v25651_v23 }
 0xdb2   :  { %30167 = vst [vmem:[#allocation23_spill] sm:$0xff] %v25588_v11  ;;  %v8637_v56 = vsub.f32 %v8635_v5, %v8636_v25  ;;  %v8655_v49 = vcombine.high %v8653_v34, %v8653_v34  ;;  %v25591_v59 = vrot.slane %v8653_v34, %v23709_v19  ;;  %v25594_v61 = vrot.slane %v8654_v36, %v23709_v19 }
 0xdb3   :  { %v25598_v35 = vcombine.high %v25588_v11, %v25588_v11  ;;  %v25660_v34 = vrot.slane %v8950_v14, %v23709_v19  ;;  %v25663_v36 = vrot.slane %v8957_v50, %v23709_v19  ;;  %v25697_v50 = vcombine.high %v25654_v21, %v25654_v21 }
 0xdb4   :  { %v25605_v4 = vrot.slane %v8655_v49, %v23709_v19  ;;  %v25609_v29 = vcombine.high %v25591_v59, %v25591_v59  ;;  %v25613_v2 = vcombine.high %v25594_v61, %v25594_v61  ;;  %v8736_v44 = vadd.f32 1e-05, %v8637_v56 }
 0xdb5   :  { %v25648_v56 = vrot.slane %v8848_v46, %v23709_v19  ;;  %v25669_v46 = vrot.slane %v8959_v33, %v23709_v19  ;;  %v25701_v14 = vcombine.high %v25657_v16, %v25657_v16  ;;  %v25705_v33 = vcombine.high %v25660_v34, %v25660_v34 }
 0xdb6   :  { %v25625_v5 = vcombine.high %v25605_v4, %v25605_v4  ;;  %23390 = vrsqrt.f32 %v8736_v44  ;;  %v25666_v44 = vrot.slane %v8958_v57, %v23709_v19  ;;  %v25709_v13 = vcombine.high %v25663_v36, %v25663_v36 }
 0xdb7   :  { %v25683_v57 = vcombine.high %v25648_v56, %v25648_v56  ;;  %v25717_v49 = vcombine.high %v25669_v46, %v25669_v46  ;;  %v8704_v25 = vsub.f32 %v25282_v62, %v25588_v11  ;;  %v8712_v15 = vsub.f32 %v25367_v7, %v25588_v11  ;;  %v30171_v62 = vld [vmem:[#allocation14_spill] sm:$0xff]  ;;  %v30173_v7 = vld [vmem:[#allocation12_spill] sm:$0xff] }
 0xdb8   :  { %v25713_v63 = vcombine.high %v25666_v44, %v25666_v44  ;;  %v30176_v40 = vsub.f32 %v25507_v8, %v25588_v11  ;;  %v30177_v52 = vsub.f32 %v25210_v55, %v25588_v11  ;;  %v30179_v55 = vsub.f32 %v25514_v12, %v25594_v61 }
 0xdb9   :  { %v30182_v11 = vsub.f32 %v25215_v53, %v25594_v61 }
 0xdc0   :  { %v23391_v6 = vpop.eup %23390 }
 0xdc1   :  { %v8739_v3 = vcombine.high %v23391_v6, %v23391_v6  ;;  %v8746_v42 = vrot.slane %v23391_v6, %v23709_v19 }
 0xdc3   :  { %v8753_v6 = vrot.slane %v8739_v3, %v23709_v19  ;;  %v8754_v43 = vcombine.high %v8746_v42, %v8746_v42  ;;  %v25744_v28 = vrot.slane %v8746_v42, %v23709_v19 }
 0xdc5   :  { %30170 = vst [vmem:[#allocation26_spill] sm:$0xff] %v25744_v28  ;;  %v8755_v3 = vcombine.high %v8753_v6, %v8753_v6  ;;  %v25757_v27 = vrot.slane %v8753_v6, %v23709_v19  ;;  %v25760_v42 = vrot.slane %v8754_v43, %v23709_v19  ;;  %v25764_v20 = vcombine.high %v25744_v28, %v25744_v28 }
 0xdc6   :  { %v8828_v39 = vmul.f32 %v25744_v28, %v30176_v40  ;;  %v8796_v18 = vmul.f32 %v25744_v28, %v30177_v52  ;;  %v8804_v6 = vmul.f32 %v25744_v28, %v8704_v25  ;;  %v25776_v54 = vmul.f32 %v25744_v28, %v8712_v15 }
 0xdc7   :  { %v25779_v43 = vrot.slane %v8755_v3, %v23709_v19  ;;  %v25783_v0 = vcombine.high %v25757_v27, %v25757_v27  ;;  %v25787_v40 = vcombine.high %v25760_v42, %v25760_v42  ;;  %v8829_v8 = vmul.f32 %v25760_v42, %v30179_v55 }
 0xdc8   :  { %30178 = vst [vmem:[#allocation27_spill] sm:$0xff] %v25776_v54  ;;  %v30180_v52 = vsub.f32 %v25517_v17, %v25598_v35  ;;  %v30181_v25 = vsub.f32 %v25520_v22, %v25591_v59  ;;  %v8930_v28 = vmul.f32 %v25648_v56, %v8828_v39  ;;  %v8797_v54 = vmul.f32 %v25760_v42, %v30182_v11 }
 0xdc9   :  { %v25808_v12 = vcombine.high %v25779_v43, %v25779_v43  ;;  %v30183_v17 = vsub.f32 %v25526_v58, %v25613_v2  ;;  %v30184_v22 = vsub.f32 %v25523_v38, %v25605_v4  ;;  %v30185_v39 = vsub.f32 %v25529_v60, %v25609_v29 }
 0xdca   :  { %v8830_v15 = vmul.f32 %v25764_v20, %v30180_v52  ;;  %v8832_v3 = vmul.f32 %v25757_v27, %v30181_v25  ;;  %v25823_v11 = vmul.f32 %v25654_v21, %v8829_v8  ;;  %v30187_v38 = vsub.f32 %v25534_v41, %v25625_v5 }
 0xdcb   :  { %v8831_v55 = vmul.f32 %v25787_v40, %v30183_v17  ;;  %v8833_v52 = vmul.f32 %v25779_v43, %v30184_v22  ;;  %v8834_v53 = vmul.f32 %v25783_v0, %v30185_v39  ;;  %v25832_v17 = vadd.f32 %v25660_v34, %v8930_v28 }
 0xdcc   :  { %v25826_v25 = vmul.f32 %v25683_v57, %v8830_v15  ;;  %v25829_v58 = vmul.f32 %v25651_v23, %v8832_v3  ;;  %v25838_v22 = vmul.f32 %v25808_v12, %v30187_v38  ;;  %v30189_v3 = vsub.f32 %v25220_v51, %v25598_v35 }
 0xdcd   :  { %30186 = vst [vmem:[#allocation24_spill] sm:$0xff] %v25832_v17  ;;  %v25841_v60 = vmul.f32 %v25697_v50, %v8831_v55  ;;  %v25844_v8 = vmul.f32 %v25657_v16, %v8833_v52  ;;  %v25847_v15 = vmul.f32 %v25693_v48, %v8834_v53  ;;  %v30190_v41 = vsub.f32 %v25229_v9, %v25613_v2 }
 0xdce   :  { %v8798_v28 = vmul.f32 %v25764_v20, %v30189_v3  ;;  %v30191_v55 = vsub.f32 %v25223_v30, %v25591_v59  ;;  %v30192_v52 = vsub.f32 %v25232_v47, %v25605_v4  ;;  %v30193_v51 = vsub.f32 %v25235_v24, %v25609_v29 }
 0xdcf   :  { %30188 = vst [vmem:[#allocation28_spill] sm:$0xff] %v25847_v15  ;;  %v8799_v39 = vmul.f32 %v25787_v40, %v30190_v41  ;;  %v30194_v9 = vsub.f32 %v25247_v10, %v25625_v5  ;;  %v8898_v17 = vmul.f32 %v25648_v56, %v8796_v18  ;;  %v8899_v30 = vmul.f32 %v25654_v21, %v8797_v54 }
 0xdd0   :  { %v8800_v38 = vmul.f32 %v25757_v27, %v30191_v55  ;;  %v8801_v53 = vmul.f32 %v25779_v43, %v30192_v52  ;;  %v8802_v3 = vmul.f32 %v25783_v0, %v30193_v51  ;;  %v8900_v55 = vmul.f32 %v25683_v57, %v8798_v28 }
 0xdd1   :  { %v8803_v41 = vmul.f32 %v25808_v12, %v30194_v9  ;;  %v8901_v47 = vmul.f32 %v25697_v50, %v8799_v39  ;;  %v25882_v10 = vadd.f32 %v25660_v34, %v8898_v17  ;;  %v25885_v9 = vadd.f32 %v25666_v44, %v8899_v30 }
 0xdd2   :  { %v8902_v52 = vmul.f32 %v25651_v23, %v8800_v38  ;;  %v8903_v15 = vmul.f32 %v25657_v16, %v8801_v53  ;;  %v8904_v24 = vmul.f32 %v25693_v48, %v8802_v3  ;;  %v25888_v18 = vadd.f32 %v25705_v33, %v8900_v55 }
 0xdd3   :  { %v8905_v51 = vmul.f32 %v25701_v14, %v8803_v41  ;;  %30195 = vst [vmem:[#allocation30_spill] sm:$0xff] %v25885_v9  ;;  %v25891_v54 = vadd.f32 %v25713_v63, %v8901_v47  ;;  %v9087_v53 = vcombine.low %v25882_v10, %v25885_v9  ;;  %v30202_v3 = vsub.f32 %v25286_v1, %v25594_v61 }
 0xdd4   :  { %30196 = vst [vmem:[#allocation29_spill] sm:$0xff] %v25888_v18  ;;  %v25894_v28 = vadd.f32 %v25663_v36, %v8902_v52  ;;  %v25897_v39 = vadd.f32 %v25669_v46, %v8903_v15  ;;  %v25900_v38 = vadd.f32 %v25709_v13, %v8904_v24  ;;  %v30203_v55 = vsub.f32 %v25289_v45, %v25598_v35 }
 0xdd5   :  { %30197 = vst [vmem:[#allocation31_spill] sm:$0xff] %v25891_v54  ;;  %v25903_v17 = vadd.f32 %v25717_v49, %v8905_v51  ;;  %v8805_v41 = vmul.f32 %v25760_v42, %v30202_v3  ;;  %v9088_v30 = vcombine.low %v25888_v18, %v25891_v54  ;;  %v30204_v52 = vsub.f32 %v25293_v37, %v25613_v2 }
 0xdd6   :  { %30198 = vst [vmem:[#allocation32_spill] sm:$0xff] %v25894_v28  ;;  %30199 = vst [vmem:[#allocation33_spill] sm:$0xff] %v25897_v39  ;;  %v9089_v15 = vcombine.low %v25894_v28, %v25897_v39  ;;  %v8806_v47 = vmul.f32 %v25764_v20, %v30203_v55  ;;  %v9097_v51 = vrot.slane %v9087_v53, %v23709_v19  ;;  %v30209_v53 = vld [vmem:[#allocation9_spill] sm:$0xff] }
 0xdd7   :  { %30200 = vst [vmem:[#allocation34_spill] sm:$0xff] %v25900_v38  ;;  %30201 = vst [vmem:[#allocation35_spill] sm:$0xff] %v25903_v17  ;;  %v8807_v24 = vmul.f32 %v25787_v40, %v30204_v52  ;;  %v9090_v1 = vcombine.low %v25900_v38, %v25903_v17  ;;  %v30205_v3 = vsub.f32 %v25296_v26, %v25591_v59  ;;  %v30207_v52 = vld [vmem:[#allocation7_spill] sm:$0xff] }
 0xdd8   :  { %v30206_v45 = vsub.f32 %v25299_v31, %v25605_v4  ;;  %v9104_v54 = vrot.slane %v9088_v30, %v23709_v19  ;;  %v9111_v37 = vrot.slane %v9089_v15, %v23709_v19  ;;  %v30208_v28 = vsub.f32 %v30207_v52, %v25609_v29 }
 0xdd9   :  { %v8808_v39 = vmul.f32 %v25757_v27, %v30205_v3  ;;  %v30210_v38 = vsub.f32 %v30209_v53, %v25625_v5  ;;  %v9118_v3 = vrot.slane %v9090_v1, %v23709_v19  ;;  %v8906_v31 = vmul.f32 %v25648_v56, %v8804_v6 }
 0xdda   :  { %v8809_v55 = vmul.f32 %v25779_v43, %v30206_v45  ;;  %v8810_v17 = vmul.f32 %v25783_v0, %v30208_v28  ;;  %v8907_v45 = vmul.f32 %v25654_v21, %v8805_v41  ;;  %v8908_v30 = vmul.f32 %v25683_v57, %v8806_v47 }
 0xddb   :  { %v8811_v26 = vmul.f32 %v25808_v12, %v30210_v38  ;;  %v9119_v18 = vcombine.low %v9097_v51, %v9104_v54  ;;  %v8909_v15 = vmul.f32 %v25697_v50, %v8807_v24  ;;  %v8910_v52 = vmul.f32 %v25651_v23, %v8808_v39 }
 0xddc   :  { %v8911_v28 = vmul.f32 %v25657_v16, %v8809_v55  ;;  %v9120_v9 = vcombine.low %v9111_v37, %v9118_v3  ;;  %v8912_v53 = vmul.f32 %v25693_v48, %v8810_v17  ;;  %v25954_v1 = vadd.f32 %v25660_v34, %v8906_v31 }
 0xddd   :  { %v8913_v38 = vmul.f32 %v25701_v14, %v8811_v26  ;;  %v9127_v6 = vrot.slane %v9119_v18, %v23709_v19  ;;  %v25958_v41 = vadd.f32 %v25666_v44, %v8907_v45  ;;  %v25961_v54 = vadd.f32 %v25705_v33, %v8908_v30  ;;  %v30217_v26 = vld [vmem:[#allocation10_spill] sm:$0xff]  ;;  %v30219_v30 = vld [vmem:[#allocation11_spill] sm:$0xff] }
 0xdde   :  { %v25964_v39 = vadd.f32 %v25713_v63, %v8909_v15  ;;  %v9134_v47 = vrot.slane %v9120_v9, %v23709_v19  ;;  %v25968_v17 = vadd.f32 %v25663_v36, %v8910_v52  ;;  %v25971_v24 = vadd.f32 %v25669_v46, %v8911_v28 }
 0xddf   :  { %30211 = vst [vmem:[#allocation36_spill] sm:$0xff] %v25961_v54  ;;  %v25974_v51 = vadd.f32 %v25709_v13, %v8912_v53  ;;  %v25977_v18 = vadd.f32 %v25717_v49, %v8913_v38  ;;  %v9136_v55 = vcombine.low %v25954_v1, %v25958_v41  ;;  %v30218_v9 = vsub.f32 %v30217_v26, %v25594_v61 }
 0xde0   :  { %30212 = vst [vmem:[#allocation38_spill] sm:$0xff] %v25964_v39  ;;  %30213 = vst [vmem:[#allocation37_spill] sm:$0xff] %v25968_v17  ;;  %v9137_v37 = vcombine.low %v25961_v54, %v25964_v39  ;;  %v9135_v31 = vcombine.low %v9127_v6, %v9134_v47  ;;  %v9138_v45 = vcombine.low %v25968_v17, %v25971_v24 }
 0xde1   :  { %30214 = vst [vmem:[#allocation39_spill] sm:$0xff] %v25971_v24  ;;  %30215 = vst [vmem:[#allocation41_spill] sm:$0xff] %v25974_v51  ;;  %v8813_v3 = vmul.f32 %v25760_v42, %v30218_v9  ;;  %v30220_v15 = vsub.f32 %v30219_v30, %v25598_v35  ;;  %v30221_v28 = vsub.f32 %v30171_v62, %v25613_v2  ;;  %v30229_v24 = vld [vmem:[#allocation27_spill] sm:$0xff] }
 0xde2   :  { %30216 = vst [vmem:[#allocation42_spill] sm:$0xff] %v25977_v18  ;;  %v9139_v38 = vcombine.low %v25974_v51, %v25977_v18  ;;  %v9146_v26 = vrot.slane %v9136_v55, %v23709_v19  ;;  %v9153_v6 = vrot.slane %v9137_v37, %v23709_v19  ;;  %v30222_v47 = vsub.f32 %v30172_v32, %v25591_v59  ;;  %v30226_v37 = vld [vmem:[#allocation15_spill] sm:$0xff] }
 0xde3   :  { %v8814_v52 = vmul.f32 %v25764_v20, %v30220_v15  ;;  %v8815_v53 = vmul.f32 %v25787_v40, %v30221_v28  ;;  %22637 = vmatmul.mubr.msk.f32.vlgmr.msra.gmra.mrb[76].mxu0 %vm832_vm3, %v9135_v31  ;;  %v9160_v30 = vrot.slane %v9138_v45, %v23709_v19  ;;  %v30223_v62 = vsub.f32 %v30173_v7, %v25605_v4  ;;  %v30224_v28 = vld [vmem:[#allocation13_spill] sm:$0xff] }
 0xde4   :  { %v8816_v9 = vmul.f32 %v25757_v27, %v30222_v47  ;;  %v30225_v18 = vsub.f32 %v30224_v28, %v25609_v29  ;;  %v30227_v51 = vsub.f32 %v30226_v37, %v25625_v5  ;;  %v30228_v47 = vmov 0.0  }
 0xde5   :  { %v8817_v15 = vmul.f32 %v25779_v43, %v30223_v62  ;;  %22639 = vmatprep.mubr.msk.f32.mxu0 %vm23573_vm1, %v30228_v47  ;;  %v9167_v31 = vrot.slane %v9139_v38, %v23709_v19  ;;  %v9168_v45 = vcombine.low %v9146_v26, %v9153_v6  ;;  %v8914_v7 = vmul.f32 %v25648_v56, %v30229_v24 }
 0xde6   :  { %v8818_v55 = vmul.f32 %v25783_v0, %v30225_v18  ;;  %v8819_v32 = vmul.f32 %v25808_v12, %v30227_v51  ;;  %v8915_v62 = vmul.f32 %v25654_v21, %v8813_v3  ;;  %v8916_v28 = vmul.f32 %v25683_v57, %v8814_v52 }
 0xde7   :  { %v8917_v18 = vmul.f32 %v25697_v50, %v8815_v53  ;;  %v8918_v17 = vmul.f32 %v25651_v23, %v8816_v9  ;;  %v8919_v37 = vmul.f32 %v25657_v16, %v8817_v15  ;;  %v9169_v51 = vcombine.low %v9160_v30, %v9167_v31  ;;  %v30233_v31 = vld [vmem:[#allocation16_spill] sm:$0xff] }
 0xde8   :  { %v9176_v39 = vrot.slane %v9168_v45, %v23709_v19  ;;  %v8920_v54 = vmul.f32 %v25693_v48, %v8818_v55  ;;  %v8921_v38 = vmul.f32 %v25701_v14, %v8819_v32  ;;  %v26033_v26 = vadd.f32 %v25660_v34, %v8914_v7  ;;  %v30234_v45 = vld [vmem:[#allocation23_spill] sm:$0xff] }
 0xde9   :  { %v26036_v24 = vadd.f32 %v25666_v44, %v8915_v62  ;;  %v26039_v3 = vadd.f32 %v25705_v33, %v8916_v28  ;;  %v26042_v52 = vadd.f32 %v25713_v63, %v8917_v18  ;;  %v9183_v53 = vrot.slane %v9169_v51, %v23709_v19 }
 0xdea   :  { %30230 = vst [vmem:[#allocation40_spill] sm:$0xff] %v26033_v26  ;;  %v26046_v6 = vadd.f32 %v25663_v36, %v8918_v17  ;;  %v26049_v9 = vadd.f32 %v25669_v46, %v8919_v37  ;;  %v26052_v30 = vadd.f32 %v25709_v13, %v8920_v54  ;;  %v26055_v15 = vadd.f32 %v25717_v49, %v8921_v38  ;;  %v30236_v17 = vld [vmem:[#allocation26_spill] sm:$0xff]  ;;  %v30237_v54 = vld [vmem:[#allocation17_spill] sm:$0xff] }
 0xdeb   :  { %30231 = vst [vmem:[#allocation43_spill] sm:$0xff] %v26036_v24  ;;  %30232 = vst [vmem:[#allocation44_spill] sm:$0xff] %v26042_v52  ;;  %v9185_v55 = vcombine.low %v26033_v26, %v26036_v24  ;;  %v9186_v32 = vcombine.low %v26039_v3, %v26042_v52  ;;  %v30235_v7 = vsub.f32 %v30233_v31, %v30234_v45  ;;  %v30239_v38 = vld [vmem:[#allocation18_spill] sm:$0xff] }
 0xdec   :  { %v9184_v28 = vcombine.low %v9176_v39, %v9183_v53  ;;  %v9187_v18 = vcombine.low %v26046_v6, %v26049_v9  ;;  %v30238_v37 = vsub.f32 %v30237_v54, %v25594_v61  ;;  %v30240_v24 = vsub.f32 %v30239_v38, %v25598_v35  ;;  %v30241_v53 = vld [vmem:[#allocation19_spill] sm:$0xff] }
 0xded   :  { %v8820_v62 = vmul.f32 %v30236_v17, %v30235_v7  ;;  %v9188_v52 = vcombine.low %v26052_v30, %v26055_v15  ;;  %v9195_v31 = vrot.slane %v9185_v55, %v23709_v19  ;;  %v9202_v39 = vrot.slane %v9186_v32, %v23709_v19  ;;  %v30247_v32 = vld [vmem:[#allocation25_spill] sm:$0xff] }
 0xdee   :  { %v8821_v51 = vmul.f32 %v25760_v42, %v30238_v37  ;;  %v8822_v26 = vmul.f32 %v25764_v20, %v30240_v24  ;;  %v30242_v45 = vsub.f32 %v30241_v53, %v25613_v2  ;;  %22640 = vmatmul.mubr.msk.f32.gmra.mrb[78].mxu0 %vm832_vm3, %v9184_v28  ;;  %v9209_v61 = vrot.slane %v9187_v18, %v23709_v19  ;;  %v30243_v42 = vld [vmem:[#allocation20_spill] sm:$0xff]  ;;  %v30245_v24 = vld [vmem:[#allocation22_spill] sm:$0xff]  ;;  %v30249_v18 = vld [vmem:[#allocation21_spill] sm:$0xff] }
 0xdef   :  { %v30244_v35 = vsub.f32 %v30243_v42, %v25591_v59  ;;  %v30246_v17 = vsub.f32 %v30245_v24, %v25605_v4  ;;  %v30248_v54 = vsub.f32 %v30247_v32, %v25609_v29  ;;  %22642 = vmatprep.mubr.msk.f32.mxu0 %vm23573_vm1, %v30228_v47  ;;  %v9217_v28 = vcombine.low %v9195_v31, %v9202_v39  ;;  %v30252_v24 = vld [vmem:[#allocation24_spill] sm:$0xff] }
 0xdf0   :  { %v8823_v7 = vmul.f32 %v25787_v40, %v30242_v45  ;;  %v9216_v40 = vrot.slane %v9188_v52, %v23709_v19  ;;  %v30250_v59 = vsub.f32 %v30249_v18, %v25625_v5  ;;  %v8922_v4 = vmul.f32 %v25648_v56, %v8820_v62 }
 0xdf1   :  { %v8824_v20 = vmul.f32 %v25757_v27, %v30244_v35  ;;  %v8825_v55 = vmul.f32 %v25779_v43, %v30246_v17  ;;  %v8826_v2 = vmul.f32 %v25783_v0, %v30248_v54  ;;  %v8923_v43 = vmul.f32 %v25654_v21, %v8821_v51 }
 0xdf2   :  { %v8827_v27 = vmul.f32 %v25808_v12, %v30250_v59  ;;  %v8924_v37 = vmul.f32 %v25683_v57, %v8822_v26  ;;  %v8925_v29 = vmul.f32 %v25697_v50, %v8823_v7  ;;  %v9218_v38 = vcombine.low %v9209_v61, %v9216_v40 }
 0xdf3   :  { %v8926_v0 = vmul.f32 %v25651_v23, %v8824_v20  ;;  %v9225_v53 = vrot.slane %v9217_v28, %v23709_v19  ;;  %v8927_v52 = vmul.f32 %v25657_v16, %v8825_v55  ;;  %v8928_v31 = vmul.f32 %v25693_v48, %v8826_v2 }
 0xdf4   :  { %v8929_v5 = vmul.f32 %v25701_v14, %v8827_v27  ;;  %v26114_v12 = vadd.f32 %v25660_v34, %v8922_v4  ;;  %v26117_v21 = vadd.f32 %v25666_v44, %v8923_v43  ;;  %v26120_v56 = vadd.f32 %v25705_v33, %v8924_v37  ;;  %v9473_v37 = vld [vmem:[%s29852_s7] sm:$0xff] }
 0xdf5   :  { %v9232_v23 = vrot.slane %v9218_v38, %v23709_v19  ;;  %v26124_v50 = vadd.f32 %v25713_v63, %v8925_v29  ;;  %v26127_v16 = vadd.f32 %v25663_v36, %v8926_v0  ;;  %v26130_v48 = vadd.f32 %v25669_v46, %v8927_v52  ;;  %v9474_v29 = vld [vmem:[%s29852_s7 + $0x8] sm:$0xff]  ;;  %v9476_v52 = vld [vmem:[%s29852_s7 + $0x18] sm:$0xff] }
 0xdf6   :  { %v26133_v34 = vadd.f32 %v25709_v13, %v8928_v31  ;;  %v26136_v57 = vadd.f32 %v25717_v49, %v8929_v5  ;;  %v9234_v26 = vcombine.low %v26114_v12, %v26117_v21  ;;  %v8937_v62 = vmul.f32 %v25701_v14, %v25838_v22  ;;  %v9477_v5 = vld [vmem:[%s29852_s7 + $0x20] sm:$0xff] }
 0xdf7   :  { %v9233_v51 = vcombine.low %v9225_v53, %v9232_v23  ;;  %v9235_v39 = vcombine.low %v26120_v56, %v26124_v50  ;;  %v9236_v45 = vcombine.low %v26127_v16, %v26130_v48  ;;  %v26148_v7 = vadd.f32 %v25666_v44, %v25823_v11  ;;  %v9475_v53 = vld [vmem:[%s29852_s7 + $0x10] sm:$0xff]  ;;  %v9478_v23 = vld [vmem:[%s29852_s7 + $0x28] sm:$0xff] }
 0xdf8   :  { %v9237_v61 = vcombine.low %v26133_v34, %v26136_v57  ;;  %v9244_v42 = vrot.slane %v9234_v26, %v23709_v19  ;;  %v26155_v35 = vadd.f32 %v25705_v33, %v25826_v25  ;;  %v26159_v14 = vadd.f32 %v25713_v63, %v25841_v60  ;;  %v30251_v33 = vld [vmem:[#allocation28_spill] sm:$0xff] }
 0xdf9   :  { %22643 = vmatmul.mubr.msk.f32.gmra.mrb[80].mxu0 %vm832_vm3, %v9233_v51  ;;  %v9251_v22 = vrot.slane %v9235_v39, %v23709_v19  ;;  %v9258_v44 = vrot.slane %v9236_v45, %v23709_v19  ;;  %v26166_v11 = vadd.f32 %v25663_v36, %v25829_v58  ;;  %v26170_v20 = vadd.f32 %v25669_v46, %v25844_v8  ;;  %v9480_v51 = vld [vmem:[%s29852_s7 + $0x38] sm:$0xff]  ;;  %v21697_v45 = vld [vmem:[%s29851_s6] ss:$0 sm:$0xff] }
 0xdfa   :  { %22645 = vmatprep.mubr.msk.f32.mxu0 %vm23573_vm1, %v30228_v47  ;;  %v9265_v63 = vrot.slane %v9237_v61, %v23709_v19  ;;  %v26177_v25 = vadd.f32 %v25709_v13, %v30251_v33  ;;  %v26180_v60 = vadd.f32 %v25717_v49, %v8937_v62  ;;  %v9283_v36 = vcombine.low %v30252_v24, %v26148_v7  ;;  %v9479_v62 = vld [vmem:[%s29852_s7 + $0x30] sm:$0xff] }
 0xdfb   :  { %v9266_v58 = vcombine.low %v9244_v42, %v9251_v22  ;;  %v9284_v46 = vcombine.low %v26155_v35, %v26159_v14  ;;  %v9285_v8 = vcombine.low %v26166_v11, %v26170_v20  ;;  %v23156_v0 = vpack.c.bf16 %v9474_v29, %v9473_v37 }
 0xdfc   :  { %v9267_v17 = vcombine.low %v9258_v44, %v9265_v63  ;;  %v9286_v55 = vcombine.low %v26177_v25, %v26180_v60  ;;  %v9293_v13 = vrot.slane %v9283_v36, %v23709_v19  ;;  %v30253_v38 = vmov 0.0|0.0  }
 0xdfd   :  { %v9300_v32 = vrot.slane %v9284_v46, %v23709_v19  ;;  %v9274_v49 = vrot.slane %v9266_v58, %v23709_v19  ;;  %v9307_v2 = vrot.slane %v9285_v8, %v23709_v19  ;;  %23157 = vmatpush3.bf16.msra.mxu1 %v23156_v0  ;;  %v23159_v31 = vpack.c.bf16 %v9476_v52, %v9475_v53 }
 0xdfe   :  { %v9281_v54 = vrot.slane %v9267_v17, %v23709_v19  ;;  %v9314_v40 = vrot.slane %v9286_v55, %v23709_v19  ;;  %23158 = vmatprep.subr.bf16.mxu1 %v30253_v38  ;;  %v23162_v26 = vpack.c.bf16 %v9478_v23, %v9477_v5  ;;  %v23165_v39 = vpack.c.bf16 %v9480_v51, %v9479_v62 }
 0xdff   :  { %v9315_v28 = vcombine.low %v9293_v13, %v9300_v32 }
 0xe00   :  { %v9282_v18 = vcombine.low %v9274_v49, %v9281_v54  ;;  %v9316_v59 = vcombine.low %v9307_v2, %v9314_v40 }
 0xe01   :  { %v9323_v27 = vrot.slane %v9315_v28, %v23709_v19  ;;  %23160 = vmatpush3.bf16.msra.mxu1 %v23159_v31 }
 0xe02   :  { %22646 = vmatmul.mubr.msk.f32.gmra.mrb[82].mxu0 %vm832_vm3, %v9282_v18  ;;  %v9330_v4 = vrot.slane %v9316_v59, %v23709_v19  ;;  %23161 = vmatprep.subr.bf16.mxu1 %v30253_v38 }
 0xe03   :  { %22648 = vmatprep.mubr.msk.f32.mxu0 %vm23573_vm1, %v30228_v47 }
 0xe04   :  { %v9331_v43 = vcombine.low %v9323_v27, %v9330_v4 }
 0xe05   :  { %23163 = vmatpush3.bf16.msra.mxu1 %v23162_v26 }
 0xe06   :  { %22649 = vmatmul.mubr.msk.f32.gmra.mrb[84].mxu0 %vm832_vm3, %v9331_v43  ;;  %23164 = vmatprep.subr.bf16.mxu1 %v30253_v38 }
 0xe07   :  { %22690 = vmatprep.mubr.msk.f32.mxu0 %vm23573_vm1, %v30228_v47 }
 0xe09   :  { %23166 = vmatpush3.bf16.msra.mxu1 %v23165_v39 }
 0xe0a   :  { %22705 = vmatprep.subr.mxu1 %v30228_v47 }
 0xeb6   :  { %v9424_v61 = vpop.f32.mrb[76].mxu0 }
 0xeb7   :  { %v9425_v42 = vadd.f32 %v21697_v45, %v9424_v61  ;;  %v22638_v22 = vpop.f32.mrb[77].mxu0 }
 0xeb9   :  { %v9453_v44 = vmul.f32 0.70710677, %v9425_v42  ;;  %v9448_v8 = vmul.f32 0.5, %v9425_v42 }
 0xebb   :  { %23392 = verf.f32 %v9453_v44  ;;  %v30254_v44 = vld [vmem:[#allocation6_spill] sm:$0xff] }
 0xec1   :  { %v9429_v63 = vpop.f32.mrb[78].mxu0 }
 0xec2   :  { %v9430_v33 = vadd.f32 %v21697_v45, %v9429_v63  ;;  %v22641_v36 = vpop.f32.mrb[79].mxu0  ;;  %v29949_v63 = vsub.s32 3, %v30254_v44 }
 0xec4   :  { %v9454_v58 = vmul.f32 0.70710677, %v9430_v33  ;;  %v9449_v40 = vmul.f32 0.5, %v9430_v33  ;;  %v26254_v33 = vld [vmem:[%s29853_s8] sm:$0x3f] }
 0xec5   :  { %v23393_v46 = vpop.eup %23392  ;;  %v26259_v36 = vrot.slane %v26254_v33, %v29949_v63 }
 0xec6   :  { %23394 = verf.f32 %v9454_v58  ;;  %v9463_v17 = vadd.f32 1.0, %v23393_v46 }
 0xec8   :  { %v9468_v55 = vmul.f32 %v9463_v17, %v9448_v8  ;;  %v21713_v17 = vld [vmem:[%s29848_s3 + $0x20] sm:$0xff] }
 0xeca   :  { %22668 = vmatmul.mubr.msk.f32.vlgmr.msra.gmra.mrb[82].mxu1 %vm9485_vm10, %v9468_v55  ;;  %v21714_v55 = vld [vmem:[%s29848_s3 + $0x28] sm:$0xff] }
 0xecb   :  { %22670 = vmatprep.mubr.msk.f32.mxu1 %vm23573_vm1, %v30228_v47 }
 0xecc   :  { %v9434_v13 = vpop.f32.mrb[80].mxu0 }
 0xecd   :  { %v9435_v32 = vadd.f32 %v21697_v45, %v9434_v13  ;;  %v22644_v49 = vpop.f32.mrb[81].mxu0  ;;  %v21715_v13 = vld [vmem:[%s29848_s3 + $0x30] sm:$0xff] }
 0xecf   :  { %v9455_v54 = vmul.f32 0.70710677, %v9435_v32  ;;  %v9450_v52 = vmul.f32 0.5, %v9435_v32 }
 0xed0   :  { %v23395_v2 = vpop.eup %23394 }
 0xed1   :  { %23396 = verf.f32 %v9455_v54  ;;  %v9464_v28 = vadd.f32 1.0, %v23395_v2  ;;  %v23168_v54 = vpack.c.bf16 %v21714_v55, %v21713_v17  ;;  %v21716_v2 = vld [vmem:[%s29848_s3 + $0x38] sm:$0xff] }
 0xed3   :  { %v9469_v18 = vmul.f32 %v9464_v28, %v9449_v40  ;;  %23169 = vmatpush3.bf16.msra.mxu0 %v23168_v54  ;;  %v30261_v54 = vld [vmem:[#allocation35_spill] sm:$0xff] }
 0xed4   :  { %23170 = vmatprep.subr.bf16.mxu0 %v30253_v38 }
 0xed5   :  { %v9439_v59 = vpop.f32.mrb[82].mxu0  ;;  %22671 = vmatmul.mubr.msk.f32.gmra.mrb[84].mxu1 %vm9485_vm10, %v9469_v18 }
 0xed6   :  { %v9440_v27 = vadd.f32 %v21697_v45, %v9439_v59  ;;  %v22647_v4 = vpop.f32.mrb[83].mxu0  ;;  %22673 = vmatprep.mubr.msk.f32.mxu1 %vm23573_vm1, %v30228_v47  ;;  %v23171_v59 = vpack.c.bf16 %v21716_v2, %v21715_v13 }
 0xed8   :  { %v9456_v43 = vmul.f32 0.70710677, %v9440_v27  ;;  %v9451_v62 = vmul.f32 0.5, %v9440_v27  ;;  %23172 = vmatpush3.bf16.msra.mxu0 %v23171_v59 }
 0xed9   :  { %v9444_v37 = vpop.f32.mrb[84].mxu0  ;;  %22710 = vmatprep.subr.mxu0 %v30228_v47 }
 0xeda   :  { %23398 = verf.f32 %v9456_v43  ;;  %v9445_v29 = vadd.f32 %v21697_v45, %v9444_v37  ;;  %v22650_v0 = vpop.f32.mrb[85].mxu0 }
 0xedb   :  { %v23397_v53 = vpop.eup %23396 }
 0xedc   :  { %v9465_v31 = vadd.f32 1.0, %v23397_v53  ;;  %v9457_v5 = vmul.f32 0.70710677, %v9445_v29  ;;  %v9452_v42 = vmul.f32 0.5, %v9445_v29 }
 0xede   :  { %v9470_v23 = vmul.f32 %v9465_v31, %v9450_v52  ;;  %23400 = verf.f32 %v9457_v5  ;;  %v30255_v31 = vld [vmem:[#allocation30_spill] sm:$0xff] }
 0xee0   :  { %22674 = vmatmul.mubr.msk.f32.gmra.mrb[86].mxu1 %vm9485_vm10, %v9470_v23 }
 0xee1   :  { %22676 = vmatprep.mubr.msk.f32.mxu1 %vm23573_vm1, %v30228_v47 }
 0xee4   :  { %v23399_v26 = vpop.eup %23398 }
 0xee5   :  { %v9466_v51 = vadd.f32 1.0, %v23399_v26  ;;  %v30256_v26 = vld [vmem:[#allocation29_spill] sm:$0xff] }
 0xee7   :  { %v9471_v39 = vmul.f32 %v9466_v51, %v9451_v62  ;;  %v30257_v51 = vld [vmem:[#allocation32_spill] sm:$0xff] }
 0xee8   :  { %v23401_v61 = vpop.eup %23400 }
 0xee9   :  { %v9467_v22 = vadd.f32 1.0, %v23401_v61  ;;  %22677 = vmatmul.mubr.msk.f32.gmra.mrb[88].mxu1 %vm9485_vm10, %v9471_v39 }
 0xeea   :  { %22679 = vmatprep.mubr.msk.f32.mxu1 %vm23573_vm1, %v30228_v47 }
 0xeeb   :  { %v9472_v45 = vmul.f32 %v9467_v22, %v9452_v42  ;;  %v30258_v22 = vld [vmem:[#allocation31_spill] sm:$0xff] }
 0xeed   :  { %22680 = vmatmul.mubr.msk.f32.gmra.mrb[90].mxu1 %vm9485_vm10, %v9472_v45 }
 0xeee   :  { %22707 = vmatprep.mubr.msk.f32.mxu1 %vm23573_vm1, %v30228_v47 }
 0xf9d   :  { %v9567_v58 = vpop.f32.mrb[82].mxu1 }
 0xf9e   :  { %v9568_v46 = vadd.f32 %v9567_v58, %v26259_v36  ;;  %v22669_v8 = vpop.f32.mrb[83].mxu1  ;;  %v30259_v58 = vld [vmem:[#allocation33_spill] sm:$0xff] }
 0xf9f   :  { %v30260_v8 = vld [vmem:[#allocation34_spill] sm:$0xff] }
 0xfa0   :  { %v9596_v32 = vcombine.high %v9568_v46, %v9568_v46  ;;  %v9603_v49 = vrot.slane %v9568_v46, %v23709_v19 }
 0xfa2   :  { %v9610_v40 = vrot.slane %v9596_v32, %v23709_v19  ;;  %v9611_v28 = vcombine.high %v9603_v49, %v9603_v49  ;;  %v9619_v18 = vrot.slane %v9603_v49, %v23709_v19 }
 0xfa4   :  { %v9612_v27 = vcombine.high %v9610_v40, %v9610_v40  ;;  %v9626_v4 = vrot.slane %v9610_v40, %v23709_v19  ;;  %v9633_v43 = vrot.slane %v9611_v28, %v23709_v19  ;;  %v9641_v37 = vcombine.high %v9619_v18, %v9619_v18 }
 0xfa5   :  { %v26281_v29 = vadd.f32 %v9619_v18, %v25882_v10 }
 0xfa6   :  { %v9640_v0 = vrot.slane %v9612_v27, %v23709_v19  ;;  %v9642_v53 = vcombine.high %v9626_v4, %v9626_v4  ;;  %v9643_v52 = vcombine.high %v9633_v43, %v9633_v43  ;;  %v26285_v5 = vadd.f32 %v9633_v43, %v30255_v31 }
 0xfa7   :  { %v26288_v62 = vadd.f32 %v9641_v37, %v30256_v26  ;;  %v26291_v39 = vadd.f32 %v9626_v4, %v30257_v51  ;;  %v10227_v61 = vmul.f32 %v26281_v29, %v26281_v29 }
 0xfa8   :  { %v9572_v23 = vpop.f32.mrb[84].mxu1  ;;  %v9644_v42 = vcombine.high %v9640_v0, %v9640_v0  ;;  %v26297_v45 = vadd.f32 %v9643_v52, %v30258_v22  ;;  %v26300_v46 = vadd.f32 %v9640_v0, %v30259_v58  ;;  %v26303_v17 = vadd.f32 %v9642_v53, %v30260_v8 }
 0xfa9   :  { %v22672_v10 = vpop.f32.mrb[85].mxu1  ;;  %v9961_v55 = vcombine.low %v26281_v29, %v26285_v5  ;;  %v10228_v13 = vmul.f32 %v26285_v5, %v26285_v5  ;;  %v10229_v32 = vmul.f32 %v26288_v62, %v26288_v62  ;;  %v9573_v49 = vadd.f32 %v9572_v23, %v26259_v36 }
 0xfaa   :  { %v26313_v2 = vadd.f32 %v9644_v42, %v30261_v54  ;;  %v9962_v40 = vcombine.low %v26288_v62, %v26297_v45  ;;  %v9963_v28 = vcombine.low %v26291_v39, %v26300_v46  ;;  %v10230_v18 = vmul.f32 %v26297_v45, %v26297_v45 }
 0xfab   :  { %v9971_v59 = vrot.slane %v9961_v55, %v23709_v19  ;;  %v10231_v27 = vmul.f32 %v26291_v39, %v26291_v39  ;;  %v10232_v4 = vmul.f32 %v26300_v46, %v26300_v46  ;;  %v10307_v43 = vcombine.low %v10227_v61, %v10228_v13 }
 0xfac   :  { %v9964_v37 = vcombine.low %v26303_v17, %v26313_v2  ;;  %v9978_v0 = vrot.slane %v9962_v40, %v23709_v19  ;;  %v10233_v53 = vmul.f32 %v26303_v17, %v26303_v17  ;;  %v10234_v52 = vmul.f32 %v26313_v2, %v26313_v2 }
 0xfad   :  { %v9985_v31 = vrot.slane %v9963_v28, %v23709_v19  ;;  %v10308_v23 = vcombine.low %v10229_v32, %v10230_v18  ;;  %v10309_v26 = vcombine.low %v10231_v27, %v10232_v4  ;;  %v9645_v51 = vcombine.high %v9573_v49, %v9573_v49 }
 0xfae   :  { %v9992_v10 = vrot.slane %v9964_v37, %v23709_v19  ;;  %v9993_v42 = vcombine.low %v9971_v59, %v9978_v0  ;;  %v10310_v61 = vcombine.low %v10233_v53, %v10234_v52  ;;  %v9652_v22 = vrot.slane %v9573_v49, %v23709_v19 }
 0xfaf   :  { %v10317_v58 = vrot.slane %v10307_v43, %v23709_v19  ;;  %v10324_v8 = vrot.slane %v10308_v23, %v23709_v19  ;;  %v9659_v55 = vrot.slane %v9645_v51, %v23709_v19  ;;  %v10331_v40 = vrot.slane %v10309_v26, %v23709_v19 }
 0xfb0   :  { %v9994_v54 = vcombine.low %v9985_v31, %v9992_v10  ;;  %v10338_v32 = vrot.slane %v10310_v61, %v23709_v19  ;;  %v9660_v28 = vcombine.high %v9652_v22, %v9652_v22  ;;  %v9668_v59 = vrot.slane %v9652_v22, %v23709_v19 }
 0xfb1   :  { %v10339_v27 = vcombine.low %v10317_v58, %v10324_v8  ;;  %v9661_v4 = vcombine.high %v9659_v55, %v9659_v55  ;;  %v9675_v49 = vrot.slane %v9659_v55, %v23709_v19  ;;  %v10001_v43 = vrot.slane %v9993_v42, %v23709_v19  ;;  %v30263_v55 = vld [vmem:[#allocation36_spill] sm:$0xff] }
 0xfb2   :  { %v10008_v37 = vrot.slane %v9994_v54, %v23709_v19  ;;  %v10340_v0 = vcombine.low %v10331_v40, %v10338_v32  ;;  %v9682_v53 = vrot.slane %v9660_v28, %v23709_v19  ;;  %v9690_v31 = vcombine.high %v9668_v59, %v9668_v59  ;;  %v30265_v32 = vld [vmem:[#allocation38_spill] sm:$0xff]  ;;  %v30267_v28 = vld [vmem:[#allocation37_spill] sm:$0xff] }
 0xfb3   :  { %v9577_v13 = vpop.f32.mrb[86].mxu1  ;;  %v9689_v52 = vrot.slane %v9661_v4, %v23709_v19  ;;  %v9691_v23 = vcombine.high %v9675_v49, %v9675_v49  ;;  %v26350_v22 = vadd.f32 %v9668_v59, %v25954_v1  ;;  %v10347_v42 = vrot.slane %v10339_v27, %v23709_v19  ;;  %v30269_v4 = vld [vmem:[#allocation39_spill] sm:$0xff]  ;;  %v30271_v27 = vld [vmem:[#allocation41_spill] sm:$0xff] }
 0xfb4   :  { %v22675_v18 = vpop.f32.mrb[87].mxu1  ;;  %v9578_v26 = vadd.f32 %v9577_v13, %v26259_v36  ;;  %v10009_v51 = vcombine.low %v10001_v43, %v10008_v37  ;;  %v10354_v10 = vrot.slane %v10340_v0, %v23709_v19  ;;  %v9692_v61 = vcombine.high %v9682_v53, %v9682_v53 }
 0xfb5   :  { %v9693_v58 = vcombine.high %v9689_v52, %v9689_v52  ;;  %v26354_v8 = vadd.f32 %v9682_v53, %v25958_v41  ;;  %v26357_v54 = vadd.f32 %v9690_v31, %v30263_v55  ;;  %v26364_v18 = vadd.f32 %v9675_v49, %v30267_v28  ;;  %v30273_v41 = vld [vmem:[#allocation42_spill] sm:$0xff] }
 0xfb6   :  { %v10211_v40 = vsel %vm832_vm3, %v10009_v51, 0.0  ;;  %v26361_v13 = vadd.f32 %v9692_v61, %v30265_v32  ;;  %v26367_v1 = vadd.f32 %v9689_v52, %v30269_v4  ;;  %v10355_v59 = vcombine.low %v10347_v42, %v10354_v10 }
 0xfb7   :  { %30262 = vst [vmem:[#allocation14_spill] sm:$0xff] %v26354_v8  ;;  %30264 = vst [vmem:[#allocation8_spill] sm:$0xff] %v26357_v54  ;;  %v26370_v43 = vadd.f32 %v9691_v23, %v30271_v27  ;;  %v26373_v37 = vadd.f32 %v9693_v58, %v30273_v41  ;;  %v10010_v0 = vcombine.low %v26350_v22, %v26354_v8 }
 0xfb8   :  { %30266 = vst [vmem:[#allocation12_spill] sm:$0xff] %v26361_v13  ;;  %30268 = vst [vmem:[#allocation7_spill] sm:$0xff] %v26364_v18  ;;  %v10011_v53 = vcombine.low %v26357_v54, %v26361_v13  ;;  %v10012_v49 = vcombine.low %v26364_v18, %v26367_v1  ;;  %v10235_v52 = vmul.f32 %v26350_v22, %v26350_v22 }
 0xfb9   :  { %30270 = vst [vmem:[#allocation9_spill] sm:$0xff] %v26367_v1  ;;  %30272 = vst [vmem:[#allocation10_spill] sm:$0xff] %v26370_v43  ;;  %v10236_v31 = vmul.f32 %v26354_v8, %v26354_v8  ;;  %v10013_v51 = vcombine.low %v26370_v43, %v26373_v37  ;;  %v10020_v10 = vrot.slane %v10010_v0, %v23709_v19 }
 0xfba   :  { %30274 = vst [vmem:[#allocation11_spill] sm:$0xff] %v26373_v37  ;;  %v10237_v61 = vmul.f32 %v26357_v54, %v26357_v54  ;;  %v10238_v42 = vmul.f32 %v26361_v13, %v26361_v13  ;;  %v10027_v55 = vrot.slane %v10011_v53, %v23709_v19  ;;  %v10034_v32 = vrot.slane %v10012_v49, %v23709_v19 }
 0xfbb   :  { %v10239_v28 = vmul.f32 %v26364_v18, %v26364_v18  ;;  %v10240_v4 = vmul.f32 %v26367_v1, %v26367_v1  ;;  %v10041_v27 = vrot.slane %v10013_v51, %v23709_v19  ;;  %v10241_v41 = vmul.f32 %v26370_v43, %v26370_v43 }
 0xfbc   :  { %v9582_v23 = vpop.f32.mrb[88].mxu1  ;;  %v10242_v0 = vmul.f32 %v26373_v37, %v26373_v37  ;;  %v10356_v63 = vcombine.low %v10235_v52, %v10236_v31  ;;  %v10357_v38 = vcombine.low %v10237_v61, %v10238_v42  ;;  %v9694_v47 = vcombine.high %v9578_v26, %v9578_v26 }
 0xfbd   :  { %v22678_v58 = vpop.f32.mrb[89].mxu1  ;;  %v10358_v53 = vcombine.low %v10239_v28, %v10240_v4  ;;  %v10043_v13 = vcombine.low %v10034_v32, %v10041_v27  ;;  %v9701_v1 = vrot.slane %v9578_v26, %v23709_v19 }
 0xfbe   :  { %v10042_v58 = vcombine.low %v10020_v10, %v10027_v55  ;;  %v10359_v18 = vcombine.low %v10241_v41, %v10242_v0  ;;  %v10366_v54 = vrot.slane %v10356_v63, %v23709_v19  ;;  %v10373_v43 = vrot.slane %v10357_v38, %v23709_v19 }
 0xfbf   :  { %v10380_v37 = vrot.slane %v10358_v53, %v23709_v19  ;;  %v9708_v52 = vrot.slane %v9694_v47, %v23709_v19  ;;  %v10057_v31 = vrot.slane %v10043_v13, %v23709_v19  ;;  %v9709_v61 = vcombine.high %v9701_v1, %v9701_v1 }
 0xfc0   :  { %v26403_v49 = vpop.f32.mrb[90].mxu1  ;;  %v10050_v8 = vrot.slane %v10042_v58, %v23709_v19  ;;  %v10387_v10 = vrot.slane %v10359_v18, %v23709_v19  ;;  %v9717_v42 = vrot.slane %v9701_v1, %v23709_v19  ;;  %v10557_v63 = vsel %vm832_vm3, %v10355_v59, 0.0  ;;  %v30275_v18 = vld [vmem:[#allocation40_spill] sm:$0xff] }
 0xfc1   :  { %v22681_v51 = vpop.f32.mrb[91].mxu1  ;;  %v10388_v55 = vcombine.low %v10366_v54, %v10373_v43  ;;  %v9710_v26 = vcombine.high %v9708_v52, %v9708_v52  ;;  %v9724_v32 = vrot.slane %v9708_v52, %v23709_v19  ;;  %v9731_v38 = vrot.slane %v9709_v61, %v23709_v19  ;;  %v30276_v43 = vld [vmem:[#allocation43_spill] sm:$0xff] }
 0xfc2   :  { %v10058_v28 = vcombine.low %v10050_v8, %v10057_v31  ;;  %v10389_v4 = vcombine.low %v10380_v37, %v10387_v10  ;;  %v9739_v27 = vcombine.high %v9717_v42, %v9717_v42  ;;  %v26420_v0 = vadd.f32 %v9717_v42, %v30275_v18  ;;  %v30279_v31 = vld [vmem:[#allocation44_spill] sm:$0xff] }
 0xfc3   :  { %v10396_v47 = vrot.slane %v10388_v55, %v23709_v19  ;;  %v9738_v13 = vrot.slane %v9710_v26, %v23709_v19  ;;  %v9740_v41 = vcombine.high %v9724_v32, %v9724_v32  ;;  %v9741_v59 = vcombine.high %v9731_v38, %v9731_v38 }
 0xfc4   :  { %v10212_v1 = vsel %vm832_vm3, %v10058_v28, 0.0  ;;  %v10403_v54 = vrot.slane %v10389_v4, %v23709_v19  ;;  %v26425_v58 = vadd.f32 %v9731_v38, %v30276_v43  ;;  %v26428_v53 = vadd.f32 %v9739_v27, %v26039_v3 }
 0xfc5   :  { %v10213_v8 = vadd.f32 %v10212_v1, %v10211_v40  ;;  %v9742_v37 = vcombine.high %v9738_v13, %v9738_v13  ;;  %v9583_v51 = vadd.f32 %v9582_v23, %v26259_v36  ;;  %v26432_v10 = vadd.f32 %v9741_v59, %v30279_v31 }
 0xfc6   :  { %30277 = vst [vmem:[#allocation13_spill] sm:$0xff] %v26425_v58  ;;  %30278 = vst [vmem:[#allocation15_spill] sm:$0xff] %v26428_v53  ;;  %v10404_v52 = vcombine.low %v10396_v47, %v10403_v54  ;;  %v26435_v61 = vadd.f32 %v9724_v32, %v26046_v6  ;;  %v26438_v42 = vadd.f32 %v9738_v13, %v26049_v9 }
 0xfc7   :  { %v26441_v55 = vadd.f32 %v9740_v41, %v26052_v30  ;;  %v26444_v40 = vadd.f32 %v9742_v37, %v26055_v15  ;;  %v10059_v3 = vcombine.low %v26420_v0, %v26425_v58  ;;  %v10244_v23 = vmul.f32 %v26425_v58, %v26425_v58 }
 0xfc8   :  { %30280 = vst [vmem:[#allocation27_spill] sm:$0xff] %v26435_v61  ;;  %30281 = vst [vmem:[#allocation16_spill] sm:$0xff] %v26438_v42  ;;  %v10558_v26 = vsel %vm832_vm3, %v10404_v52, 0.0  ;;  %v10060_v6 = vcombine.low %v26428_v53, %v26432_v10  ;;  %v10061_v9 = vcombine.low %v26435_v61, %v26438_v42  ;;  %v10243_v30 = vmul.f32 %v26420_v0, %v26420_v0 }
 0xfc9   :  { %30282 = vst [vmem:[#allocation23_spill] sm:$0xff] %v26441_v55  ;;  %30283 = vst [vmem:[#allocation26_spill] sm:$0xff] %v26444_v40  ;;  %v10062_v15 = vcombine.low %v26441_v55, %v26444_v40  ;;  %v10069_v32 = vrot.slane %v10059_v3, %v23709_v19  ;;  %v10245_v28 = vmul.f32 %v26428_v53, %v26428_v53 }
 0xfca   :  { %v10246_v4 = vmul.f32 %v26432_v10, %v26432_v10  ;;  %v10076_v38 = vrot.slane %v10060_v6, %v23709_v19  ;;  %v10083_v27 = vrot.slane %v10061_v9, %v23709_v19  ;;  %v10247_v47 = vmul.f32 %v26435_v61, %v26435_v61 }
 0xfcb   :  { %v10248_v13 = vmul.f32 %v26438_v42, %v26438_v42  ;;  %v10090_v41 = vrot.slane %v10062_v15, %v23709_v19  ;;  %v10249_v18 = vmul.f32 %v26441_v55, %v26441_v55  ;;  %v10250_v1 = vmul.f32 %v26444_v40, %v26444_v40 }
 0xfcc   :  { %v10405_v54 = vcombine.low %v10243_v30, %v10244_v23  ;;  %v10091_v59 = vcombine.low %v10069_v32, %v10076_v38  ;;  %v10406_v43 = vcombine.low %v10245_v28, %v10246_v4  ;;  %v9743_v52 = vcombine.high %v9583_v51, %v9583_v51 }
 0xfcd   :  { %v10407_v37 = vcombine.low %v10247_v47, %v10248_v13  ;;  %v10092_v31 = vcombine.low %v10083_v27, %v10090_v41  ;;  %v10408_v3 = vcombine.low %v10249_v18, %v10250_v1  ;;  %v9750_v9 = vrot.slane %v9583_v51, %v23709_v19 }
 0xfce   :  { %v10415_v6 = vrot.slane %v10405_v54, %v23709_v19  ;;  %v10099_v42 = vrot.slane %v10091_v59, %v23709_v19  ;;  %v10422_v15 = vrot.slane %v10406_v43, %v23709_v19  ;;  %v9757_v61 = vrot.slane %v9743_v52, %v23709_v19 }
 0xfcf   :  { %v10429_v55 = vrot.slane %v10407_v37, %v23709_v19  ;;  %v10106_v23 = vrot.slane %v10092_v31, %v23709_v19  ;;  %v10436_v30 = vrot.slane %v10408_v3, %v23709_v19  ;;  %v9758_v32 = vcombine.high %v9750_v9, %v9750_v9 }
 0xfd0   :  { %v9766_v28 = vrot.slane %v9750_v9, %v23709_v19  ;;  %v10559_v4 = vadd.f32 %v10558_v26, %v10557_v63  ;;  %v10437_v38 = vcombine.low %v10415_v6, %v10422_v15  ;;  %v9759_v27 = vcombine.high %v9757_v61, %v9757_v61 }
 0xfd1   :  { %v9773_v51 = vrot.slane %v9757_v61, %v23709_v19  ;;  %v10107_v47 = vcombine.low %v10099_v42, %v10106_v23  ;;  %v10438_v13 = vcombine.low %v10429_v55, %v10436_v30  ;;  %v9780_v41 = vrot.slane %v9758_v32, %v23709_v19 }
 0xfd2   :  { %v9788_v18 = vcombine.high %v9766_v28, %v9766_v28  ;;  %v10445_v1 = vrot.slane %v10437_v38, %v23709_v19  ;;  %v9787_v54 = vrot.slane %v9759_v27, %v23709_v19  ;;  %v26489_v43 = vadd.f32 %v9766_v28, %v26114_v12 }
 0xfd3   :  { %v9789_v59 = vcombine.high %v9773_v51, %v9773_v51  ;;  %v10214_v37 = vsel %vm832_vm3, %v10107_v47, 0.0  ;;  %v10452_v63 = vrot.slane %v10438_v13, %v23709_v19  ;;  %v9790_v26 = vcombine.high %v9780_v41, %v9780_v41 }
 0xfd4   :  { %30284 = vst [vmem:[#allocation17_spill] sm:$0xff] %v26489_v43  ;;  %v26494_v61 = vadd.f32 %v9780_v41, %v26117_v21  ;;  %v10215_v42 = vadd.f32 %v10214_v37, %v10213_v8  ;;  %v9791_v55 = vcombine.high %v9787_v54, %v9787_v54  ;;  %v26497_v52 = vadd.f32 %v9788_v18, %v26120_v56 }
 0xfd5   :  { %v9588_v31 = vadd.f32 %v26403_v49, %v26259_v36  ;;  %v10453_v3 = vcombine.low %v10445_v1, %v10452_v63  ;;  %v26502_v12 = vadd.f32 %v9790_v26, %v26124_v50  ;;  %v26505_v6 = vadd.f32 %v9773_v51, %v26127_v16 }
 0xfd6   :  { %30285 = vst [vmem:[#allocation18_spill] sm:$0xff] %v26494_v61  ;;  %30286 = vst [vmem:[#allocation19_spill] sm:$0xff] %v26497_v52  ;;  %v26508_v9 = vadd.f32 %v9787_v54, %v26130_v48  ;;  %v26511_v21 = vadd.f32 %v9789_v59, %v26133_v34  ;;  %v26514_v8 = vadd.f32 %v9791_v55, %v26136_v57 }
 0xfd7   :  { %30287 = vst [vmem:[#allocation20_spill] sm:$0xff] %v26502_v12  ;;  %30288 = vst [vmem:[#allocation22_spill] sm:$0xff] %v26505_v6  ;;  %v10108_v56 = vcombine.low %v26489_v43, %v26494_v61  ;;  %v10252_v36 = vmul.f32 %v26494_v61, %v26494_v61  ;;  %v10560_v50 = vsel %vm832_vm3, %v10453_v3, 0.0  ;;  %v10109_v16 = vcombine.low %v26497_v52, %v26502_v12  ;;  %v30301_v61 = vld [vmem:[#allocation27_spill] sm:$0xff] }
 0xfd8   :  { %30289 = vst [vmem:[#allocation25_spill] sm:$0xff] %v26508_v9  ;;  %30290 = vst [vmem:[#allocation21_spill] sm:$0xff] %v26511_v21  ;;  %v10110_v48 = vcombine.low %v26505_v6, %v26508_v9  ;;  %v10251_v34 = vmul.f32 %v26489_v43, %v26489_v43  ;;  %v10111_v57 = vcombine.low %v26511_v21, %v26514_v8 }
 0xfd9   :  { %30291 = vst [vmem:[#allocation28_spill] sm:$0xff] %v26514_v8  ;;  %v10118_v49 = vrot.slane %v10108_v56, %v23709_v19  ;;  %v10253_v15 = vmul.f32 %v26497_v52, %v26497_v52  ;;  %v10254_v23 = vmul.f32 %v26502_v12, %v26502_v12  ;;  %v10125_v30 = vrot.slane %v10109_v16, %v23709_v19 }
 0xfda   :  { %v10132_v32 = vrot.slane %v10110_v48, %v23709_v19  ;;  %v10255_v28 = vmul.f32 %v26505_v6, %v26505_v6  ;;  %v10256_v38 = vmul.f32 %v26508_v9, %v26508_v9  ;;  %v10139_v27 = vrot.slane %v10111_v57, %v23709_v19  ;;  %v30297_v6 = vld [vmem:[#allocation9_spill] sm:$0xff] }
 0xfdb   :  { %v10257_v51 = vmul.f32 %v26511_v21, %v26511_v21  ;;  %v10258_v47 = vmul.f32 %v26514_v8, %v26514_v8  ;;  %v10454_v13 = vcombine.low %v10251_v34, %v10252_v36  ;;  %v10140_v41 = vcombine.low %v10118_v49, %v10125_v30 }
 0xfdc   :  { %v10455_v18 = vcombine.low %v10253_v15, %v10254_v23  ;;  %v10456_v1 = vcombine.low %v10255_v28, %v10256_v38  ;;  %v9792_v54 = vcombine.high %v9588_v31, %v9588_v31  ;;  %v10141_v59 = vcombine.low %v10132_v32, %v10139_v27 }
 0xfdd   :  { %v10457_v37 = vcombine.low %v10257_v51, %v10258_v47  ;;  %v10464_v63 = vrot.slane %v10454_v13, %v23709_v19  ;;  %v9799_v26 = vrot.slane %v9588_v31, %v23709_v19  ;;  %v10148_v55 = vrot.slane %v10140_v41, %v23709_v19 }
 0xfde   :  { %v10471_v3 = vrot.slane %v10455_v18, %v23709_v19  ;;  %v10478_v56 = vrot.slane %v10456_v1, %v23709_v19  ;;  %v9806_v16 = vrot.slane %v9792_v54, %v23709_v19  ;;  %v10155_v36 = vrot.slane %v10141_v59, %v23709_v19 }
 0xfdf   :  { %v10485_v48 = vrot.slane %v10457_v37, %v23709_v19  ;;  %v9807_v34 = vcombine.high %v9799_v26, %v9799_v26  ;;  %v9815_v57 = vrot.slane %v9799_v26, %v23709_v19  ;;  %v10561_v49 = vadd.f32 %v10560_v50, %v10559_v4 }
 0xfe0   :  { %v10486_v15 = vcombine.low %v10464_v63, %v10471_v3  ;;  %v9808_v23 = vcombine.high %v9806_v16, %v9806_v16  ;;  %v9822_v31 = vrot.slane %v9806_v16, %v23709_v19  ;;  %v10156_v30 = vcombine.low %v10148_v55, %v10155_v36 }
 0xfe1   :  { %v10487_v32 = vcombine.low %v10478_v56, %v10485_v48  ;;  %v9829_v28 = vrot.slane %v9807_v34, %v23709_v19  ;;  %v9837_v38 = vcombine.high %v9815_v57, %v9815_v57  ;;  %v26559_v13 = vadd.f32 %v9815_v57, %v30252_v24 }
 0xfe2   :  { %v10494_v27 = vrot.slane %v10486_v15, %v23709_v19  ;;  %v9836_v51 = vrot.slane %v9808_v23, %v23709_v19  ;;  %v9838_v47 = vcombine.high %v9822_v31, %v9822_v31  ;;  %v10216_v41 = vsel %vm832_vm3, %v10156_v30, 0.0 }
 0xfe3   :  { %v10501_v4 = vrot.slane %v10487_v32, %v23709_v19  ;;  %v9839_v50 = vcombine.high %v9829_v28, %v9829_v28  ;;  %v26564_v18 = vadd.f32 %v9829_v28, %v26148_v7  ;;  %v10217_v1 = vadd.f32 %v10216_v41, %v10215_v42 }
 0xfe4   :  { %v9840_v54 = vcombine.high %v9836_v51, %v9836_v51  ;;  %v26567_v59 = vadd.f32 %v9837_v38, %v26155_v35  ;;  %v26570_v37 = vadd.f32 %v9822_v31, %v26166_v11  ;;  %v26576_v26 = vadd.f32 %v9836_v51, %v26170_v20 }
 0xfe5   :  { %v10502_v63 = vcombine.low %v10494_v27, %v10501_v4  ;;  %v26573_v24 = vadd.f32 %v9839_v50, %v26159_v14  ;;  %v26579_v55 = vadd.f32 %v9838_v47, %v26177_v25  ;;  %v10157_v35 = vcombine.low %v26559_v13, %v26564_v18 }
 0xfe6   :  { %v26582_v7 = vadd.f32 %v9840_v54, %v26180_v60  ;;  %v10259_v11 = vmul.f32 %v26559_v13, %v26559_v13  ;;  %v10260_v42 = vmul.f32 %v26564_v18, %v26564_v18  ;;  %v10159_v25 = vcombine.low %v26570_v37, %v26576_v26 }
 0xfe7   :  { %v10562_v14 = vsel %vm832_vm3, %v10502_v63, 0.0  ;;  %v10158_v20 = vcombine.low %v26567_v59, %v26573_v24  ;;  %v10261_v60 = vmul.f32 %v26567_v59, %v26567_v59  ;;  %v10167_v16 = vrot.slane %v10157_v35, %v23709_v19 }
 0xfe8   :  { %v10563_v3 = vadd.f32 %v10562_v14, %v10561_v49  ;;  %v10160_v56 = vcombine.low %v26579_v55, %v26582_v7  ;;  %v10262_v36 = vmul.f32 %v26573_v24, %v26573_v24  ;;  %v10181_v34 = vrot.slane %v10159_v25, %v23709_v19 }
 0xfe9   :  { %v10174_v48 = vrot.slane %v10158_v20, %v23709_v19  ;;  %v10263_v57 = vmul.f32 %v26570_v37, %v26570_v37  ;;  %v10264_v15 = vmul.f32 %v26576_v26, %v26576_v26  ;;  %v10265_v23 = vmul.f32 %v26579_v55, %v26579_v55 }
 0xfea   :  { %v10188_v49 = vrot.slane %v10160_v56, %v23709_v19  ;;  %v10266_v31 = vmul.f32 %v26582_v7, %v26582_v7  ;;  %v10503_v30 = vcombine.low %v10259_v11, %v10260_v42  ;;  %v10504_v28 = vcombine.low %v10261_v60, %v10262_v36 }
 0xfeb   :  { %v10189_v32 = vcombine.low %v10167_v16, %v10174_v48  ;;  %v10505_v38 = vcombine.low %v10263_v57, %v10264_v15  ;;  %v29973_v36 = vsub.s32 4, %v30254_v44  ;;  %v29972_v15 = vsub.s32 5, %v30254_v44  ;;  %v30296_v44 = vld [vmem:[#allocation7_spill] sm:$0xff] }
 0xfec   :  { %v10190_v27 = vcombine.low %v10181_v34, %v10188_v49  ;;  %v10506_v51 = vcombine.low %v10265_v23, %v10266_v31  ;;  %v10513_v47 = vrot.slane %v10503_v30, %v23709_v19  ;;  %v10520_v41 = vrot.slane %v10504_v28, %v23709_v19 }
 0xfed   :  { %v10197_v4 = vrot.slane %v10189_v32, %v23709_v19  ;;  %v10527_v54 = vrot.slane %v10505_v38, %v23709_v19  ;;  %v10776_v31 = vrot.slane %v26254_v33, %v29973_v36 }
 0xfee   :  { %v10204_v50 = vrot.slane %v10190_v27, %v23709_v19  ;;  %v10534_v63 = vrot.slane %v10506_v51, %v23709_v19  ;;  %v10535_v35 = vcombine.low %v10513_v47, %v10520_v41 }
 0xfef   :  { %v10778_v27 = vcombine.high %v10776_v31, %v10776_v31 }
 0xff0   :  { %v10205_v14 = vcombine.low %v10197_v4, %v10204_v50  ;;  %v10536_v11 = vcombine.low %v10527_v54, %v10534_v63  ;;  %v10543_v20 = vrot.slane %v10535_v35, %v23709_v19  ;;  %v10785_v50 = vrot.slane %v10776_v31, %v23709_v19 }
 0xff1   :  { %v10792_v54 = vrot.slane %v10778_v27, %v23709_v19 }
 0xff2   :  { %v10218_v42 = vsel %vm832_vm3, %v10205_v14, 0.0  ;;  %v10550_v25 = vrot.slane %v10536_v11, %v23709_v19 }
 0xff3   :  { %v10219_v60 = vadd.f32 %v10218_v42, %v10217_v1  ;;  %v10878_v1 = vrot.slane %v26254_v33, %v29972_v15 }
 0xff4   :  { %v10551_v56 = vcombine.low %v10543_v20, %v10550_v25 }
 0xff5   :  { %v10220_v16 = vrot.slane %v10219_v60, 4  ;;  %v10887_v63 = vrot.slane %v10878_v1, %v23709_v19 }
 0xff6   :  { %v10564_v48 = vsel %vm832_vm3, %v10551_v56, 0.0 }
 0xff7   :  { %v10221_v34 = vadd.f32 %v10220_v16, %v10219_v60  ;;  %v10565_v57 = vadd.f32 %v10564_v48, %v10563_v3  ;;  %v10880_v3 = vcombine.high %v10878_v1, %v10878_v1  ;;  %v10793_v16 = vcombine.high %v10785_v50, %v10785_v50 }
 0xff8   :  { %v10794_v48 = vcombine.high %v10792_v54, %v10792_v54  ;;  %v26710_v15 = vrot.slane %v10887_v63, %v23709_v19 }
 0xff9   :  { %v10222_v49 = vrot.slane %v10221_v34, 2  ;;  %v10566_v23 = vrot.slane %v10565_v57, 4  ;;  %v10894_v33 = vrot.slane %v10880_v3, %v23709_v19  ;;  %v30294_v3 = vld [vmem:[#allocation8_spill] sm:$0xff] }
 0xffb   :  { %v10223_v30 = vadd.f32 %v10222_v49, %v10221_v34  ;;  %v10567_v32 = vadd.f32 %v10566_v23, %v10565_v57  ;;  %v10895_v34 = vcombine.high %v10887_v63, %v10887_v63  ;;  %v26713_v36 = vrot.slane %v10894_v33, %v23709_v19 }
 0xffd   :  { %v10224_v28 = vrot.slane %v10223_v30, 1  ;;  %v10568_v38 = vrot.slane %v10567_v32, 2 }
 0xfff   :  { %v10225_v51 = vadd.f32 %v10224_v28, %v10223_v30  ;;  %v10569_v47 = vadd.f32 %v10568_v38, %v10567_v32  ;;  %v10896_v30 = vcombine.high %v10894_v33, %v10894_v33  ;;  %v30295_v28 = vld [vmem:[#allocation12_spill] sm:$0xff] }
0x1001   :  { %v10226_v41 = vmul.f32 0.025, %v10225_v51  ;;  %v10570_v4 = vrot.slane %v10569_v47, 1 }
0x1003   :  { %v10571_v35 = vadd.f32 %v10570_v4, %v10569_v47  ;;  %v10573_v14 = vmul.f32 %v10226_v41, %v10226_v41  ;;  %v10576_v11 = vcombine.high %v10226_v41, %v10226_v41  ;;  %v10583_v42 = vrot.slane %v10226_v41, %v23709_v19 }
0x1005   :  { %v10572_v20 = vmul.f32 0.025, %v10571_v35  ;;  %v10590_v25 = vrot.slane %v10576_v11, %v23709_v19  ;;  %v10591_v60 = vcombine.high %v10583_v42, %v10583_v42  ;;  %v26638_v56 = vrot.slane %v10583_v42, %v23709_v19  ;;  %v30293_v35 = vld [vmem:[#allocation14_spill] sm:$0xff] }
0x1007   :  { %30292 = vst [vmem:[#allocation24_spill] sm:$0xff] %v26638_v56  ;;  %v10574_v57 = vsub.f32 %v10572_v20, %v10573_v14  ;;  %v10592_v49 = vcombine.high %v10590_v25, %v10590_v25  ;;  %v26641_v23 = vrot.slane %v10590_v25, %v23709_v19  ;;  %v26644_v31 = vrot.slane %v10591_v60, %v23709_v19 }
0x1008   :  { %v26648_v32 = vcombine.high %v26638_v56, %v26638_v56  ;;  %v26698_v25 = vrot.slane %v10785_v50, %v23709_v19  ;;  %v26701_v60 = vrot.slane %v10792_v54, %v23709_v19  ;;  %v26719_v50 = vrot.slane %v10896_v30, %v23709_v19 }
0x1009   :  { %v26655_v38 = vrot.slane %v10592_v49, %v23709_v19  ;;  %v26659_v27 = vcombine.high %v26641_v23, %v26641_v23  ;;  %v26663_v51 = vcombine.high %v26644_v31, %v26644_v31  ;;  %v10673_v4 = vadd.f32 1e-05, %v10574_v57 }
0x100a   :  { %v26704_v57 = vrot.slane %v10793_v16, %v23709_v19  ;;  %v26707_v49 = vrot.slane %v10794_v48, %v23709_v19  ;;  %v26743_v48 = vcombine.high %v26701_v60, %v26701_v60  ;;  %v26755_v30 = vcombine.high %v26710_v15, %v26710_v15 }
0x100b   :  { %v26675_v14 = vcombine.high %v26655_v38, %v26655_v38  ;;  %23402 = vrsqrt.f32 %v10673_v4  ;;  %v26716_v4 = vrot.slane %v10895_v34, %v23709_v19  ;;  %v26733_v34 = vcombine.high %v26698_v25, %v26698_v25 }
0x100c   :  { %v26747_v33 = vcombine.high %v26704_v57, %v26704_v57  ;;  %v26751_v63 = vcombine.high %v26707_v49, %v26707_v49  ;;  %v26759_v54 = vcombine.high %v26713_v36, %v26713_v36  ;;  %v26767_v20 = vcombine.high %v26719_v50, %v26719_v50 }
0x100d   :  { %v26763_v16 = vcombine.high %v26716_v4, %v26716_v4  ;;  %v10641_v42 = vsub.f32 %v26350_v22, %v26638_v56  ;;  %v10649_v47 = vsub.f32 %v26420_v0, %v26638_v56  ;;  %v30302_v0 = vld [vmem:[#allocation16_spill] sm:$0xff]  ;;  %v30304_v22 = vsub.f32 %v26559_v13, %v26638_v56 }
0x100e   :  { %v30305_v58 = vsub.f32 %v26281_v29, %v26638_v56  ;;  %v30307_v29 = vsub.f32 %v26564_v18, %v26644_v31  ;;  %v30310_v56 = vsub.f32 %v26285_v5, %v26644_v31 }
0x1015   :  { %v23403_v11 = vpop.eup %23402 }
0x1016   :  { %v10676_v21 = vcombine.high %v23403_v11, %v23403_v11  ;;  %v10683_v9 = vrot.slane %v23403_v11, %v23709_v19 }
0x1018   :  { %v10690_v11 = vrot.slane %v10676_v21, %v23709_v19  ;;  %v10691_v43 = vcombine.high %v10683_v9, %v10683_v9  ;;  %v26794_v12 = vrot.slane %v10683_v9, %v23709_v19 }
0x101a   :  { %30300 = vst [vmem:[#allocation30_spill] sm:$0xff] %v26794_v12  ;;  %v10692_v21 = vcombine.high %v10690_v11, %v10690_v11  ;;  %v26807_v53 = vrot.slane %v10690_v11, %v23709_v19  ;;  %v26810_v9 = vrot.slane %v10691_v43, %v23709_v19  ;;  %v26814_v52 = vcombine.high %v26794_v12, %v26794_v12 }
0x101b   :  { %v10765_v41 = vmul.f32 %v26794_v12, %v30304_v22  ;;  %v10733_v8 = vmul.f32 %v26794_v12, %v30305_v58  ;;  %v10741_v11 = vmul.f32 %v26794_v12, %v10641_v42  ;;  %v26826_v40 = vmul.f32 %v26794_v12, %v10649_v47 }
0x101c   :  { %v26829_v43 = vrot.slane %v10692_v21, %v23709_v19  ;;  %v26833_v1 = vcombine.high %v26807_v53, %v26807_v53  ;;  %v26837_v13 = vcombine.high %v26810_v9, %v26810_v9  ;;  %v10766_v58 = vmul.f32 %v26810_v9, %v30307_v29 }
0x101d   :  { %30306 = vst [vmem:[#allocation29_spill] sm:$0xff] %v26826_v40  ;;  %v30308_v47 = vsub.f32 %v26567_v59, %v26648_v32  ;;  %v30309_v22 = vsub.f32 %v26570_v37, %v26641_v23  ;;  %v10867_v12 = vmul.f32 %v26698_v25, %v10765_v41  ;;  %v10734_v40 = vmul.f32 %v26810_v9, %v30310_v56 }
0x101e   :  { %v26858_v18 = vcombine.high %v26829_v43, %v26829_v43  ;;  %v30311_v59 = vsub.f32 %v26573_v24, %v26663_v51  ;;  %v30312_v37 = vsub.f32 %v26576_v26, %v26655_v38  ;;  %v30313_v41 = vsub.f32 %v26579_v55, %v26659_v27 }
0x101f   :  { %v10767_v42 = vmul.f32 %v26814_v52, %v30308_v47  ;;  %v10769_v21 = vmul.f32 %v26807_v53, %v30309_v22  ;;  %v26873_v56 = vmul.f32 %v26704_v57, %v10766_v58  ;;  %v30315_v26 = vsub.f32 %v26582_v7, %v26675_v14 }
0x1020   :  { %v10768_v29 = vmul.f32 %v26837_v13, %v30311_v59  ;;  %v10770_v47 = vmul.f32 %v26829_v43, %v30312_v37  ;;  %v10771_v5 = vmul.f32 %v26833_v1, %v30313_v41  ;;  %v26882_v59 = vadd.f32 %v26710_v15, %v10867_v12 }
0x1021   :  { %v26876_v22 = vmul.f32 %v26733_v34, %v10767_v42  ;;  %v26879_v24 = vmul.f32 %v26701_v60, %v10769_v21  ;;  %v26888_v37 = vmul.f32 %v26858_v18, %v30315_v26  ;;  %v30317_v21 = vsub.f32 %v26288_v62, %v26648_v32 }
0x1022   :  { %30314 = vst [vmem:[#allocation32_spill] sm:$0xff] %v26882_v59  ;;  %v26891_v55 = vmul.f32 %v26747_v33, %v10768_v29  ;;  %v26894_v58 = vmul.f32 %v26707_v49, %v10770_v47  ;;  %v26897_v42 = vmul.f32 %v26743_v48, %v10771_v5  ;;  %v30318_v7 = vsub.f32 %v26297_v45, %v26663_v51 }
0x1023   :  { %v10735_v12 = vmul.f32 %v26814_v52, %v30317_v21  ;;  %v30319_v29 = vsub.f32 %v26291_v39, %v26641_v23  ;;  %v30320_v47 = vsub.f32 %v26300_v46, %v26655_v38  ;;  %v30321_v62 = vsub.f32 %v26303_v17, %v26659_v27 }
0x1024   :  { %30316 = vst [vmem:[#allocation31_spill] sm:$0xff] %v26897_v42  ;;  %v10736_v41 = vmul.f32 %v26837_v13, %v30318_v7  ;;  %v30322_v45 = vsub.f32 %v26313_v2, %v26675_v14  ;;  %v10835_v59 = vmul.f32 %v26698_v25, %v10733_v8  ;;  %v10836_v39 = vmul.f32 %v26704_v57, %v10734_v40 }
0x1025   :  { %v10737_v26 = vmul.f32 %v26807_v53, %v30319_v29  ;;  %v10738_v5 = vmul.f32 %v26829_v43, %v30320_v47  ;;  %v10739_v21 = vmul.f32 %v26833_v1, %v30321_v62  ;;  %v10837_v29 = vmul.f32 %v26733_v34, %v10735_v12 }
0x1026   :  { %v10740_v7 = vmul.f32 %v26858_v18, %v30322_v45  ;;  %v10838_v46 = vmul.f32 %v26747_v33, %v10736_v41  ;;  %v26932_v2 = vadd.f32 %v26710_v15, %v10835_v59  ;;  %v26935_v45 = vadd.f32 %v26716_v4, %v10836_v39 }
0x1027   :  { %v10839_v47 = vmul.f32 %v26701_v60, %v10737_v26  ;;  %v10840_v42 = vmul.f32 %v26707_v49, %v10738_v5  ;;  %v10841_v17 = vmul.f32 %v26743_v48, %v10739_v21  ;;  %v26938_v40 = vadd.f32 %v26755_v30, %v10837_v29 }
0x1028   :  { %v10842_v62 = vmul.f32 %v26751_v63, %v10740_v7  ;;  %30323 = vst [vmem:[#allocation33_spill] sm:$0xff] %v26935_v45  ;;  %v26941_v8 = vadd.f32 %v26763_v16, %v10838_v46  ;;  %v11037_v5 = vcombine.low %v26932_v2, %v26935_v45  ;;  %v30330_v21 = vsub.f32 %v30293_v35, %v26644_v31 }
0x1029   :  { %30324 = vst [vmem:[#allocation34_spill] sm:$0xff] %v26938_v40  ;;  %v26944_v12 = vadd.f32 %v26713_v36, %v10839_v47  ;;  %v26947_v41 = vadd.f32 %v26719_v50, %v10840_v42  ;;  %v26950_v26 = vadd.f32 %v26759_v54, %v10841_v17  ;;  %v30331_v29 = vsub.f32 %v30294_v3, %v26648_v32 }
0x102a   :  { %30325 = vst [vmem:[#allocation35_spill] sm:$0xff] %v26941_v8  ;;  %v26953_v59 = vadd.f32 %v26767_v20, %v10842_v62  ;;  %v10742_v7 = vmul.f32 %v26810_v9, %v30330_v21  ;;  %v11038_v39 = vcombine.low %v26938_v40, %v26941_v8  ;;  %v30332_v47 = vsub.f32 %v30295_v28, %v26663_v51 }
0x102b   :  { %30326 = vst [vmem:[#allocation36_spill] sm:$0xff] %v26944_v12  ;;  %30327 = vst [vmem:[#allocation38_spill] sm:$0xff] %v26947_v41  ;;  %v11039_v42 = vcombine.low %v26944_v12, %v26947_v41  ;;  %v10743_v46 = vmul.f32 %v26814_v52, %v30331_v29  ;;  %v11047_v62 = vrot.slane %v11037_v5, %v23709_v19  ;;  %v30337_v5 = vld [vmem:[#allocation11_spill] sm:$0xff] }
0x102c   :  { %30328 = vst [vmem:[#allocation37_spill] sm:$0xff] %v26950_v26  ;;  %30329 = vst [vmem:[#allocation39_spill] sm:$0xff] %v26953_v59  ;;  %v10744_v17 = vmul.f32 %v26837_v13, %v30332_v47  ;;  %v11040_v35 = vcombine.low %v26950_v26, %v26953_v59  ;;  %v30333_v21 = vsub.f32 %v30296_v44, %v26641_v23  ;;  %v30335_v47 = vld [vmem:[#allocation10_spill] sm:$0xff] }
0x102d   :  { %v30334_v3 = vsub.f32 %v30297_v6, %v26655_v38  ;;  %v11054_v8 = vrot.slane %v11038_v39, %v23709_v19  ;;  %v11061_v28 = vrot.slane %v11039_v42, %v23709_v19  ;;  %v30336_v12 = vsub.f32 %v30335_v47, %v26659_v27 }
0x102e   :  { %v10745_v41 = vmul.f32 %v26807_v53, %v30333_v21  ;;  %v30338_v26 = vsub.f32 %v30337_v5, %v26675_v14  ;;  %v11068_v21 = vrot.slane %v11040_v35, %v23709_v19  ;;  %v10843_v6 = vmul.f32 %v26698_v25, %v10741_v11 }
0x102f   :  { %v10746_v29 = vmul.f32 %v26829_v43, %v30334_v3  ;;  %v10747_v59 = vmul.f32 %v26833_v1, %v30336_v12  ;;  %v10844_v3 = vmul.f32 %v26704_v57, %v10742_v7  ;;  %v10845_v39 = vmul.f32 %v26733_v34, %v10743_v46 }
0x1030   :  { %v10748_v44 = vmul.f32 %v26858_v18, %v30338_v26  ;;  %v11069_v40 = vcombine.low %v11047_v62, %v11054_v8  ;;  %v10846_v42 = vmul.f32 %v26747_v33, %v10744_v17  ;;  %v10847_v47 = vmul.f32 %v26701_v60, %v10745_v41 }
0x1031   :  { %v10848_v12 = vmul.f32 %v26707_v49, %v10746_v29  ;;  %v11070_v45 = vcombine.low %v11061_v28, %v11068_v21  ;;  %v10849_v5 = vmul.f32 %v26743_v48, %v10747_v59  ;;  %v27004_v35 = vadd.f32 %v26710_v15, %v10843_v6 }
0x1032   :  { %v10850_v26 = vmul.f32 %v26751_v63, %v10748_v44  ;;  %v11077_v11 = vrot.slane %v11069_v40, %v23709_v19  ;;  %v27008_v7 = vadd.f32 %v26716_v4, %v10844_v3  ;;  %v27011_v8 = vadd.f32 %v26755_v30, %v10845_v39  ;;  %v30345_v44 = vld [vmem:[#allocation13_spill] sm:$0xff]  ;;  %v30347_v39 = vld [vmem:[#allocation15_spill] sm:$0xff] }
0x1033   :  { %v27014_v41 = vadd.f32 %v26763_v16, %v10846_v42  ;;  %v11084_v46 = vrot.slane %v11070_v45, %v23709_v19  ;;  %v27018_v59 = vadd.f32 %v26713_v36, %v10847_v47  ;;  %v27021_v17 = vadd.f32 %v26719_v50, %v10848_v12 }
0x1034   :  { %30339 = vst [vmem:[#allocation41_spill] sm:$0xff] %v27011_v8  ;;  %v27024_v62 = vadd.f32 %v26759_v54, %v10849_v5  ;;  %v27027_v40 = vadd.f32 %v26767_v20, %v10850_v26  ;;  %v11086_v29 = vcombine.low %v27004_v35, %v27008_v7  ;;  %v30346_v45 = vsub.f32 %v30345_v44, %v26644_v31 }
0x1035   :  { %30340 = vst [vmem:[#allocation42_spill] sm:$0xff] %v27014_v41  ;;  %30341 = vst [vmem:[#allocation40_spill] sm:$0xff] %v27018_v59  ;;  %v11087_v28 = vcombine.low %v27011_v8, %v27014_v41  ;;  %v11085_v6 = vcombine.low %v11077_v11, %v11084_v46  ;;  %v11088_v3 = vcombine.low %v27018_v59, %v27021_v17 }
0x1036   :  { %30342 = vst [vmem:[#allocation43_spill] sm:$0xff] %v27021_v17  ;;  %30343 = vst [vmem:[#allocation44_spill] sm:$0xff] %v27024_v62  ;;  %v10750_v21 = vmul.f32 %v26810_v9, %v30346_v45  ;;  %v30348_v42 = vsub.f32 %v30347_v39, %v26648_v32  ;;  %v30349_v12 = vsub.f32 %v26432_v10, %v26663_v51  ;;  %v30357_v17 = vld [vmem:[#allocation29_spill] sm:$0xff] }
0x1037   :  { %30344 = vst [vmem:[#allocation14_spill] sm:$0xff] %v27027_v40  ;;  %v11089_v26 = vcombine.low %v27024_v62, %v27027_v40  ;;  %v11096_v44 = vrot.slane %v11086_v29, %v23709_v19  ;;  %v11103_v11 = vrot.slane %v11087_v28, %v23709_v19  ;;  %v30350_v46 = vsub.f32 %v30301_v61, %v26641_v23  ;;  %v30354_v28 = vld [vmem:[#allocation26_spill] sm:$0xff] }
0x1038   :  { %v10751_v47 = vmul.f32 %v26814_v52, %v30348_v42  ;;  %v10752_v5 = vmul.f32 %v26837_v13, %v30349_v12  ;;  %22691 = vmatmul.mubr.msk.f32.vlgmr.msra.gmra.mrb[86].mxu0 %vm832_vm3, %v11085_v6  ;;  %v11110_v39 = vrot.slane %v11088_v3, %v23709_v19  ;;  %v30351_v10 = vsub.f32 %v30302_v0, %v26655_v38  ;;  %v30352_v12 = vld [vmem:[#allocation23_spill] sm:$0xff] }
0x1039   :  { %v10753_v45 = vmul.f32 %v26807_v53, %v30350_v46  ;;  %v30353_v40 = vsub.f32 %v30352_v12, %v26659_v27  ;;  %v30355_v62 = vsub.f32 %v30354_v28, %v26675_v14  ;;  %v30356_v46 = vmov 0.0  }
0x103a   :  { %v10754_v42 = vmul.f32 %v26829_v43, %v30351_v10  ;;  %22693 = vmatprep.mubr.msk.f32.mxu0 %vm23573_vm1, %v30356_v46  ;;  %v11117_v6 = vrot.slane %v11089_v26, %v23709_v19  ;;  %v11118_v3 = vcombine.low %v11096_v44, %v11103_v11  ;;  %v10851_v0 = vmul.f32 %v26698_v25, %v30357_v17 }
0x103b   :  { %v10755_v29 = vmul.f32 %v26833_v1, %v30353_v40  ;;  %v10756_v61 = vmul.f32 %v26858_v18, %v30355_v62  ;;  %v10852_v10 = vmul.f32 %v26704_v57, %v10750_v21  ;;  %v10853_v12 = vmul.f32 %v26733_v34, %v10751_v47 }
0x103c   :  { %v10854_v40 = vmul.f32 %v26747_v33, %v10752_v5  ;;  %v10855_v59 = vmul.f32 %v26701_v60, %v10753_v45  ;;  %v10856_v28 = vmul.f32 %v26707_v49, %v10754_v42  ;;  %v11119_v62 = vcombine.low %v11110_v39, %v11117_v6  ;;  %v30365_v6 = vld [vmem:[#allocation17_spill] sm:$0xff] }
0x103d   :  { %v11126_v41 = vrot.slane %v11118_v3, %v23709_v19  ;;  %v10857_v8 = vmul.f32 %v26743_v48, %v10755_v29  ;;  %v10858_v26 = vmul.f32 %v26751_v63, %v10756_v61  ;;  %v27083_v44 = vadd.f32 %v26710_v15, %v10851_v0  ;;  %v30366_v3 = vld [vmem:[#allocation24_spill] sm:$0xff] }
0x103e   :  { %v27086_v17 = vadd.f32 %v26716_v4, %v10852_v10  ;;  %v27089_v21 = vadd.f32 %v26755_v30, %v10853_v12  ;;  %v27092_v47 = vadd.f32 %v26763_v16, %v10854_v40  ;;  %v11133_v5 = vrot.slane %v11119_v62, %v23709_v19 }
0x103f   :  { %30358 = vst [vmem:[#allocation8_spill] sm:$0xff] %v27083_v44  ;;  %v27096_v11 = vadd.f32 %v26713_v36, %v10855_v59  ;;  %v27099_v45 = vadd.f32 %v26719_v50, %v10856_v28  ;;  %v27102_v39 = vadd.f32 %v26759_v54, %v10857_v8  ;;  %v27105_v42 = vadd.f32 %v26767_v20, %v10858_v26  ;;  %v30368_v59 = vld [vmem:[#allocation30_spill] sm:$0xff]  ;;  %v30371_v26 = vld [vmem:[#allocation19_spill] sm:$0xff] }
0x1040   :  { %30359 = vst [vmem:[#allocation12_spill] sm:$0xff] %v27086_v17  ;;  %30360 = vst [vmem:[#allocation7_spill] sm:$0xff] %v27089_v21  ;;  %v11135_v29 = vcombine.low %v27083_v44, %v27086_v17  ;;  %v11136_v61 = vcombine.low %v27089_v21, %v27092_v47  ;;  %v30367_v0 = vsub.f32 %v30365_v6, %v30366_v3  ;;  %v30369_v8 = vld [vmem:[#allocation18_spill] sm:$0xff] }
0x1041   :  { %30361 = vst [vmem:[#allocation9_spill] sm:$0xff] %v27092_v47  ;;  %30362 = vst [vmem:[#allocation27_spill] sm:$0xff] %v27099_v45  ;;  %v11134_v12 = vcombine.low %v11126_v41, %v11133_v5  ;;  %v11137_v40 = vcombine.low %v27096_v11, %v27099_v45  ;;  %v30370_v28 = vsub.f32 %v30369_v8, %v26644_v31  ;;  %v30373_v5 = vld [vmem:[#allocation20_spill] sm:$0xff] }
0x1042   :  { %30363 = vst [vmem:[#allocation16_spill] sm:$0xff] %v27102_v39  ;;  %30364 = vst [vmem:[#allocation10_spill] sm:$0xff] %v27105_v42  ;;  %v10757_v10 = vmul.f32 %v30368_v59, %v30367_v0  ;;  %v30372_v17 = vsub.f32 %v30371_v26, %v26648_v32  ;;  %v11138_v47 = vcombine.low %v27102_v39, %v27105_v42 }
0x1043   :  { %v10758_v62 = vmul.f32 %v26810_v9, %v30370_v28  ;;  %v11145_v6 = vrot.slane %v11135_v29, %v23709_v19  ;;  %v11152_v41 = vrot.slane %v11136_v61, %v23709_v19  ;;  %v30374_v3 = vsub.f32 %v30373_v5, %v26663_v51  ;;  %22694 = vmatmul.mubr.msk.f32.gmra.mrb[88].mxu0 %vm832_vm3, %v11134_v12  ;;  %v30375_v9 = vld [vmem:[#allocation22_spill] sm:$0xff]  ;;  %v30379_v61 = vld [vmem:[#allocation21_spill] sm:$0xff] }
0x1044   :  { %v10759_v44 = vmul.f32 %v26814_v52, %v30372_v17  ;;  %v11159_v31 = vrot.slane %v11137_v40, %v23709_v19  ;;  %v30376_v32 = vsub.f32 %v30375_v9, %v26641_v23  ;;  %v30377_v17 = vld [vmem:[#allocation25_spill] sm:$0xff]  ;;  %v30380_v8 = vsub.f32 %v30379_v61, %v26659_v27  ;;  %22696 = vmatprep.mubr.msk.f32.mxu0 %vm23573_vm1, %v30356_v46  ;;  %v30381_v40 = vld [vmem:[#allocation28_spill] sm:$0xff] }
0x1045   :  { %v10760_v0 = vmul.f32 %v26837_v13, %v30374_v3  ;;  %v30378_v59 = vsub.f32 %v30377_v17, %v26655_v38  ;;  %v11166_v13 = vrot.slane %v11138_v47, %v23709_v19  ;;  %v11167_v12 = vcombine.low %v11145_v6, %v11152_v41  ;;  %v30399_v17 = vld [vmem:[#allocation32_spill] sm:$0xff] }
0x1046   :  { %v10761_v52 = vmul.f32 %v26807_v53, %v30376_v32  ;;  %v10763_v51 = vmul.f32 %v26833_v1, %v30380_v8  ;;  %v30382_v23 = vsub.f32 %v30381_v40, %v26675_v14  ;;  %v10859_v38 = vmul.f32 %v26698_v25, %v10757_v10 }
0x1047   :  { %v10762_v29 = vmul.f32 %v26829_v43, %v30378_v59  ;;  %v10860_v43 = vmul.f32 %v26704_v57, %v10758_v62  ;;  %v10861_v28 = vmul.f32 %v26733_v34, %v10759_v44  ;;  %v10862_v27 = vmul.f32 %v26747_v33, %v10760_v0 }
0x1048   :  { %v10764_v53 = vmul.f32 %v26858_v18, %v30382_v23  ;;  %v10863_v1 = vmul.f32 %v26701_v60, %v10761_v52  ;;  %v11168_v26 = vcombine.low %v11159_v31, %v11166_v13  ;;  %v11175_v5 = vrot.slane %v11167_v12, %v23709_v19 }
0x1049   :  { %v10864_v47 = vmul.f32 %v26707_v49, %v10762_v29  ;;  %v10865_v6 = vmul.f32 %v26743_v48, %v10763_v51  ;;  %v27164_v18 = vadd.f32 %v26710_v15, %v10859_v38  ;;  %v27167_v25 = vadd.f32 %v26716_v4, %v10860_v43 }
0x104a   :  { %v10866_v14 = vmul.f32 %v26751_v63, %v10764_v53  ;;  %v27170_v57 = vadd.f32 %v26755_v30, %v10861_v28  ;;  %v11182_v60 = vrot.slane %v11168_v26, %v23709_v19  ;;  %v27174_v33 = vadd.f32 %v26763_v16, %v10862_v27  ;;  %v27257_v28 = vld [vmem:[%s29849_s4 + $0x1] ss:$0 sm:$0xff] }
0x104b   :  { %30383 = vst [vmem:[#allocation11_spill] sm:$0xff] %v27164_v18  ;;  %30384 = vst [vmem:[#allocation13_spill] sm:$0xff] %v27167_v25  ;;  %v27177_v49 = vadd.f32 %v26713_v36, %v10863_v1  ;;  %v27180_v48 = vadd.f32 %v26719_v50, %v10864_v47  ;;  %v27183_v15 = vadd.f32 %v26759_v54, %v10865_v6 }
0x104c   :  { %30385 = vst [vmem:[#allocation15_spill] sm:$0xff] %v27170_v57  ;;  %30386 = vst [vmem:[#allocation23_spill] sm:$0xff] %v27174_v33  ;;  %v27186_v34 = vadd.f32 %v26767_v20, %v10866_v14  ;;  %v11184_v44 = vcombine.low %v27164_v18, %v27167_v25  ;;  %v10874_v10 = vmul.f32 %v26751_v63, %v26888_v37 }
0x104d   :  { %30387 = vst [vmem:[#allocation26_spill] sm:$0xff] %v27177_v49  ;;  %30388 = vst [vmem:[#allocation29_spill] sm:$0xff] %v27180_v48  ;;  %v11183_v62 = vcombine.low %v11175_v5, %v11182_v60  ;;  %v11185_v41 = vcombine.low %v27170_v57, %v27174_v33  ;;  %v11186_v3 = vcombine.low %v27177_v49, %v27180_v48 }
0x104e   :  { %30389 = vst [vmem:[#allocation17_spill] sm:$0xff] %v27183_v15  ;;  %30390 = vst [vmem:[#allocation24_spill] sm:$0xff] %v27186_v34  ;;  %v27198_v0 = vadd.f32 %v26716_v4, %v26873_v56  ;;  %v11187_v31 = vcombine.low %v27183_v15, %v27186_v34  ;;  %v11194_v9 = vrot.slane %v11184_v44, %v23709_v19 }
0x104f   :  { %v27205_v32 = vadd.f32 %v26755_v30, %v26876_v22  ;;  %v27209_v63 = vadd.f32 %v26763_v16, %v26891_v55  ;;  %22697 = vmatmul.mubr.msk.f32.gmra.mrb[90].mxu0 %vm832_vm3, %v11183_v62  ;;  %v11201_v37 = vrot.slane %v11185_v41, %v23709_v19  ;;  %v11208_v4 = vrot.slane %v11186_v3, %v23709_v19  ;;  %v30396_v30 = vld [vmem:[#allocation31_spill] sm:$0xff] }
0x1050   :  { %30391 = vst [vmem:[#allocation30_spill] sm:$0xff] %v27198_v0  ;;  %v27216_v56 = vadd.f32 %v26713_v36, %v26879_v24  ;;  %v27220_v52 = vadd.f32 %v26719_v50, %v26894_v58  ;;  %22699 = vmatprep.mubr.msk.f32.mxu0 %vm23573_vm1, %v30356_v46  ;;  %v11215_v16 = vrot.slane %v11187_v31, %v23709_v19 }
0x1051   :  { %30392 = vst [vmem:[#allocation18_spill] sm:$0xff] %v27205_v32  ;;  %30393 = vst [vmem:[#allocation19_spill] sm:$0xff] %v27209_v63  ;;  %v27227_v22 = vadd.f32 %v26759_v54, %v30396_v30  ;;  %v27230_v55 = vadd.f32 %v26767_v20, %v10874_v10  ;;  %v11233_v36 = vcombine.low %v30399_v17, %v27198_v0 }
0x1052   :  { %30394 = vst [vmem:[#allocation20_spill] sm:$0xff] %v27216_v56  ;;  %30395 = vst [vmem:[#allocation22_spill] sm:$0xff] %v27220_v52  ;;  %v11216_v24 = vcombine.low %v11194_v9, %v11201_v37  ;;  %v11234_v50 = vcombine.low %v27205_v32, %v27209_v63  ;;  %v11235_v58 = vcombine.low %v27216_v56, %v27220_v52 }
0x1053   :  { %30397 = vst [vmem:[#allocation25_spill] sm:$0xff] %v27227_v22  ;;  %30398 = vst [vmem:[#allocation21_spill] sm:$0xff] %v27230_v55  ;;  %v11217_v59 = vcombine.low %v11208_v4, %v11215_v16  ;;  %v11236_v29 = vcombine.low %v27227_v22, %v27230_v55  ;;  %v11243_v54 = vrot.slane %v11233_v36, %v23709_v19 }
0x1054   :  { %v11250_v61 = vrot.slane %v11234_v50, %v23709_v19  ;;  %v11224_v20 = vrot.slane %v11216_v24, %v23709_v19  ;;  %v11257_v51 = vrot.slane %v11235_v58, %v23709_v19 }
0x1055   :  { %v11231_v8 = vrot.slane %v11217_v59, %v23709_v19  ;;  %v11264_v13 = vrot.slane %v11236_v29, %v23709_v19 }
0x1056   :  { %v11265_v12 = vcombine.low %v11243_v54, %v11250_v61 }
0x1057   :  { %v11232_v40 = vcombine.low %v11224_v20, %v11231_v8  ;;  %v11266_v23 = vcombine.low %v11257_v51, %v11264_v13 }
0x1058   :  { %v11273_v53 = vrot.slane %v11265_v12, %v23709_v19 }
0x1059   :  { %22700 = vmatmul.mubr.msk.f32.gmra.mrb[92].mxu0 %vm832_vm3, %v11232_v40  ;;  %v11280_v38 = vrot.slane %v11266_v23, %v23709_v19 }
0x105a   :  { %22702 = vmatprep.mubr.msk.f32.mxu0 %vm23573_vm1, %v30356_v46 }
0x105b   :  { %v11281_v43 = vcombine.low %v11273_v53, %v11280_v38 }
0x105d   :  { %22703 = vmatmul.mubr.msk.f32.gmra.mrb[94].mxu0 %vm832_vm3, %v11281_v43 }
0x105e   :  { %22712 = vmatprep.mubr.msk.f32.mxu0 %vm23573_vm1, %v30356_v46 }
0x110b   :  { %v11358_v27 = vpop.f32.mrb[86].mxu0 }
0x110c   :  { %v11359_v1 = vadd.f32 %v27257_v28, %v11358_v27  ;;  %v22692_v26 = vpop.f32.mrb[87].mxu0 }
0x110e   :  { %v11387_v5 = vcombine.high %v11359_v1, %v11359_v1  ;;  %v11394_v47 = vrot.slane %v11359_v1, %v23709_v19 }
0x1110   :  { %v11401_v6 = vrot.slane %v11387_v5, %v23709_v19  ;;  %v11402_v14 = vcombine.high %v11394_v47, %v11394_v47  ;;  %v11410_v44 = vrot.slane %v11394_v47, %v23709_v19 }
0x1112   :  { %v11403_v60 = vcombine.high %v11401_v6, %v11401_v6  ;;  %v11417_v10 = vrot.slane %v11401_v6, %v23709_v19  ;;  %v11424_v62 = vrot.slane %v11402_v14, %v23709_v19 }
0x1114   :  { %v11431_v41 = vrot.slane %v11403_v60, %v23709_v19  ;;  %v11433_v3 = vcombine.high %v11417_v10, %v11417_v10  ;;  %v11632_v31 = vcombine.low %v11410_v44, %v11424_v62  ;;  %v21724_v9 = vcombine.high %v11410_v44, %v11424_v62 }
0x1115   :  { %v11654_v24 = vrot.slane %v11417_v10, %v23709_v19 }
0x1116   :  { %v11363_v37 = vpop.f32.mrb[88].mxu0  ;;  %v11640_v30 = vrot.slane %v11632_v31, %v23709_v19  ;;  %v11647_v36 = vrot.slane %v21724_v9, %v23709_v19  ;;  %v11435_v50 = vcombine.high %v11431_v41, %v11431_v41  ;;  %v11747_v54 = vcombine.low %v11431_v41, %v11433_v3 }
0x1117   :  { %v11364_v4 = vadd.f32 %v27257_v28, %v11363_v37  ;;  %v22695_v16 = vpop.f32.mrb[89].mxu0  ;;  %v11669_v13 = vrot.slane %v11654_v24, %v23709_v19 }
0x1118   :  { %v11655_v29 = vcombine.low %v11640_v30, %v11647_v36  ;;  %v11755_v43 = vrot.slane %v11747_v54, %v23709_v19 }
0x1119   :  { %v11436_v58 = vcombine.high %v11364_v4, %v11364_v4  ;;  %v11443_v59 = vrot.slane %v11364_v4, %v23709_v19 }
0x111a   :  { %v11662_v51 = vrot.slane %v11655_v29, %v23709_v19 }
0x111b   :  { %v11450_v61 = vrot.slane %v11436_v58, %v23709_v19  ;;  %v11451_v20 = vcombine.high %v11443_v59, %v11443_v59  ;;  %v11459_v8 = vrot.slane %v11443_v59, %v23709_v19 }
0x111c   :  { %v27277_v38 = vcombine.low %v11662_v51, %v11669_v13 }
0x111d   :  { %v11452_v12 = vcombine.high %v11450_v61, %v11450_v61  ;;  %v11466_v40 = vrot.slane %v11450_v61, %v23709_v19  ;;  %v11473_v23 = vrot.slane %v11451_v20, %v23709_v19  ;;  %v11748_v53 = vcombine.low %v11435_v50, %v11459_v8 }
0x111e   :  { %11671 = vrot.lane.b32.xlu0 %v27277_v38, %s23576_s19 }
0x111f   :  { %v11480_v27 = vrot.slane %v11452_v12, %v23709_v19  ;;  %v11482_v1 = vcombine.high %v11466_v40, %v11466_v40  ;;  %v11762_v26 = vrot.slane %v11748_v53, %v23709_v19  ;;  %v11769_v5 = vrot.slane %v11473_v23, %v23709_v19 }
0x1120   :  { %v21729_v6 = vcombine.high %v11459_v8, %v11473_v23 }
0x1121   :  { %v11770_v44 = vcombine.low %v11755_v43, %v11762_v26  ;;  %v11863_v10 = vcombine.low %v11466_v40, %v11480_v27  ;;  %v11784_v62 = vrot.slane %v11769_v5, %v23709_v19  ;;  %v11884_v41 = vrot.slane %v11482_v1, %v23709_v19 }
0x1122   :  { %v11368_v47 = vpop.f32.mrb[90].mxu0  ;;  %v11870_v37 = vrot.slane %v21729_v6, %v23709_v19  ;;  %v11484_v16 = vcombine.high %v11480_v27, %v11480_v27 }
0x1123   :  { %v11369_v14 = vadd.f32 %v27257_v28, %v11368_v47  ;;  %v22698_v60 = vpop.f32.mrb[91].mxu0  ;;  %v11777_v9 = vrot.slane %v11770_v44, %v23709_v19  ;;  %v11877_v4 = vrot.slane %v11863_v10, %v23709_v19  ;;  %v11899_v20 = vrot.slane %v11884_v41, %v23709_v19 }
0x1125   :  { %v11485_v3 = vcombine.high %v11369_v14, %v11369_v14  ;;  %v11492_v31 = vrot.slane %v11369_v14, %v23709_v19  ;;  %v27294_v50 = vcombine.low %v11777_v9, %v11784_v62  ;;  %v11885_v58 = vcombine.low %v11870_v37, %v11877_v4 }
0x1127   :  { %v11499_v30 = vrot.slane %v11485_v3, %v23709_v19  ;;  %v11500_v36 = vcombine.high %v11492_v31, %v11492_v31  ;;  %v11508_v24 = vrot.slane %v11492_v31, %v23709_v19  ;;  %v11892_v61 = vrot.slane %v11885_v58, %v23709_v19  ;;  %11786 = vrot.lane.b32.xlu1 %v27294_v50, %s23576_s19 }
0x1129   :  { %v11501_v59 = vcombine.high %v11499_v30, %v11499_v30  ;;  %v11522_v29 = vrot.slane %v11500_v36, %v23709_v19  ;;  %v11530_v54 = vcombine.high %v11508_v24, %v11508_v24  ;;  %v11977_v8 = vcombine.low %v11484_v16, %v11508_v24 }
0x112a   :  { %v11515_v51 = vrot.slane %v11499_v30, %v23709_v19  ;;  %v27303_v53 = vcombine.low %v11892_v61, %v11899_v20 }
0x112b   :  { %v11529_v13 = vrot.slane %v11501_v59, %v23709_v19  ;;  %v11532_v12 = vcombine.high %v11522_v29, %v11522_v29  ;;  %v11978_v40 = vcombine.low %v11522_v29, %v11530_v54  ;;  %v11985_v43 = vrot.slane %v11977_v8, %v23709_v19 }
0x112c   :  { %v11373_v23 = vpop.f32.mrb[92].mxu0  ;;  %11901 = vrot.lane.b32.xlu0 %v27303_v53, %s23576_s19 }
0x112d   :  { %v11374_v27 = vadd.f32 %v27257_v28, %v11373_v23  ;;  %v22701_v1 = vpop.f32.mrb[93].mxu0  ;;  %v11992_v26 = vrot.slane %v11978_v40, %v23709_v19  ;;  %v11999_v5 = vrot.slane %v11532_v12, %v23709_v19  ;;  %v12092_v47 = vcombine.low %v11515_v51, %v11529_v13 }
0x112e   :  { %v21734_v6 = vcombine.high %v11515_v51, %v11529_v13 }
0x112f   :  { %v11534_v14 = vcombine.high %v11374_v27, %v11374_v27  ;;  %v11541_v60 = vrot.slane %v11374_v27, %v23709_v19  ;;  %v12000_v44 = vcombine.low %v11985_v43, %v11992_v26  ;;  %v12100_v10 = vrot.slane %v12092_v47, %v23709_v19 }
0x1130   :  { %v12107_v62 = vrot.slane %v21734_v6, %v23709_v19  ;;  %v11378_v41 = vpop.f32.mrb[94].mxu0  ;;  %v12014_v30 = vrot.slane %v11999_v5, %v23709_v19 }
0x1131   :  { %v11548_v3 = vrot.slane %v11534_v14, %v23709_v19  ;;  %v11549_v31 = vcombine.high %v11541_v60, %v11541_v60  ;;  %v11557_v9 = vrot.slane %v11541_v60, %v23709_v19  ;;  %v11379_v37 = vadd.f32 %v27257_v28, %v11378_v41  ;;  %v22704_v4 = vpop.f32.mrb[95].mxu0 }
0x1132   :  { %v12007_v16 = vrot.slane %v12000_v44, %v23709_v19  ;;  %v12115_v36 = vcombine.low %v12100_v10, %v12107_v62 }
0x1133   :  { %v11550_v24 = vcombine.high %v11548_v3, %v11548_v3  ;;  %v11564_v58 = vrot.slane %v11548_v3, %v23709_v19  ;;  %v11571_v59 = vrot.slane %v11549_v31, %v23709_v19  ;;  %v11579_v29 = vcombine.high %v11557_v9, %v11557_v9 }
0x1134   :  { %v27321_v54 = vcombine.low %v12007_v16, %v12014_v30  ;;  %v12114_v61 = vrot.slane %v11557_v9, %v23709_v19  ;;  %v12122_v20 = vrot.slane %v12115_v36, %v23709_v19  ;;  %v11583_v8 = vcombine.high %v11379_v37, %v11379_v37 }
0x1135   :  { %v11578_v28 = vrot.slane %v11550_v24, %v23709_v19  ;;  %v11581_v51 = vcombine.high %v11571_v59, %v11571_v59  ;;  %v12207_v13 = vcombine.low %v11571_v59, %v11579_v29  ;;  %v11590_v12 = vrot.slane %v11379_v37, %v23709_v19 }
0x1136   :  { %v12129_v40 = vrot.slane %v12114_v61, %v23709_v19  ;;  %v11597_v23 = vrot.slane %v11583_v8, %v23709_v19  ;;  %12016 = vrot.lane.b32.xlu1 %v27321_v54, %s23576_s19 }
0x1137   :  { %v12208_v43 = vcombine.low %v11581_v51, %v11564_v58  ;;  %v11598_v1 = vcombine.high %v11590_v12, %v11590_v12  ;;  %v11606_v5 = vrot.slane %v11590_v12, %v23709_v19  ;;  %v12215_v47 = vrot.slane %v12207_v13, %v23709_v19 }
0x1138   :  { %v27331_v27 = vcombine.low %v12122_v20, %v12129_v40  ;;  %v11599_v26 = vcombine.high %v11597_v23, %v11597_v23  ;;  %v12229_v14 = vrot.slane %v11578_v28, %v23709_v19  ;;  %v11613_v60 = vrot.slane %v11597_v23, %v23709_v19 }
0x1139   :  { %v12222_v6 = vrot.slane %v12208_v43, %v23709_v19  ;;  %v21739_v44 = vcombine.high %v11564_v58, %v11578_v28  ;;  %v11620_v10 = vrot.slane %v11598_v1, %v23709_v19  ;;  %v11628_v41 = vcombine.high %v11606_v5, %v11606_v5 }
0x113a   :  { %v11627_v62 = vrot.slane %v11599_v26, %v23709_v19  ;;  %12131 = vrot.lane.b32.xlu0 %v27331_v27, %s23576_s19  ;;  %v11629_v31 = vcombine.high %v11613_v60, %v11613_v60  ;;  %v12244_v30 = vrot.slane %v12229_v14, %v23709_v19 }
0x113b   :  { %v12230_v3 = vcombine.low %v12215_v47, %v12222_v6  ;;  %v11630_v9 = vcombine.high %v11620_v10, %v11620_v10  ;;  %v12323_v4 = vcombine.low %v11606_v5, %v11620_v10  ;;  %v12330_v24 = vrot.slane %v21739_v44, %v23709_v19 }
0x113c   :  { %v11631_v37 = vcombine.high %v11627_v62, %v11627_v62  ;;  %v12438_v36 = vcombine.low %v11627_v62, %v11629_v31  ;;  %v12344_v59 = vrot.slane %v11628_v41, %v23709_v19 }
0x113d   :  { %v12237_v16 = vrot.slane %v12230_v3, %v23709_v19  ;;  %v12337_v58 = vrot.slane %v12323_v4, %v23709_v19  ;;  %v12437_v29 = vcombine.low %v11630_v9, %v11613_v60  ;;  %v12560_v9 = vld [vmem:[#allocation2] sm:$0x1f] }
0x113e   :  { %v12452_v20 = vrot.slane %v12438_v36, %v23709_v19  ;;  %v12459_v51 = vrot.slane %v11631_v37, %v23709_v19  ;;  %v12359_v12 = vrot.slane %v12344_v59, %v23709_v19 }
0x113f   :  { %v27347_v61 = vcombine.low %v12237_v16, %v12244_v30  ;;  %v12345_v8 = vcombine.low %v12330_v24, %v12337_v58  ;;  %v12445_v28 = vrot.slane %v12437_v29, %v23709_v19  ;;  %v12561_v24 = vld [vmem:[#allocation2 + $0x8] sm:$0x1f] }
0x1140   :  { %v12474_v1 = vrot.slane %v12459_v51, %v23709_v19 }
0x1141   :  { %12246 = vrot.lane.b32.xlu1 %v27347_v61, %s23576_s19  ;;  %v12352_v13 = vrot.slane %v12345_v8, %v23709_v19  ;;  %v12460_v40 = vcombine.low %v12445_v28, %v12452_v20  ;;  %v12562_v28 = vld [vmem:[#allocation2 + $0x10] sm:$0x1f] }
0x1143   :  { %v27356_v23 = vcombine.low %v12352_v13, %v12359_v12  ;;  %v12467_v43 = vrot.slane %v12460_v40, %v23709_v19 }
0x1145   :  { %v27360_v26 = vcombine.low %v12467_v43, %v12474_v1  ;;  %12361 = vrot.lane.b32.xlu0 %v27356_v23, %s23576_s19  ;;  %v12563_v1 = vld [vmem:[#allocation2 + $0x18] sm:$0x1f] }
0x1147   :  { %12476 = vrot.lane.b32.xlu1 %v27360_v26, %s23576_s19 }
0x1190   :  { %v11672_v5 = vpop.permute.xlu0 %11671 }
0x1191   :  { %22706 = vmatpush3.xpose.msk.msra.mxu1 %vm1224_vm4, %v11672_v5 }
0x1192   :  { %22715 = vmatprep.subr.mxu1 %v30356_v46 }
0x1194   :  { %22708 = vmatmul.mubr.msk.f32.vlgmr.msra.gmra.mrb[92].mxu1 %vm1224_vm4, %v27277_v38 }
0x1195   :  { %22717 = vmatprep.mubr.msk.f32.mxu1 %vm23573_vm1, %v30356_v46 }
0x1199   :  { %v11787_v47 = vpop.permute.xlu1 %11786 }
0x119a   :  { %22711 = vmatpush3.xpose.msk.msra.mxu0 %vm1224_vm4, %v11787_v47 }
0x119b   :  { %22720 = vmatprep.subr.mxu0 %v30356_v46 }
0x119d   :  { %22713 = vmatmul.mubr.msk.f32.vlgmr.msra.gmra.mrb[96].mxu0 %vm1224_vm4, %v27294_v50 }
0x119e   :  { %v11902_v6 = vpop.permute.xlu0 %11901  ;;  %22722 = vmatprep.mubr.msk.f32.mxu0 %vm23573_vm1, %v30356_v46 }
0x119f   :  { %22716 = vmatpush3.xpose.msk.msra.mxu1 %vm1224_vm4, %v11902_v6 }
0x11a0   :  { %22725 = vmatprep.subr.mxu1 %v30356_v46 }
0x11a2   :  { %22718 = vmatmul.mubr.msk.f32.vlgmr.msra.gmra.mrb[94].mxu1 %vm1224_vm4, %v27303_v53 }
0x11a3   :  { %22727 = vmatprep.mubr.msk.f32.mxu1 %vm23573_vm1, %v30356_v46 }
0x11a8   :  { %v12017_v14 = vpop.permute.xlu1 %12016 }
0x11a9   :  { %22721 = vmatpush3.xpose.msk.msra.mxu0 %vm1224_vm4, %v12017_v14 }
0x11aa   :  { %22730 = vmatprep.subr.mxu0 %v30356_v46 }
0x11ac   :  { %v12132_v60 = vpop.permute.xlu0 %12131  ;;  %22723 = vmatmul.mubr.msk.f32.vlgmr.msra.gmra.mrb[98].mxu0 %vm1224_vm4, %v27321_v54 }
0x11ad   :  { %22726 = vmatpush3.xpose.msk.msra.mxu1 %vm1224_vm4, %v12132_v60  ;;  %22732 = vmatprep.mubr.msk.f32.mxu0 %vm23573_vm1, %v30356_v46 }
0x11ae   :  { %22735 = vmatprep.subr.mxu1 %v30356_v46 }
0x11b0   :  { %22728 = vmatmul.mubr.msk.f32.vlgmr.msra.gmra.mrb[96].mxu1 %vm1224_vm4, %v27331_v27 }
0x11b1   :  { %22737 = vmatprep.mubr.msk.f32.mxu1 %vm23573_vm1, %v30356_v46 }
0x11b3   :  { %v12247_v44 = vpop.permute.xlu1 %12246 }
0x11b4   :  { %22731 = vmatpush3.xpose.msk.msra.mxu0 %vm1224_vm4, %v12247_v44  ;;  %v12564_v44 = vld [vmem:[#allocation2 + $0x20] sm:$0x1f] }
0x11b5   :  { %22740 = vmatprep.subr.mxu0 %v30356_v46 }
0x11b7   :  { %22733 = vmatmul.mubr.msk.f32.vlgmr.msra.gmra.mrb[100].mxu0 %vm1224_vm4, %v27347_v61  ;;  %v12362_v10 = vpop.permute.xlu0 %12361 }
0x11b8   :  { %22742 = vmatprep.mubr.msk.f32.mxu0 %vm23573_vm1, %v30356_v46  ;;  %22736 = vmatpush3.xpose.msk.msra.mxu1 %vm1224_vm4, %v12362_v10 }
0x11b9   :  { %v12477_v62 = vpop.permute.xlu1 %12476  ;;  %22745 = vmatprep.subr.mxu1 %v30356_v46 }
0x11ba   :  { %22741 = vmatpush3.xpose.msk.msra.mxu0 %vm1224_vm4, %v12477_v62 }
0x11bb   :  { %22738 = vmatmul.mubr.msk.f32.vlgmr.msra.gmra.mrb[98].mxu1 %vm1224_vm4, %v27356_v23  ;;  %22750 = vmatprep.subr.mxu0 %v30356_v46 }
0x11bc   :  { %22747 = vmatprep.mubr.msk.f32.mxu1 %vm23573_vm1, %v30356_v46 }
0x11bd   :  { %22743 = vmatmul.mubr.msk.f32.vlgmr.msra.gmra.mrb[102].mxu0 %vm1224_vm4, %v27360_v26 }
0x11be   :  { %22752 = vmatprep.mubr.msk.f32.mxu0 %vm23573_vm1, %v30356_v46 }
0x1267   :  { %v11743_v41 = vpop.f32.mrb[92].mxu1 }
0x1268   :  { %v12552_v3 = vmul.f32 0.35355338, %v11743_v41  ;;  %v22709_v31 = vpop.f32.mrb[93].mxu1 }
0x126a   :  { %v27414_v37 = vadd.f32 %v12560_v9, %v12552_v3  ;;  %v12565_v9 = vld [vmem:[#allocation2 + $0x28] sm:$0x1f] }
0x126c   :  { %12576 = vst.msk [vmem:[#allocation2] sm:$0x1f] %vm2112_vm5, %v27414_v37  ;;  %v12584_v4 = vsel %vm2112_vm5, %v27414_v37, -inf }
0x126d   :  { %12585 = vmax.xlane.f32.xlu0 %v12584_v4 }
0x1270   :  { %v11858_v16 = vpop.f32.mrb[96].mxu0 }
0x1271   :  { %v12553_v30 = vmul.f32 0.35355338, %v11858_v16  ;;  %v22714_v36 = vpop.f32.mrb[97].mxu0 }
0x1273   :  { %v27420_v58 = vadd.f32 %v12561_v24, %v12553_v30 }
0x1275   :  { %v11973_v59 = vpop.f32.mrb[94].mxu1  ;;  %12577 = vst.msk [vmem:[#allocation2 + $0x8] sm:$0x1f] %vm2112_vm5, %v27420_v58  ;;  %v12587_v8 = vsel %vm2112_vm5, %v27420_v58, -inf }
0x1276   :  { %v12554_v29 = vmul.f32 0.35355338, %v11973_v59  ;;  %v22719_v20 = vpop.f32.mrb[95].mxu1  ;;  %12588 = vmax.xlane.f32.xlu1 %v12587_v8  ;;  %v12566_v59 = vld [vmem:[#allocation2 + $0x30] sm:$0x1f] }
0x1278   :  { %v27426_v51 = vadd.f32 %v12562_v28, %v12554_v29 }
0x127a   :  { %12578 = vst.msk [vmem:[#allocation2 + $0x10] sm:$0x1f] %vm2112_vm5, %v27426_v51  ;;  %v12590_v13 = vsel %vm2112_vm5, %v27426_v51, -inf }
0x127b   :  { %12591 = vmax.xlane.f32.xlu0 %v12590_v13  ;;  %v12567_v13 = vld [vmem:[#allocation2 + $0x38] sm:$0x1f] }
0x127f   :  { %v12088_v12 = vpop.f32.mrb[98].mxu0 }
0x1280   :  { %v12555_v40 = vmul.f32 0.35355338, %v12088_v12  ;;  %v22724_v43 = vpop.f32.mrb[99].mxu0 }
0x1282   :  { %v27432_v5 = vadd.f32 %v12563_v1, %v12555_v40 }
0x1283   :  { %v12203_v47 = vpop.f32.mrb[96].mxu1 }
0x1284   :  { %12579 = vst.msk [vmem:[#allocation2 + $0x18] sm:$0x1f] %vm2112_vm5, %v27432_v5  ;;  %v12556_v6 = vmul.f32 0.35355338, %v12203_v47  ;;  %v22729_v14 = vpop.f32.mrb[97].mxu1  ;;  %v12593_v60 = vsel %vm2112_vm5, %v27432_v5, -inf }
0x1285   :  { %12594 = vmax.xlane.f32.xlu0 %v12593_v60 }
0x1286   :  { %v27438_v10 = vadd.f32 %v12564_v44, %v12556_v6 }
0x1288   :  { %12580 = vst.msk [vmem:[#allocation2 + $0x20] sm:$0x1f] %vm2112_vm5, %v27438_v10  ;;  %v12596_v62 = vsel %vm2112_vm5, %v27438_v10, -inf }
0x1289   :  { %12597 = vmax.xlane.f32.xlu1 %v12596_v62 }
0x128a   :  { %v12318_v41 = vpop.f32.mrb[100].mxu0 }
0x128b   :  { %v12557_v3 = vmul.f32 0.35355338, %v12318_v41  ;;  %v22734_v31 = vpop.f32.mrb[101].mxu0 }
0x128d   :  { %v27444_v4 = vadd.f32 %v12565_v9, %v12557_v3 }
0x128e   :  { %v12433_v16 = vpop.f32.mrb[98].mxu1 }
0x128f   :  { %12581 = vst.msk [vmem:[#allocation2 + $0x28] sm:$0x1f] %vm2112_vm5, %v27444_v4  ;;  %v12599_v30 = vsel %vm2112_vm5, %v27444_v4, -inf  ;;  %v12558_v36 = vmul.f32 0.35355338, %v12433_v16  ;;  %v22739_v24 = vpop.f32.mrb[99].mxu1 }
0x1290   :  { %12600 = vmax.xlane.f32.xlu0 %v12599_v30  ;;  %v12548_v29 = vpop.f32.mrb[102].mxu0 }
0x1291   :  { %v27450_v20 = vadd.f32 %v12566_v59, %v12558_v36  ;;  %v12559_v8 = vmul.f32 0.35355338, %v12548_v29  ;;  %v22744_v28 = vpop.f32.mrb[103].mxu0 }
0x1293   :  { %12582 = vst.msk [vmem:[#allocation2 + $0x30] sm:$0x1f] %vm2112_vm5, %v27450_v20  ;;  %v27454_v12 = vadd.f32 %v12567_v13, %v12559_v8  ;;  %v12602_v40 = vsel %vm2112_vm5, %v27450_v20, -inf }
0x1294   :  { %12603 = vmax.xlane.f32.xlu1 %v12602_v40 }
0x1295   :  { %12583 = vst.msk [vmem:[#allocation2 + $0x38] sm:$0x1f] %vm2112_vm5, %v27454_v12  ;;  %v12605_v43 = vsel %vm2112_vm5, %v27454_v12, -inf }
0x1296   :  { %12606 = vmax.xlane.f32.xlu0 %v12605_v43 }
0x12a5   :  { %12672 = vrot.lane.b32.xlu1 %v27277_v38, %s23577_s20 }
0x12a9   :  { %12826 = vrot.lane.b32.xlu1 %v27303_v53, %s23577_s20 }
0x12ac   :  { %12749 = vrot.lane.b32.xlu0 %v27294_v50, %s23577_s20 }
0x12ad   :  { %12903 = vrot.lane.b32.xlu1 %v27321_v54, %s23577_s20 }
0x12b0   :  { %12980 = vrot.lane.b32.xlu0 %v27331_v27, %s23577_s20 }
0x12b1   :  { %13057 = vrot.lane.b32.xlu1 %v27347_v61, %s23577_s20 }
0x12b4   :  { %13134 = vrot.lane.b32.xlu0 %v27356_v23, %s23577_s20 }
0x12b5   :  { %13211 = vrot.lane.b32.xlu1 %v27360_v26, %s23577_s20 }
0x12b8   :  { %13290 = vrot.lane.b32.xlu0 %v27277_v38, %s23578_s1 }
0x12b9   :  { %13368 = vrot.lane.b32.xlu1 %v27294_v50, %s23578_s1 }
0x12bc   :  { %13288 = vrot.lane.b32.xlu0 %v27277_v38, %s23579_s21 }
0x12bd   :  { %13366 = vrot.lane.b32.xlu1 %v27294_v50, %s23579_s21 }
0x12c0   :  { %13446 = vrot.lane.b32.xlu0 %v27303_v53, %s23578_s1 }
0x12c1   :  { %13524 = vrot.lane.b32.xlu1 %v27321_v54, %s23578_s1 }
0x12fa   :  { %v12586_v1 = vpop.xlane.xlu0 %12585 }
0x12fb   :  { %v12608_v47 = vsub.f32 %v27414_v37, %v12586_v1 }
0x12fd   :  { %v12616_v6 = vmul.f32 1.442695, %v12608_v47 }
0x12ff   :  { %23404 = vpow2.f32 %v12616_v6 }
0x1303   :  { %v12589_v14 = vpop.xlane.xlu1 %12588 }
0x1304   :  { %v12609_v60 = vsub.f32 %v27420_v58, %v12589_v14 }
0x1306   :  { %v12618_v44 = vmul.f32 1.442695, %v12609_v60 }
0x1308   :  { %v12592_v62 = vpop.xlane.xlu0 %12591  ;;  %23406 = vpow2.f32 %v12618_v44 }
0x1309   :  { %v12610_v41 = vsub.f32 %v27426_v51, %v12592_v62  ;;  %v27493_v31 = vpop.eup %23404 }
0x130a   :  { %v12632_v9 = vsel %vm2112_vm5, %v27493_v31, 0.0 }
0x130b   :  { %v12620_v3 = vmul.f32 1.442695, %v12610_v41  ;;  %12633 = vadd.xlane.f32.xlu1 %v12632_v9 }
0x130d   :  { %23408 = vpow2.f32 %v12620_v3 }
0x1312   :  { %v12595_v16 = vpop.xlane.xlu0 %12594  ;;  %v27498_v36 = vpop.eup %23406 }
0x1313   :  { %v12611_v37 = vsub.f32 %v27432_v5, %v12595_v16  ;;  %v12635_v51 = vsel %vm2112_vm5, %v27498_v36, 0.0 }
0x1314   :  { %12636 = vadd.xlane.f32.xlu0 %v12635_v51 }
0x1315   :  { %v12622_v30 = vmul.f32 1.442695, %v12611_v37 }
0x1316   :  { %v12598_v58 = vpop.xlane.xlu1 %12597 }
0x1317   :  { %v12612_v24 = vsub.f32 %v27438_v10, %v12598_v58  ;;  %23410 = vpow2.f32 %v12622_v30  ;;  %v27503_v29 = vpop.eup %23408 }
0x1318   :  { %v12638_v8 = vsel %vm2112_vm5, %v27503_v29, 0.0 }
0x1319   :  { %v12624_v59 = vmul.f32 1.442695, %v12612_v24  ;;  %12639 = vadd.xlane.f32.xlu1 %v12638_v8 }
0x131b   :  { %23412 = vpow2.f32 %v12624_v59 }
0x131d   :  { %v12601_v5 = vpop.xlane.xlu0 %12600 }
0x131e   :  { %v12613_v28 = vsub.f32 %v27444_v4, %v12601_v5 }
0x1320   :  { %v12626_v13 = vmul.f32 1.442695, %v12613_v28 }
0x1321   :  { %v27508_v40 = vpop.eup %23410  ;;  %v12604_v10 = vpop.xlane.xlu1 %12603 }
0x1322   :  { %23414 = vpow2.f32 %v12626_v13  ;;  %v12641_v43 = vsel %vm2112_vm5, %v27508_v40, 0.0  ;;  %v12614_v1 = vsub.f32 %v27450_v20, %v12604_v10 }
0x1323   :  { %12642 = vadd.xlane.f32.xlu0 %v12641_v43  ;;  %v12607_v47 = vpop.xlane.xlu0 %12606 }
0x1324   :  { %v12628_v14 = vmul.f32 1.442695, %v12614_v1  ;;  %v12615_v60 = vsub.f32 %v27454_v12, %v12607_v47 }
0x1325   :  { %v27513_v6 = vpop.eup %23412  ;;  %v12673_v44 = vpop.permute.xlu1 %12672 }
0x1326   :  { %v12644_v4 = vsel %vm2112_vm5, %v27513_v6, 0.0  ;;  %23416 = vpow2.f32 %v12628_v14  ;;  %v12630_v62 = vmul.f32 1.442695, %v12615_v60  ;;  %22746 = vmatpush3.msk.msra.mxu1 %vm2215_vm6, %v12673_v44 }
0x1327   :  { %12645 = vadd.xlane.f32.xlu1 %v12644_v4  ;;  %v12750_v41 = vpop.permute.xlu0 %12749  ;;  %22755 = vmatprep.subr.mxu1 %v30356_v46 }
0x1328   :  { %23418 = vpow2.f32 %v12630_v62  ;;  %22751 = vmatpush3.msk.msra.mxu0 %vm2215_vm6, %v12750_v41 }
0x1329   :  { %22760 = vmatprep.subr.mxu0 %v30356_v46  ;;  %v12827_v30 = vpop.permute.xlu1 %12826 }
0x132b   :  { %v12981_v59 = vpop.permute.xlu0 %12980 }
0x132c   :  { %v27522_v20 = vpop.eup %23414 }
0x132d   :  { %v12647_v12 = vsel %vm2112_vm5, %v27522_v20, 0.0  ;;  %v12904_v58 = vpop.permute.xlu1 %12903 }
0x132e   :  { %12648 = vadd.xlane.f32.xlu0 %v12647_v12 }
0x132f   :  { %v13135_v5 = vpop.permute.xlu0 %13134 }
0x1330   :  { %v27526_v3 = vpop.eup %23416 }
0x1331   :  { %v12650_v9 = vsel %vm2112_vm5, %v27526_v3, 0.0  ;;  %v13058_v24 = vpop.permute.xlu1 %13057 }
0x1332   :  { %v27530_v16 = vpop.eup %23418  ;;  %12651 = vadd.xlane.f32.xlu1 %v12650_v9 }
0x1333   :  { %v12653_v37 = vsel %vm2112_vm5, %v27530_v16, 0.0  ;;  %v27558_v13 = vpop.permute.xlu0 %13290 }
0x1334   :  { %12654 = vadd.xlane.f32.xlu0 %v12653_v37 }
0x1335   :  { %v13212_v51 = vpop.permute.xlu1 %13211 }
0x1337   :  { %v27562_v43 = vpop.permute.xlu0 %13288 }
0x1339   :  { %v27554_v8 = vpop.permute.xlu1 %13368 }
0x133b   :  { %v27564_v47 = vpop.permute.xlu0 %13446 }
0x133d   :  { %v27556_v28 = vpop.permute.xlu1 %13366 }
0x1341   :  { %v27560_v10 = vpop.permute.xlu1 %13524 }
0x1343   :  { %13522 = vrot.lane.b32.xlu1 %v27321_v54, %s23579_s21 }
0x1347   :  { %13680 = vrot.lane.b32.xlu1 %v27347_v61, %s23578_s1 }
0x134a   :  { %13444 = vrot.lane.b32.xlu0 %v27303_v53, %s23579_s21 }
0x134b   :  { %13678 = vrot.lane.b32.xlu1 %v27347_v61, %s23579_s21 }
0x134e   :  { %13602 = vrot.lane.b32.xlu0 %v27331_v27, %s23578_s1 }
0x134f   :  { %13836 = vrot.lane.b32.xlu1 %v27360_v26, %s23578_s1 }
0x1352   :  { %13600 = vrot.lane.b32.xlu0 %v27331_v27, %s23579_s21 }
0x1353   :  { %13834 = vrot.lane.b32.xlu1 %v27360_v26, %s23579_s21 }
0x1356   :  { %13758 = vrot.lane.b32.xlu0 %v27356_v23, %s23578_s1 }
0x135a   :  { %13756 = vrot.lane.b32.xlu0 %v27356_v23, %s23579_s21 }
0x1398   :  { %v12634_v1 = vpop.xlane.xlu1 %12633 }
0x1399   :  { %23420 = vrcp.f32 %v12634_v1 }
0x13a1   :  { %v12637_v14 = vpop.xlane.xlu0 %12636 }
0x13a2   :  { %23422 = vrcp.f32 %v12637_v14 }
0x13a3   :  { %v23421_v60 = vpop.eup %23420 }
0x13a4   :  { %v12664_v4 = vmul.f32 %v23421_v60, %v27493_v31 }
0x13a6   :  { %v12640_v44 = vpop.xlane.xlu1 %12639  ;;  %22748 = vmatmul.mubr.msk.f32.vlgmr.msra.gmra.mrb[100].mxu1 %vm2211_vm7, %v12664_v4 }
0x13a7   :  { %23424 = vrcp.f32 %v12640_v44  ;;  %22756 = vmatpush3.msk.msra.mxu1 %vm2215_vm6, %v12827_v30  ;;  %22757 = vmatprep.mubr.msk.f32.mxu1 %vm23573_vm1, %v30356_v46 }
0x13a8   :  { %22765 = vmatprep.subr.mxu1 %v30356_v46 }
0x13ac   :  { %v23423_v62 = vpop.eup %23422 }
0x13ad   :  { %v12665_v12 = vmul.f32 %v23423_v62, %v27498_v36 }
0x13af   :  { %22753 = vmatmul.mubr.msk.f32.vlgmr.msra.gmra.mrb[104].mxu0 %vm2211_vm7, %v12665_v12 }
0x13b0   :  { %v12643_v41 = vpop.xlane.xlu0 %12642  ;;  %22761 = vmatpush3.msk.msra.mxu0 %vm2215_vm6, %v12904_v58  ;;  %22762 = vmatprep.mubr.msk.f32.mxu0 %vm23573_vm1, %v30356_v46 }
0x13b1   :  { %23426 = vrcp.f32 %v12643_v41  ;;  %v23425_v9 = vpop.eup %23424  ;;  %22770 = vmatprep.subr.mxu0 %v30356_v46 }
0x13b2   :  { %v12666_v31 = vmul.f32 %v23425_v9, %v27503_v29 }
0x13b4   :  { %v12646_v37 = vpop.xlane.xlu1 %12645  ;;  %22758 = vmatmul.mubr.msk.f32.vlgmr.msra.gmra.mrb[102].mxu1 %vm2211_vm7, %v12666_v31 }
0x13b5   :  { %23428 = vrcp.f32 %v12646_v37  ;;  %22766 = vmatpush3.msk.msra.mxu1 %vm2215_vm6, %v12981_v59  ;;  %22767 = vmatprep.mubr.msk.f32.mxu1 %vm23573_vm1, %v30356_v46 }
0x13b6   :  { %22775 = vmatprep.subr.mxu1 %v30356_v46 }
0x13bb   :  { %v23427_v36 = vpop.eup %23426  ;;  %v12649_v30 = vpop.xlane.xlu0 %12648 }
0x13bc   :  { %23430 = vrcp.f32 %v12649_v30  ;;  %v12667_v58 = vmul.f32 %v23427_v36, %v27508_v40 }
0x13be   :  { %22763 = vmatmul.mubr.msk.f32.vlgmr.msra.gmra.mrb[106].mxu0 %vm2211_vm7, %v12667_v58 }
0x13bf   :  { %v23429_v1 = vpop.eup %23428  ;;  %22771 = vmatpush3.msk.msra.mxu0 %vm2215_vm6, %v13058_v24  ;;  %22772 = vmatprep.mubr.msk.f32.mxu0 %vm23573_vm1, %v30356_v46  ;;  %v12652_v29 = vpop.xlane.xlu1 %12651 }
0x13c0   :  { %v12668_v59 = vmul.f32 %v23429_v1, %v27513_v6  ;;  %22780 = vmatprep.subr.mxu0 %v30356_v46  ;;  %23432 = vrcp.f32 %v12652_v29 }
0x13c1   :  { %v12655_v14 = vpop.xlane.xlu0 %12654 }
0x13c2   :  { %22768 = vmatmul.mubr.msk.f32.vlgmr.msra.gmra.mrb[104].mxu1 %vm2211_vm7, %v12668_v59  ;;  %23434 = vrcp.f32 %v12655_v14 }
0x13c3   :  { %22776 = vmatpush3.msk.msra.mxu1 %vm2215_vm6, %v13135_v5  ;;  %22777 = vmatprep.mubr.msk.f32.mxu1 %vm23573_vm1, %v30356_v46  ;;  %v13523_v60 = vpop.permute.xlu1 %13522 }
0x13c4   :  { %22785 = vmatprep.subr.mxu1 %v30356_v46 }
0x13c5   :  { %v13445_v24 = vpop.permute.xlu0 %13444 }
0x13c6   :  { %v23431_v40 = vpop.eup %23430 }
0x13c7   :  { %v12669_v44 = vmul.f32 %v23431_v40, %v27522_v20  ;;  %v13681_v41 = vpop.permute.xlu1 %13680 }
0x13c9   :  { %22773 = vmatmul.mubr.msk.f32.vlgmr.msra.gmra.mrb[108].mxu0 %vm2211_vm7, %v12669_v44  ;;  %v13603_v4 = vpop.permute.xlu0 %13602 }
0x13ca   :  { %22781 = vmatpush3.msk.msra.mxu0 %vm2215_vm6, %v13212_v51  ;;  %22782 = vmatprep.mubr.msk.f32.mxu0 %vm23573_vm1, %v30356_v46  ;;  %v23433_v6 = vpop.eup %23432 }
0x13cb   :  { %22790 = vmatprep.subr.mxu0 %v30356_v46  ;;  %v12670_v5 = vmul.f32 %v23433_v6, %v27526_v3  ;;  %v13679_v3 = vpop.permute.xlu1 %13678 }
0x13cc   :  { %v23435_v62 = vpop.eup %23434 }
0x13cd   :  { %22778 = vmatmul.mubr.msk.f32.vlgmr.msra.gmra.mrb[106].mxu1 %vm2211_vm7, %v12670_v5  ;;  %v12671_v12 = vmul.f32 %v23435_v62, %v27530_v16  ;;  %v13601_v20 = vpop.permute.xlu0 %13600 }
0x13ce   :  { %22786 = vmatpush3.xpose.msk.msra.mxu1 %vm1224_vm4, %v27558_v13  ;;  %22787 = vmatprep.mubr.msk.f32.mxu1 %vm23573_vm1, %v30356_v46 }
0x13cf   :  { %22783 = vmatmul.mubr.msk.f32.vlgmr.msra.gmra.mrb[110].mxu0 %vm2211_vm7, %v12671_v12  ;;  %22795 = vmatprep.subr.mxu1 %v30356_v46  ;;  %v13837_v51 = vpop.permute.xlu1 %13836 }
0x13d0   :  { %22792 = vmatprep.mubr.msk.f32.mxu0 %vm23573_vm1, %v30356_v46 }
0x13d1   :  { %22791 = vmatpush3.xpose.msk.msra.mxu0 %vm1224_vm4, %v27554_v8  ;;  %22788 = vmatmul.mubr.msk.f32.vlgmr.msra.gmra.mrb[108].mxu1 %vm1224_vm4, %v27562_v43  ;;  %v13759_v16 = vpop.permute.xlu0 %13758 }
0x13d2   :  { %22800 = vmatprep.subr.mxu0 %v30356_v46  ;;  %22796 = vmatpush3.xpose.msk.msra.mxu1 %vm1224_vm4, %v27564_v47 }
0x13d3   :  { %22797 = vmatprep.mubr.msk.f32.mxu1 %vm23573_vm1, %v30356_v46  ;;  %22805 = vmatprep.subr.mxu1 %v30356_v46 }
0x13d4   :  { %22793 = vmatmul.mubr.msk.f32.vlgmr.msra.gmra.mrb[112].mxu0 %vm1224_vm4, %v27556_v28  ;;  %v13835_v28 = vpop.permute.xlu1 %13834 }
0x13d5   :  { %22801 = vmatpush3.xpose.msk.msra.mxu0 %vm1224_vm4, %v27560_v10  ;;  %22802 = vmatprep.mubr.msk.f32.mxu0 %vm23573_vm1, %v30356_v46  ;;  %v13757_v8 = vpop.permute.xlu0 %13756 }
0x13d6   :  { %22798 = vmatmul.mubr.msk.f32.vlgmr.msra.gmra.mrb[110].mxu1 %vm1224_vm4, %v13445_v24  ;;  %22810 = vmatprep.subr.mxu0 %v30356_v46 }
0x13d7   :  { %22806 = vmatpush3.xpose.msk.msra.mxu1 %vm1224_vm4, %v13603_v4  ;;  %22807 = vmatprep.mubr.msk.f32.mxu1 %vm23573_vm1, %v30356_v46  ;;  %v13920_v4 = vld [vmem:[#allocation2 + $0x40] sm:$0x1f] }
0x13d8   :  { %22803 = vmatmul.mubr.msk.f32.vlgmr.msra.gmra.mrb[114].mxu0 %vm1224_vm4, %v13523_v60  ;;  %22815 = vmatprep.subr.mxu1 %v30356_v46 }
0x13d9   :  { %22811 = vmatpush3.xpose.msk.msra.mxu0 %vm1224_vm4, %v13681_v41  ;;  %22812 = vmatprep.mubr.msk.f32.mxu0 %vm23573_vm1, %v30356_v46 }
0x13da   :  { %22808 = vmatmul.mubr.msk.f32.vlgmr.msra.gmra.mrb[112].mxu1 %vm1224_vm4, %v13601_v20  ;;  %22820 = vmatprep.subr.mxu0 %v30356_v46  ;;  %v13921_v20 = vld [vmem:[#allocation2 + $0x48] sm:$0x1f] }
0x13db   :  { %22816 = vmatpush3.xpose.msk.msra.mxu1 %vm1224_vm4, %v13759_v16  ;;  %22817 = vmatprep.mubr.msk.f32.mxu1 %vm23573_vm1, %v30356_v46 }
0x13dc   :  { %22813 = vmatmul.mubr.msk.f32.vlgmr.msra.gmra.mrb[116].mxu0 %vm1224_vm4, %v13679_v3  ;;  %22825 = vmatprep.subr.mxu1 %v30356_v46 }
0x13dd   :  { %22821 = vmatpush3.xpose.msk.msra.mxu0 %vm1224_vm4, %v13837_v51  ;;  %22822 = vmatprep.mubr.msk.f32.mxu0 %vm23573_vm1, %v30356_v46 }
0x13de   :  { %22818 = vmatmul.mubr.msk.f32.vlgmr.msra.gmra.mrb[114].mxu1 %vm1224_vm4, %v13757_v8  ;;  %22830 = vmatprep.subr.mxu0 %v30356_v46 }
0x13df   :  { %22827 = vmatprep.mubr.msk.f32.mxu1 %vm23573_vm1, %v30356_v46 }
0x13e0   :  { %22823 = vmatmul.mubr.msk.f32.vlgmr.msra.gmra.mrb[118].mxu0 %vm1224_vm4, %v13835_v28 }
0x13e1   :  { %22832 = vmatprep.mubr.msk.f32.mxu0 %vm23573_vm1, %v30356_v46 }
0x1479   :  { %v27656_v13 = vpop.f32.mrb[100].mxu1 }
0x147a   :  { %v22749_v10 = vpop.f32.mrb[101].mxu1 }
0x147b   :  { %v13922_v10 = vld [vmem:[#allocation2 + $0x50] sm:$0x1f] }
0x1482   :  { %v27658_v43 = vpop.f32.mrb[104].mxu0 }
0x1483   :  { %v22754_v47 = vpop.f32.mrb[105].mxu0 }
0x1487   :  { %v27660_v9 = vpop.f32.mrb[102].mxu1 }
0x1488   :  { %v22759_v37 = vpop.f32.mrb[103].mxu1 }
0x1491   :  { %v27662_v31 = vpop.f32.mrb[106].mxu0 }
0x1492   :  { %v22764_v36 = vpop.f32.mrb[107].mxu0 }
0x1495   :  { %v27664_v30 = vpop.f32.mrb[104].mxu1 }
0x1496   :  { %v22769_v58 = vpop.f32.mrb[105].mxu1 }
0x149c   :  { %v27666_v1 = vpop.f32.mrb[108].mxu0 }
0x149d   :  { %v22774_v29 = vpop.f32.mrb[109].mxu0 }
0x14a0   :  { %v27668_v59 = vpop.f32.mrb[106].mxu1 }
0x14a1   :  { %v22779_v14 = vpop.f32.mrb[107].mxu1 }
0x14a2   :  { %v27670_v40 = vpop.f32.mrb[110].mxu0  ;;  %v13923_v14 = vld [vmem:[#allocation2 + $0x58] sm:$0x1f] }
0x14a3   :  { %v22784_v24 = vpop.f32.mrb[111].mxu0 }
0x14a4   :  { %v13362_v60 = vpop.f32.mrb[108].mxu1 }
0x14a5   :  { %v13912_v44 = vmul.f32 0.35355338, %v13362_v60  ;;  %v22789_v6 = vpop.f32.mrb[109].mxu1 }
0x14a7   :  { %v13440_v5 = vpop.f32.mrb[112].mxu0  ;;  %v27672_v62 = vadd.f32 %v13920_v4, %v13912_v44 }
0x14a8   :  { %v13913_v41 = vmul.f32 0.35355338, %v13440_v5  ;;  %v22794_v12 = vpop.f32.mrb[113].mxu0  ;;  %v13924_v5 = vld [vmem:[#allocation2 + $0x60] sm:$0x1f] }
0x14a9   :  { %v13518_v3 = vpop.f32.mrb[110].mxu1  ;;  %13936 = vst.msk [vmem:[#allocation2 + $0x40] sm:$0x1f] %vm2112_vm5, %v27672_v62  ;;  %v13944_v28 = vsel %vm2112_vm5, %v27672_v62, -inf }
0x14aa   :  { %v27676_v16 = vadd.f32 %v13921_v20, %v13913_v41  ;;  %v13914_v51 = vmul.f32 0.35355338, %v13518_v3  ;;  %v22799_v8 = vpop.f32.mrb[111].mxu1  ;;  %13945 = vmax.xlane.f32.xlu0 %v13944_v28 }
0x14ab   :  { %v13596_v47 = vpop.f32.mrb[114].mxu0  ;;  %v13925_v8 = vld [vmem:[#allocation2 + $0x68] sm:$0x1f] }
0x14ac   :  { %13937 = vst.msk [vmem:[#allocation2 + $0x48] sm:$0x1f] %vm2112_vm5, %v27676_v16  ;;  %v27682_v37 = vadd.f32 %v13922_v10, %v13914_v51  ;;  %v13915_v36 = vmul.f32 0.35355338, %v13596_v47  ;;  %v22804_v58 = vpop.f32.mrb[115].mxu0  ;;  %v13947_v29 = vsel %vm2112_vm5, %v27676_v16, -inf }
0x14ad   :  { %v13674_v24 = vpop.f32.mrb[112].mxu1  ;;  %13948 = vmax.xlane.f32.xlu1 %v13947_v29  ;;  %v13926_v29 = vld [vmem:[#allocation2 + $0x70] sm:$0x1f] }
0x14ae   :  { %13938 = vst.msk [vmem:[#allocation2 + $0x50] sm:$0x1f] %vm2112_vm5, %v27682_v37  ;;  %v27688_v60 = vadd.f32 %v13923_v14, %v13915_v36  ;;  %v13916_v44 = vmul.f32 0.35355338, %v13674_v24  ;;  %v22809_v6 = vpop.f32.mrb[113].mxu1  ;;  %v13950_v4 = vsel %vm2112_vm5, %v27682_v37, -inf }
0x14af   :  { %13951 = vmax.xlane.f32.xlu0 %v13950_v4  ;;  %v13752_v41 = vpop.f32.mrb[116].mxu0 }
0x14b0   :  { %13939 = vst.msk [vmem:[#allocation2 + $0x58] sm:$0x1f] %vm2112_vm5, %v27688_v60  ;;  %v13932_v12 = vadd.f32 %v13924_v5, %v13916_v44  ;;  %v13917_v20 = vmul.f32 0.35355338, %v13752_v41  ;;  %v22814_v3 = vpop.f32.mrb[117].mxu0  ;;  %v13953_v51 = vsel %vm2112_vm5, %v27688_v60, -inf }
0x14b1   :  { %v13830_v28 = vpop.f32.mrb[114].mxu1  ;;  %v13927_v5 = vld [vmem:[#allocation2 + $0x78] sm:$0x1f] }
0x14b2   :  { %13940 = vst.msk [vmem:[#allocation2 + $0x60] sm:$0x1f] %vm2112_vm5, %v13932_v12  ;;  %v13933_v10 = vadd.f32 %v13925_v8, %v13917_v20  ;;  %v13918_v47 = vmul.f32 0.35355338, %v13830_v28  ;;  %v22819_v36 = vpop.f32.mrb[115].mxu1  ;;  %v13956_v58 = vsel %vm2112_vm5, %v13932_v12, -inf }
0x14b3   :  { %13957 = vmax.xlane.f32.xlu1 %v13956_v58  ;;  %13954 = vmax.xlane.f32.xlu0 %v13953_v51  ;;  %v13908_v14 = vpop.f32.mrb[118].mxu0 }
0x14b4   :  { %13941 = vst.msk [vmem:[#allocation2 + $0x68] sm:$0x1f] %vm2112_vm5, %v13933_v10  ;;  %v13934_v24 = vadd.f32 %v13926_v29, %v13918_v47  ;;  %v13919_v44 = vmul.f32 0.35355338, %v13908_v14  ;;  %v22824_v6 = vpop.f32.mrb[119].mxu0  ;;  %v13959_v4 = vsel %vm2112_vm5, %v13933_v10, -inf }
0x14b6   :  { %13942 = vst.msk [vmem:[#allocation2 + $0x70] sm:$0x1f] %vm2112_vm5, %v13934_v24  ;;  %v13935_v41 = vadd.f32 %v13927_v5, %v13919_v44  ;;  %v13962_v20 = vsel %vm2112_vm5, %v13934_v24, -inf }
0x14b7   :  { %13963 = vmax.xlane.f32.xlu1 %v13962_v20  ;;  %13960 = vmax.xlane.f32.xlu0 %v13959_v4 }
0x14b8   :  { %13943 = vst.msk [vmem:[#allocation2 + $0x78] sm:$0x1f] %vm2112_vm5, %v13935_v41  ;;  %v13965_v3 = vsel %vm2112_vm5, %v13935_v41, -inf }
0x14bb   :  { %13966 = vmax.xlane.f32.xlu0 %v13965_v3 }
0x14c8   :  { %14032 = vrot.lane.b32.xlu1 %v27277_v38, %s23580_s22 }
0x14cc   :  { %14186 = vrot.lane.b32.xlu1 %v27303_v53, %s23580_s22 }
0x14d0   :  { %14263 = vrot.lane.b32.xlu1 %v27321_v54, %s23580_s22 }
0x14d1   :  { %14109 = vrot.lane.b32.xlu0 %v27294_v50, %s23580_s22 }
0x14d4   :  { %14417 = vrot.lane.b32.xlu1 %v27347_v61, %s23580_s22 }
0x14d5   :  { %14340 = vrot.lane.b32.xlu0 %v27331_v27, %s23580_s22 }
0x14d8   :  { %14571 = vrot.lane.b32.xlu1 %v27360_v26, %s23580_s22 }
0x14d9   :  { %14494 = vrot.lane.b32.xlu0 %v27356_v23, %s23580_s22 }
0x14dc   :  { %14728 = vrot.lane.b32.xlu1 %v27294_v50, %s23581_s23 }
0x14dd   :  { %14650 = vrot.lane.b32.xlu0 %v27277_v38, %s23581_s23 }
0x14e0   :  { %14726 = vrot.lane.b32.xlu1 %v27294_v50, %s23582_s24 }
0x14e1   :  { %14648 = vrot.lane.b32.xlu0 %v27277_v38, %s23582_s24 }
0x14e4   :  { %14884 = vrot.lane.b32.xlu1 %v27321_v54, %s23581_s23 }
0x14e5   :  { %14806 = vrot.lane.b32.xlu0 %v27303_v53, %s23581_s23 }
0x1537   :  { %v13946_v51 = vpop.xlane.xlu0 %13945 }
0x1538   :  { %v13968_v8 = vsub.f32 %v27672_v62, %v13946_v51 }
0x153a   :  { %v13949_v28 = vpop.xlane.xlu1 %13948  ;;  %v13976_v47 = vmul.f32 1.442695, %v13968_v8 }
0x153b   :  { %v13969_v36 = vsub.f32 %v27676_v16, %v13949_v28 }
0x153c   :  { %v13952_v58 = vpop.xlane.xlu0 %13951  ;;  %23436 = vpow2.f32 %v13976_v47 }
0x153d   :  { %v13970_v29 = vsub.f32 %v27682_v37, %v13952_v58  ;;  %v13978_v14 = vmul.f32 1.442695, %v13969_v36 }
0x153f   :  { %v13980_v44 = vmul.f32 1.442695, %v13970_v29  ;;  %23438 = vpow2.f32 %v13978_v14 }
0x1540   :  { %v13958_v6 = vpop.xlane.xlu1 %13957  ;;  %v13955_v4 = vpop.xlane.xlu0 %13954 }
0x1541   :  { %23440 = vpow2.f32 %v13980_v44  ;;  %v13972_v5 = vsub.f32 %v13932_v12, %v13958_v6  ;;  %v13971_v20 = vsub.f32 %v27688_v60, %v13955_v4 }
0x1543   :  { %v13984_v3 = vmul.f32 1.442695, %v13972_v5  ;;  %v13982_v55 = vmul.f32 1.442695, %v13971_v20 }
0x1544   :  { %v13964_v62 = vpop.xlane.xlu1 %13963  ;;  %v13961_v51 = vpop.xlane.xlu0 %13960 }
0x1545   :  { %23442 = vpow2.f32 %v13984_v3  ;;  %v13974_v8 = vsub.f32 %v13934_v24, %v13964_v62  ;;  %v13973_v16 = vsub.f32 %v13933_v10, %v13961_v51 }
0x1546   :  { %23444 = vpow2.f32 %v13982_v55  ;;  %v27736_v28 = vpop.eup %23436 }
0x1547   :  { %v13988_v37 = vmul.f32 1.442695, %v13974_v8  ;;  %v13986_v47 = vmul.f32 1.442695, %v13973_v16  ;;  %v13992_v29 = vsel %vm2112_vm5, %v27736_v28, 0.0 }
0x1548   :  { %v14033_v36 = vpop.permute.xlu1 %14032  ;;  %v13967_v58 = vpop.xlane.xlu0 %13966  ;;  %13993 = vadd.xlane.f32.xlu1 %v13992_v29 }
0x1549   :  { %v27740_v12 = vpop.eup %23438  ;;  %23446 = vpow2.f32 %v13988_v37  ;;  %v13975_v60 = vsub.f32 %v13935_v41, %v13967_v58  ;;  %22826 = vmatpush3.msk.msra.mxu1 %vm2215_vm6, %v14033_v36 }
0x154a   :  { %23448 = vpow2.f32 %v13986_v47  ;;  %v13995_v55 = vsel %vm2112_vm5, %v27740_v12, 0.0  ;;  %22835 = vmatprep.subr.mxu1 %v30356_v46 }
0x154b   :  { %v27746_v10 = vpop.eup %23440  ;;  %v13990_v24 = vmul.f32 1.442695, %v13975_v60  ;;  %13996 = vadd.xlane.f32.xlu0 %v13995_v55 }
0x154c   :  { %v14110_v14 = vpop.permute.xlu0 %14109  ;;  %v13998_v44 = vsel %vm2112_vm5, %v27746_v10, 0.0  ;;  %v14187_v37 = vpop.permute.xlu1 %14186 }
0x154d   :  { %23450 = vpow2.f32 %v13990_v24  ;;  %13999 = vadd.xlane.f32.xlu1 %v13998_v44  ;;  %22831 = vmatpush3.msk.msra.mxu0 %vm2215_vm6, %v14110_v14 }
0x154e   :  { %22840 = vmatprep.subr.mxu0 %v30356_v46 }
0x154f   :  { %v27752_v41 = vpop.eup %23442 }
0x1550   :  { %v27754_v6 = vpop.eup %23444  ;;  %v14004_v4 = vsel %vm2112_vm5, %v27752_v41, 0.0  ;;  %v14264_v47 = vpop.permute.xlu1 %14263 }
0x1551   :  { %14005 = vadd.xlane.f32.xlu1 %v14004_v4  ;;  %v14001_v5 = vsel %vm2112_vm5, %v27754_v6, 0.0  ;;  %v14341_v58 = vpop.permute.xlu0 %14340 }
0x1552   :  { %14002 = vadd.xlane.f32.xlu0 %v14001_v5 }
0x1553   :  { %v27760_v20 = vpop.eup %23446 }
0x1554   :  { %v27762_v3 = vpop.eup %23448  ;;  %v14010_v62 = vsel %vm2112_vm5, %v27760_v20, 0.0  ;;  %v14418_v36 = vpop.permute.xlu1 %14417 }
0x1555   :  { %14011 = vadd.xlane.f32.xlu1 %v14010_v62  ;;  %v14007_v51 = vsel %vm2112_vm5, %v27762_v3, 0.0  ;;  %v14495_v60 = vpop.permute.xlu0 %14494 }
0x1556   :  { %14008 = vadd.xlane.f32.xlu0 %v14007_v51 }
0x1557   :  { %v27768_v8 = vpop.eup %23450 }
0x1558   :  { %v14013_v16 = vsel %vm2112_vm5, %v27768_v8, 0.0  ;;  %v27816_v29 = vpop.permute.xlu1 %14571 }
0x1559   :  { %v27820_v24 = vpop.permute.xlu0 %14650 }
0x155a   :  { %14014 = vadd.xlane.f32.xlu0 %v14013_v16 }
0x155c   :  { %v27818_v55 = vpop.permute.xlu1 %14728 }
0x155d   :  { %v27824_v44 = vpop.permute.xlu0 %14648 }
0x1560   :  { %v27822_v14 = vpop.permute.xlu1 %14726 }
0x1561   :  { %v27828_v5 = vpop.permute.xlu0 %14806 }
0x1564   :  { %v27826_v4 = vpop.permute.xlu1 %14884 }
0x1566   :  { %14882 = vrot.lane.b32.xlu1 %v27321_v54, %s23582_s24 }
0x156a   :  { %15040 = vrot.lane.b32.xlu1 %v27347_v61, %s23581_s23 }
0x156e   :  { %15038 = vrot.lane.b32.xlu1 %v27347_v61, %s23582_s24 }
0x1570   :  { %14804 = vrot.lane.b32.xlu0 %v27303_v53, %s23582_s24 }
0x1572   :  { %15196 = vrot.lane.b32.xlu1 %v27360_v26, %s23581_s23 }
0x1574   :  { %14962 = vrot.lane.b32.xlu0 %v27331_v27, %s23581_s23 }
0x1576   :  { %15194 = vrot.lane.b32.xlu1 %v27360_v26, %s23582_s24 }
0x1578   :  { %14960 = vrot.lane.b32.xlu0 %v27331_v27, %s23582_s24 }
0x157a   :  { %15392 = vrot.lane.b32.xlu1 %v27277_v38, %s23583_s25 }
0x157c   :  { %15118 = vrot.lane.b32.xlu0 %v27356_v23, %s23581_s23 }
0x157e   :  { %15546 = vrot.lane.b32.xlu1 %v27303_v53, %s23583_s25 }
0x1580   :  { %15116 = vrot.lane.b32.xlu0 %v27356_v23, %s23582_s24 }
0x1582   :  { %15623 = vrot.lane.b32.xlu1 %v27321_v54, %s23583_s25 }
0x1584   :  { %15469 = vrot.lane.b32.xlu0 %v27294_v50, %s23583_s25 }
0x1586   :  { %15777 = vrot.lane.b32.xlu1 %v27347_v61, %s23583_s25 }
0x1588   :  { %15700 = vrot.lane.b32.xlu0 %v27331_v27, %s23583_s25 }
0x158a   :  { %15931 = vrot.lane.b32.xlu1 %v27360_v26, %s23583_s25 }
0x158c   :  { %15854 = vrot.lane.b32.xlu0 %v27356_v23, %s23583_s25 }
0x158e   :  { %16088 = vrot.lane.b32.xlu1 %v27294_v50, %s23584_s26 }
0x1590   :  { %16010 = vrot.lane.b32.xlu0 %v27277_v38, %s23584_s26 }
0x1592   :  { %16086 = vrot.lane.b32.xlu1 %v27294_v50, %s23585_s27 }
0x1594   :  { %16008 = vrot.lane.b32.xlu0 %v27277_v38, %s23585_s27 }
0x15d5   :  { %v13994_v62 = vpop.xlane.xlu1 %13993 }
0x15d6   :  { %23452 = vrcp.f32 %v13994_v62 }
0x15d8   :  { %v13997_v51 = vpop.xlane.xlu0 %13996 }
0x15d9   :  { %23454 = vrcp.f32 %v13997_v51 }
0x15da   :  { %v14000_v16 = vpop.xlane.xlu1 %13999 }
0x15db   :  { %23456 = vrcp.f32 %v14000_v16 }
0x15de   :  { %v14006_v22 = vpop.xlane.xlu1 %14005 }
0x15df   :  { %23458 = vrcp.f32 %v14006_v22  ;;  %v14003_v63 = vpop.xlane.xlu0 %14002 }
0x15e0   :  { %23460 = vrcp.f32 %v14003_v63  ;;  %v23453_v52 = vpop.eup %23452 }
0x15e1   :  { %v14024_v32 = vmul.f32 %v23453_v52, %v27736_v28 }
0x15e2   :  { %v14012_v56 = vpop.xlane.xlu1 %14011 }
0x15e3   :  { %v23455_v0 = vpop.eup %23454  ;;  %23462 = vrcp.f32 %v14012_v56  ;;  %v14009_v17 = vpop.xlane.xlu0 %14008  ;;  %22828 = vmatmul.mubr.msk.f32.vlgmr.msra.gmra.mrb[116].mxu1 %vm2211_vm7, %v14024_v32 }
0x15e4   :  { %23464 = vrcp.f32 %v14009_v17  ;;  %v14025_v62 = vmul.f32 %v23455_v0, %v27740_v12  ;;  %22836 = vmatpush3.msk.msra.mxu1 %vm2215_vm6, %v14187_v37  ;;  %22837 = vmatprep.mubr.msk.f32.mxu1 %vm23573_vm1, %v30356_v46 }
0x15e5   :  { %v23457_v34 = vpop.eup %23456  ;;  %22845 = vmatprep.subr.mxu1 %v30356_v46 }
0x15e6   :  { %v27836_v22 = vpop.permute.xlu1 %14882  ;;  %22833 = vmatmul.mubr.msk.f32.vlgmr.msra.gmra.mrb[120].mxu0 %vm2211_vm7, %v14025_v62  ;;  %v14026_v63 = vmul.f32 %v23457_v34, %v27746_v10 }
0x15e7   :  { %v14015_v56 = vpop.xlane.xlu0 %14014  ;;  %22841 = vmatpush3.msk.msra.mxu0 %vm2215_vm6, %v14264_v47  ;;  %22842 = vmatprep.mubr.msk.f32.mxu0 %vm23573_vm1, %v30356_v46 }
0x15e8   :  { %23466 = vrcp.f32 %v14015_v56  ;;  %22838 = vmatmul.mubr.msk.f32.vlgmr.msra.gmra.mrb[118].mxu1 %vm2211_vm7, %v14026_v63  ;;  %22850 = vmatprep.subr.mxu0 %v30356_v46 }
0x15e9   :  { %v23459_v0 = vpop.eup %23458  ;;  %22846 = vmatpush3.msk.msra.mxu1 %vm2215_vm6, %v14341_v58  ;;  %22847 = vmatprep.mubr.msk.f32.mxu1 %vm23573_vm1, %v30356_v46 }
0x15ea   :  { %v23461_v32 = vpop.eup %23460  ;;  %22855 = vmatprep.subr.mxu1 %v30356_v46  ;;  %v14028_v34 = vmul.f32 %v23459_v0, %v27752_v41  ;;  %v15041_v52 = vpop.permute.xlu1 %15040 }
0x15eb   :  { %v14805_v17 = vpop.permute.xlu0 %14804  ;;  %v14027_v28 = vmul.f32 %v23461_v32, %v27754_v6 }
0x15ec   :  { %22848 = vmatmul.mubr.msk.f32.vlgmr.msra.gmra.mrb[120].mxu1 %vm2211_vm7, %v14028_v34 }
0x15ed   :  { %v23463_v12 = vpop.eup %23462  ;;  %22843 = vmatmul.mubr.msk.f32.vlgmr.msra.gmra.mrb[122].mxu0 %vm2211_vm7, %v14027_v28  ;;  %22856 = vmatpush3.msk.msra.mxu1 %vm2215_vm6, %v14495_v60 }
0x15ee   :  { %v23465_v10 = vpop.eup %23464  ;;  %22851 = vmatpush3.msk.msra.mxu0 %vm2215_vm6, %v14418_v36  ;;  %22852 = vmatprep.mubr.msk.f32.mxu0 %vm23573_vm1, %v30356_v46  ;;  %v14030_v37 = vmul.f32 %v23463_v12, %v27760_v20  ;;  %v15039_v47 = vpop.permute.xlu1 %15038 }
0x15ef   :  { %22857 = vmatprep.mubr.msk.f32.mxu1 %vm23573_vm1, %v30356_v46  ;;  %22860 = vmatprep.subr.mxu0 %v30356_v46  ;;  %v14029_v41 = vmul.f32 %v23465_v10, %v27762_v3  ;;  %v14963_v6 = vpop.permute.xlu0 %14962 }
0x15f0   :  { %22858 = vmatmul.mubr.msk.f32.vlgmr.msra.gmra.mrb[122].mxu1 %vm2211_vm7, %v14030_v37  ;;  %22865 = vmatprep.subr.mxu1 %v30356_v46 }
0x15f1   :  { %22853 = vmatmul.mubr.msk.f32.vlgmr.msra.gmra.mrb[124].mxu0 %vm2211_vm7, %v14029_v41  ;;  %22867 = vmatprep.mubr.msk.f32.mxu1 %vm23573_vm1, %v30356_v46  ;;  %v15280_v41 = vld [vmem:[#allocation2 + $0x80] sm:$0x1f] }
0x15f2   :  { %v23467_v36 = vpop.eup %23466  ;;  %22861 = vmatpush3.msk.msra.mxu0 %vm2215_vm6, %v27816_v29  ;;  %22862 = vmatprep.mubr.msk.f32.mxu0 %vm23573_vm1, %v30356_v46  ;;  %v15197_v58 = vpop.permute.xlu1 %15196 }
0x15f3   :  { %v14031_v20 = vmul.f32 %v23467_v36, %v27768_v8  ;;  %22870 = vmatprep.subr.mxu0 %v30356_v46  ;;  %v14961_v3 = vpop.permute.xlu0 %14960 }
0x15f4   :  { %22866 = vmatpush3.xpose.msk.msra.mxu1 %vm1224_vm4, %v27820_v24 }
0x15f5   :  { %22863 = vmatmul.mubr.msk.f32.vlgmr.msra.gmra.mrb[126].mxu0 %vm2211_vm7, %v14031_v20  ;;  %22875 = vmatprep.subr.mxu1 %v30356_v46 }
0x15f6   :  { %22872 = vmatprep.mubr.msk.f32.mxu0 %vm23573_vm1, %v30356_v46  ;;  %v15195_v29 = vpop.permute.xlu1 %15194 }
0x15f7   :  { %22868 = vmatmul.mubr.msk.f32.vlgmr.msra.gmra.mrb[124].mxu1 %vm1224_vm4, %v27824_v44  ;;  %v15119_v8 = vpop.permute.xlu0 %15118 }
0x15f8   :  { %22876 = vmatpush3.xpose.msk.msra.mxu1 %vm1224_vm4, %v27828_v5  ;;  %22877 = vmatprep.mubr.msk.f32.mxu1 %vm23573_vm1, %v30356_v46 }
0x15f9   :  { %22871 = vmatpush3.xpose.msk.msra.mxu0 %vm1224_vm4, %v27818_v55  ;;  %22885 = vmatprep.subr.mxu1 %v30356_v46 }
0x15fa   :  { %22880 = vmatprep.subr.mxu0 %v30356_v46  ;;  %v15393_v55 = vpop.permute.xlu1 %15392 }
0x15fb   :  { %22878 = vmatmul.mubr.msk.f32.vlgmr.msra.gmra.mrb[126].mxu1 %vm1224_vm4, %v14805_v17  ;;  %v15117_v60 = vpop.permute.xlu0 %15116 }
0x15fc   :  { %22873 = vmatmul.mubr.msk.f32.vlgmr.msra.gmra.mrb[128].mxu0 %vm1224_vm4, %v27822_v14  ;;  %22886 = vmatpush3.xpose.msk.msra.mxu1 %vm1224_vm4, %v14963_v6 }
0x15fd   :  { %22881 = vmatpush3.xpose.msk.msra.mxu0 %vm1224_vm4, %v27826_v4  ;;  %22882 = vmatprep.mubr.msk.f32.mxu0 %vm23573_vm1, %v30356_v46 }
0x15fe   :  { %22887 = vmatprep.mubr.msk.f32.mxu1 %vm23573_vm1, %v30356_v46  ;;  %22890 = vmatprep.subr.mxu0 %v30356_v46 }
0x15ff   :  { %22888 = vmatmul.mubr.msk.f32.vlgmr.msra.gmra.mrb[128].mxu1 %vm1224_vm4, %v14961_v3  ;;  %22895 = vmatprep.subr.mxu1 %v30356_v46  ;;  %v15470_v24 = vpop.permute.xlu0 %15469 }
0x1600   :  { %22883 = vmatmul.mubr.msk.f32.vlgmr.msra.gmra.mrb[130].mxu0 %vm1224_vm4, %v27836_v22  ;;  %22896 = vmatpush3.xpose.msk.msra.mxu1 %vm1224_vm4, %v15119_v8 }
0x1601   :  { %22891 = vmatpush3.xpose.msk.msra.mxu0 %vm1224_vm4, %v15041_v52  ;;  %22892 = vmatprep.mubr.msk.f32.mxu0 %vm23573_vm1, %v30356_v46 }
0x1602   :  { %22897 = vmatprep.mubr.msk.f32.mxu1 %vm23573_vm1, %v30356_v46  ;;  %22900 = vmatprep.subr.mxu0 %v30356_v46 }
0x1603   :  { %22898 = vmatmul.mubr.msk.f32.vlgmr.msra.gmra.mrb[130].mxu1 %vm1224_vm4, %v15117_v60  ;;  %22905 = vmatprep.subr.mxu1 %v30356_v46 }
0x1604   :  { %22893 = vmatmul.mubr.msk.f32.vlgmr.msra.gmra.mrb[132].mxu0 %vm1224_vm4, %v15039_v47  ;;  %22906 = vmatpush3.msk.msra.mxu1 %vm2215_vm6, %v15393_v55  ;;  %v15281_v55 = vld [vmem:[#allocation2 + $0x88] sm:$0x1f] }
0x1605   :  { %22901 = vmatpush3.xpose.msk.msra.mxu0 %vm1224_vm4, %v15197_v58  ;;  %22902 = vmatprep.mubr.msk.f32.mxu0 %vm23573_vm1, %v30356_v46 }
0x1606   :  { %22910 = vmatprep.subr.mxu0 %v30356_v46  ;;  %22907 = vmatprep.mubr.msk.f32.mxu1 %vm23573_vm1, %v30356_v46 }
0x1607   :  { %22915 = vmatprep.subr.mxu1 %v30356_v46 }
0x1608   :  { %22903 = vmatmul.mubr.msk.f32.vlgmr.msra.gmra.mrb[134].mxu0 %vm1224_vm4, %v15195_v29  ;;  %v15282_v29 = vld [vmem:[#allocation2 + $0x90] sm:$0x1f] }
0x1609   :  { %22911 = vmatpush3.msk.msra.mxu0 %vm2215_vm6, %v15470_v24  ;;  %22912 = vmatprep.mubr.msk.f32.mxu0 %vm23573_vm1, %v30356_v46 }
0x160a   :  { %22920 = vmatprep.subr.mxu0 %v30356_v46 }
0x16b6   :  { %v27928_v14 = vpop.f32.mrb[116].mxu1 }
0x16b7   :  { %v22829_v44 = vpop.f32.mrb[117].mxu1 }
0x16b9   :  { %v27930_v4 = vpop.f32.mrb[120].mxu0 }
0x16ba   :  { %v22834_v5 = vpop.f32.mrb[121].mxu0 }
0x16bb   :  { %v27932_v51 = vpop.f32.mrb[118].mxu1 }
0x16bc   :  { %v22839_v16 = vpop.f32.mrb[119].mxu1 }
0x16bf   :  { %v27934_v62 = vpop.f32.mrb[120].mxu1 }
0x16c0   :  { %v27936_v22 = vpop.f32.mrb[122].mxu0  ;;  %v22849_v63 = vpop.f32.mrb[121].mxu1 }
0x16c1   :  { %v22844_v56 = vpop.f32.mrb[123].mxu0 }
0x16c3   :  { %v27938_v0 = vpop.f32.mrb[122].mxu1 }
0x16c4   :  { %v27940_v32 = vpop.f32.mrb[124].mxu0  ;;  %v22859_v34 = vpop.f32.mrb[123].mxu1 }
0x16c5   :  { %v22854_v52 = vpop.f32.mrb[125].mxu0 }
0x16c8   :  { %v27942_v17 = vpop.f32.mrb[126].mxu0 }
0x16c9   :  { %v22864_v28 = vpop.f32.mrb[127].mxu0 }
0x16ca   :  { %v14722_v12 = vpop.f32.mrb[124].mxu1  ;;  %v15284_v28 = vld [vmem:[#allocation2 + $0xa0] sm:$0x1f] }
0x16cb   :  { %v15272_v10 = vmul.f32 0.35355338, %v14722_v12  ;;  %v22869_v37 = vpop.f32.mrb[125].mxu1 }
0x16cc   :  { %v15283_v37 = vld [vmem:[#allocation2 + $0x98] sm:$0x1f] }
0x16cd   :  { %v27944_v6 = vadd.f32 %v15280_v41, %v15272_v10 }
0x16ce   :  { %v14878_v47 = vpop.f32.mrb[126].mxu1 }
0x16cf   :  { %15296 = vst.msk [vmem:[#allocation2 + $0x80] sm:$0x1f] %vm2112_vm5, %v27944_v6  ;;  %v14800_v36 = vpop.f32.mrb[128].mxu0  ;;  %v15274_v20 = vmul.f32 0.35355338, %v14878_v47  ;;  %v22879_v3 = vpop.f32.mrb[127].mxu1 }
0x16d0   :  { %v15304_v58 = vsel %vm2112_vm5, %v27944_v6, -inf  ;;  %v15273_v8 = vmul.f32 0.35355338, %v14800_v36  ;;  %v22874_v60 = vpop.f32.mrb[129].mxu0 }
0x16d1   :  { %15305 = vmax.xlane.f32.xlu0 %v15304_v58  ;;  %v27950_v24 = vadd.f32 %v15282_v29, %v15274_v20  ;;  %v15286_v60 = vld [vmem:[#allocation2 + $0xb0] sm:$0x1f] }
0x16d2   :  { %v27952_v44 = vadd.f32 %v15281_v55, %v15273_v8  ;;  %v15034_v5 = vpop.f32.mrb[128].mxu1 }
0x16d3   :  { %15298 = vst.msk [vmem:[#allocation2 + $0x90] sm:$0x1f] %vm2112_vm5, %v27950_v24  ;;  %v14956_v16 = vpop.f32.mrb[130].mxu0  ;;  %v15276_v63 = vmul.f32 0.35355338, %v15034_v5  ;;  %v22889_v56 = vpop.f32.mrb[129].mxu1 }
0x16d4   :  { %v15310_v34 = vsel %vm2112_vm5, %v27950_v24, -inf  ;;  %15297 = vst.msk [vmem:[#allocation2 + $0x88] sm:$0x1f] %vm2112_vm5, %v27952_v44  ;;  %v15275_v52 = vmul.f32 0.35355338, %v14956_v16  ;;  %v22884_v12 = vpop.f32.mrb[131].mxu0 }
0x16d5   :  { %15311 = vmax.xlane.f32.xlu0 %v15310_v34  ;;  %v15307_v10 = vsel %vm2112_vm5, %v27952_v44, -inf  ;;  %v15292_v41 = vadd.f32 %v15284_v28, %v15276_v63  ;;  %v15285_v16 = vld [vmem:[#allocation2 + $0xa8] sm:$0x1f] }
0x16d6   :  { %15308 = vmax.xlane.f32.xlu1 %v15307_v10  ;;  %v15291_v47 = vadd.f32 %v15283_v37, %v15275_v52  ;;  %v15190_v36 = vpop.f32.mrb[130].mxu1  ;;  %v15287_v37 = vld [vmem:[#allocation2 + $0xb8] sm:$0x1f] }
0x16d7   :  { %15300 = vst.msk [vmem:[#allocation2 + $0xa0] sm:$0x1f] %vm2112_vm5, %v15292_v41  ;;  %v15112_v20 = vpop.f32.mrb[132].mxu0  ;;  %v15278_v3 = vmul.f32 0.35355338, %v15190_v36  ;;  %v22899_v58 = vpop.f32.mrb[131].mxu1 }
0x16d8   :  { %v15316_v8 = vsel %vm2112_vm5, %v15292_v41, -inf  ;;  %15299 = vst.msk [vmem:[#allocation2 + $0x98] sm:$0x1f] %vm2112_vm5, %v15291_v47  ;;  %v15277_v29 = vmul.f32 0.35355338, %v15112_v20  ;;  %v22894_v55 = vpop.f32.mrb[133].mxu0 }
0x16d9   :  { %v15313_v5 = vsel %vm2112_vm5, %v15291_v47, -inf  ;;  %v27966_v56 = vadd.f32 %v15286_v60, %v15278_v3  ;;  %v27984_v3 = vpop.permute.xlu1 %15546 }
0x16da   :  { %15317 = vmax.xlane.f32.xlu1 %v15316_v8  ;;  %15314 = vmax.xlane.f32.xlu0 %v15313_v5  ;;  %v15293_v63 = vadd.f32 %v15285_v16, %v15277_v29  ;;  %v27988_v8 = vpop.permute.xlu0 %15700 }
0x16db   :  { %15302 = vst.msk [vmem:[#allocation2 + $0xb0] sm:$0x1f] %vm2112_vm5, %v27966_v56  ;;  %v15268_v34 = vpop.f32.mrb[134].mxu0  ;;  %v15322_v52 = vsel %vm2112_vm5, %v27966_v56, -inf }
0x16dc   :  { %15301 = vst.msk [vmem:[#allocation2 + $0xa8] sm:$0x1f] %vm2112_vm5, %v15293_v63  ;;  %v15279_v28 = vmul.f32 0.35355338, %v15268_v34  ;;  %v22904_v12 = vpop.f32.mrb[135].mxu0  ;;  %v15319_v10 = vsel %vm2112_vm5, %v15293_v63, -inf }
0x16dd   :  { %v27986_v58 = vpop.permute.xlu1 %15623 }
0x16de   :  { %15323 = vmax.xlane.f32.xlu1 %v15322_v52  ;;  %15320 = vmax.xlane.f32.xlu0 %v15319_v10  ;;  %v27974_v36 = vadd.f32 %v15287_v37, %v15279_v28  ;;  %v27992_v60 = vpop.permute.xlu0 %15854 }
0x16e0   :  { %15303 = vst.msk [vmem:[#allocation2 + $0xb8] sm:$0x1f] %vm2112_vm5, %v27974_v36  ;;  %v15325_v20 = vsel %vm2112_vm5, %v27974_v36, -inf }
0x16e1   :  { %v27990_v29 = vpop.permute.xlu1 %15777 }
0x16e2   :  { %15326 = vmax.xlane.f32.xlu0 %v15325_v20  ;;  %v27996_v5 = vpop.permute.xlu0 %16010 }
0x16e5   :  { %v27994_v55 = vpop.permute.xlu1 %15931 }
0x16e6   :  { %v28000_v34 = vpop.permute.xlu0 %16008 }
0x16e9   :  { %v27998_v16 = vpop.permute.xlu1 %16088 }
0x16ed   :  { %v28002_v28 = vpop.permute.xlu1 %16086 }
0x16ef   :  { %16244 = vrot.lane.b32.xlu1 %v27321_v54, %s23584_s26 }
0x16f8   :  { %16166 = vrot.lane.b32.xlu0 %v27303_v53, %s23584_s26 }
0x175e   :  { %v15306_v52 = vpop.xlane.xlu0 %15305 }
0x175f   :  { %v15328_v12 = vsub.f32 %v27944_v6, %v15306_v52 }
0x1761   :  { %v15336_v10 = vmul.f32 1.442695, %v15328_v12 }
0x1762   :  { %v15312_v37 = vpop.xlane.xlu0 %15311 }
0x1763   :  { %23468 = vpow2.f32 %v15336_v10  ;;  %v15330_v20 = vsub.f32 %v27950_v24, %v15312_v37  ;;  %v15309_v15 = vpop.xlane.xlu1 %15308 }
0x1764   :  { %v15329_v48 = vsub.f32 %v27952_v44, %v15309_v15 }
0x1765   :  { %v15340_v49 = vmul.f32 1.442695, %v15330_v20 }
0x1766   :  { %v15338_v33 = vmul.f32 1.442695, %v15329_v48 }
0x1767   :  { %23470 = vpow2.f32 %v15340_v49  ;;  %v15318_v57 = vpop.xlane.xlu1 %15317  ;;  %v15315_v25 = vpop.xlane.xlu0 %15314 }
0x1768   :  { %23472 = vpow2.f32 %v15338_v33  ;;  %v15332_v18 = vsub.f32 %v15292_v41, %v15318_v57  ;;  %v15331_v42 = vsub.f32 %v15291_v47, %v15315_v25 }
0x176a   :  { %v15344_v39 = vmul.f32 1.442695, %v15332_v18  ;;  %v15342_v45 = vmul.f32 1.442695, %v15331_v42 }
0x176b   :  { %v15321_v21 = vpop.xlane.xlu0 %15320  ;;  %v15324_v33 = vpop.xlane.xlu1 %15323 }
0x176c   :  { %23474 = vpow2.f32 %v15344_v39  ;;  %v15333_v6 = vsub.f32 %v15293_v63, %v15321_v21  ;;  %v15334_v44 = vsub.f32 %v27966_v56, %v15324_v33 }
0x176d   :  { %v23469_v52 = vpop.eup %23468  ;;  %23476 = vpow2.f32 %v15342_v45 }
0x176e   :  { %v15346_v12 = vmul.f32 1.442695, %v15333_v6  ;;  %v15352_v24 = vsel %vm2112_vm5, %v23469_v52, 0.0  ;;  %v15348_v47 = vmul.f32 1.442695, %v15334_v44 }
0x176f   :  { %15353 = vadd.xlane.f32.xlu1 %v15352_v24  ;;  %v15327_v41 = vpop.xlane.xlu0 %15326  ;;  %v28052_v56 = vpop.permute.xlu1 %16244 }
0x1770   :  { %23478 = vpow2.f32 %v15346_v12  ;;  %v15335_v63 = vsub.f32 %v27974_v36, %v15327_v41 }
0x1771   :  { %v23471_v15 = vpop.eup %23470  ;;  %23480 = vpow2.f32 %v15348_v47 }
0x1772   :  { %v23473_v48 = vpop.eup %23472  ;;  %v15358_v49 = vsel %vm2112_vm5, %v23471_v15, 0.0  ;;  %v15350_v10 = vmul.f32 1.442695, %v15335_v63 }
0x1773   :  { %15359 = vadd.xlane.f32.xlu1 %v15358_v49  ;;  %v15355_v57 = vsel %vm2112_vm5, %v23473_v48, 0.0  ;;  %v28054_v24 = vpop.permute.xlu0 %16166 }
0x1774   :  { %15356 = vadd.xlane.f32.xlu0 %v15355_v57  ;;  %23482 = vpow2.f32 %v15350_v10 }
0x1776   :  { %v28010_v18 = vpop.eup %23474 }
0x1777   :  { %v28012_v42 = vpop.eup %23476  ;;  %v15364_v21 = vsel %vm2112_vm5, %v28010_v18, 0.0 }
0x1778   :  { %15365 = vadd.xlane.f32.xlu1 %v15364_v21  ;;  %v15361_v45 = vsel %vm2112_vm5, %v28012_v42, 0.0 }
0x1779   :  { %15362 = vadd.xlane.f32.xlu0 %v15361_v45 }
0x177a   :  { %v28018_v39 = vpop.eup %23478 }
0x177b   :  { %v15367_v25 = vsel %vm2112_vm5, %v28018_v39, 0.0  ;;  %v28028_v37 = vpop.eup %23480 }
0x177c   :  { %v15370_v20 = vsel %vm2112_vm5, %v28028_v37, 0.0 }
0x177d   :  { %15368 = vadd.xlane.f32.xlu0 %v15367_v25 }
0x177e   :  { %v28032_v6 = vpop.eup %23482 }
0x177f   :  { %v15373_v12 = vsel %vm2112_vm5, %v28032_v6, 0.0 }
0x1789   :  { %16322 = vrot.lane.b32.xlu1 %v27331_v27, %s23584_s26 }
0x1793   :  { %16164 = vrot.lane.b32.xlu0 %v27303_v53, %s23585_s27 }
0x17ad   :  { %15371 = vadd.xlane.f32.xlu1 %v15370_v20 }
0x17b2   :  { %15374 = vadd.xlane.f32.xlu0 %v15373_v12 }
0x17be   :  { %16400 = vrot.lane.b32.xlu1 %v27347_v61, %s23584_s26 }
0x17c2   :  { %16478 = vrot.lane.b32.xlu1 %v27356_v23, %s23584_s26 }
0x17c6   :  { %16556 = vrot.lane.b32.xlu1 %v27360_v26, %s23584_s26 }
0x17c8   :  { %16242 = vrot.lane.b32.xlu0 %v27321_v54, %s23585_s27 }
0x17ca   :  { %16554 = vrot.lane.b32.xlu1 %v27360_v26, %s23585_s27 }
0x17cc   :  { %16320 = vrot.lane.b32.xlu0 %v27331_v27, %s23585_s27 }
0x17d0   :  { %16398 = vrot.lane.b32.xlu0 %v27347_v61, %s23585_s27 }
0x17d4   :  { %16476 = vrot.lane.b32.xlu0 %v27356_v23, %s23585_s27 }
0x17fc   :  { %v15354_v36 = vpop.xlane.xlu1 %15353 }
0x17fd   :  { %23484 = vrcp.f32 %v15354_v36 }
0x1800   :  { %v15360_v49 = vpop.xlane.xlu1 %15359 }
0x1801   :  { %23486 = vrcp.f32 %v15360_v49  ;;  %v15357_v57 = vpop.xlane.xlu0 %15356 }
0x1802   :  { %23488 = vrcp.f32 %v15357_v57 }
0x1805   :  { %v15366_v21 = vpop.xlane.xlu1 %15365 }
0x1806   :  { %23490 = vrcp.f32 %v15366_v21  ;;  %v15363_v45 = vpop.xlane.xlu0 %15362 }
0x1807   :  { %v23485_v25 = vpop.eup %23484  ;;  %23492 = vrcp.f32 %v15363_v45 }
0x1808   :  { %v15384_v33 = vmul.f32 %v23485_v25, %v23469_v52 }
0x180a   :  { %v15369_v44 = vpop.xlane.xlu0 %15368  ;;  %22908 = vmatmul.mubr.msk.f32.vlgmr.msra.gmra.mrb[132].mxu1 %vm2211_vm7, %v15384_v33 }
0x180b   :  { %v23487_v41 = vpop.eup %23486  ;;  %23494 = vrcp.f32 %v15369_v44  ;;  %22916 = vmatpush3.msk.msra.mxu1 %vm2215_vm6, %v27984_v3  ;;  %22917 = vmatprep.mubr.msk.f32.mxu1 %vm23573_vm1, %v30356_v46 }
0x180c   :  { %v23489_v47 = vpop.eup %23488  ;;  %v15386_v63 = vmul.f32 %v23487_v41, %v23471_v15  ;;  %22925 = vmatprep.subr.mxu1 %v30356_v46 }
0x180d   :  { %v15385_v10 = vmul.f32 %v23489_v47, %v23473_v48 }
0x180e   :  { %22918 = vmatmul.mubr.msk.f32.vlgmr.msra.gmra.mrb[134].mxu1 %vm2211_vm7, %v15386_v63 }
0x180f   :  { %22913 = vmatmul.mubr.msk.f32.vlgmr.msra.gmra.mrb[136].mxu0 %vm2211_vm7, %v15385_v10  ;;  %22926 = vmatpush3.msk.msra.mxu1 %vm2215_vm6, %v27988_v8 }
0x1810   :  { %v23491_v52 = vpop.eup %23490  ;;  %22921 = vmatpush3.msk.msra.mxu0 %vm2215_vm6, %v27986_v58  ;;  %22922 = vmatprep.mubr.msk.f32.mxu0 %vm23573_vm1, %v30356_v46 }
0x1811   :  { %v23493_v3 = vpop.eup %23492  ;;  %v15388_v15 = vmul.f32 %v23491_v52, %v28010_v18  ;;  %22927 = vmatprep.mubr.msk.f32.mxu1 %vm23573_vm1, %v30356_v46  ;;  %22930 = vmatprep.subr.mxu0 %v30356_v46  ;;  %v16165_v18 = vpop.permute.xlu0 %16164 }
0x1812   :  { %v15387_v48 = vmul.f32 %v23493_v3, %v28012_v42  ;;  %22935 = vmatprep.subr.mxu1 %v30356_v46 }
0x1813   :  { %22928 = vmatmul.mubr.msk.f32.vlgmr.msra.gmra.mrb[136].mxu1 %vm2211_vm7, %v15388_v15 }
0x1814   :  { %22923 = vmatmul.mubr.msk.f32.vlgmr.msra.gmra.mrb[138].mxu0 %vm2211_vm7, %v15387_v48  ;;  %22936 = vmatpush3.msk.msra.mxu1 %vm2215_vm6, %v27992_v60 }
0x1815   :  { %v23495_v58 = vpop.eup %23494  ;;  %22931 = vmatpush3.msk.msra.mxu0 %vm2215_vm6, %v27990_v29  ;;  %22932 = vmatprep.mubr.msk.f32.mxu0 %vm23573_vm1, %v30356_v46  ;;  %v16323_v29 = vpop.permute.xlu1 %16322 }
0x1816   :  { %v15389_v8 = vmul.f32 %v23495_v58, %v28018_v39  ;;  %22940 = vmatprep.subr.mxu0 %v30356_v46  ;;  %22937 = vmatprep.mubr.msk.f32.mxu1 %vm23573_vm1, %v30356_v46 }
0x1817   :  { %22945 = vmatprep.subr.mxu1 %v30356_v46 }
0x1818   :  { %22933 = vmatmul.mubr.msk.f32.vlgmr.msra.gmra.mrb[140].mxu0 %vm2211_vm7, %v15389_v8 }
0x1819   :  { %22941 = vmatpush3.msk.msra.mxu0 %vm2215_vm6, %v27994_v55  ;;  %22942 = vmatprep.mubr.msk.f32.mxu0 %vm23573_vm1, %v30356_v46 }
0x181a   :  { %22950 = vmatprep.subr.mxu0 %v30356_v46 }
0x183a   :  { %v15372_v60 = vpop.xlane.xlu1 %15371 }
0x183b   :  { %23496 = vrcp.f32 %v15372_v60 }
0x183e   :  { %v16401_v36 = vpop.permute.xlu1 %16400 }
0x183f   :  { %v15375_v42 = vpop.xlane.xlu0 %15374 }
0x1840   :  { %23498 = vrcp.f32 %v15375_v42 }
0x1843   :  { %v16243_v20 = vpop.permute.xlu0 %16242 }
0x1845   :  { %v23497_v39 = vpop.eup %23496 }
0x1846   :  { %v15390_v12 = vmul.f32 %v23497_v39, %v28028_v37 }
0x1847   :  { %v16321_v57 = vpop.permute.xlu0 %16320 }
0x1848   :  { %22938 = vmatmul.mubr.msk.f32.vlgmr.msra.gmra.mrb[138].mxu1 %vm2211_vm7, %v15390_v12 }
0x1849   :  { %22946 = vmatpush3.xpose.msk.msra.mxu1 %vm1224_vm4, %v27996_v5  ;;  %22947 = vmatprep.mubr.msk.f32.mxu1 %vm23573_vm1, %v30356_v46  ;;  %v16479_v5 = vpop.permute.xlu1 %16478 }
0x184a   :  { %v23499_v55 = vpop.eup %23498  ;;  %22955 = vmatprep.subr.mxu1 %v30356_v46 }
0x184b   :  { %v15391_v49 = vmul.f32 %v23499_v55, %v28032_v6 }
0x184c   :  { %22948 = vmatmul.mubr.msk.f32.vlgmr.msra.gmra.mrb[140].mxu1 %vm1224_vm4, %v28000_v34  ;;  %v16399_v34 = vpop.permute.xlu0 %16398 }
0x184d   :  { %22943 = vmatmul.mubr.msk.f32.vlgmr.msra.gmra.mrb[142].mxu0 %vm2211_vm7, %v15391_v49  ;;  %22956 = vmatpush3.xpose.msk.msra.mxu1 %vm1224_vm4, %v28054_v24  ;;  %v16642_v49 = vld [vmem:[#allocation2 + $0xd0] sm:$0x1f] }
0x184e   :  { %22951 = vmatpush3.xpose.msk.msra.mxu0 %vm1224_vm4, %v27998_v16  ;;  %22952 = vmatprep.mubr.msk.f32.mxu0 %vm23573_vm1, %v30356_v46  ;;  %v16557_v16 = vpop.permute.xlu1 %16556 }
0x184f   :  { %22957 = vmatprep.mubr.msk.f32.mxu1 %vm23573_vm1, %v30356_v46  ;;  %22960 = vmatprep.subr.mxu0 %v30356_v46 }
0x1850   :  { %22965 = vmatprep.subr.mxu1 %v30356_v46  ;;  %22958 = vmatmul.mubr.msk.f32.vlgmr.msra.gmra.mrb[142].mxu1 %vm1224_vm4, %v16165_v18 }
0x1851   :  { %22953 = vmatmul.mubr.msk.f32.vlgmr.msra.gmra.mrb[144].mxu0 %vm1224_vm4, %v28002_v28  ;;  %22966 = vmatpush3.xpose.msk.msra.mxu1 %vm1224_vm4, %v16323_v29  ;;  %v16477_v28 = vpop.permute.xlu0 %16476  ;;  %v16640_v29 = vld [vmem:[#allocation2 + $0xc0] sm:$0x1f] }
0x1852   :  { %22961 = vmatpush3.xpose.msk.msra.mxu0 %vm1224_vm4, %v28052_v56  ;;  %22962 = vmatprep.mubr.msk.f32.mxu0 %vm23573_vm1, %v30356_v46  ;;  %v16555_v37 = vpop.permute.xlu1 %16554 }
0x1853   :  { %22967 = vmatprep.mubr.msk.f32.mxu1 %vm23573_vm1, %v30356_v46  ;;  %22970 = vmatprep.subr.mxu0 %v30356_v46 }
0x1854   :  { %22975 = vmatprep.subr.mxu1 %v30356_v46  ;;  %22968 = vmatmul.mubr.msk.f32.vlgmr.msra.gmra.mrb[144].mxu1 %vm1224_vm4, %v16321_v57 }
0x1855   :  { %22963 = vmatmul.mubr.msk.f32.vlgmr.msra.gmra.mrb[146].mxu0 %vm1224_vm4, %v16243_v20  ;;  %22976 = vmatpush3.xpose.msk.msra.mxu1 %vm1224_vm4, %v16479_v5  ;;  %v16641_v5 = vld [vmem:[#allocation2 + $0xc8] sm:$0x1f] }
0x1856   :  { %22971 = vmatpush3.xpose.msk.msra.mxu0 %vm1224_vm4, %v16401_v36  ;;  %22972 = vmatprep.mubr.msk.f32.mxu0 %vm23573_vm1, %v30356_v46 }
0x1857   :  { %22977 = vmatprep.mubr.msk.f32.mxu1 %vm23573_vm1, %v30356_v46  ;;  %22980 = vmatprep.subr.mxu0 %v30356_v46 }
0x1858   :  { %22978 = vmatmul.mubr.msk.f32.vlgmr.msra.gmra.mrb[146].mxu1 %vm1224_vm4, %v16477_v28  ;;  %22985 = vmatprep.subr.mxu1 %v30356_v46 }
0x1859   :  { %22973 = vmatmul.mubr.msk.f32.vlgmr.msra.gmra.mrb[148].mxu0 %vm1224_vm4, %v16399_v34  ;;  %22987 = vmatprep.mubr.msk.f32.mxu1 %vm23573_vm1, %v30356_v46 }
0x185a   :  { %22981 = vmatpush3.xpose.msk.msra.mxu0 %vm1224_vm4, %v16557_v16  ;;  %22982 = vmatprep.mubr.msk.f32.mxu0 %vm23573_vm1, %v30356_v46 }
0x185b   :  { %22990 = vmatprep.subr.mxu0 %v30356_v46 }
0x185d   :  { %22983 = vmatmul.mubr.msk.f32.vlgmr.msra.gmra.mrb[150].mxu0 %vm1224_vm4, %v16555_v37 }
0x185e   :  { %22992 = vmatprep.mubr.msk.f32.mxu0 %vm23573_vm1, %v30356_v46 }
0x18dd   :  { %v28149_v6 = vpop.f32.mrb[132].mxu1 }
0x18de   :  { %v22909_v56 = vpop.f32.mrb[133].mxu1 }
0x18e1   :  { %v28151_v24 = vpop.f32.mrb[134].mxu1 }
0x18e2   :  { %v28153_v21 = vpop.f32.mrb[136].mxu0  ;;  %v22919_v45 = vpop.f32.mrb[135].mxu1 }
0x18e3   :  { %v22914_v25 = vpop.f32.mrb[137].mxu0 }
0x18e6   :  { %v28155_v33 = vpop.f32.mrb[136].mxu1 }
0x18e7   :  { %v28157_v44 = vpop.f32.mrb[138].mxu0  ;;  %v22929_v41 = vpop.f32.mrb[137].mxu1 }
0x18e8   :  { %v22924_v47 = vpop.f32.mrb[139].mxu0 }
0x18e9   :  { %v16644_v47 = vld [vmem:[#allocation2 + $0xe0] sm:$0x1f] }
0x18eb   :  { %v28159_v63 = vpop.f32.mrb[140].mxu0 }
0x18ec   :  { %v22934_v10 = vpop.f32.mrb[141].mxu0 }
0x191b   :  { %v28161_v52 = vpop.f32.mrb[138].mxu1 }
0x191c   :  { %v22939_v3 = vpop.f32.mrb[139].mxu1 }
0x191f   :  { %v16082_v15 = vpop.f32.mrb[140].mxu1 }
0x1920   :  { %v28163_v48 = vpop.f32.mrb[142].mxu0  ;;  %v16632_v58 = vmul.f32 0.35355338, %v16082_v15  ;;  %v22949_v8 = vpop.f32.mrb[141].mxu1  ;;  %v16643_v15 = vld [vmem:[#allocation2 + $0xd8] sm:$0x1f] }
0x1921   :  { %v22944_v60 = vpop.f32.mrb[143].mxu0 }
0x1922   :  { %v28165_v18 = vadd.f32 %v16640_v29, %v16632_v58 }
0x1923   :  { %v16238_v42 = vpop.f32.mrb[142].mxu1 }
0x1924   :  { %16656 = vst.msk [vmem:[#allocation2 + $0xc0] sm:$0x1f] %vm2112_vm5, %v28165_v18  ;;  %v16160_v39 = vpop.f32.mrb[144].mxu0  ;;  %v16634_v20 = vmul.f32 0.35355338, %v16238_v42  ;;  %v22959_v12 = vpop.f32.mrb[143].mxu1 }
0x1925   :  { %v16664_v55 = vsel %vm2112_vm5, %v28165_v18, -inf  ;;  %v16633_v36 = vmul.f32 0.35355338, %v16160_v39  ;;  %v22954_v57 = vpop.f32.mrb[145].mxu0 }
0x1926   :  { %16665 = vmax.xlane.f32.xlu0 %v16664_v55  ;;  %v16650_v34 = vadd.f32 %v16642_v49, %v16634_v20  ;;  %v16646_v55 = vld [vmem:[#allocation2 + $0xf0] sm:$0x1f]  ;;  %v16645_v57 = vld [vmem:[#allocation2 + $0xe8] sm:$0x1f] }
0x1927   :  { %v16649_v16 = vadd.f32 %v16641_v5, %v16633_v36  ;;  %v16394_v28 = vpop.f32.mrb[144].mxu1 }
0x1928   :  { %16658 = vst.msk [vmem:[#allocation2 + $0xd0] sm:$0x1f] %vm2112_vm5, %v16650_v34  ;;  %v16316_v37 = vpop.f32.mrb[146].mxu0  ;;  %v16636_v56 = vmul.f32 0.35355338, %v16394_v28  ;;  %v22969_v45 = vpop.f32.mrb[145].mxu1 }
0x1929   :  { %v16670_v25 = vsel %vm2112_vm5, %v16650_v34, -inf  ;;  %16657 = vst.msk [vmem:[#allocation2 + $0xc8] sm:$0x1f] %vm2112_vm5, %v16649_v16  ;;  %v16635_v41 = vmul.f32 0.35355338, %v16316_v37  ;;  %v22964_v10 = vpop.f32.mrb[147].mxu0 }
0x192a   :  { %16671 = vmax.xlane.f32.xlu0 %v16670_v25  ;;  %v16667_v3 = vsel %vm2112_vm5, %v16649_v16, -inf  ;;  %v16652_v58 = vadd.f32 %v16644_v47, %v16636_v56  ;;  %v16647_v47 = vld [vmem:[#allocation2 + $0xf8] sm:$0x1f] }
0x192b   :  { %16668 = vmax.xlane.f32.xlu1 %v16667_v3  ;;  %v16651_v8 = vadd.f32 %v16643_v15, %v16635_v41  ;;  %v16550_v29 = vpop.f32.mrb[146].mxu1 }
0x192c   :  { %16660 = vst.msk [vmem:[#allocation2 + $0xe0] sm:$0x1f] %vm2112_vm5, %v16652_v58  ;;  %v16472_v60 = vpop.f32.mrb[148].mxu0  ;;  %v16638_v42 = vmul.f32 0.35355338, %v16550_v29  ;;  %v22979_v39 = vpop.f32.mrb[147].mxu1 }
0x192d   :  { %v16676_v20 = vsel %vm2112_vm5, %v16652_v58, -inf  ;;  %16659 = vst.msk [vmem:[#allocation2 + $0xd8] sm:$0x1f] %vm2112_vm5, %v16651_v8  ;;  %v16637_v12 = vmul.f32 0.35355338, %v16472_v60  ;;  %v22974_v36 = vpop.f32.mrb[149].mxu0 }
0x192e   :  { %v16673_v49 = vsel %vm2112_vm5, %v16651_v8, -inf  ;;  %v16654_v5 = vadd.f32 %v16646_v55, %v16638_v42 }
0x192f   :  { %16677 = vmax.xlane.f32.xlu1 %v16676_v20  ;;  %16674 = vmax.xlane.f32.xlu0 %v16673_v49  ;;  %v16653_v28 = vadd.f32 %v16645_v57, %v16637_v12 }
0x1930   :  { %16662 = vst.msk [vmem:[#allocation2 + $0xf0] sm:$0x1f] %vm2112_vm5, %v16654_v5  ;;  %v16628_v37 = vpop.f32.mrb[150].mxu0  ;;  %v16682_v56 = vsel %vm2112_vm5, %v16654_v5, -inf }
0x1931   :  { %16661 = vst.msk [vmem:[#allocation2 + $0xe8] sm:$0x1f] %vm2112_vm5, %v16653_v28  ;;  %v16639_v45 = vmul.f32 0.35355338, %v16628_v37  ;;  %v22984_v25 = vpop.f32.mrb[151].mxu0  ;;  %v16679_v41 = vsel %vm2112_vm5, %v16653_v28, -inf }
0x1933   :  { %16683 = vmax.xlane.f32.xlu1 %v16682_v56  ;;  %16680 = vmax.xlane.f32.xlu0 %v16679_v41  ;;  %v16655_v10 = vadd.f32 %v16647_v47, %v16639_v45 }
0x1935   :  { %16663 = vst.msk [vmem:[#allocation2 + $0xf8] sm:$0x1f] %vm2112_vm5, %v16655_v10  ;;  %v16685_v3 = vsel %vm2112_vm5, %v16655_v10, -inf }
0x1937   :  { %16686 = vmax.xlane.f32.xlu0 %v16685_v3 }
0x1944   :  { %16752 = vrot.lane.b32.xlu1 %v27277_v38, %s23586_s28 }
0x1948   :  { %16906 = vrot.lane.b32.xlu1 %v27303_v53, %s23586_s28 }
0x194c   :  { %16983 = vrot.lane.b32.xlu1 %v27321_v54, %s23586_s28 }
0x194d   :  { %16829 = vrot.lane.b32.xlu0 %v27294_v50, %s23586_s28 }
0x1950   :  { %17137 = vrot.lane.b32.xlu1 %v27347_v61, %s23586_s28 }
0x1951   :  { %17060 = vrot.lane.b32.xlu0 %v27331_v27, %s23586_s28 }
0x19b3   :  { %v16666_v15 = vpop.xlane.xlu0 %16665 }
0x19b4   :  { %v16688_v29 = vsub.f32 %v28165_v18, %v16666_v15 }
0x19b6   :  { %v16696_v60 = vmul.f32 1.442695, %v16688_v29 }
0x19b7   :  { %v16672_v38 = vpop.xlane.xlu0 %16671 }
0x19b8   :  { %23500 = vpow2.f32 %v16696_v60  ;;  %v16690_v42 = vsub.f32 %v16650_v34, %v16672_v38  ;;  %v16669_v53 = vpop.xlane.xlu1 %16668 }
0x19b9   :  { %v16689_v39 = vsub.f32 %v16649_v16, %v16669_v53 }
0x19ba   :  { %v16700_v20 = vmul.f32 1.442695, %v16690_v42 }
0x19bb   :  { %v16698_v54 = vmul.f32 1.442695, %v16689_v39 }
0x19bc   :  { %23502 = vpow2.f32 %v16700_v20  ;;  %v16678_v12 = vpop.xlane.xlu1 %16677  ;;  %v16675_v50 = vpop.xlane.xlu0 %16674 }
0x19bd   :  { %23504 = vpow2.f32 %v16698_v54  ;;  %v16692_v55 = vsub.f32 %v16652_v58, %v16678_v12  ;;  %v16691_v61 = vsub.f32 %v16651_v8, %v16675_v50 }
0x19bf   :  { %v16704_v36 = vmul.f32 1.442695, %v16692_v55  ;;  %v16702_v49 = vmul.f32 1.442695, %v16691_v61 }
0x19c0   :  { %v16684_v27 = vpop.xlane.xlu1 %16683  ;;  %v16681_v57 = vpop.xlane.xlu0 %16680 }
0x19c1   :  { %23506 = vpow2.f32 %v16704_v36  ;;  %v16694_v18 = vsub.f32 %v16654_v5, %v16684_v27  ;;  %v16693_v37 = vsub.f32 %v16653_v28, %v16681_v57 }
0x19c2   :  { %v28198_v56 = vpop.eup %23500  ;;  %23508 = vpow2.f32 %v16702_v49 }
0x19c3   :  { %v16708_v34 = vmul.f32 1.442695, %v16694_v18  ;;  %v16706_v16 = vmul.f32 1.442695, %v16693_v37  ;;  %v16712_v45 = vsel %vm2112_vm5, %v28198_v56, 0.0 }
0x19c4   :  { %v16753_v25 = vpop.permute.xlu1 %16752  ;;  %v16687_v41 = vpop.xlane.xlu0 %16686  ;;  %16713 = vadd.xlane.f32.xlu1 %v16712_v45 }
0x19c5   :  { %23510 = vpow2.f32 %v16708_v34  ;;  %v16695_v58 = vsub.f32 %v16655_v10, %v16687_v41  ;;  %22986 = vmatpush3.msk.msra.mxu1 %vm2215_vm6, %v16753_v25 }
0x19c6   :  { %v28203_v8 = vpop.eup %23502  ;;  %23512 = vpow2.f32 %v16706_v16  ;;  %22995 = vmatprep.subr.mxu1 %v30356_v46  ;;  %v30400_v16 = vmov 0.0|0.0  }
0x19c7   :  { %v28206_v5 = vpop.eup %23504  ;;  %v16710_v28 = vmul.f32 1.442695, %v16695_v58  ;;  %v16718_v47 = vsel %vm2112_vm5, %v28203_v8, 0.0 }
0x19c8   :  { %v16830_v3 = vpop.permute.xlu0 %16829  ;;  %16719 = vadd.xlane.f32.xlu1 %v16718_v47  ;;  %v16715_v15 = vsel %vm2112_vm5, %v28206_v5, 0.0 }
0x19c9   :  { %23514 = vpow2.f32 %v16710_v28  ;;  %16716 = vadd.xlane.f32.xlu0 %v16715_v15  ;;  %22991 = vmatpush3.msk.msra.mxu0 %vm2215_vm6, %v16830_v3 }
0x19ca   :  { %23000 = vmatprep.subr.mxu0 %v30356_v46 }
0x19cb   :  { %v28214_v10 = vpop.eup %23506 }
0x19cc   :  { %v28216_v29 = vpop.eup %23508  ;;  %v16724_v60 = vsel %vm2112_vm5, %v28214_v10, 0.0 }
0x19cd   :  { %16725 = vadd.xlane.f32.xlu1 %v16724_v60  ;;  %v16721_v38 = vsel %vm2112_vm5, %v28216_v29, 0.0 }
0x19ce   :  { %16722 = vadd.xlane.f32.xlu0 %v16721_v38 }
0x19cf   :  { %v28222_v42 = vpop.eup %23510 }
0x19d0   :  { %v28224_v53 = vpop.eup %23512  ;;  %v16730_v39 = vsel %vm2112_vm5, %v28222_v42, 0.0 }
0x19d1   :  { %16731 = vadd.xlane.f32.xlu1 %v16730_v39  ;;  %v16727_v20 = vsel %vm2112_vm5, %v28224_v53, 0.0 }
0x19d2   :  { %16728 = vadd.xlane.f32.xlu0 %v16727_v20 }
0x19d3   :  { %v28230_v54 = vpop.eup %23514 }
0x19d4   :  { %v16733_v12 = vsel %vm2112_vm5, %v28230_v54, 0.0 }
0x19d6   :  { %16734 = vadd.xlane.f32.xlu0 %v16733_v12  ;;  %v21711_v12 = vld [vmem:[%s29850_s5 + $0x30] sm:$0xff] }
0x19e2   :  { %17291 = vrot.lane.b32.xlu1 %v27360_v26, %s23586_s28 }
0x19e6   :  { %17378 = vrot.lane.b32.xlu1 %v27930_v4, %s23587_s29 }
0x19ea   :  { %17410 = vrot.lane.b32.xlu1 %v28153_v21, %s23588_s30 }
0x19ec   :  { %17214 = vrot.lane.b32.xlu0 %v27356_v23, %s23586_s28  ;;  %v16907_v23 = vpop.permute.xlu1 %16906 }
0x19ee   :  { %17412 = vrot.lane.b32.xlu1 %v28151_v24, %s23588_s30 }
0x19f0   :  { %17376 = vrot.lane.b32.xlu0 %v27928_v14, %s23587_s29  ;;  %v16984_v26 = vpop.permute.xlu1 %16983 }
0x19f2   :  { %17384 = vrot.lane.b32.xlu1 %v27934_v62, %s23587_s29 }
0x19f4   :  { %17408 = vrot.lane.b32.xlu0 %v28149_v6, %s23588_s30  ;;  %v17138_v14 = vpop.permute.xlu1 %17137 }
0x19f6   :  { %17416 = vrot.lane.b32.xlu1 %v28155_v33, %s23588_s30 }
0x19f8   :  { %17380 = vrot.lane.b32.xlu0 %v27932_v51, %s23587_s29  ;;  %v17061_v51 = vpop.permute.xlu0 %17060 }
0x19fa   :  { %17388 = vrot.lane.b32.xlu1 %v27938_v0, %s23587_s29 }
0x19fc   :  { %17382 = vrot.lane.b32.xlu0 %v27936_v22, %s23587_s29 }
0x19fe   :  { %17420 = vrot.lane.b32.xlu1 %v28161_v52, %s23588_s30 }
0x1a00   :  { %17414 = vrot.lane.b32.xlu0 %v28157_v44, %s23588_s30 }
0x1a04   :  { %17386 = vrot.lane.b32.xlu0 %v27940_v32, %s23587_s29 }
0x1a08   :  { %17418 = vrot.lane.b32.xlu0 %v28159_v63, %s23588_s30 }
0x1a51   :  { %v16714_v4 = vpop.xlane.xlu1 %16713 }
0x1a52   :  { %23516 = vrcp.f32 %v16714_v4 }
0x1a55   :  { %v16720_v62 = vpop.xlane.xlu1 %16719 }
0x1a56   :  { %23518 = vrcp.f32 %v16720_v62  ;;  %v16717_v22 = vpop.xlane.xlu0 %16716 }
0x1a57   :  { %23520 = vrcp.f32 %v16717_v22 }
0x1a5a   :  { %v16726_v0 = vpop.xlane.xlu1 %16725 }
0x1a5b   :  { %23522 = vrcp.f32 %v16726_v0  ;;  %v16723_v6 = vpop.xlane.xlu0 %16722 }
0x1a5c   :  { %v23517_v24 = vpop.eup %23516  ;;  %23524 = vrcp.f32 %v16723_v6 }
0x1a5d   :  { %v16744_v32 = vmul.f32 %v23517_v24, %v28198_v56 }
0x1a5e   :  { %v16732_v21 = vpop.xlane.xlu1 %16731 }
0x1a5f   :  { %23526 = vrcp.f32 %v16732_v21  ;;  %v16729_v33 = vpop.xlane.xlu0 %16728  ;;  %22988 = vmatmul.mubr.msk.f32.vlgmr.msra.gmra.mrb[148].mxu1 %vm2211_vm7, %v16744_v32 }
0x1a60   :  { %v23519_v44 = vpop.eup %23518  ;;  %23528 = vrcp.f32 %v16729_v33  ;;  %22996 = vmatpush3.msk.msra.mxu1 %vm2215_vm6, %v16907_v23  ;;  %22997 = vmatprep.mubr.msk.f32.mxu1 %vm23573_vm1, %v30356_v46  ;;  %v21712_v23 = vld [vmem:[%s29850_s5 + $0x38] sm:$0xff] }
0x1a61   :  { %v23521_v63 = vpop.eup %23520  ;;  %v16746_v52 = vmul.f32 %v23519_v44, %v28203_v8  ;;  %23005 = vmatprep.subr.mxu1 %v30356_v46  ;;  %v23256_v62 = vpack.i.bf16 %v21712_v23, %v21711_v12 }
0x1a62   :  { %v16745_v50 = vmul.f32 %v23521_v63, %v28206_v5  ;;  %v17292_v45 = vpop.permute.xlu1 %17291 }
0x1a63   :  { %v16735_v55 = vpop.xlane.xlu0 %16734  ;;  %22998 = vmatmul.mubr.msk.f32.vlgmr.msra.gmra.mrb[150].mxu1 %vm2211_vm7, %v16746_v52 }
0x1a64   :  { %23530 = vrcp.f32 %v16735_v55  ;;  %22993 = vmatmul.mubr.msk.f32.vlgmr.msra.gmra.mrb[152].mxu0 %vm2211_vm7, %v16745_v50  ;;  %23006 = vmatpush3.msk.msra.mxu1 %vm2215_vm6, %v17061_v51 }
0x1a65   :  { %v23523_v61 = vpop.eup %23522  ;;  %23001 = vmatpush3.msk.msra.mxu0 %vm2215_vm6, %v16984_v26  ;;  %23002 = vmatprep.mubr.msk.f32.mxu0 %vm23573_vm1, %v30356_v46 }
0x1a66   :  { %v23525_v36 = vpop.eup %23524  ;;  %v16748_v49 = vmul.f32 %v23523_v61, %v28214_v10  ;;  %23007 = vmatprep.mubr.msk.f32.mxu1 %vm23573_vm1, %v30356_v46  ;;  %23010 = vmatprep.subr.mxu0 %v30356_v46  ;;  %v17379_v0 = vpop.permute.xlu1 %17378 }
0x1a67   :  { %v16747_v27 = vmul.f32 %v23525_v36, %v28216_v29  ;;  %v17215_v57 = vpop.permute.xlu0 %17214  ;;  %23015 = vmatprep.subr.mxu1 %v30356_v46 }
0x1a68   :  { %23008 = vmatmul.mubr.msk.f32.vlgmr.msra.gmra.mrb[152].mxu1 %vm2211_vm7, %v16748_v49 }
0x1a69   :  { %v23527_v18 = vpop.eup %23526  ;;  %23003 = vmatmul.mubr.msk.f32.vlgmr.msra.gmra.mrb[154].mxu0 %vm2211_vm7, %v16747_v27  ;;  %23016 = vmatpush3.msk.msra.mxu1 %vm2215_vm6, %v17215_v57 }
0x1a6a   :  { %v23529_v37 = vpop.eup %23528  ;;  %v16750_v56 = vmul.f32 %v23527_v18, %v28222_v42  ;;  %23011 = vmatpush3.msk.msra.mxu0 %vm2215_vm6, %v17138_v14  ;;  %23012 = vmatprep.mubr.msk.f32.mxu0 %vm23573_vm1, %v30356_v46  ;;  %v21709_v42 = vld [vmem:[%s29850_s5 + $0x20] sm:$0xff]  ;;  %v23177_v14 = vpack.c.bf16 %v21712_v23, %v21711_v12  ;;  %v17411_v24 = vpop.permute.xlu1 %17410 }
0x1a6b   :  { %v16749_v34 = vmul.f32 %v23529_v37, %v28224_v53  ;;  %23017 = vmatprep.mubr.msk.f32.mxu1 %vm23573_vm1, %v30356_v46  ;;  %23020 = vmatprep.subr.mxu0 %v30356_v46  ;;  %v17377_v22 = vpop.permute.xlu0 %17376 }
0x1a6c   :  { %23018 = vmatmul.mubr.msk.f32.vlgmr.msra.gmra.mrb[154].mxu1 %vm2211_vm7, %v16750_v56  ;;  %23173 = vmatprep.subr.bf16.mxu1 %v30400_v16  ;;  %v17464_v61 = vsel %vm1224_vm4, %v27656_v13, %v17377_v22 }
0x1a6d   :  { %23013 = vmatmul.mubr.msk.f32.vlgmr.msra.gmra.mrb[156].mxu0 %vm2211_vm7, %v16749_v34  ;;  %23033 = vmatprep.mubr.msk.f32.mxu1 %vm23573_vm1, %v30356_v46  ;;  %v17465_v34 = vsel %vm1224_vm4, %v27658_v43, %v17379_v0 }
0x1a6e   :  { %v23531_v25 = vpop.eup %23530  ;;  %23021 = vmatpush3.msk.msra.mxu0 %vm2215_vm6, %v17292_v45  ;;  %23022 = vmatprep.mubr.msk.f32.mxu0 %vm23573_vm1, %v30356_v46  ;;  %v17413_v21 = vpop.permute.xlu1 %17412 }
0x1a6f   :  { %v16751_v41 = vmul.f32 %v23531_v25, %v28230_v54  ;;  %23179 = vmatprep.subr.bf16.mxu0 %v30400_v16  ;;  %v17409_v6 = vpop.permute.xlu0 %17408 }
0x1a70   :  { %v17472_v36 = vsel %vm6966_vm9, %v17464_v61, %v17409_v6 }
0x1a71   :  { %23023 = vmatmul.mubr.msk.f32.vlgmr.msra.gmra.mrb[158].mxu0 %vm2211_vm7, %v16751_v41  ;;  %v17473_v41 = vsel %vm6966_vm9, %v17465_v34, %v17411_v24 }
0x1a72   :  { %23056 = vmatprep.mubr.msk.f32.mxu0 %vm23573_vm1, %v30356_v46 }
0x1a73   :  { %v17381_v32 = vpop.permute.xlu0 %17380 }
0x1a74   :  { %v17466_v18 = vsel %vm1224_vm4, %v27660_v9, %v17381_v32 }
0x1a75   :  { %v17474_v9 = vsel %vm6966_vm9, %v17466_v18, %v17413_v21 }
0x1a77   :  { %v17383_v33 = vpop.permute.xlu0 %17382 }
0x1a7b   :  { %v17415_v44 = vpop.permute.xlu0 %17414 }
0x1a7f   :  { %v17387_v52 = vpop.permute.xlu0 %17386 }
0x1a83   :  { %v17419_v55 = vpop.permute.xlu0 %17418 }
0x1b32   :  { %v16825_v58 = vpop.f32.mrb[148].mxu1 }
0x1b33   :  { %v22989_v8 = vpop.f32.mrb[149].mxu1  ;;  %17440 = vrot.lane.b32.xlu0 %v16825_v58, %s23589_s12 }
0x1b36   :  { %v16979_v5 = vpop.f32.mrb[150].mxu1 }
0x1b37   :  { %v16902_v28 = vpop.f32.mrb[152].mxu0  ;;  %v22999_v47 = vpop.f32.mrb[151].mxu1  ;;  %17390 = vrot.lane.b32.xlu0 %v27942_v17, %s23587_s29  ;;  %v21710_v17 = vld [vmem:[%s29850_s5 + $0x28] sm:$0xff]  ;;  %s23591_s29 = smov [#allocation3]  }
0x1b38   :  { %17442 = vrot.lane.b32.xlu1 %v16902_v28, %s23589_s12  ;;  %v22994_v3 = vpop.f32.mrb[153].mxu0  ;;  %v23174_v20 = vpack.c.bf16 %v21710_v17, %v21709_v42  ;;  %v23251_v51 = vpack.i.bf16 %v21710_v17, %v21709_v42  ;;  %v17467_v28 = vsel %vm1224_vm4, %v27662_v31, %v17383_v33  ;;  %v17469_v31 = vsel %vm1224_vm4, %v27666_v1, %v17387_v52 }
0x1b3a   :  { %23175 = vmatpush3.bf16.msra.mxu1 %v23174_v20 }
0x1b3b   :  { %v17133_v15 = vpop.f32.mrb[152].mxu1  ;;  %23176 = vmatprep.subr.bf16.mxu1 %v30400_v16 }
0x1b3c   :  { %v17056_v10 = vpop.f32.mrb[154].mxu0  ;;  %v23009_v29 = vpop.f32.mrb[153].mxu1  ;;  %17444 = vrot.lane.b32.xlu1 %v16979_v5, %s23589_s12 }
0x1b3d   :  { %17446 = vrot.lane.b32.xlu0 %v17056_v10, %s23589_s12  ;;  %v23004_v60 = vpop.f32.mrb[155].mxu0 }
0x1b3e   :  { %23178 = vmatpush3.bf16.msra.mxu1 %v23177_v14 }
0x1b3f   :  { %v17287_v38 = vpop.f32.mrb[154].mxu1  ;;  %23185 = vmatprep.subr.bf16.mxu1 %v30400_v16 }
0x1b40   :  { %v17210_v53 = vpop.f32.mrb[156].mxu0  ;;  %v23019_v39 = vpop.f32.mrb[155].mxu1  ;;  %17448 = vrot.lane.b32.xlu1 %v17133_v15, %s23589_s12  ;;  %v17475_v15 = vsel %vm6966_vm9, %v17467_v28, %v17415_v44 }
0x1b41   :  { %17450 = vrot.lane.b32.xlu0 %v17210_v53, %s23589_s12  ;;  %v23014_v54 = vpop.f32.mrb[157].mxu0 }
0x1b42   :  { %v17477_v54 = vsel %vm6966_vm9, %v17469_v31, %v17419_v55 }
0x1b44   :  { %v17364_v26 = vpop.f32.mrb[158].mxu0  ;;  %17452 = vrot.lane.b32.xlu1 %v17287_v38, %s23589_s12 }
0x1b45   :  { %17422 = vrot.lane.b32.xlu0 %v28163_v48, %s23588_s30  ;;  %v23024_v4 = vpop.f32.mrb[159].mxu0  ;;  %v17385_v48 = vpop.permute.xlu1 %17384 }
0x1b46   :  { %v17468_v45 = vsel %vm1224_vm4, %v27664_v30, %v17385_v48 }
0x1b48   :  { %17454 = vrot.lane.b32.xlu1 %v17364_v26, %s23589_s12 }
0x1b49   :  { %23252 = vrot.lane.b32.xlu0 %v23251_v51, %s23576_s19  ;;  %v17417_v63 = vpop.permute.xlu1 %17416 }
0x1b4a   :  { %v17476_v58 = vsel %vm6966_vm9, %v17468_v45, %v17417_v63 }
0x1b4c   :  { %23257 = vrot.lane.b32.xlu1 %v23256_v62, %s23576_s19 }
0x1b4d   :  { %v17389_v50 = vpop.permute.xlu1 %17388 }
0x1b4e   :  { %v17470_v3 = vsel %vm1224_vm4, %v27668_v59, %v17389_v50 }
0x1b51   :  { %v17421_v27 = vpop.permute.xlu1 %17420 }
0x1b52   :  { %v28363_v60 = vsel %vm6966_vm9, %v17470_v3, %v17421_v27 }
0x1ba5   :  { %v17441_v49 = vpop.permute.xlu0 %17440 }
0x1ba6   :  { %v17480_v57 = vsel %vm6975_vm8, %v17472_v36, %v17441_v49 }
0x1ba7   :  { %v17496_v37 = vcombine.high %v17480_v57, %v17480_v57  ;;  %v17503_v56 = vrot.slane %v17480_v57, %v23709_v19 }
0x1ba9   :  { %v17511_v25 = vcombine.high %v17503_v56, %v17503_v56  ;;  %v17391_v13 = vpop.permute.xlu0 %17390  ;;  %v17510_v8 = vrot.slane %v17496_v37, %v23709_v19  ;;  %v17518_v47 = vrot.slane %v17503_v56, %v23709_v19 }
0x1baa   :  { %v17443_v5 = vpop.permute.xlu1 %17442  ;;  %v28376_v1 = vsel %vm1224_vm4, %v27670_v40, %v17391_v13 }
0x1bab   :  { %v17532_v43 = vrot.slane %v17511_v25, %v23709_v19  ;;  %v17481_v30 = vsel %vm6975_vm8, %v17473_v41, %v17443_v5  ;;  %v17525_v17 = vrot.slane %v17510_v8, %v23709_v19 }
0x1bac   :  { %v17535_v10 = vcombine.high %v17481_v30, %v17481_v30  ;;  %v17542_v29 = vrot.slane %v17481_v30, %v23709_v19 }
0x1bad   :  { %v17812_v38 = vcombine.low %v17518_v47, %v17532_v43  ;;  %v21856_v42 = vcombine.high %v17518_v47, %v17532_v43 }
0x1bae   :  { %v17549_v53 = vrot.slane %v17535_v10, %v23709_v19  ;;  %v17550_v39 = vcombine.high %v17542_v29, %v17542_v29  ;;  %v17557_v59 = vrot.slane %v17542_v29, %v23709_v19  ;;  %v17445_v20 = vpop.permute.xlu1 %17444 }
0x1baf   :  { %v17822_v12 = vrot.slane %v17812_v38, %v23709_v19  ;;  %v17829_v23 = vrot.slane %v21856_v42, %v23709_v19  ;;  %v17482_v26 = vsel %vm6975_vm8, %v17474_v9, %v17445_v20  ;;  %v17447_v14 = vpop.permute.xlu0 %17446 }
0x1bb0   :  { %v17571_v4 = vrot.slane %v17550_v39, %v23709_v19  ;;  %v17572_v51 = vcombine.high %v17557_v59, %v17557_v59  ;;  %v17814_v62 = vcombine.low %v17525_v17, %v17557_v59  ;;  %v17574_v0 = vcombine.high %v17482_v26, %v17482_v26 }
0x1bb1   :  { %v17844_v22 = vcombine.low %v17822_v12, %v17829_v23  ;;  %v17581_v6 = vrot.slane %v17482_v26, %v23709_v19  ;;  %v17483_v24 = vsel %vm6975_vm8, %v17475_v15, %v17447_v14  ;;  %v17564_v32 = vrot.slane %v17549_v53, %v23709_v19 }
0x1bb2   :  { %v17573_v21 = vcombine.high %v17571_v4, %v17571_v4  ;;  %v17815_v33 = vcombine.low %v17571_v4, %v17572_v51  ;;  %v17613_v48 = vcombine.high %v17483_v24, %v17483_v24  ;;  %v17449_v44 = vpop.permute.xlu1 %17448  ;;  %v17836_v40 = vrot.slane %v17814_v62, %v23709_v19 }
0x1bb3   :  { %v28383_v63 = vrot.slane %v17844_v22, %v23709_v19  ;;  %v17588_v52 = vrot.slane %v17574_v0, %v23709_v19  ;;  %v17589_v50 = vcombine.high %v17581_v6, %v17581_v6  ;;  %v17451_v55 = vpop.permute.xlu0 %17450  ;;  %v17620_v49 = vrot.slane %v17483_v24, %v23709_v19 }
0x1bb4   :  { %v17843_v61 = vrot.slane %v17815_v33, %v23709_v19  ;;  %v17861_v36 = vcombine.low %v17573_v21, %v17564_v32  ;;  %v17627_v27 = vrot.slane %v17613_v48, %v23709_v19  ;;  %v17596_v57 = vrot.slane %v17581_v6, %v23709_v19 }
0x1bb5   :  { %v17603_v18 = vrot.slane %v17588_v52, %v23709_v19  ;;  %v17610_v37 = vrot.slane %v17589_v50, %v23709_v19  ;;  %v17484_v56 = vsel %vm6975_vm8, %v17476_v58, %v17449_v44  ;;  %v17628_v45 = vcombine.high %v17620_v49, %v17620_v49 }
0x1bb6   :  { %v17845_v34 = vcombine.low %v17836_v40, %v17843_v61  ;;  %v17635_v25 = vrot.slane %v17620_v49, %v23709_v19  ;;  %v17485_v13 = vsel %vm6975_vm8, %v17477_v54, %v17451_v55  ;;  %v17871_v41 = vrot.slane %v17861_v36, %v23709_v19  ;;  %v17453_v17 = vpop.permute.xlu1 %17452 }
0x1bb7   :  { %v17862_v8 = vcombine.low %v17596_v57, %v17610_v37  ;;  %v21857_v5 = vcombine.high %v17596_v57, %v17610_v37  ;;  %v17652_v9 = vcombine.high %v17484_v56, %v17484_v56  ;;  %v17642_v28 = vrot.slane %v17627_v27, %v23709_v19  ;;  %v17423_v54 = vpop.permute.xlu0 %17422 }
0x1bb8   :  { %v17649_v47 = vrot.slane %v17628_v45, %v23709_v19  ;;  %v17650_v43 = vcombine.high %v17635_v25, %v17635_v25  ;;  %v17864_v30 = vcombine.low %v17603_v18, %v17635_v25  ;;  %v17659_v15 = vrot.slane %v17484_v56, %v23709_v19 }
0x1bb9   :  { %v17878_v3 = vrot.slane %v17862_v8, %v23709_v19  ;;  %v17885_v58 = vrot.slane %v21857_v5, %v23709_v19  ;;  %v17666_v10 = vrot.slane %v17652_v9, %v23709_v19  ;;  %v17691_v42 = vcombine.high %v17485_v13, %v17485_v13 }
0x1bba   :  { %v17651_v29 = vcombine.high %v17649_v47, %v17649_v47  ;;  %v17892_v31 = vrot.slane %v17864_v30, %v23709_v19  ;;  %v17910_v38 = vcombine.low %v17649_v47, %v17650_v43  ;;  %v17859_v53 = vrot.slane %v17845_v34, %v23709_v19 }
0x1bbb   :  { %v17893_v39 = vcombine.low %v17871_v41, %v17878_v3  ;;  %v17667_v59 = vcombine.high %v17659_v15, %v17659_v15  ;;  %v17674_v20 = vrot.slane %v17659_v15, %v23709_v19  ;;  %v17681_v26 = vrot.slane %v17666_v10, %v23709_v19 }
0x1bbc   :  { %v17894_v12 = vcombine.low %v17885_v58, %v17892_v31  ;;  %v17911_v23 = vcombine.low %v17651_v29, %v17642_v28  ;;  %v17698_v14 = vrot.slane %v17485_v13, %v23709_v19  ;;  %v17920_v4 = vrot.slane %v17910_v38, %v23709_v19 }
0x1bbd   :  { %v17688_v51 = vrot.slane %v17667_v59, %v23709_v19  ;;  %v17705_v62 = vrot.slane %v17691_v42, %v23709_v19  ;;  %v17486_v22 = vsel %vm6975_vm8, %v28363_v60, %v17453_v17  ;;  %v17479_v32 = vsel %vm6966_vm9, %v28376_v1, %v17423_v54  ;;  %v17455_v60 = vpop.permute.xlu1 %17454 }
0x1bbe   :  { %v17706_v0 = vcombine.high %v17698_v14, %v17698_v14  ;;  %v17713_v6 = vrot.slane %v17698_v14, %v23709_v19  ;;  %v17730_v24 = vcombine.high %v17486_v22, %v17486_v22  ;;  %v17927_v21 = vrot.slane %v17911_v23, %v23709_v19 }
0x1bbf   :  { %v17912_v33 = vcombine.low %v17674_v20, %v17688_v51  ;;  %v21858_v48 = vcombine.high %v17674_v20, %v17688_v51  ;;  %v17737_v44 = vrot.slane %v17486_v22, %v23709_v19  ;;  %v17720_v40 = vrot.slane %v17705_v62, %v23709_v19 }
0x1bc0   :  { %v17727_v52 = vrot.slane %v17706_v0, %v23709_v19  ;;  %v17728_v50 = vcombine.high %v17713_v6, %v17713_v6  ;;  %v17959_v55 = vcombine.low %v17681_v26, %v17713_v6  ;;  %v17744_v49 = vrot.slane %v17730_v24, %v23709_v19 }
0x1bc1   :  { %v17934_v61 = vrot.slane %v17912_v33, %v23709_v19  ;;  %v17941_v36 = vrot.slane %v21858_v48, %v23709_v19  ;;  %v17745_v1 = vcombine.high %v17737_v44, %v17737_v44  ;;  %v17752_v37 = vrot.slane %v17737_v44, %v23709_v19 }
0x1bc2   :  { %v17729_v27 = vcombine.high %v17727_v52, %v17727_v52  ;;  %v17960_v57 = vcombine.low %v17727_v52, %v17728_v50  ;;  %v17969_v18 = vrot.slane %v17959_v55, %v23709_v19  ;;  %v17487_v45 = vsel %vm6975_vm8, %v17479_v32, %v17455_v60  ;;  %v30401_v52 = vld [vmem:[#allocation6_spill] sm:$0xff] }
0x1bc3   :  { %v17943_v56 = vcombine.low %v17934_v61, %v17941_v36  ;;  %v17766_v34 = vrot.slane %v17745_v1, %v23709_v19  ;;  %v17860_v25 = vcombine.low %v28383_v63, %v17859_v53  ;;  %v17769_v8 = vcombine.high %v17487_v45, %v17487_v45 }
0x1bc4   :  { %v17961_v13 = vcombine.low %v17729_v27, %v17720_v40  ;;  %v17976_v41 = vrot.slane %v17960_v57, %v23709_v19  ;;  %v17776_v5 = vrot.slane %v17487_v45, %v23709_v19  ;;  %v17759_v9 = vrot.slane %v17744_v49, %v23709_v19  ;;  %v28467_v40 = vld [vmem:[%s29853_s8 + $0x8] sm:$0x3f]  ;;  %v23253_v49 = vpop.permute.xlu0 %23252  ;;  %v23258_v57 = vpop.permute.xlu1 %23257 }
0x1bc5   :  { %v17962_v28 = vcombine.low %v17752_v37, %v17766_v34  ;;  %23034 = vmatmul.mubr.msk.f32.vlgmr.msra.gmra.mrb[156].mxu1 %vm832_vm3, %v17860_v25  ;;  %v17901_v47 = vrot.slane %v17893_v39, %v23709_v19  ;;  %v17908_v43 = vrot.slane %v17894_v12, %v23709_v19  ;;  %v21859_v3 = vcombine.high %v17752_v37, %v17766_v34 }
0x1bc6   :  { %v17991_v30 = vcombine.low %v17969_v18, %v17976_v41  ;;  %v17783_v58 = vrot.slane %v17769_v8, %v23709_v19  ;;  %v17784_v63 = vcombine.high %v17776_v5, %v17776_v5  ;;  %23036 = vmatprep.mubr.msk.f32.mxu1 %vm23573_vm1, %v30356_v46  ;;  %v17983_v15 = vrot.slane %v17961_v13, %v23709_v19 }
0x1bc7   :  { %v17990_v10 = vrot.slane %v17962_v28, %v23709_v19  ;;  %v17791_v29 = vrot.slane %v17776_v5, %v23709_v19  ;;  %v17909_v31 = vcombine.low %v17901_v47, %v17908_v43  ;;  %v17942_v42 = vcombine.low %v17920_v4, %v17927_v21 }
0x1bc8   :  { %v17805_v38 = vrot.slane %v17784_v63, %v23709_v19  ;;  %v17957_v17 = vrot.slane %v17943_v56, %v23709_v19  ;;  %v18018_v20 = vrot.slane %v21859_v3, %v23709_v19  ;;  %v17798_v54 = vrot.slane %v17783_v58, %v23709_v19 }
0x1bc9   :  { %v17992_v53 = vcombine.low %v17983_v15, %v17990_v10  ;;  %v17806_v39 = vcombine.high %v17791_v29, %v17791_v29  ;;  %v18009_v59 = vcombine.low %v17759_v9, %v17791_v29  ;;  %23037 = vmatmul.mubr.msk.f32.gmra.mrb[158].mxu1 %vm832_vm3, %v17909_v31  ;;  %v17950_v23 = vrot.slane %v17942_v42, %v23709_v19 }
0x1bca   :  { %v17807_v12 = vcombine.high %v17805_v38, %v17805_v38  ;;  %23039 = vmatprep.mubr.msk.f32.mxu1 %vm23573_vm1, %v30356_v46  ;;  %v17999_v4 = vrot.slane %v17991_v30, %v23709_v19  ;;  %v30402_v50 = vsub.s32 0, %v30401_v52  ;;  %v23255_v1 = vunpack.i.h.bf16 %v23253_v49 }
0x1bcb   :  { %v18010_v26 = vcombine.low %v17805_v38, %v17806_v39  ;;  %v18025_v14 = vrot.slane %v18009_v59, %v23709_v19  ;;  %v18006_v51 = vrot.slane %v17992_v53, %v23709_v19  ;;  %v17958_v22 = vcombine.low %v17950_v23, %v17957_v17  ;;  %v30403_v38 = vld [vmem:[#allocation33_spill] sm:$0xff]  ;;  %v30404_v53 = vld [vmem:[#allocation34_spill] sm:$0xff]  ;;  %v30405_v59 = vld [vmem:[#allocation36_spill] sm:$0xff] }
0x1bcc   :  { %v18011_v62 = vcombine.low %v17807_v12, %v17798_v54  ;;  %v28472_v55 = vrot.slane %v28467_v40, %v30402_v50  ;;  %v23254_v27 = vunpack.i.l.bf16 %v23253_v49  ;;  %v23260_v56 = vunpack.i.h.bf16 %v23258_v57 }
0x1bcd   :  { %v18040_v0 = vcombine.low %v18018_v20, %v18025_v14  ;;  %v18007_v6 = vcombine.low %v17999_v4, %v18006_v51  ;;  %v18032_v24 = vrot.slane %v18010_v26, %v23709_v19  ;;  %23040 = vmatmul.mubr.msk.f32.gmra.mrb[160].mxu1 %vm832_vm3, %v17958_v22  ;;  %v23259_v34 = vunpack.i.l.bf16 %v23258_v57  ;;  %v30406_v26 = vld [vmem:[#allocation35_spill] sm:$0xff]  ;;  %v30407_v4 = vld [vmem:[#allocation38_spill] sm:$0xff] }
0x1bce   :  { %v18039_v32 = vrot.slane %v18011_v62, %v23709_v19  ;;  %23042 = vmatprep.mubr.msk.f32.mxu1 %vm23573_vm1, %v30356_v46  ;;  %v23180_v25 = vpack.c.bf16 %v23255_v1, %v23254_v27  ;;  %v30408_v62 = vld [vmem:[#allocation37_spill] sm:$0xff] }
0x1bcf   :  { %v18048_v33 = vrot.slane %v18040_v0, %v23709_v19  ;;  %v23183_v28 = vpack.c.bf16 %v23260_v56, %v23259_v34 }
0x1bd0   :  { %v18041_v21 = vcombine.low %v18032_v24, %v18039_v32  ;;  %23181 = vmatpush3.bf16.msra.mxu0 %v23180_v25 }
0x1bd1   :  { %23043 = vmatmul.mubr.msk.f32.gmra.mrb[162].mxu1 %vm832_vm3, %v18007_v6  ;;  %23182 = vmatprep.subr.bf16.mxu0 %v30400_v16 }
0x1bd2   :  { %v18055_v48 = vrot.slane %v18041_v21, %v23709_v19  ;;  %23045 = vmatprep.mubr.msk.f32.mxu1 %vm23573_vm1, %v30356_v46  ;;  %v30409_v21 = vld [vmem:[#allocation39_spill] sm:$0xff] }
0x1bd4   :  { %v18056_v44 = vcombine.low %v18048_v33, %v18055_v48  ;;  %23184 = vmatpush3.bf16.msra.mxu0 %v23183_v28 }
0x1bd5   :  { %23197 = vmatprep.subr.bf16.mxu0 %v30400_v16 }
0x1bd6   :  { %23046 = vmatmul.mubr.msk.f32.gmra.mrb[164].mxu1 %vm832_vm3, %v18056_v44 }
0x1bd7   :  { %23087 = vmatprep.mubr.msk.f32.mxu1 %vm23573_vm1, %v30356_v46 }
0x1c98   :  { %v18133_v60 = vpop.f32.mrb[156].mxu1 }
0x1c99   :  { %v18134_v61 = vadd.f32 %v18133_v60, %v28472_v55  ;;  %v23035_v36 = vpop.f32.mrb[157].mxu1 }
0x1c9b   :  { %v18162_v18 = vcombine.high %v18134_v61, %v18134_v61  ;;  %v18169_v37 = vrot.slane %v18134_v61, %v23709_v19 }
0x1c9c   :  { %v18138_v45 = vpop.f32.mrb[158].mxu1 }
0x1c9d   :  { %v18176_v13 = vrot.slane %v18162_v18, %v23709_v19  ;;  %v18177_v41 = vcombine.high %v18169_v37, %v18169_v37  ;;  %v18185_v8 = vrot.slane %v18169_v37, %v23709_v19  ;;  %v18139_v5 = vadd.f32 %v18138_v45, %v28472_v55  ;;  %v23038_v9 = vpop.f32.mrb[159].mxu1 }
0x1c9f   :  { %v18178_v47 = vcombine.high %v18176_v13, %v18176_v13  ;;  %v18192_v43 = vrot.slane %v18176_v13, %v23709_v19  ;;  %v18199_v30 = vrot.slane %v18177_v41, %v23709_v19  ;;  %v18207_v3 = vcombine.high %v18185_v8, %v18185_v8 }
0x1ca0   :  { %v28483_v58 = vadd.f32 %v18185_v8, %v26932_v2  ;;  %v18211_v63 = vcombine.high %v18139_v5, %v18139_v5  ;;  %v18218_v15 = vrot.slane %v18139_v5, %v23709_v19  ;;  %v28490_v17 = vpop.f32.mrb[160].mxu1 }
0x1ca1   :  { %v18206_v10 = vrot.slane %v18178_v47, %v23709_v19  ;;  %v18208_v29 = vcombine.high %v18192_v43, %v18192_v43  ;;  %v18209_v31 = vcombine.high %v18199_v30, %v18199_v30  ;;  %v28488_v42 = vadd.f32 %v18199_v30, %v30403_v38  ;;  %v23041_v12 = vpop.f32.mrb[161].mxu1 }
0x1ca2   :  { %v28493_v39 = vadd.f32 %v18207_v3, %v30404_v53  ;;  %v28496_v20 = vadd.f32 %v18192_v43, %v30405_v59  ;;  %v18793_v2 = vmul.f32 %v28483_v58, %v28483_v58  ;;  %v18225_v54 = vrot.slane %v18211_v63, %v23709_v19 }
0x1ca3   :  { %v18210_v23 = vcombine.high %v18206_v10, %v18206_v10  ;;  %v28502_v14 = vadd.f32 %v18209_v31, %v30406_v26  ;;  %v28505_v51 = vadd.f32 %v18206_v10, %v30407_v4  ;;  %v28508_v22 = vadd.f32 %v18208_v29, %v30408_v62 }
0x1ca4   :  { %v18527_v0 = vcombine.low %v28483_v58, %v28488_v42  ;;  %v18794_v6 = vmul.f32 %v28488_v42, %v28488_v42  ;;  %v18795_v24 = vmul.f32 %v28493_v39, %v28493_v39  ;;  %v18797_v32 = vmul.f32 %v28496_v20, %v28496_v20  ;;  %v28528_v60 = vpop.f32.mrb[162].mxu1 }
0x1ca5   :  { %v28520_v33 = vadd.f32 %v18210_v23, %v30409_v21  ;;  %v18528_v48 = vcombine.low %v28493_v39, %v28502_v14  ;;  %v18529_v44 = vcombine.low %v28496_v20, %v28505_v51  ;;  %v18796_v50 = vmul.f32 %v28502_v14, %v28502_v14  ;;  %v23044_v27 = vpop.f32.mrb[163].mxu1 }
0x1ca6   :  { %v18537_v61 = vrot.slane %v18527_v0, %v23709_v19  ;;  %v18798_v36 = vmul.f32 %v28505_v51, %v28505_v51  ;;  %v18799_v49 = vmul.f32 %v28508_v22, %v28508_v22  ;;  %v18873_v1 = vcombine.low %v18793_v2, %v18794_v6  ;;  %v30410_v6 = vld [vmem:[#allocation41_spill] sm:$0xff] }
0x1ca7   :  { %v18530_v57 = vcombine.low %v28508_v22, %v28520_v33  ;;  %v18544_v18 = vrot.slane %v18528_v48, %v23709_v19  ;;  %v18551_v37 = vrot.slane %v18529_v44, %v23709_v19  ;;  %v18800_v56 = vmul.f32 %v28520_v33, %v28520_v33  ;;  %v30411_v48 = vld [vmem:[#allocation42_spill] sm:$0xff] }
0x1ca8   :  { %v18874_v34 = vcombine.low %v18795_v24, %v18796_v50  ;;  %v18875_v45 = vcombine.low %v18797_v32, %v18798_v36  ;;  %v18883_v25 = vrot.slane %v18873_v1, %v23709_v19  ;;  %v18226_v13 = vcombine.high %v18218_v15, %v18218_v15  ;;  %v30412_v50 = vld [vmem:[#allocation40_spill] sm:$0xff] }
0x1ca9   :  { %v18558_v41 = vrot.slane %v18530_v57, %v23709_v19  ;;  %v18559_v8 = vcombine.low %v18537_v61, %v18544_v18  ;;  %v18876_v5 = vcombine.low %v18799_v49, %v18800_v56  ;;  %v18227_v9 = vcombine.high %v18225_v54, %v18225_v54  ;;  %v28543_v28 = vpop.f32.mrb[164].mxu1  ;;  %v30414_v49 = vld [vmem:[#allocation44_spill] sm:$0xff] }
0x1caa   :  { %v18890_v47 = vrot.slane %v18874_v34, %v23709_v19  ;;  %v18897_v43 = vrot.slane %v18875_v45, %v23709_v19  ;;  %v18234_v30 = vrot.slane %v18218_v15, %v23709_v19  ;;  %v18241_v3 = vrot.slane %v18225_v54, %v23709_v19  ;;  %v23047_v63 = vpop.f32.mrb[165].mxu1 }
0x1cab   :  { %v18560_v10 = vcombine.low %v18551_v37, %v18558_v41  ;;  %v18567_v29 = vrot.slane %v18559_v8, %v23709_v19  ;;  %v18904_v31 = vrot.slane %v18876_v5, %v23709_v19  ;;  %v18248_v38 = vrot.slane %v18226_v13, %v23709_v19 }
0x1cac   :  { %v18905_v53 = vcombine.low %v18883_v25, %v18890_v47  ;;  %v18255_v59 = vrot.slane %v18227_v9, %v23709_v19  ;;  %v18256_v2 = vcombine.high %v18234_v30, %v18234_v30  ;;  %v18257_v12 = vcombine.high %v18241_v3, %v18241_v3 }
0x1cad   :  { %v18574_v23 = vrot.slane %v18560_v10, %v23709_v19  ;;  %v18906_v26 = vcombine.low %v18897_v43, %v18904_v31  ;;  %v18258_v4 = vcombine.high %v18248_v38, %v18248_v38  ;;  %v28555_v15 = vadd.f32 %v18234_v30, %v27004_v35  ;;  %v30413_v35 = vld [vmem:[#allocation43_spill] sm:$0xff] }
0x1cae   :  { %v18913_v54 = vrot.slane %v18905_v53, %v23709_v19  ;;  %v18259_v62 = vcombine.high %v18255_v59, %v18255_v59  ;;  %v28559_v0 = vadd.f32 %v18248_v38, %v27008_v7  ;;  %v28562_v24 = vadd.f32 %v18256_v2, %v30410_v6  ;;  %v30416_v7 = vld [vmem:[#allocation14_spill] sm:$0xff] }
0x1caf   :  { %v18575_v32 = vcombine.low %v18567_v29, %v18574_v23  ;;  %v18920_v21 = vrot.slane %v18906_v26, %v23709_v19  ;;  %v28566_v44 = vadd.f32 %v18258_v4, %v30411_v48  ;;  %v28569_v61 = vadd.f32 %v18241_v3, %v30412_v50 }
0x1cb0   :  { %v28572_v36 = vadd.f32 %v18255_v59, %v30413_v35  ;;  %v28575_v1 = vadd.f32 %v18257_v12, %v30414_v49  ;;  %v28578_v27 = vadd.f32 %v18259_v62, %v30416_v7  ;;  %v18576_v57 = vcombine.low %v28555_v15, %v28559_v0 }
0x1cb1   :  { %v18777_v18 = vsel %vm832_vm3, %v18575_v32, 0.0  ;;  %v18921_v37 = vcombine.low %v18913_v54, %v18920_v21  ;;  %v18577_v56 = vcombine.low %v28562_v24, %v28566_v44  ;;  %v18801_v34 = vmul.f32 %v28555_v15, %v28555_v15 }
0x1cb2   :  { %30415 = vst [vmem:[#allocation28_spill] sm:$0xff] %v28575_v1  ;;  %30417 = vst [vmem:[#allocation31_spill] sm:$0xff] %v28578_v27  ;;  %v18578_v45 = vcombine.low %v28569_v61, %v28572_v36  ;;  %v18579_v25 = vcombine.low %v28575_v1, %v28578_v27  ;;  %v18586_v13 = vrot.slane %v18576_v57, %v23709_v19 }
0x1cb3   :  { %v18802_v41 = vmul.f32 %v28559_v0, %v28559_v0  ;;  %v19123_v8 = vsel %vm832_vm3, %v18921_v37, 0.0  ;;  %v18593_v5 = vrot.slane %v18577_v56, %v23709_v19  ;;  %v18803_v9 = vmul.f32 %v28562_v24, %v28562_v24 }
0x1cb4   :  { %v18804_v47 = vmul.f32 %v28566_v44, %v28566_v44  ;;  %v18600_v43 = vrot.slane %v18578_v45, %v23709_v19  ;;  %v18607_v30 = vrot.slane %v18579_v25, %v23709_v19  ;;  %v18805_v3 = vmul.f32 %v28569_v61, %v28569_v61 }
0x1cb5   :  { %v18806_v63 = vmul.f32 %v28572_v36, %v28572_v36  ;;  %v18608_v10 = vcombine.low %v18586_v13, %v18593_v5  ;;  %v18807_v29 = vmul.f32 %v28575_v1, %v28575_v1  ;;  %v18808_v31 = vmul.f32 %v28578_v27, %v28578_v27 }
0x1cb6   :  { %v18922_v38 = vcombine.low %v18801_v34, %v18802_v41  ;;  %v18609_v53 = vcombine.low %v18600_v43, %v18607_v30  ;;  %v18923_v59 = vcombine.low %v18803_v9, %v18804_v47  ;;  %v18144_v12 = vadd.f32 %v28490_v17, %v28472_v55 }
0x1cb7   :  { %v18924_v2 = vcombine.low %v18805_v3, %v18806_v63  ;;  %v18616_v23 = vrot.slane %v18608_v10, %v23709_v19  ;;  %v18925_v26 = vcombine.low %v18807_v29, %v18808_v31  ;;  %v18149_v54 = vadd.f32 %v28528_v60, %v28472_v55  ;;  %v30418_v3 = vld [vmem:[#allocation8_spill] sm:$0xff] }
0x1cb8   :  { %v18932_v4 = vrot.slane %v18922_v38, %v23709_v19  ;;  %v18623_v62 = vrot.slane %v18609_v53, %v23709_v19  ;;  %v18939_v6 = vrot.slane %v18923_v59, %v23709_v19  ;;  %v18260_v21 = vcombine.high %v18144_v12, %v18144_v12  ;;  %v30420_v38 = vld [vmem:[#allocation12_spill] sm:$0xff] }
0x1cb9   :  { %v18946_v32 = vrot.slane %v18924_v2, %v23709_v19  ;;  %v18953_v48 = vrot.slane %v18925_v26, %v23709_v19  ;;  %v18267_v50 = vrot.slane %v18144_v12, %v23709_v19  ;;  %v18309_v17 = vcombine.high %v18149_v54, %v18149_v54  ;;  %v30424_v12 = vld [vmem:[#allocation27_spill] sm:$0xff]  ;;  %v30426_v26 = vld [vmem:[#allocation16_spill] sm:$0xff] }
0x1cba   :  { %v28622_v35 = vrot.slane %v18149_v54, %v23709_v19  ;;  %v18624_v49 = vcombine.low %v18616_v23, %v18623_v62  ;;  %v18954_v7 = vcombine.low %v18932_v4, %v18939_v6  ;;  %v18274_v57 = vrot.slane %v18260_v21, %v23709_v19  ;;  %v30428_v62 = vld [vmem:[#allocation9_spill] sm:$0xff] }
0x1cbb   :  { %v28627_v60 = vadd.f32 %v28543_v28, %v28472_v55  ;;  %v18955_v37 = vcombine.low %v18946_v32, %v18953_v48  ;;  %v18275_v56 = vcombine.high %v18267_v50, %v18267_v50  ;;  %v18283_v34 = vrot.slane %v18267_v50, %v23709_v19  ;;  %v30430_v50 = vld [vmem:[#allocation10_spill] sm:$0xff] }
0x1cbc   :  { %v18323_v45 = vrot.slane %v18309_v17, %v23709_v19  ;;  %v18778_v25 = vsel %vm832_vm3, %v18624_v49, 0.0  ;;  %v18962_v13 = vrot.slane %v18954_v7, %v23709_v19  ;;  %v18276_v41 = vcombine.high %v18274_v57, %v18274_v57 }
0x1cbd   :  { %v18290_v5 = vrot.slane %v18274_v57, %v23709_v19  ;;  %v28634_v9 = vadd.f32 %v18778_v25, %v18777_v18  ;;  %v18969_v47 = vrot.slane %v18955_v37, %v23709_v19  ;;  %v18297_v55 = vrot.slane %v18275_v56, %v23709_v19  ;;  %v30422_v18 = vld [vmem:[#allocation7_spill] sm:$0xff] }
0x1cbe   :  { %v18305_v28 = vcombine.high %v18283_v34, %v18283_v34  ;;  %v18304_v43 = vrot.slane %v18276_v41, %v23709_v19  ;;  %v28640_v63 = vadd.f32 %v18283_v34, %v30418_v3  ;;  %v18324_v3 = vcombine.high %v28622_v35, %v28622_v35 }
0x1cbf   :  { %v18306_v30 = vcombine.high %v18290_v5, %v18290_v5  ;;  %v28643_v10 = vadd.f32 %v18290_v5, %v27096_v11  ;;  %v18970_v29 = vcombine.low %v18962_v13, %v18969_v47  ;;  %v18307_v31 = vcombine.high %v18297_v55, %v18297_v55 }
0x1cc0   :  { %v28646_v53 = vadd.f32 %v18297_v55, %v30420_v38  ;;  %v28649_v59 = vadd.f32 %v18305_v28, %v30422_v18  ;;  %v18308_v2 = vcombine.high %v18304_v43, %v18304_v43  ;;  %v28652_v23 = vadd.f32 %v18304_v43, %v30424_v12 }
0x1cc1   :  { %30419 = vst [vmem:[#allocation33_spill] sm:$0xff] %v28643_v10  ;;  %v28655_v4 = vadd.f32 %v18306_v30, %v30426_v26  ;;  %v18809_v54 = vmul.f32 %v28640_v63, %v28640_v63  ;;  %v19124_v11 = vsel %vm832_vm3, %v18970_v29, 0.0  ;;  %v28661_v6 = vadd.f32 %v18307_v31, %v30428_v62 }
0x1cc2   :  { %30421 = vst [vmem:[#allocation34_spill] sm:$0xff] %v28646_v53  ;;  %30423 = vst [vmem:[#allocation36_spill] sm:$0xff] %v28649_v59  ;;  %v18625_v32 = vcombine.low %v28640_v63, %v28646_v53  ;;  %v18810_v21 = vmul.f32 %v28646_v53, %v28646_v53  ;;  %v28667_v48 = vadd.f32 %v19124_v11, %v19123_v8 }
0x1cc3   :  { %30425 = vst [vmem:[#allocation35_spill] sm:$0xff] %v28652_v23  ;;  %30427 = vst [vmem:[#allocation38_spill] sm:$0xff] %v28655_v4  ;;  %v28670_v17 = vadd.f32 %v18308_v2, %v30430_v50  ;;  %v18627_v49 = vcombine.low %v28643_v10, %v28652_v23  ;;  %v18811_v7 = vmul.f32 %v28649_v59, %v28649_v59 }
0x1cc4   :  { %30429 = vst [vmem:[#allocation37_spill] sm:$0xff] %v28661_v6  ;;  %v18626_v57 = vcombine.low %v28649_v59, %v28661_v6  ;;  %v18635_v37 = vrot.slane %v18625_v32, %v23709_v19  ;;  %v18812_v56 = vmul.f32 %v28661_v6, %v28661_v6  ;;  %v18813_v8 = vmul.f32 %v28643_v10, %v28643_v10 }
0x1cc5   :  { %30431 = vst [vmem:[#allocation39_spill] sm:$0xff] %v28670_v17  ;;  %v18628_v34 = vcombine.low %v28655_v4, %v28670_v17  ;;  %v18649_v25 = vrot.slane %v18627_v49, %v23709_v19  ;;  %v18814_v13 = vmul.f32 %v28652_v23, %v28652_v23  ;;  %v18815_v41 = vmul.f32 %v28655_v4, %v28655_v4 }
0x1cc6   :  { %v18642_v5 = vrot.slane %v18626_v57, %v23709_v19  ;;  %v18816_v47 = vmul.f32 %v28670_v17, %v28670_v17  ;;  %v18971_v55 = vcombine.low %v18809_v54, %v18810_v21  ;;  %v18972_v28 = vcombine.low %v18811_v7, %v18812_v56 }
0x1cc7   :  { %v18656_v43 = vrot.slane %v18628_v34, %v23709_v19  ;;  %v18973_v30 = vcombine.low %v18813_v8, %v18814_v13  ;;  %v18325_v29 = vcombine.high %v18323_v45, %v18323_v45  ;;  %v18332_v54 = vrot.slane %v28622_v35, %v23709_v19  ;;  %v30432_v35 = vld [vmem:[#allocation11_spill] sm:$0xff] }
0x1cc8   :  { %v18657_v31 = vcombine.low %v18635_v37, %v18642_v5  ;;  %v18974_v38 = vcombine.low %v18815_v41, %v18816_v47  ;;  %v18981_v18 = vrot.slane %v18971_v55, %v23709_v19  ;;  %v18988_v2 = vrot.slane %v18972_v28, %v23709_v19  ;;  %v30434_v41 = vld [vmem:[#allocation13_spill] sm:$0xff]  ;;  %v30436_v47 = vld [vmem:[#allocation15_spill] sm:$0xff] }
0x1cc9   :  { %v18658_v12 = vcombine.low %v18649_v25, %v18656_v43  ;;  %v18995_v26 = vrot.slane %v18973_v30, %v23709_v19  ;;  %v18339_v11 = vrot.slane %v18323_v45, %v23709_v19  ;;  %v18346_v50 = vrot.slane %v18324_v3, %v23709_v19  ;;  %v30438_v43 = vld [vmem:[#allocation23_spill] sm:$0xff]  ;;  %v30440_v3 = vld [vmem:[#allocation26_spill] sm:$0xff] }
0x1cca   :  { %v18665_v62 = vrot.slane %v18657_v31, %v23709_v19  ;;  %v19002_v32 = vrot.slane %v18974_v38, %v23709_v19  ;;  %v19003_v21 = vcombine.low %v18981_v18, %v18988_v2  ;;  %v18353_v7 = vrot.slane %v18325_v29, %v23709_v19  ;;  %v30442_v31 = vld [vmem:[#allocation29_spill] sm:$0xff] }
0x1ccb   :  { %v18672_v49 = vrot.slane %v18658_v12, %v23709_v19  ;;  %v18354_v57 = vcombine.high %v18332_v54, %v18332_v54  ;;  %v18355_v37 = vcombine.high %v18339_v11, %v18339_v11  ;;  %v18356_v34 = vcombine.high %v18346_v50, %v18346_v50  ;;  %v30444_v2 = vld [vmem:[#allocation17_spill] sm:$0xff] }
0x1ccc   :  { %v19004_v56 = vcombine.low %v18995_v26, %v19002_v32  ;;  %v19011_v8 = vrot.slane %v19003_v21, %v23709_v19  ;;  %v28709_v25 = vadd.f32 %v18332_v54, %v30432_v35  ;;  %v18357_v13 = vcombine.high %v18353_v7, %v18353_v7  ;;  %v30446_v26 = vld [vmem:[#allocation24_spill] sm:$0xff] }
0x1ccd   :  { %v18673_v45 = vcombine.low %v18665_v62, %v18672_v49  ;;  %v28712_v5 = vadd.f32 %v18346_v50, %v30434_v41  ;;  %v28715_v55 = vadd.f32 %v18354_v57, %v30436_v47  ;;  %v28719_v30 = vadd.f32 %v18356_v34, %v30438_v43 }
0x1cce   :  { %30433 = vst [vmem:[#allocation41_spill] sm:$0xff] %v28709_v25  ;;  %v19018_v28 = vrot.slane %v19004_v56, %v23709_v19  ;;  %v28722_v29 = vadd.f32 %v18339_v11, %v30440_v3  ;;  %v28725_v38 = vadd.f32 %v18353_v7, %v30442_v31  ;;  %v28729_v12 = vadd.f32 %v18355_v37, %v30444_v2 }
0x1ccf   :  { %30435 = vst [vmem:[#allocation42_spill] sm:$0xff] %v28712_v5  ;;  %30437 = vst [vmem:[#allocation40_spill] sm:$0xff] %v28715_v55  ;;  %v18780_v18 = vsel %vm832_vm3, %v18673_v45, 0.0  ;;  %v28732_v54 = vadd.f32 %v18357_v13, %v30446_v26  ;;  %v18674_v62 = vcombine.low %v28709_v25, %v28712_v5  ;;  %v18675_v11 = vcombine.low %v28715_v55, %v28719_v30 }
0x1cd0   :  { %30439 = vst [vmem:[#allocation43_spill] sm:$0xff] %v28719_v30  ;;  %30441 = vst [vmem:[#allocation44_spill] sm:$0xff] %v28722_v29  ;;  %v18781_v32 = vadd.f32 %v18780_v18, %v28634_v9  ;;  %v19019_v21 = vcombine.low %v19011_v8, %v19018_v28  ;;  %v18676_v50 = vcombine.low %v28722_v29, %v28725_v38 }
0x1cd1   :  { %30443 = vst [vmem:[#allocation14_spill] sm:$0xff] %v28725_v38  ;;  %30445 = vst [vmem:[#allocation8_spill] sm:$0xff] %v28729_v12  ;;  %v18677_v49 = vcombine.low %v28729_v12, %v28732_v54  ;;  %v18684_v7 = vrot.slane %v18674_v62, %v23709_v19  ;;  %v18817_v57 = vmul.f32 %v28709_v25, %v28709_v25 }
0x1cd2   :  { %30447 = vst [vmem:[#allocation12_spill] sm:$0xff] %v28732_v54  ;;  %v18818_v37 = vmul.f32 %v28712_v5, %v28712_v5  ;;  %v19126_v9 = vsel %vm832_vm3, %v19019_v21, 0.0  ;;  %v18691_v56 = vrot.slane %v18675_v11, %v23709_v19  ;;  %v18698_v8 = vrot.slane %v18676_v50, %v23709_v19 }
0x1cd3   :  { %v18819_v34 = vmul.f32 %v28715_v55, %v28715_v55  ;;  %v19127_v35 = vadd.f32 %v19126_v9, %v28667_v48  ;;  %v18705_v45 = vrot.slane %v18677_v49, %v23709_v19  ;;  %v18820_v13 = vmul.f32 %v28719_v30, %v28719_v30 }
0x1cd4   :  { %v18821_v41 = vmul.f32 %v28722_v29, %v28722_v29  ;;  %v18706_v47 = vcombine.low %v18684_v7, %v18691_v56  ;;  %v18822_v28 = vmul.f32 %v28725_v38, %v28725_v38  ;;  %v18823_v43 = vmul.f32 %v28729_v12, %v28729_v12 }
0x1cd5   :  { %v18824_v3 = vmul.f32 %v28732_v54, %v28732_v54  ;;  %v18707_v31 = vcombine.low %v18698_v8, %v18705_v45  ;;  %v19020_v48 = vcombine.low %v18817_v57, %v18818_v37  ;;  %v19021_v18 = vcombine.low %v18819_v34, %v18820_v13 }
0x1cd6   :  { %v18358_v2 = vcombine.high %v28627_v60, %v28627_v60  ;;  %v18714_v26 = vrot.slane %v18706_v47, %v23709_v19  ;;  %v19022_v62 = vcombine.low %v18821_v41, %v18822_v28  ;;  %v18365_v11 = vrot.slane %v28627_v60, %v23709_v19 }
0x1cd7   :  { %v19023_v21 = vcombine.low %v18823_v43, %v18824_v3  ;;  %v18721_v50 = vrot.slane %v18707_v31, %v23709_v19  ;;  %v19030_v49 = vrot.slane %v19020_v48, %v23709_v19  ;;  %v19037_v7 = vrot.slane %v19021_v18, %v23709_v19  ;;  %v30448_v43 = vld [vmem:[#allocation32_spill] sm:$0xff] }
0x1cd8   :  { %v18372_v9 = vrot.slane %v18358_v2, %v23709_v19  ;;  %v19044_v57 = vrot.slane %v19022_v62, %v23709_v19  ;;  %v18373_v56 = vcombine.high %v18365_v11, %v18365_v11  ;;  %v18381_v8 = vrot.slane %v18365_v11, %v23709_v19  ;;  %v30449_v11 = vld [vmem:[#allocation30_spill] sm:$0xff] }
0x1cd9   :  { %v19051_v37 = vrot.slane %v19023_v21, %v23709_v19  ;;  %v18722_v34 = vcombine.low %v18714_v26, %v18721_v50  ;;  %v19052_v45 = vcombine.low %v19030_v49, %v19037_v7  ;;  %v30450_v7 = vld [vmem:[#allocation18_spill] sm:$0xff] }
0x1cda   :  { %v18374_v13 = vcombine.high %v18372_v9, %v18372_v9  ;;  %v18388_v60 = vrot.slane %v18372_v9, %v23709_v19  ;;  %v18395_v47 = vrot.slane %v18373_v56, %v23709_v19  ;;  %v18403_v28 = vcombine.high %v18381_v8, %v18381_v8  ;;  %v30452_v56 = vld [vmem:[#allocation22_spill] sm:$0xff] }
0x1cdb   :  { %v19053_v41 = vcombine.low %v19044_v57, %v19051_v37  ;;  %v28780_v3 = vadd.f32 %v18381_v8, %v30448_v43  ;;  %v18782_v31 = vsel %vm832_vm3, %v18722_v34, 0.0  ;;  %v19060_v48 = vrot.slane %v19052_v45, %v23709_v19  ;;  %v30451_v57 = vld [vmem:[#allocation20_spill] sm:$0xff]  ;;  %v30453_v45 = vld [vmem:[#allocation19_spill] sm:$0xff]  ;;  %v30455_v43 = vld [vmem:[#allocation21_spill] sm:$0xff] }
0x1cdc   :  { %v18402_v18 = vrot.slane %v18374_v13, %v23709_v19  ;;  %v18404_v2 = vcombine.high %v18388_v60, %v18388_v60  ;;  %v18783_v62 = vadd.f32 %v18782_v31, %v18781_v32  ;;  %v18405_v21 = vcombine.high %v18395_v47, %v18395_v47  ;;  %v30454_v32 = vld [vmem:[#allocation25_spill] sm:$0xff] }
0x1cdd   :  { %v19067_v26 = vrot.slane %v19053_v41, %v23709_v19  ;;  %v28787_v50 = vadd.f32 %v18395_v47, %v30449_v11  ;;  %v28790_v9 = vadd.f32 %v18403_v28, %v30450_v7  ;;  %v28793_v37 = vadd.f32 %v18388_v60, %v30451_v57 }
0x1cde   :  { %v18406_v49 = vcombine.high %v18402_v18, %v18402_v18  ;;  %v28796_v8 = vadd.f32 %v18402_v18, %v30452_v56  ;;  %v28799_v13 = vadd.f32 %v18405_v21, %v30453_v45  ;;  %v28802_v41 = vadd.f32 %v18404_v2, %v30454_v32 }
0x1cdf   :  { %v19068_v34 = vcombine.low %v19060_v48, %v19067_v26  ;;  %v18723_v47 = vcombine.low %v28780_v3, %v28787_v50  ;;  %v18825_v28 = vmul.f32 %v28780_v3, %v28780_v3  ;;  %v18826_v48 = vmul.f32 %v28787_v50, %v28787_v50 }
0x1ce0   :  { %v28807_v31 = vadd.f32 %v18406_v49, %v30455_v43  ;;  %v18725_v60 = vcombine.low %v28793_v37, %v28796_v8  ;;  %v18724_v2 = vcombine.low %v28790_v9, %v28799_v13  ;;  %v18827_v21 = vmul.f32 %v28790_v9, %v28790_v9 }
0x1ce1   :  { %v19128_v18 = vsel %vm832_vm3, %v19068_v34, 0.0  ;;  %v18733_v26 = vrot.slane %v18723_v47, %v23709_v19  ;;  %v18828_v57 = vmul.f32 %v28799_v13, %v28799_v13  ;;  %v18829_v34 = vmul.f32 %v28793_v37, %v28793_v37 }
0x1ce2   :  { %v19129_v11 = vadd.f32 %v19128_v18, %v19127_v35  ;;  %v18726_v49 = vcombine.low %v28802_v41, %v28807_v31  ;;  %v18747_v7 = vrot.slane %v18725_v60, %v23709_v19  ;;  %v18740_v56 = vrot.slane %v18724_v2, %v23709_v19 }
0x1ce3   :  { %v18830_v45 = vmul.f32 %v28796_v8, %v28796_v8  ;;  %v18831_v32 = vmul.f32 %v28802_v41, %v28802_v41  ;;  %v18832_v47 = vmul.f32 %v28807_v31, %v28807_v31  ;;  %v19069_v43 = vcombine.low %v18825_v28, %v18826_v48 }
0x1ce4   :  { %v18754_v35 = vrot.slane %v18726_v49, %v23709_v19  ;;  %v19070_v60 = vcombine.low %v18827_v21, %v18828_v57  ;;  %v18755_v18 = vcombine.low %v18733_v26, %v18740_v56 }
0x1ce5   :  { %v19071_v16 = vcombine.low %v18829_v34, %v18830_v45  ;;  %v19072_v2 = vcombine.low %v18831_v32, %v18832_v47  ;;  %v19079_v17 = vrot.slane %v19069_v43, %v23709_v19 }
0x1ce6   :  { %v18756_v46 = vcombine.low %v18747_v7, %v18754_v35  ;;  %v19086_v4 = vrot.slane %v19070_v60, %v23709_v19  ;;  %v18763_v23 = vrot.slane %v18755_v18, %v23709_v19  ;;  %v30456_v35 = vsub.s32 1, %v30401_v52 }
0x1ce7   :  { %v19093_v6 = vrot.slane %v19071_v16, %v23709_v19  ;;  %v19100_v49 = vrot.slane %v19072_v2, %v23709_v19 }
0x1ce8   :  { %v18770_v10 = vrot.slane %v18756_v46, %v23709_v19  ;;  %v19101_v59 = vcombine.low %v19079_v17, %v19086_v4 }
0x1ce9   :  { %v19102_v28 = vcombine.low %v19093_v6, %v19100_v49 }
0x1cea   :  { %v18771_v53 = vcombine.low %v18763_v23, %v18770_v10  ;;  %v19109_v26 = vrot.slane %v19101_v59, %v23709_v19  ;;  %v19342_v10 = vrot.slane %v28467_v40, %v30456_v35 }
0x1ceb   :  { %v19116_v21 = vrot.slane %v19102_v28, %v23709_v19 }
0x1cec   :  { %v18784_v48 = vsel %vm832_vm3, %v18771_v53, 0.0  ;;  %v30457_v53 = vsub.s32 2, %v30401_v52  ;;  %v19351_v2 = vrot.slane %v19342_v10, %v23709_v19 }
0x1ced   :  { %v18785_v7 = vadd.f32 %v18784_v48, %v18783_v62  ;;  %v19117_v57 = vcombine.low %v19109_v26, %v19116_v21  ;;  %v19344_v62 = vcombine.high %v19342_v10, %v19342_v10 }
0x1cee   :  { %v19444_v59 = vrot.slane %v28467_v40, %v30457_v53 }
0x1cef   :  { %v18786_v56 = vrot.slane %v18785_v7, 4  ;;  %v19130_v34 = vsel %vm832_vm3, %v19117_v57, 0.0  ;;  %v19358_v49 = vrot.slane %v19344_v62, %v23709_v19 }
0x1cf0   :  { %v19131_v46 = vadd.f32 %v19130_v34, %v19129_v11  ;;  %v19446_v60 = vcombine.high %v19444_v59, %v19444_v59  ;;  %v19453_v28 = vrot.slane %v19444_v59, %v23709_v19 }
0x1cf1   :  { %v18787_v45 = vadd.f32 %v18786_v56, %v18785_v7 }
0x1cf2   :  { %v19132_v16 = vrot.slane %v19131_v46, 4  ;;  %v19460_v40 = vrot.slane %v19446_v60, %v23709_v19  ;;  %v30463_v60 = vld [vmem:[#allocation33_spill] sm:$0xff] }
0x1cf3   :  { %v18788_v32 = vrot.slane %v18787_v45, 2 }
0x1cf4   :  { %v19133_v4 = vadd.f32 %v19132_v16, %v19131_v46  ;;  %v19359_v46 = vcombine.high %v19351_v2, %v19351_v2  ;;  %v19461_v16 = vcombine.high %v19453_v28, %v19453_v28  ;;  %v19462_v53 = vcombine.high %v19460_v40, %v19460_v40 }
0x1cf5   :  { %v18789_v23 = vadd.f32 %v18788_v32, %v18787_v45  ;;  %v19360_v32 = vcombine.high %v19358_v49, %v19358_v49 }
0x1cf6   :  { %v19134_v17 = vrot.slane %v19133_v4, 2 }
0x1cf7   :  { %v18790_v6 = vrot.slane %v18789_v23, 1 }
0x1cf8   :  { %v19135_v43 = vadd.f32 %v19134_v17, %v19133_v4 }
0x1cf9   :  { %v18791_v47 = vadd.f32 %v18790_v6, %v18789_v23 }
0x1cfa   :  { %v19136_v11 = vrot.slane %v19135_v43, 1 }
0x1cfb   :  { %v18792_v18 = vmul.f32 0.025, %v18791_v47 }
0x1cfc   :  { %v19137_v48 = vadd.f32 %v19136_v11, %v19135_v43 }
0x1cfd   :  { %v19139_v26 = vmul.f32 %v18792_v18, %v18792_v18  ;;  %v19142_v21 = vcombine.high %v18792_v18, %v18792_v18  ;;  %v19149_v7 = vrot.slane %v18792_v18, %v23709_v19 }
0x1cfe   :  { %v19138_v57 = vmul.f32 0.025, %v19137_v48 }
0x1cff   :  { %v19156_v56 = vrot.slane %v19142_v21, %v23709_v19  ;;  %v19157_v34 = vcombine.high %v19149_v7, %v19149_v7  ;;  %v28859_v45 = vrot.slane %v19149_v7, %v23709_v19  ;;  %v28931_v7 = vrot.slane %v19453_v28, %v23709_v19 }
0x1d00   :  { %v19140_v35 = vsub.f32 %v19138_v57, %v19139_v26  ;;  %v28928_v26 = vrot.slane %v19360_v32, %v23709_v19  ;;  %v28934_v57 = vrot.slane %v19460_v40, %v23709_v19 }
0x1d01   :  { %30458 = vst [vmem:[#allocation7_spill] sm:$0xff] %v28859_v45  ;;  %v19158_v10 = vcombine.high %v19156_v56, %v19156_v56  ;;  %v28862_v23 = vrot.slane %v19156_v56, %v23709_v19  ;;  %v28865_v4 = vrot.slane %v19157_v34, %v23709_v19  ;;  %v28869_v59 = vcombine.high %v28859_v45, %v28859_v45 }
0x1d02   :  { %v19239_v48 = vadd.f32 1e-05, %v19140_v35  ;;  %v28919_v34 = vrot.slane %v19351_v2, %v23709_v19  ;;  %v28922_v35 = vrot.slane %v19358_v49, %v23709_v19  ;;  %v28940_v2 = vrot.slane %v19462_v53, %v23709_v19 }
0x1d03   :  { %v28876_v62 = vrot.slane %v19158_v10, %v23709_v19  ;;  %v28880_v47 = vcombine.high %v28862_v23, %v28862_v23  ;;  %v28884_v43 = vcombine.high %v28865_v4, %v28865_v4  ;;  %v28925_v10 = vrot.slane %v19359_v46, %v23709_v19 }
0x1d04   :  { %23532 = vrsqrt.f32 %v19239_v48  ;;  %v28937_v48 = vrot.slane %v19461_v16, %v23709_v19  ;;  %v28954_v16 = vcombine.high %v28919_v34, %v28919_v34  ;;  %v28964_v32 = vcombine.high %v28922_v35, %v28922_v35 }
0x1d05   :  { %v28896_v21 = vcombine.high %v28876_v62, %v28876_v62  ;;  %v28968_v40 = vcombine.high %v28925_v10, %v28925_v10  ;;  %v28972_v28 = vcombine.high %v28928_v26, %v28928_v26  ;;  %v28976_v53 = vcombine.high %v28931_v7, %v28931_v7 }
0x1d06   :  { %v28980_v49 = vcombine.high %v28934_v57, %v28934_v57  ;;  %v28984_v46 = vcombine.high %v28937_v48, %v28937_v48  ;;  %v28988_v56 = vcombine.high %v28940_v2, %v28940_v2  ;;  %v19207_v11 = vsub.f32 %v28555_v15, %v28859_v45  ;;  %v30462_v15 = vld [vmem:[#allocation37_spill] sm:$0xff] }
0x1d07   :  { %v19215_v17 = vsub.f32 %v28640_v63, %v28859_v45  ;;  %v30464_v63 = vld [vmem:[#allocation35_spill] sm:$0xff]  ;;  %v30467_v27 = vsub.f32 %v28780_v3, %v28859_v45  ;;  %v30468_v6 = vsub.f32 %v28483_v58, %v28859_v45  ;;  %v30470_v58 = vsub.f32 %v28787_v50, %v28865_v4 }
0x1d08   :  { %v30473_v45 = vsub.f32 %v28488_v42, %v28865_v4 }
0x1d0e   :  { %v23533_v18 = vpop.eup %23532 }
0x1d0f   :  { %v19242_v54 = vcombine.high %v23533_v18, %v23533_v18  ;;  %v19249_v12 = vrot.slane %v23533_v18, %v23709_v19 }
0x1d11   :  { %v19256_v18 = vrot.slane %v19242_v54, %v23709_v19  ;;  %v19257_v55 = vcombine.high %v19249_v12, %v19249_v12  ;;  %v29015_v38 = vrot.slane %v19249_v12, %v23709_v19 }
0x1d13   :  { %30461 = vst [vmem:[#allocation27_spill] sm:$0xff] %v29015_v38  ;;  %v19258_v54 = vcombine.high %v19256_v18, %v19256_v18  ;;  %v29028_v1 = vrot.slane %v19256_v18, %v23709_v19  ;;  %v29031_v12 = vrot.slane %v19257_v55, %v23709_v19  ;;  %v29035_v5 = vcombine.high %v29015_v38, %v29015_v38 }
0x1d14   :  { %v19331_v25 = vmul.f32 %v29015_v38, %v30467_v27  ;;  %v19299_v52 = vmul.f32 %v29015_v38, %v30468_v6  ;;  %v19307_v18 = vmul.f32 %v29015_v38, %v19207_v11  ;;  %v29047_v30 = vmul.f32 %v29015_v38, %v19215_v17 }
0x1d15   :  { %v29050_v55 = vrot.slane %v19258_v54, %v23709_v19  ;;  %v29054_v29 = vcombine.high %v29028_v1, %v29028_v1  ;;  %v29058_v27 = vcombine.high %v29031_v12, %v29031_v12  ;;  %v19332_v3 = vmul.f32 %v29031_v12, %v30470_v58 }
0x1d16   :  { %30469 = vst [vmem:[#allocation16_spill] sm:$0xff] %v29047_v30  ;;  %v30471_v6 = vsub.f32 %v28790_v9, %v28869_v59  ;;  %v30472_v11 = vsub.f32 %v28793_v37, %v28862_v23  ;;  %v19433_v38 = vmul.f32 %v28919_v34, %v19331_v25  ;;  %v19300_v30 = vmul.f32 %v29031_v12, %v30473_v45 }
0x1d17   :  { %v29079_v50 = vcombine.high %v29050_v55, %v29050_v55  ;;  %v30474_v9 = vsub.f32 %v28799_v13, %v28884_v43  ;;  %v30475_v37 = vsub.f32 %v28796_v8, %v28876_v62  ;;  %v30476_v25 = vsub.f32 %v28802_v41, %v28880_v47 }
0x1d18   :  { %v19333_v17 = vmul.f32 %v29035_v5, %v30471_v6  ;;  %v19335_v54 = vmul.f32 %v29028_v1, %v30472_v11  ;;  %v29094_v45 = vmul.f32 %v28925_v10, %v19332_v3  ;;  %v30478_v8 = vsub.f32 %v28807_v31, %v28896_v21 }
0x1d19   :  { %v19334_v58 = vmul.f32 %v29058_v27, %v30474_v9  ;;  %v19336_v6 = vmul.f32 %v29050_v55, %v30475_v37  ;;  %v19337_v42 = vmul.f32 %v29054_v29, %v30476_v25  ;;  %v29103_v9 = vadd.f32 %v28931_v7, %v19433_v38 }
0x1d1a   :  { %v29097_v11 = vmul.f32 %v28954_v16, %v19333_v17  ;;  %v29100_v13 = vmul.f32 %v28922_v35, %v19335_v54  ;;  %v29109_v37 = vmul.f32 %v29079_v50, %v30478_v8  ;;  %v30480_v54 = vsub.f32 %v28493_v39, %v28869_v59 }
0x1d1b   :  { %30477 = vst [vmem:[#allocation9_spill] sm:$0xff] %v29103_v9  ;;  %v29112_v41 = vmul.f32 %v28968_v40, %v19334_v58  ;;  %v29115_v3 = vmul.f32 %v28928_v26, %v19336_v6  ;;  %v29118_v17 = vmul.f32 %v28964_v32, %v19337_v42  ;;  %v30481_v31 = vsub.f32 %v28502_v14, %v28884_v43 }
0x1d1c   :  { %v19301_v38 = vmul.f32 %v29035_v5, %v30480_v54  ;;  %v30482_v58 = vsub.f32 %v28496_v20, %v28862_v23  ;;  %v30483_v6 = vsub.f32 %v28505_v51, %v28876_v62  ;;  %v30484_v39 = vsub.f32 %v28508_v22, %v28880_v47 }
0x1d1d   :  { %30479 = vst [vmem:[#allocation10_spill] sm:$0xff] %v29118_v17  ;;  %v19302_v25 = vmul.f32 %v29058_v27, %v30481_v31  ;;  %v30485_v14 = vsub.f32 %v28520_v33, %v28896_v21  ;;  %v19401_v9 = vmul.f32 %v28919_v34, %v19299_v52  ;;  %v19402_v20 = vmul.f32 %v28925_v10, %v19300_v30 }
0x1d1e   :  { %v19303_v8 = vmul.f32 %v29028_v1, %v30482_v58  ;;  %v19304_v42 = vmul.f32 %v29050_v55, %v30483_v6  ;;  %v19305_v54 = vmul.f32 %v29054_v29, %v30484_v39  ;;  %v19403_v58 = vmul.f32 %v28954_v16, %v19301_v38 }
0x1d1f   :  { %v19306_v31 = vmul.f32 %v29079_v50, %v30485_v14  ;;  %v19404_v51 = vmul.f32 %v28968_v40, %v19302_v25  ;;  %v29153_v33 = vadd.f32 %v28931_v7, %v19401_v9  ;;  %v29156_v14 = vadd.f32 %v28937_v48, %v19402_v20 }
0x1d20   :  { %v19405_v6 = vmul.f32 %v28922_v35, %v19303_v8  ;;  %v19406_v17 = vmul.f32 %v28928_v26, %v19304_v42  ;;  %v19407_v22 = vmul.f32 %v28964_v32, %v19305_v54  ;;  %v29159_v52 = vadd.f32 %v28976_v53, %v19403_v58 }
0x1d21   :  { %v19408_v39 = vmul.f32 %v28972_v28, %v19306_v31  ;;  %30486 = vst [vmem:[#allocation11_spill] sm:$0xff] %v29156_v14  ;;  %v29162_v30 = vadd.f32 %v28984_v46, %v19404_v51  ;;  %v19591_v42 = vcombine.low %v29153_v33, %v29156_v14  ;;  %v30493_v54 = vsub.f32 %v28559_v0, %v28865_v4 }
0x1d22   :  { %30487 = vst [vmem:[#allocation13_spill] sm:$0xff] %v29159_v52  ;;  %v29165_v38 = vadd.f32 %v28934_v57, %v19405_v6  ;;  %v29168_v25 = vadd.f32 %v28940_v2, %v19406_v17  ;;  %v29171_v8 = vadd.f32 %v28980_v49, %v19407_v22  ;;  %v30494_v58 = vsub.f32 %v28562_v24, %v28869_v59 }
0x1d23   :  { %30488 = vst [vmem:[#allocation15_spill] sm:$0xff] %v29162_v30  ;;  %v29174_v9 = vadd.f32 %v28988_v56, %v19408_v39  ;;  %v19308_v31 = vmul.f32 %v29031_v12, %v30493_v54  ;;  %v19592_v20 = vcombine.low %v29159_v52, %v29162_v30  ;;  %v30495_v6 = vsub.f32 %v28566_v44, %v28884_v43 }
0x1d24   :  { %30489 = vst [vmem:[#allocation23_spill] sm:$0xff] %v29165_v38  ;;  %30490 = vst [vmem:[#allocation26_spill] sm:$0xff] %v29168_v25  ;;  %v19593_v17 = vcombine.low %v29165_v38, %v29168_v25  ;;  %v19309_v51 = vmul.f32 %v29035_v5, %v30494_v58  ;;  %v19601_v39 = vrot.slane %v19591_v42, %v23709_v19  ;;  %v30500_v42 = vld [vmem:[#allocation31_spill] sm:$0xff] }
0x1d25   :  { %30491 = vst [vmem:[#allocation29_spill] sm:$0xff] %v29171_v8  ;;  %30492 = vst [vmem:[#allocation17_spill] sm:$0xff] %v29174_v9  ;;  %v19310_v22 = vmul.f32 %v29058_v27, %v30495_v6  ;;  %v19594_v0 = vcombine.low %v29171_v8, %v29174_v9  ;;  %v30496_v54 = vsub.f32 %v28569_v61, %v28862_v23  ;;  %v30498_v6 = vld [vmem:[#allocation28_spill] sm:$0xff] }
0x1d26   :  { %v30497_v24 = vsub.f32 %v28572_v36, %v28876_v62  ;;  %v19608_v30 = vrot.slane %v19592_v20, %v23709_v19  ;;  %v19615_v44 = vrot.slane %v19593_v17, %v23709_v19  ;;  %v30499_v38 = vsub.f32 %v30498_v6, %v28880_v47 }
0x1d27   :  { %v19311_v25 = vmul.f32 %v29028_v1, %v30496_v54  ;;  %v30501_v8 = vsub.f32 %v30500_v42, %v28896_v21  ;;  %v19622_v54 = vrot.slane %v19594_v0, %v23709_v19  ;;  %v19409_v36 = vmul.f32 %v28919_v34, %v19307_v18 }
0x1d28   :  { %v19312_v58 = vmul.f32 %v29050_v55, %v30497_v24  ;;  %v19313_v9 = vmul.f32 %v29054_v29, %v30499_v38  ;;  %v19410_v24 = vmul.f32 %v28925_v10, %v19308_v31  ;;  %v19411_v20 = vmul.f32 %v28954_v16, %v19309_v51 }
0x1d29   :  { %v19314_v61 = vmul.f32 %v29079_v50, %v30501_v8  ;;  %v19623_v52 = vcombine.low %v19601_v39, %v19608_v30  ;;  %v19412_v17 = vmul.f32 %v28968_v40, %v19310_v22  ;;  %v19413_v6 = vmul.f32 %v28922_v35, %v19311_v25 }
0x1d2a   :  { %v19414_v38 = vmul.f32 %v28928_v26, %v19312_v58  ;;  %v19624_v14 = vcombine.low %v19615_v44, %v19622_v54  ;;  %v19415_v42 = vmul.f32 %v28964_v32, %v19313_v9  ;;  %v29225_v0 = vadd.f32 %v28931_v7, %v19409_v36 }
0x1d2b   :  { %v19416_v8 = vmul.f32 %v28972_v28, %v19314_v61  ;;  %v19631_v18 = vrot.slane %v19623_v52, %v23709_v19  ;;  %v29229_v31 = vadd.f32 %v28937_v48, %v19410_v24  ;;  %v29232_v30 = vadd.f32 %v28976_v53, %v19411_v20  ;;  %v30508_v61 = vld [vmem:[#allocation34_spill] sm:$0xff]  ;;  %v30510_v20 = vld [vmem:[#allocation36_spill] sm:$0xff] }
0x1d2c   :  { %v29235_v25 = vadd.f32 %v28984_v46, %v19412_v17  ;;  %v19638_v51 = vrot.slane %v19624_v14, %v23709_v19  ;;  %v29239_v9 = vadd.f32 %v28934_v57, %v19413_v6  ;;  %v29242_v22 = vadd.f32 %v28940_v2, %v19414_v38 }
0x1d2d   :  { %30502 = vst [vmem:[#allocation24_spill] sm:$0xff] %v29232_v30  ;;  %v29245_v39 = vadd.f32 %v28980_v49, %v19415_v42  ;;  %v29248_v52 = vadd.f32 %v28988_v56, %v19416_v8  ;;  %v19640_v58 = vcombine.low %v29225_v0, %v29229_v31  ;;  %v30509_v14 = vsub.f32 %v30508_v61, %v28865_v4 }
0x1d2e   :  { %30503 = vst [vmem:[#allocation32_spill] sm:$0xff] %v29235_v25  ;;  %30504 = vst [vmem:[#allocation30_spill] sm:$0xff] %v29239_v9  ;;  %v19641_v44 = vcombine.low %v29232_v30, %v29235_v25  ;;  %v19639_v36 = vcombine.low %v19631_v18, %v19638_v51  ;;  %v19642_v24 = vcombine.low %v29239_v9, %v29242_v22 }
0x1d2f   :  { %30505 = vst [vmem:[#allocation18_spill] sm:$0xff] %v29242_v22  ;;  %30506 = vst [vmem:[#allocation20_spill] sm:$0xff] %v29245_v39  ;;  %v19316_v54 = vmul.f32 %v29031_v12, %v30509_v14  ;;  %v30511_v17 = vsub.f32 %v30510_v20, %v28869_v59  ;;  %v30512_v38 = vsub.f32 %v30462_v15, %v28884_v43  ;;  %v30520_v22 = vld [vmem:[#allocation16_spill] sm:$0xff] }
0x1d30   :  { %30507 = vst [vmem:[#allocation22_spill] sm:$0xff] %v29248_v52  ;;  %v19643_v8 = vcombine.low %v29245_v39, %v29248_v52  ;;  %v19650_v61 = vrot.slane %v19640_v58, %v23709_v19  ;;  %v19657_v18 = vrot.slane %v19641_v44, %v23709_v19  ;;  %v30513_v51 = vsub.f32 %v30463_v60, %v28862_v23  ;;  %v30517_v44 = vld [vmem:[#allocation39_spill] sm:$0xff] }
0x1d31   :  { %v19317_v6 = vmul.f32 %v29035_v5, %v30511_v17  ;;  %v19318_v42 = vmul.f32 %v29058_v27, %v30512_v38  ;;  %23057 = vmatmul.mubr.msk.f32.vlgmr.msra.gmra.mrb[160].mxu0 %vm832_vm3, %v19639_v36  ;;  %v19664_v20 = vrot.slane %v19642_v24, %v23709_v19  ;;  %v30514_v15 = vsub.f32 %v30464_v63, %v28876_v62  ;;  %v30515_v38 = vld [vmem:[#allocation38_spill] sm:$0xff] }
0x1d32   :  { %v19319_v14 = vmul.f32 %v29028_v1, %v30513_v51  ;;  %v30516_v52 = vsub.f32 %v30515_v38, %v28880_v47  ;;  %v30518_v39 = vsub.f32 %v30517_v44, %v28896_v21  ;;  %v30519_v51 = vmov 0.0  }
0x1d33   :  { %v19320_v17 = vmul.f32 %v29050_v55, %v30514_v15  ;;  %23059 = vmatprep.mubr.msk.f32.mxu0 %vm23573_vm1, %v30519_v51  ;;  %v19671_v36 = vrot.slane %v19643_v8, %v23709_v19  ;;  %v19672_v24 = vcombine.low %v19650_v61, %v19657_v18  ;;  %v19417_v63 = vmul.f32 %v28919_v34, %v30520_v22 }
0x1d34   :  { %v19321_v58 = vmul.f32 %v29054_v29, %v30516_v52  ;;  %v19322_v60 = vmul.f32 %v29079_v50, %v30518_v39  ;;  %v19418_v15 = vmul.f32 %v28925_v10, %v19316_v54  ;;  %v19419_v38 = vmul.f32 %v28954_v16, %v19317_v6 }
0x1d35   :  { %v19420_v52 = vmul.f32 %v28968_v40, %v19318_v42  ;;  %v19421_v25 = vmul.f32 %v28922_v35, %v19319_v14  ;;  %v19422_v44 = vmul.f32 %v28928_v26, %v19320_v17  ;;  %v19673_v39 = vcombine.low %v19664_v20, %v19671_v36  ;;  %v30524_v36 = vld [vmem:[#allocation41_spill] sm:$0xff] }
0x1d36   :  { %v19680_v9 = vrot.slane %v19672_v24, %v23709_v19  ;;  %v19423_v30 = vmul.f32 %v28964_v32, %v19321_v58  ;;  %v19424_v8 = vmul.f32 %v28972_v28, %v19322_v60  ;;  %v29304_v61 = vadd.f32 %v28931_v7, %v19417_v63  ;;  %v30525_v24 = vld [vmem:[#allocation7_spill] sm:$0xff] }
0x1d37   :  { %v29307_v22 = vadd.f32 %v28937_v48, %v19418_v15  ;;  %v29310_v54 = vadd.f32 %v28976_v53, %v19419_v38  ;;  %v29313_v6 = vadd.f32 %v28984_v46, %v19420_v52  ;;  %v19687_v42 = vrot.slane %v19673_v39, %v23709_v19 }
0x1d38   :  { %30521 = vst [vmem:[#allocation19_spill] sm:$0xff] %v29304_v61  ;;  %v29317_v18 = vadd.f32 %v28934_v57, %v19421_v25  ;;  %v29320_v14 = vadd.f32 %v28940_v2, %v19422_v44  ;;  %v29323_v20 = vadd.f32 %v28980_v49, %v19423_v30  ;;  %v29326_v17 = vadd.f32 %v28988_v56, %v19424_v8  ;;  %v30527_v25 = vld [vmem:[#allocation27_spill] sm:$0xff]  ;;  %v30528_v30 = vld [vmem:[#allocation42_spill] sm:$0xff]  ;;  %v30530_v8 = vld [vmem:[#allocation40_spill] sm:$0xff] }
0x1d39   :  { %30522 = vst [vmem:[#allocation25_spill] sm:$0xff] %v29307_v22  ;;  %30523 = vst [vmem:[#allocation21_spill] sm:$0xff] %v29313_v6  ;;  %v19689_v58 = vcombine.low %v29304_v61, %v29307_v22  ;;  %v19690_v60 = vcombine.low %v29310_v54, %v29313_v6  ;;  %v30526_v63 = vsub.f32 %v30524_v36, %v30525_v24 }
0x1d3a   :  { %v19688_v38 = vcombine.low %v19680_v9, %v19687_v42  ;;  %v19691_v52 = vcombine.low %v29317_v18, %v29320_v14  ;;  %v30529_v44 = vsub.f32 %v30528_v30, %v28865_v4  ;;  %v30531_v22 = vsub.f32 %v30530_v8, %v28869_v59  ;;  %v30532_v42 = vld [vmem:[#allocation43_spill] sm:$0xff] }
0x1d3b   :  { %v19323_v15 = vmul.f32 %v30527_v25, %v30526_v63  ;;  %v19692_v6 = vcombine.low %v29323_v20, %v29326_v17  ;;  %v19699_v36 = vrot.slane %v19689_v58, %v23709_v19  ;;  %v19706_v9 = vrot.slane %v19690_v60, %v23709_v19  ;;  %v30538_v60 = vld [vmem:[#allocation8_spill] sm:$0xff] }
0x1d3c   :  { %v19324_v39 = vmul.f32 %v29031_v12, %v30529_v44  ;;  %v19325_v61 = vmul.f32 %v29035_v5, %v30531_v22  ;;  %v30533_v24 = vsub.f32 %v30532_v42, %v28884_v43  ;;  %23060 = vmatmul.mubr.msk.f32.gmra.mrb[162].mxu0 %vm832_vm3, %v19688_v38  ;;  %v19713_v4 = vrot.slane %v19691_v52, %v23709_v19  ;;  %v30534_v12 = vld [vmem:[#allocation44_spill] sm:$0xff]  ;;  %v30536_v22 = vld [vmem:[#allocation14_spill] sm:$0xff] }
0x1d3d   :  { %v30535_v59 = vsub.f32 %v30534_v12, %v28862_v23  ;;  %v30537_v25 = vsub.f32 %v30536_v22, %v28876_v62  ;;  %v30539_v30 = vsub.f32 %v30538_v60, %v28880_v47  ;;  %23062 = vmatprep.mubr.msk.f32.mxu0 %vm23573_vm1, %v30519_v51  ;;  %v19721_v38 = vcombine.low %v19699_v36, %v19706_v9  ;;  %v30540_v52 = vld [vmem:[#allocation12_spill] sm:$0xff]  ;;  %v30543_v22 = vld [vmem:[#allocation9_spill] sm:$0xff] }
0x1d3e   :  { %v19326_v63 = vmul.f32 %v29058_v27, %v30533_v24  ;;  %v19720_v27 = vrot.slane %v19692_v6, %v23709_v19  ;;  %v30541_v23 = vsub.f32 %v30540_v52, %v28896_v21  ;;  %v19425_v62 = vmul.f32 %v28919_v34, %v19323_v15 }
0x1d3f   :  { %v19327_v5 = vmul.f32 %v29028_v1, %v30535_v59  ;;  %v19328_v58 = vmul.f32 %v29050_v55, %v30537_v25  ;;  %v19329_v43 = vmul.f32 %v29054_v29, %v30539_v30  ;;  %v19426_v55 = vmul.f32 %v28925_v10, %v19324_v39 }
0x1d40   :  { %v19330_v1 = vmul.f32 %v29079_v50, %v30541_v23  ;;  %v19427_v44 = vmul.f32 %v28954_v16, %v19325_v61  ;;  %v19428_v47 = vmul.f32 %v28968_v40, %v19326_v63  ;;  %v19722_v8 = vcombine.low %v19713_v4, %v19720_v27 }
0x1d41   :  { %v19429_v29 = vmul.f32 %v28922_v35, %v19327_v5  ;;  %v19729_v42 = vrot.slane %v19721_v38, %v23709_v19  ;;  %v19430_v6 = vmul.f32 %v28928_v26, %v19328_v58  ;;  %v19431_v36 = vmul.f32 %v28964_v32, %v19329_v43 }
0x1d42   :  { %v19432_v21 = vmul.f32 %v28972_v28, %v19330_v1  ;;  %v29385_v50 = vadd.f32 %v28931_v7, %v19425_v62  ;;  %v29388_v34 = vadd.f32 %v28937_v48, %v19426_v55  ;;  %v29391_v10 = vadd.f32 %v28976_v53, %v19427_v44  ;;  %v21872_v44 = vld [vmem:[%s29852_s7 + $0x40] sm:$0xff] }
0x1d43   :  { %v19736_v35 = vrot.slane %v19722_v8, %v23709_v19  ;;  %v29395_v40 = vadd.f32 %v28984_v46, %v19428_v47  ;;  %v29398_v26 = vadd.f32 %v28934_v57, %v19429_v29  ;;  %v29401_v32 = vadd.f32 %v28940_v2, %v19430_v6  ;;  %v21873_v47 = vld [vmem:[%s29852_s7 + $0x48] sm:$0xff]  ;;  %v21875_v6 = vld [vmem:[%s29852_s7 + $0x58] sm:$0xff] }
0x1d44   :  { %v29404_v7 = vadd.f32 %v28980_v49, %v19431_v36  ;;  %v29407_v16 = vadd.f32 %v28988_v56, %v19432_v21  ;;  %v19738_v61 = vcombine.low %v29385_v50, %v29388_v34  ;;  %v19440_v15 = vmul.f32 %v28972_v28, %v29109_v37  ;;  %v21876_v21 = vld [vmem:[%s29852_s7 + $0x60] sm:$0xff] }
0x1d45   :  { %v19737_v39 = vcombine.low %v19729_v42, %v19736_v35  ;;  %v19739_v9 = vcombine.low %v29391_v10, %v29395_v40  ;;  %v19740_v24 = vcombine.low %v29398_v26, %v29401_v32  ;;  %v29419_v63 = vadd.f32 %v28937_v48, %v29094_v45  ;;  %v21874_v42 = vld [vmem:[%s29852_s7 + $0x50] sm:$0xff]  ;;  %v21877_v35 = vld [vmem:[%s29852_s7 + $0x68] sm:$0xff] }
0x1d46   :  { %v19741_v4 = vcombine.low %v29404_v7, %v29407_v16  ;;  %v19748_v12 = vrot.slane %v19738_v61, %v23709_v19  ;;  %v29426_v59 = vadd.f32 %v28976_v53, %v29097_v11  ;;  %v29430_v28 = vadd.f32 %v28984_v46, %v29112_v41  ;;  %v30542_v53 = vld [vmem:[#allocation10_spill] sm:$0xff] }
0x1d47   :  { %23063 = vmatmul.mubr.msk.f32.gmra.mrb[164].mxu0 %vm832_vm3, %v19737_v39  ;;  %v19755_v37 = vrot.slane %v19739_v9, %v23709_v19  ;;  %v19762_v48 = vrot.slane %v19740_v24, %v23709_v19  ;;  %v29437_v45 = vadd.f32 %v28934_v57, %v29100_v13  ;;  %v29441_v5 = vadd.f32 %v28940_v2, %v29115_v3  ;;  %v21879_v39 = vld [vmem:[%s29852_s7 + $0x78] sm:$0xff]  ;;  %v21866_v24 = vld [vmem:[%s29851_s6 + $0x1] ss:$0 sm:$0xff] }
0x1d48   :  { %23065 = vmatprep.mubr.msk.f32.mxu0 %vm23573_vm1, %v30519_v51  ;;  %v19769_v46 = vrot.slane %v19741_v4, %v23709_v19  ;;  %v29448_v11 = vadd.f32 %v28980_v49, %v30542_v53  ;;  %v29451_v41 = vadd.f32 %v28988_v56, %v19440_v15  ;;  %v19787_v57 = vcombine.low %v30543_v22, %v29419_v63  ;;  %v21878_v15 = vld [vmem:[%s29852_s7 + $0x70] sm:$0xff] }
0x1d49   :  { %v19770_v13 = vcombine.low %v19748_v12, %v19755_v37  ;;  %v19788_v2 = vcombine.low %v29426_v59, %v29430_v28  ;;  %v19789_v3 = vcombine.low %v29437_v45, %v29441_v5  ;;  %v23186_v29 = vpack.c.bf16 %v21873_v47, %v21872_v44 }
0x1d4a   :  { %v19771_v25 = vcombine.low %v19762_v48, %v19769_v46  ;;  %v19790_v58 = vcombine.low %v29448_v11, %v29451_v41  ;;  %v19797_v49 = vrot.slane %v19787_v57, %v23709_v19  ;;  %v30544_v8 = vmov 0.0|0.0  }
0x1d4b   :  { %v19804_v60 = vrot.slane %v19788_v2, %v23709_v19  ;;  %v19778_v56 = vrot.slane %v19770_v13, %v23709_v19  ;;  %v19811_v43 = vrot.slane %v19789_v3, %v23709_v19  ;;  %23187 = vmatpush3.bf16.msra.mxu1 %v23186_v29  ;;  %v23189_v36 = vpack.c.bf16 %v21875_v6, %v21874_v42 }
0x1d4c   :  { %v19785_v30 = vrot.slane %v19771_v25, %v23709_v19  ;;  %v19818_v27 = vrot.slane %v19790_v58, %v23709_v19  ;;  %23188 = vmatprep.subr.bf16.mxu1 %v30544_v8  ;;  %v23192_v61 = vpack.c.bf16 %v21877_v35, %v21876_v21  ;;  %v23195_v9 = vpack.c.bf16 %v21879_v39, %v21878_v15 }
0x1d4d   :  { %v19819_v38 = vcombine.low %v19797_v49, %v19804_v60 }
0x1d4e   :  { %v19786_v52 = vcombine.low %v19778_v56, %v19785_v30  ;;  %v19820_v23 = vcombine.low %v19811_v43, %v19818_v27 }
0x1d4f   :  { %v19827_v1 = vrot.slane %v19819_v38, %v23709_v19  ;;  %23190 = vmatpush3.bf16.msra.mxu1 %v23189_v36 }
0x1d50   :  { %23066 = vmatmul.mubr.msk.f32.gmra.mrb[166].mxu0 %vm832_vm3, %v19786_v52  ;;  %v19834_v62 = vrot.slane %v19820_v23, %v23709_v19  ;;  %23191 = vmatprep.subr.bf16.mxu1 %v30544_v8 }
0x1d51   :  { %23068 = vmatprep.mubr.msk.f32.mxu0 %vm23573_vm1, %v30519_v51 }
0x1d52   :  { %v19835_v55 = vcombine.low %v19827_v1, %v19834_v62 }
0x1d53   :  { %23193 = vmatpush3.bf16.msra.mxu1 %v23192_v61 }
0x1d54   :  { %23069 = vmatmul.mubr.msk.f32.gmra.mrb[168].mxu0 %vm832_vm3, %v19835_v55  ;;  %23194 = vmatprep.subr.bf16.mxu1 %v30544_v8 }
0x1d55   :  { %23134 = vmatprep.mubr.msk.f32.mxu0 %vm23573_vm1, %v30519_v51 }
0x1d57   :  { %23196 = vmatpush3.bf16.msra.mxu1 %v23195_v9 }
0x1e04   :  { %v19928_v4 = vpop.f32.mrb[160].mxu0 }
0x1e05   :  { %v19929_v12 = vadd.f32 %v21866_v24, %v19928_v4  ;;  %v23058_v37 = vpop.f32.mrb[161].mxu0 }
0x1e07   :  { %v19957_v48 = vmul.f32 0.70710677, %v19929_v12  ;;  %v19952_v3 = vmul.f32 0.5, %v19929_v12 }
0x1e09   :  { %23534 = verf.f32 %v19957_v48  ;;  %v29521_v48 = vld [vmem:[%s29853_s8 + $0x8] sm:$0x3f] }
0x1e0f   :  { %v19933_v46 = vpop.f32.mrb[162].mxu0 }
0x1e10   :  { %v19934_v53 = vadd.f32 %v21866_v24, %v19933_v46  ;;  %v23061_v57 = vpop.f32.mrb[163].mxu0  ;;  %v30545_v46 = vld [vmem:[#allocation6_spill] sm:$0xff] }
0x1e12   :  { %v19958_v13 = vmul.f32 0.70710677, %v19934_v53  ;;  %v19953_v27 = vmul.f32 0.5, %v19934_v53  ;;  %v30546_v53 = vsub.s32 3, %v30545_v46 }
0x1e13   :  { %v23535_v2 = vpop.eup %23534 }
0x1e14   :  { %23536 = verf.f32 %v19958_v13  ;;  %v19967_v25 = vadd.f32 1.0, %v23535_v2  ;;  %v29526_v57 = vrot.slane %v29521_v48, %v30546_v53 }
0x1e16   :  { %v19972_v58 = vmul.f32 %v19967_v25, %v19952_v3 }
0x1e18   :  { %23088 = vmatmul.mubr.msk.f32.vlgmr.msra.gmra.mrb[166].mxu1 %vm9485_vm10, %v19972_v58 }
0x1e19   :  { %23090 = vmatprep.mubr.msk.f32.mxu1 %vm23573_vm1, %v30519_v51 }
0x1e1a   :  { %v19938_v49 = vpop.f32.mrb[164].mxu0 }
0x1e1b   :  { %v19939_v60 = vadd.f32 %v21866_v24, %v19938_v49  ;;  %v23064_v56 = vpop.f32.mrb[165].mxu0 }
0x1e1d   :  { %v19959_v30 = vmul.f32 0.70710677, %v19939_v60  ;;  %v19954_v6 = vmul.f32 0.5, %v19939_v60 }
0x1e1e   :  { %v23537_v43 = vpop.eup %23536 }
0x1e1f   :  { %23538 = verf.f32 %v19959_v30  ;;  %v19968_v38 = vadd.f32 1.0, %v23537_v43 }
0x1e21   :  { %v19973_v52 = vmul.f32 %v19968_v38, %v19953_v27 }
0x1e23   :  { %v19943_v23 = vpop.f32.mrb[166].mxu0  ;;  %23091 = vmatmul.mubr.msk.f32.gmra.mrb[168].mxu1 %vm9485_vm10, %v19973_v52 }
0x1e24   :  { %v19944_v1 = vadd.f32 %v21866_v24, %v19943_v23  ;;  %v23067_v62 = vpop.f32.mrb[167].mxu0  ;;  %23093 = vmatprep.mubr.msk.f32.mxu1 %vm23573_vm1, %v30519_v51 }
0x1e25   :  { %v30547_v62 = vld [vmem:[#allocation11_spill] sm:$0xff] }
0x1e26   :  { %v19960_v55 = vmul.f32 0.70710677, %v19944_v1  ;;  %v19955_v15 = vmul.f32 0.5, %v19944_v1 }
0x1e27   :  { %v19948_v44 = vpop.f32.mrb[168].mxu0 }
0x1e28   :  { %23540 = verf.f32 %v19960_v55  ;;  %v19949_v47 = vadd.f32 %v21866_v24, %v19948_v44  ;;  %v23070_v29 = vpop.f32.mrb[169].mxu0 }
0x1e29   :  { %v23539_v42 = vpop.eup %23538 }
0x1e2a   :  { %v19969_v36 = vadd.f32 1.0, %v23539_v42  ;;  %v19961_v21 = vmul.f32 0.70710677, %v19949_v47  ;;  %v19956_v12 = vmul.f32 0.5, %v19949_v47  ;;  %v30548_v47 = vld [vmem:[#allocation13_spill] sm:$0xff]  ;;  %v30549_v42 = vld [vmem:[#allocation23_spill] sm:$0xff] }
0x1e2c   :  { %v19974_v35 = vmul.f32 %v19969_v36, %v19954_v6  ;;  %23542 = verf.f32 %v19961_v21 }
0x1e2e   :  { %23094 = vmatmul.mubr.msk.f32.gmra.mrb[170].mxu1 %vm9485_vm10, %v19974_v35 }
0x1e2f   :  { %23096 = vmatprep.mubr.msk.f32.mxu1 %vm23573_vm1, %v30519_v51 }
0x1e32   :  { %v23541_v61 = vpop.eup %23540 }
0x1e33   :  { %v19970_v39 = vadd.f32 1.0, %v23541_v61 }
0x1e35   :  { %v19975_v9 = vmul.f32 %v19970_v39, %v19955_v15  ;;  %v30550_v15 = vld [vmem:[#allocation15_spill] sm:$0xff] }
0x1e36   :  { %v23543_v4 = vpop.eup %23542 }
0x1e37   :  { %v19971_v37 = vadd.f32 1.0, %v23543_v4  ;;  %23097 = vmatmul.mubr.msk.f32.gmra.mrb[172].mxu1 %vm9485_vm10, %v19975_v9  ;;  %v30552_v4 = vld [vmem:[#allocation29_spill] sm:$0xff] }
0x1e38   :  { %23099 = vmatprep.mubr.msk.f32.mxu1 %vm23573_vm1, %v30519_v51 }
0x1e39   :  { %v19976_v24 = vmul.f32 %v19971_v37, %v19956_v12 }
0x1e3b   :  { %23100 = vmatmul.mubr.msk.f32.gmra.mrb[174].mxu1 %vm9485_vm10, %v19976_v24 }
0x1eeb   :  { %v20071_v13 = vpop.f32.mrb[166].mxu1 }
0x1eec   :  { %v20072_v2 = vadd.f32 %v20071_v13, %v29526_v57  ;;  %v23089_v3 = vpop.f32.mrb[167].mxu1 }
0x1eee   :  { %v20100_v25 = vcombine.high %v20072_v2, %v20072_v2  ;;  %v20107_v51 = vrot.slane %v20072_v2, %v23709_v19  ;;  %v30553_v2 = vld [vmem:[#allocation17_spill] sm:$0xff] }
0x1ef0   :  { %v20114_v58 = vrot.slane %v20100_v25, %v23709_v19  ;;  %v20115_v49 = vcombine.high %v20107_v51, %v20107_v51  ;;  %v20123_v60 = vrot.slane %v20107_v51, %v23709_v19 }
0x1ef2   :  { %v20116_v56 = vcombine.high %v20114_v58, %v20114_v58  ;;  %v20130_v30 = vrot.slane %v20114_v58, %v23709_v19  ;;  %v20137_v43 = vrot.slane %v20115_v49, %v23709_v19  ;;  %v20145_v27 = vcombine.high %v20123_v60, %v20123_v60 }
0x1ef3   :  { %v20385_v38 = vadd.f32 %v20123_v60, %v29153_v33  ;;  %v30551_v33 = vld [vmem:[#allocation26_spill] sm:$0xff] }
0x1ef4   :  { %v20144_v52 = vrot.slane %v20116_v56, %v23709_v19  ;;  %v20146_v23 = vcombine.high %v20130_v30, %v20130_v30  ;;  %v20147_v1 = vcombine.high %v20137_v43, %v20137_v43  ;;  %v20386_v55 = vadd.f32 %v20137_v43, %v30547_v62 }
0x1ef5   :  { %v20387_v29 = vadd.f32 %v20145_v27, %v30548_v47  ;;  %v29539_v6 = vadd.f32 %v20130_v30, %v30549_v42  ;;  %v20731_v36 = vmul.f32 %v20385_v38, %v20385_v38 }
0x1ef6   :  { %v20076_v44 = vpop.f32.mrb[168].mxu1  ;;  %v20148_v61 = vcombine.high %v20144_v52, %v20144_v52  ;;  %v20388_v39 = vadd.f32 %v20147_v1, %v30550_v15  ;;  %v20390_v9 = vadd.f32 %v20144_v52, %v30551_v33  ;;  %v20391_v12 = vadd.f32 %v20146_v23, %v30552_v4  ;;  %v21435_v23 = vld [vmem:[%s29854_s9] sm:$0xff]  ;;  %v21436_v1 = vld [vmem:[%s29854_s9 + $0x8] sm:$0xff] }
0x1ef7   :  { %v20077_v21 = vadd.f32 %v20076_v44, %v29526_v57  ;;  %v23092_v35 = vpop.f32.mrb[169].mxu1  ;;  %v20465_v37 = vcombine.low %v20385_v38, %v20386_v55  ;;  %v20732_v24 = vmul.f32 %v20386_v55, %v20386_v55  ;;  %v20733_v53 = vmul.f32 %v20387_v29, %v20387_v29 }
0x1ef8   :  { %v20735_v13 = vmul.f32 %v29539_v6, %v29539_v6  ;;  %v20392_v3 = vadd.f32 %v20148_v61, %v30553_v2  ;;  %v20466_v25 = vcombine.low %v20387_v29, %v20388_v39  ;;  %v20467_v51 = vcombine.low %v29539_v6, %v20390_v9 }
0x1ef9   :  { %v20734_v58 = vmul.f32 %v20388_v39, %v20388_v39  ;;  %v20475_v49 = vrot.slane %v20465_v37, %v23709_v19  ;;  %v20736_v60 = vmul.f32 %v20390_v9, %v20390_v9  ;;  %v20737_v56 = vmul.f32 %v20391_v12, %v20391_v12 }
0x1efa   :  { %v20811_v30 = vcombine.low %v20731_v36, %v20732_v24  ;;  %v20468_v43 = vcombine.low %v20391_v12, %v20392_v3  ;;  %v20482_v27 = vrot.slane %v20466_v25, %v23709_v19  ;;  %v20489_v38 = vrot.slane %v20467_v51, %v23709_v19 }
0x1efb   :  { %v20738_v52 = vmul.f32 %v20392_v3, %v20392_v3  ;;  %v20812_v62 = vcombine.low %v20733_v53, %v20734_v58  ;;  %v20813_v55 = vcombine.low %v20735_v13, %v20736_v60  ;;  %v20149_v47 = vcombine.high %v20077_v21, %v20077_v21 }
0x1efc   :  { %v20821_v44 = vrot.slane %v20811_v30, %v23709_v19  ;;  %v20496_v29 = vrot.slane %v20468_v43, %v23709_v19  ;;  %v20497_v42 = vcombine.low %v20475_v49, %v20482_v27  ;;  %v20156_v35 = vrot.slane %v20077_v21, %v23709_v19 }
0x1efd   :  { %v20814_v36 = vcombine.low %v20737_v56, %v20738_v52  ;;  %v20828_v61 = vrot.slane %v20812_v62, %v23709_v19  ;;  %v20835_v15 = vrot.slane %v20813_v55, %v23709_v19  ;;  %v20163_v39 = vrot.slane %v20149_v47, %v23709_v19  ;;  %v30554_v55 = vld [vmem:[#allocation24_spill] sm:$0xff]  ;;  %v30555_v47 = vld [vmem:[#allocation30_spill] sm:$0xff] }
0x1efe   :  { %v23198_v9 = vpack.c.bf16 %v21436_v1, %v21435_v23  ;;  %v20498_v4 = vcombine.low %v20489_v38, %v20496_v29  ;;  %v20505_v12 = vrot.slane %v20497_v42, %v23709_v19  ;;  %v20164_v24 = vcombine.high %v20156_v35, %v20156_v35 }
0x1eff   :  { %v20842_v37 = vrot.slane %v20814_v36, %v23709_v19  ;;  %v20843_v13 = vcombine.low %v20821_v44, %v20828_v61  ;;  %v20165_v2 = vcombine.high %v20163_v39, %v20163_v39  ;;  %v20172_v3 = vrot.slane %v20156_v35, %v23709_v19  ;;  %v30556_v35 = vld [vmem:[#allocation32_spill] sm:$0xff] }
0x1f00   :  { %v20179_v21 = vrot.slane %v20163_v39, %v23709_v19  ;;  %23199 = vmatpush3.bf16.msra.mxu0 %v23198_v9  ;;  %v20512_v25 = vrot.slane %v20498_v4, %v23709_v19  ;;  %v20186_v58 = vrot.slane %v20164_v24, %v23709_v19  ;;  %v30559_v4 = vld [vmem:[#allocation22_spill] sm:$0xff] }
0x1f01   :  { %v20081_v33 = vpop.f32.mrb[170].mxu1  ;;  %v20844_v51 = vcombine.low %v20835_v15, %v20842_v37  ;;  %23200 = vmatprep.subr.bf16.mxu0 %v30544_v8  ;;  %v20851_v60 = vrot.slane %v20843_v13, %v23709_v19  ;;  %v20193_v56 = vrot.slane %v20165_v2, %v23709_v19  ;;  %v20194_v30 = vcombine.high %v20172_v3, %v20172_v3  ;;  %v30557_v15 = vld [vmem:[#allocation18_spill] sm:$0xff] }
0x1f02   :  { %v23095_v53 = vpop.f32.mrb[171].mxu1  ;;  %v20082_v49 = vadd.f32 %v20081_v33, %v29526_v57  ;;  %v20195_v43 = vcombine.high %v20179_v21, %v20179_v21  ;;  %v20513_v27 = vcombine.low %v20505_v12, %v20512_v25  ;;  %v20196_v52 = vcombine.high %v20186_v58, %v20186_v58  ;;  %v30558_v33 = vld [vmem:[#allocation20_spill] sm:$0xff] }
0x1f03   :  { %v20858_v38 = vrot.slane %v20844_v51, %v23709_v19  ;;  %v20393_v23 = vadd.f32 %v20172_v3, %v29225_v0  ;;  %v20197_v1 = vcombine.high %v20193_v56, %v20193_v56  ;;  %v29577_v62 = vadd.f32 %v20186_v58, %v29229_v31 }
0x1f04   :  { %v20395_v44 = vadd.f32 %v20194_v30, %v30554_v55  ;;  %v20397_v29 = vadd.f32 %v20179_v21, %v30555_v47  ;;  %v20715_v42 = vsel %vm832_vm3, %v20513_v27, 0.0  ;;  %v20396_v61 = vadd.f32 %v20196_v52, %v30556_v35 }
0x1f05   :  { %v20859_v36 = vcombine.low %v20851_v60, %v20858_v38  ;;  %v20398_v39 = vadd.f32 %v20193_v56, %v30557_v15  ;;  %v29585_v9 = vadd.f32 %v20195_v43, %v30558_v33  ;;  %v20400_v0 = vadd.f32 %v20197_v1, %v30559_v4 }
0x1f06   :  { %v20514_v12 = vcombine.low %v20393_v23, %v29577_v62  ;;  %v20739_v31 = vmul.f32 %v20393_v23, %v20393_v23  ;;  %v20515_v24 = vcombine.low %v20395_v44, %v20396_v61  ;;  %v20740_v13 = vmul.f32 %v29577_v62, %v29577_v62 }
0x1f07   :  { %v29590_v37 = vsel %vm832_vm3, %v20859_v36, 0.0  ;;  %v20516_v53 = vcombine.low %v20397_v29, %v20398_v39  ;;  %v20517_v3 = vcombine.low %v29585_v9, %v20400_v0  ;;  %v20741_v25 = vmul.f32 %v20395_v44, %v20395_v44 }
0x1f08   :  { %v20524_v21 = vrot.slane %v20514_v12, %v23709_v19  ;;  %v20742_v51 = vmul.f32 %v20396_v61, %v20396_v61  ;;  %v20531_v60 = vrot.slane %v20515_v24, %v23709_v19  ;;  %v20743_v30 = vmul.f32 %v20397_v29, %v20397_v29 }
0x1f09   :  { %v20538_v56 = vrot.slane %v20516_v53, %v23709_v19  ;;  %v20744_v43 = vmul.f32 %v20398_v39, %v20398_v39  ;;  %v20545_v27 = vrot.slane %v20517_v3, %v23709_v19  ;;  %v20745_v38 = vmul.f32 %v29585_v9, %v29585_v9 }
0x1f0a   :  { %v20086_v2 = vpop.f32.mrb[172].mxu1  ;;  %v20746_v52 = vmul.f32 %v20400_v0, %v20400_v0  ;;  %v20860_v23 = vcombine.low %v20739_v31, %v20740_v13  ;;  %v20546_v1 = vcombine.low %v20524_v21, %v20531_v60  ;;  %v20861_v55 = vcombine.low %v20741_v25, %v20742_v51 }
0x1f0b   :  { %v23098_v58 = vpop.f32.mrb[173].mxu1  ;;  %v20862_v47 = vcombine.low %v20743_v30, %v20744_v43  ;;  %v20198_v36 = vcombine.high %v20082_v49, %v20082_v49  ;;  %v20547_v35 = vcombine.low %v20538_v56, %v20545_v27  ;;  %v20205_v29 = vrot.slane %v20082_v49, %v23709_v19 }
0x1f0c   :  { %v20863_v61 = vcombine.low %v20745_v38, %v20746_v52  ;;  %v20870_v15 = vrot.slane %v20860_v23, %v23709_v19  ;;  %v20554_v33 = vrot.slane %v20546_v1, %v23709_v19  ;;  %v20877_v4 = vrot.slane %v20861_v55, %v23709_v19  ;;  %v30560_v38 = vld [vmem:[#allocation19_spill] sm:$0xff] }
0x1f0d   :  { %v20884_v0 = vrot.slane %v20862_v47, %v23709_v19  ;;  %v20212_v12 = vrot.slane %v20198_v36, %v23709_v19  ;;  %v20561_v31 = vrot.slane %v20547_v35, %v23709_v19  ;;  %v20213_v53 = vcombine.high %v20205_v29, %v20205_v29  ;;  %v30561_v47 = vld [vmem:[#allocation25_spill] sm:$0xff] }
0x1f0e   :  { %v29601_v44 = vpop.f32.mrb[174].mxu1  ;;  %v20891_v24 = vrot.slane %v20863_v61, %v23709_v19  ;;  %v20221_v13 = vrot.slane %v20205_v29, %v23709_v19  ;;  %v20892_v3 = vcombine.low %v20870_v15, %v20877_v4  ;;  %v20087_v25 = vadd.f32 %v20086_v2, %v29526_v57 }
0x1f0f   :  { %v23101_v39 = vpop.f32.mrb[175].mxu1  ;;  %v20214_v21 = vcombine.high %v20212_v12, %v20212_v12  ;;  %v20228_v49 = vrot.slane %v20212_v12, %v23709_v19  ;;  %v20562_v51 = vcombine.low %v20554_v33, %v20561_v31  ;;  %v20235_v60 = vrot.slane %v20213_v53, %v23709_v19 }
0x1f10   :  { %v20893_v58 = vcombine.low %v20884_v0, %v20891_v24  ;;  %v20243_v56 = vcombine.high %v20221_v13, %v20221_v13  ;;  %v20900_v30 = vrot.slane %v20892_v3, %v23709_v19  ;;  %v20401_v52 = vadd.f32 %v20221_v13, %v30560_v38  ;;  %v30562_v39 = vld [vmem:[#allocation21_spill] sm:$0xff] }
0x1f11   :  { %v20242_v43 = vrot.slane %v20214_v21, %v23709_v19  ;;  %v20244_v27 = vcombine.high %v20228_v49, %v20228_v49  ;;  %v20716_v23 = vsel %vm832_vm3, %v20562_v51, 0.0  ;;  %v20245_v55 = vcombine.high %v20235_v60, %v20235_v60 }
0x1f12   :  { %v20907_v1 = vrot.slane %v20893_v58, %v23709_v19  ;;  %v20402_v36 = vadd.f32 %v20235_v60, %v30561_v47  ;;  %v20717_v2 = vadd.f32 %v20716_v23, %v20715_v42  ;;  %v20403_v61 = vadd.f32 %v20243_v56, %v29310_v54 }
0x1f13   :  { %v20246_v35 = vcombine.high %v20242_v43, %v20242_v43  ;;  %v20405_v15 = vadd.f32 %v20228_v49, %v29317_v18  ;;  %v29624_v33 = vadd.f32 %v20245_v55, %v30562_v39  ;;  %v20406_v4 = vadd.f32 %v20242_v43, %v29320_v14 }
0x1f14   :  { %v20908_v29 = vcombine.low %v20900_v30, %v20907_v1  ;;  %v20407_v0 = vadd.f32 %v20244_v27, %v29323_v20  ;;  %v20563_v31 = vcombine.low %v20401_v52, %v20402_v36  ;;  %v20747_v24 = vmul.f32 %v20401_v52, %v20401_v52 }
0x1f15   :  { %v20408_v12 = vadd.f32 %v20246_v35, %v29326_v17  ;;  %v20748_v53 = vmul.f32 %v20402_v36, %v20402_v36  ;;  %v20564_v13 = vcombine.low %v20403_v61, %v29624_v33  ;;  %v20565_v54 = vcombine.low %v20405_v15, %v20406_v4 }
0x1f16   :  { %v21062_v42 = vsel %vm832_vm3, %v20908_v29, 0.0  ;;  %v20749_v3 = vmul.f32 %v20403_v61, %v20403_v61  ;;  %v20573_v49 = vrot.slane %v20563_v31, %v23709_v19  ;;  %v20750_v14 = vmul.f32 %v29624_v33, %v29624_v33 }
0x1f17   :  { %v21063_v18 = vadd.f32 %v21062_v42, %v29590_v37  ;;  %v20566_v21 = vcombine.low %v20407_v0, %v20408_v12  ;;  %v20580_v20 = vrot.slane %v20564_v13, %v23709_v19  ;;  %v20587_v17 = vrot.slane %v20565_v54, %v23709_v19 }
0x1f18   :  { %v20751_v51 = vmul.f32 %v20405_v15, %v20405_v15  ;;  %v20752_v58 = vmul.f32 %v20406_v4, %v20406_v4  ;;  %v20753_v56 = vmul.f32 %v20407_v0, %v20407_v0  ;;  %v20754_v30 = vmul.f32 %v20408_v12, %v20408_v12 }
0x1f19   :  { %v20594_v60 = vrot.slane %v20566_v21, %v23709_v19  ;;  %v20909_v43 = vcombine.low %v20747_v24, %v20748_v53  ;;  %v20595_v27 = vcombine.low %v20573_v49, %v20580_v20  ;;  %v20910_v38 = vcombine.low %v20749_v3, %v20750_v14 }
0x1f1a   :  { %v20911_v37 = vcombine.low %v20751_v51, %v20752_v58  ;;  %v20247_v52 = vcombine.high %v20087_v25, %v20087_v25  ;;  %v20912_v1 = vcombine.low %v20753_v56, %v20754_v30  ;;  %v20254_v47 = vrot.slane %v20087_v25, %v23709_v19 }
0x1f1b   :  { %v20596_v23 = vcombine.low %v20587_v17, %v20594_v60  ;;  %v20919_v55 = vrot.slane %v20909_v43, %v23709_v19  ;;  %v20603_v36 = vrot.slane %v20595_v27, %v23709_v19  ;;  %v20926_v35 = vrot.slane %v20910_v38, %v23709_v19 }
0x1f1c   :  { %v20933_v61 = vrot.slane %v20911_v37, %v23709_v19  ;;  %v20261_v15 = vrot.slane %v20247_v52, %v23709_v19  ;;  %v20940_v39 = vrot.slane %v20912_v1, %v23709_v19  ;;  %v20262_v4 = vcombine.high %v20254_v47, %v20254_v47 }
0x1f1d   :  { %v20610_v29 = vrot.slane %v20596_v23, %v23709_v19  ;;  %v20270_v0 = vrot.slane %v20254_v47, %v23709_v19  ;;  %v20941_v12 = vcombine.low %v20919_v55, %v20926_v35  ;;  %v20092_v25 = vadd.f32 %v29601_v44, %v29526_v57 }
0x1f1e   :  { %v20263_v31 = vcombine.high %v20261_v15, %v20261_v15  ;;  %v20277_v24 = vrot.slane %v20261_v15, %v23709_v19  ;;  %v20942_v42 = vcombine.low %v20933_v61, %v20940_v39  ;;  %v20284_v13 = vrot.slane %v20262_v4, %v23709_v19 }
0x1f1f   :  { %v20611_v53 = vcombine.low %v20603_v36, %v20610_v29  ;;  %v20292_v54 = vcombine.high %v20270_v0, %v20270_v0  ;;  %v20949_v3 = vrot.slane %v20941_v12, %v23709_v19  ;;  %v29654_v14 = vadd.f32 %v20270_v0, %v29385_v50 }
0x1f20   :  { %v20291_v21 = vrot.slane %v20263_v31, %v23709_v19  ;;  %v20293_v49 = vcombine.high %v20277_v24, %v20277_v24  ;;  %v20956_v17 = vrot.slane %v20942_v42, %v23709_v19  ;;  %v20294_v51 = vcombine.high %v20284_v13, %v20284_v13  ;;  %v21437_v42 = vld [vmem:[%s29854_s9 + $0x10] sm:$0xff] }
0x1f21   :  { %v20718_v20 = vsel %vm832_vm3, %v20611_v53, 0.0  ;;  %v20410_v57 = vadd.f32 %v20284_v13, %v29388_v34  ;;  %v20411_v60 = vadd.f32 %v20292_v54, %v29391_v10  ;;  %v20413_v56 = vadd.f32 %v20277_v24, %v29398_v26  ;;  %v21438_v13 = vld [vmem:[%s29854_s9 + $0x18] sm:$0xff] }
0x1f22   :  { %v29659_v44 = vadd.f32 %v20718_v20, %v20717_v2  ;;  %v20295_v58 = vcombine.high %v20291_v21, %v20291_v21  ;;  %v20957_v30 = vcombine.low %v20949_v3, %v20956_v17  ;;  %v20412_v43 = vadd.f32 %v20294_v51, %v29395_v40 }
0x1f23   :  { %v29665_v50 = vadd.f32 %v20291_v21, %v29401_v32  ;;  %v20415_v27 = vadd.f32 %v20293_v49, %v29404_v7  ;;  %v20612_v37 = vcombine.low %v29654_v14, %v20410_v57  ;;  %v20755_v34 = vmul.f32 %v29654_v14, %v29654_v14 }
0x1f24   :  { %v20416_v38 = vadd.f32 %v20295_v58, %v29407_v16  ;;  %v20756_v2 = vmul.f32 %v20410_v57, %v20410_v57  ;;  %v21064_v10 = vsel %vm832_vm3, %v20957_v30, 0.0  ;;  %v20613_v52 = vcombine.low %v20411_v60, %v20412_v43 }
0x1f25   :  { %v20614_v26 = vcombine.low %v20413_v56, %v29665_v50  ;;  %v20757_v23 = vmul.f32 %v20411_v60, %v20411_v60  ;;  %v29674_v40 = vadd.f32 %v21064_v10, %v21063_v18  ;;  %v20622_v1 = vrot.slane %v20612_v37, %v23709_v19 }
0x1f26   :  { %v20615_v32 = vcombine.low %v20415_v27, %v20416_v38  ;;  %v20758_v7 = vmul.f32 %v20412_v43, %v20412_v43  ;;  %v20629_v16 = vrot.slane %v20613_v52, %v23709_v19  ;;  %v20759_v47 = vmul.f32 %v20413_v56, %v20413_v56 }
0x1f27   :  { %v20636_v55 = vrot.slane %v20614_v26, %v23709_v19  ;;  %v20760_v36 = vmul.f32 %v29665_v50, %v29665_v50  ;;  %v20761_v61 = vmul.f32 %v20415_v27, %v20415_v27  ;;  %v20762_v15 = vmul.f32 %v20416_v38, %v20416_v38 }
0x1f28   :  { %v20643_v35 = vrot.slane %v20615_v32, %v23709_v19  ;;  %v20958_v29 = vcombine.low %v20755_v34, %v20756_v2  ;;  %v20644_v39 = vcombine.low %v20622_v1, %v20629_v16  ;;  %v20959_v18 = vcombine.low %v20757_v23, %v20758_v7 }
0x1f29   :  { %v20960_v4 = vcombine.low %v20759_v47, %v20760_v36  ;;  %v20296_v0 = vcombine.high %v20092_v25, %v20092_v25  ;;  %v20961_v31 = vcombine.low %v20761_v61, %v20762_v15  ;;  %v20303_v53 = vrot.slane %v20092_v25, %v23709_v19 }
0x1f2a   :  { %v20645_v12 = vcombine.low %v20636_v55, %v20643_v35  ;;  %v20968_v24 = vrot.slane %v20958_v29, %v23709_v19  ;;  %v20652_v54 = vrot.slane %v20644_v39, %v23709_v19  ;;  %v20975_v3 = vrot.slane %v20959_v18, %v23709_v19 }
0x1f2b   :  { %v20982_v21 = vrot.slane %v20960_v4, %v23709_v19  ;;  %v20310_v49 = vrot.slane %v20296_v0, %v23709_v19  ;;  %v20989_v25 = vrot.slane %v20961_v31, %v23709_v19  ;;  %v20311_v17 = vcombine.high %v20303_v53, %v20303_v53  ;;  %v21440_v4 = vld [vmem:[%s29854_s9 + $0x28] sm:$0xff] }
0x1f2c   :  { %v20659_v20 = vrot.slane %v20645_v12, %v23709_v19  ;;  %v20319_v51 = vrot.slane %v20303_v53, %v23709_v19  ;;  %v20990_v57 = vcombine.low %v20968_v24, %v20975_v3  ;;  %v23201_v56 = vpack.c.bf16 %v21438_v13, %v21437_v42  ;;  %v21441_v3 = vld [vmem:[%s29854_s9 + $0x30] sm:$0xff] }
0x1f2d   :  { %v20312_v58 = vcombine.high %v20310_v49, %v20310_v49  ;;  %v20326_v60 = vrot.slane %v20310_v49, %v23709_v19  ;;  %v20991_v43 = vcombine.low %v20982_v21, %v20989_v25  ;;  %v20333_v27 = vrot.slane %v20311_v17, %v23709_v19  ;;  %v21442_v21 = vld [vmem:[%s29854_s9 + $0x38] sm:$0xff] }
0x1f2e   :  { %v20660_v30 = vcombine.low %v20652_v54, %v20659_v20  ;;  %v20341_v38 = vcombine.high %v20319_v51, %v20319_v51  ;;  %v20998_v37 = vrot.slane %v20990_v57, %v23709_v19  ;;  %v20417_v10 = vadd.f32 %v20319_v51, %v30543_v22  ;;  %23202 = vmatpush3.bf16.msra.mxu0 %v23201_v56 }
0x1f2f   :  { %v20340_v34 = vrot.slane %v20312_v58, %v23709_v19  ;;  %v20342_v2 = vcombine.high %v20326_v60, %v20326_v60  ;;  %v21005_v26 = vrot.slane %v20991_v43, %v23709_v19  ;;  %v20343_v23 = vcombine.high %v20333_v27, %v20333_v27  ;;  %23203 = vmatprep.subr.bf16.mxu0 %v30544_v8 }
0x1f30   :  { %v20720_v52 = vsel %vm832_vm3, %v20660_v30, 0.0  ;;  %v20418_v32 = vadd.f32 %v20333_v27, %v29419_v63  ;;  %v29707_v7 = vadd.f32 %v20341_v38, %v29426_v59  ;;  %v20421_v16 = vadd.f32 %v20326_v60, %v29437_v45 }
0x1f31   :  { %v20344_v1 = vcombine.high %v20340_v34, %v20340_v34  ;;  %v20422_v55 = vadd.f32 %v20340_v34, %v29441_v5  ;;  %v21006_v47 = vcombine.low %v20998_v37, %v21005_v26  ;;  %v20420_v22 = vadd.f32 %v20343_v23, %v29430_v28  ;;  %v21444_v34 = vld [vmem:[%s29854_s9 + $0x48] sm:$0xff] }
0x1f32   :  { %v20423_v36 = vadd.f32 %v20342_v2, %v29448_v11  ;;  %v20661_v35 = vcombine.low %v20417_v10, %v20418_v32  ;;  %v20721_v15 = vadd.f32 %v20720_v52, %v29659_v44  ;;  %v20763_v29 = vmul.f32 %v20417_v10, %v20417_v10  ;;  %v21439_v44 = vld [vmem:[%s29854_s9 + $0x20] sm:$0xff] }
0x1f33   :  { %v29714_v61 = vadd.f32 %v20344_v1, %v29451_v41  ;;  %v20663_v63 = vcombine.low %v20421_v16, %v20422_v55  ;;  %v21066_v59 = vsel %vm832_vm3, %v21006_v47, 0.0  ;;  %v20662_v39 = vcombine.low %v29707_v7, %v20420_v22  ;;  %v21445_v1 = vld [vmem:[%s29854_s9 + $0x50] sm:$0xff] }
0x1f34   :  { %v20671_v45 = vrot.slane %v20661_v35, %v23709_v19  ;;  %v20764_v5 = vmul.f32 %v20418_v32, %v20418_v32  ;;  %v20765_v11 = vmul.f32 %v29707_v7, %v29707_v7  ;;  %v20766_v41 = vmul.f32 %v20420_v22, %v20420_v22 }
0x1f35   :  { %v20664_v18 = vcombine.low %v20423_v36, %v29714_v61  ;;  %v20685_v28 = vrot.slane %v20663_v63, %v23709_v19  ;;  %v20678_v0 = vrot.slane %v20662_v39, %v23709_v19  ;;  %v20767_v12 = vmul.f32 %v20421_v16, %v20421_v16  ;;  %v21446_v16 = vld [vmem:[%s29854_s9 + $0x58] sm:$0xff]  ;;  %v21447_v63 = vld [vmem:[%s29854_s9 + $0x60] sm:$0xff] }
0x1f36   :  { %v20768_v31 = vmul.f32 %v20422_v55, %v20422_v55  ;;  %v20769_v24 = vmul.f32 %v20423_v36, %v20423_v36  ;;  %v20770_v42 = vmul.f32 %v29714_v61, %v29714_v61  ;;  %v21007_v13 = vcombine.low %v20763_v29, %v20764_v5  ;;  %v21448_v29 = vld [vmem:[%s29854_s9 + $0x68] sm:$0xff] }
0x1f37   :  { %v20692_v53 = vrot.slane %v20664_v18, %v23709_v19  ;;  %v21008_v54 = vcombine.low %v20765_v11, %v20766_v41  ;;  %v20693_v49 = vcombine.low %v20671_v45, %v20678_v0  ;;  %v21067_v25 = vadd.f32 %v21066_v59, %v29674_v40  ;;  %v21443_v40 = vld [vmem:[%s29854_s9 + $0x40] sm:$0xff] }
0x1f38   :  { %v21009_v20 = vcombine.low %v20767_v12, %v20768_v31  ;;  %v23204_v17 = vpack.c.bf16 %v21440_v4, %v21439_v44  ;;  %v21010_v57 = vcombine.low %v20769_v24, %v20770_v42  ;;  %v21017_v58 = vrot.slane %v21007_v13, %v23709_v19 }
0x1f39   :  { %v20694_v51 = vcombine.low %v20685_v28, %v20692_v53  ;;  %v21024_v60 = vrot.slane %v21008_v54, %v23709_v19  ;;  %v20701_v56 = vrot.slane %v20693_v49, %v23709_v19  ;;  %v23207_v30 = vpack.c.bf16 %v21442_v21, %v21441_v3 }
0x1f3a   :  { %23205 = vmatpush3.bf16.msra.mxu0 %v23204_v17  ;;  %v21031_v27 = vrot.slane %v21009_v20, %v23709_v19  ;;  %v21038_v38 = vrot.slane %v21010_v57, %v23709_v19  ;;  %v23210_v52 = vpack.c.bf16 %v21444_v34, %v21443_v40  ;;  %v23213_v36 = vpack.c.bf16 %v21446_v16, %v21445_v1 }
0x1f3b   :  { %v20708_v43 = vrot.slane %v20694_v51, %v23709_v19  ;;  %v21039_v37 = vcombine.low %v21017_v58, %v21024_v60  ;;  %23206 = vmatprep.subr.bf16.mxu0 %v30544_v8  ;;  %v23216_v5 = vpack.c.bf16 %v21448_v29, %v21447_v63  ;;  %v30563_v17 = vsub.s32 4, %v30545_v46 }
0x1f3c   :  { %v21040_v10 = vcombine.low %v21031_v27, %v21038_v38  ;;  %v30564_v57 = vsub.s32 5, %v30545_v46 }
0x1f3d   :  { %v20709_v2 = vcombine.low %v20701_v56, %v20708_v43  ;;  %v21047_v23 = vrot.slane %v21039_v37, %v23709_v19  ;;  %v21216_v51 = vrot.slane %v29521_v48, %v30563_v17 }
0x1f3e   :  { %23208 = vmatpush3.bf16.msra.mxu0 %v23207_v30  ;;  %v21054_v32 = vrot.slane %v21040_v10, %v23709_v19  ;;  %v21286_v58 = vrot.slane %v29521_v48, %v30564_v57  ;;  %v21449_v57 = vld [vmem:[%s29854_s9 + $0x70] sm:$0xff] }
0x1f3f   :  { %v20722_v26 = vsel %vm832_vm3, %v20709_v2, 0.0  ;;  %23209 = vmatprep.subr.bf16.mxu0 %v30544_v8  ;;  %v21218_v46 = vcombine.high %v21216_v51, %v21216_v51 }
0x1f40   :  { %v20723_v55 = vadd.f32 %v20722_v26, %v20721_v15  ;;  %v21055_v47 = vcombine.low %v21047_v23, %v21054_v32  ;;  %v21225_v26 = vrot.slane %v21216_v51, %v23709_v19 }
0x1f42   :  { %v20724_v22 = vrot.slane %v20723_v55, 4  ;;  %23211 = vmatpush3.bf16.msra.mxu0 %v23210_v52  ;;  %v21068_v35 = vsel %vm832_vm3, %v21055_v47, 0.0  ;;  %v21288_v52 = vcombine.high %v21286_v58, %v21286_v58  ;;  %v21247_v32 = vcombine.high %v21225_v26, %v21225_v26 }
0x1f43   :  { %23212 = vmatprep.subr.bf16.mxu0 %v30544_v8  ;;  %v21069_v39 = vadd.f32 %v21068_v35, %v21067_v25  ;;  %v21239_v1 = vrot.slane %v21225_v26, %v23709_v19 }
0x1f44   :  { %v20725_v59 = vadd.f32 %v20724_v22, %v20723_v55  ;;  %v21302_v23 = vrot.slane %v21288_v52, %v23709_v19 }
0x1f45   :  { %v21070_v15 = vrot.slane %v21069_v39, 4  ;;  %v21265_v35 = vcombine.high %v21239_v1, %v21239_v1 }
0x1f46   :  { %v20726_v45 = vrot.slane %v20725_v59, 2  ;;  %23214 = vmatpush3.bf16.msra.mxu0 %v23213_v36  ;;  %v21254_v36 = vrot.slane %v21247_v32, %v23709_v19  ;;  %v21316_v63 = vrot.slane %v21302_v23, %v23709_v19 }
0x1f47   :  { %23215 = vmatprep.subr.bf16.mxu0 %v30544_v8  ;;  %v21071_v28 = vadd.f32 %v21070_v15, %v21069_v39 }
0x1f48   :  { %v20727_v18 = vadd.f32 %v20726_v45, %v20725_v59 }
0x1f49   :  { %v21072_v41 = vrot.slane %v21071_v28, 2 }
0x1f4a   :  { %v20728_v11 = vrot.slane %v20727_v18, 1  ;;  %23217 = vmatpush3.bf16.msra.mxu0 %v23216_v5 }
0x1f4b   :  { %23218 = vmatprep.subr.bf16.mxu0 %v30544_v8  ;;  %v21073_v4 = vadd.f32 %v21072_v41, %v21071_v28 }
0x1f4c   :  { %v20729_v44 = vadd.f32 %v20728_v11, %v20727_v18 }
0x1f4d   :  { %v21074_v12 = vrot.slane %v21073_v4, 1 }
0x1f4e   :  { %v20730_v0 = vmul.f32 0.025, %v20729_v44 }
0x1f4f   :  { %v21075_v31 = vadd.f32 %v21074_v12, %v21073_v4  ;;  %v21256_v12 = vcombine.high %v21254_v36, %v21254_v36 }
0x1f50   :  { %v21077_v24 = vmul.f32 %v20730_v0, %v20730_v0  ;;  %v21080_v53 = vcombine.high %v20730_v0, %v20730_v0  ;;  %v21087_v42 = vrot.slane %v20730_v0, %v23709_v19  ;;  %v21325_v0 = vcombine.high %v21316_v63, %v21316_v63 }
0x1f51   :  { %v21076_v13 = vmul.f32 0.025, %v21075_v31 }
0x1f52   :  { %v21094_v54 = vrot.slane %v21080_v53, %v23709_v19  ;;  %v21101_v3 = vrot.slane %v21087_v42, %v23709_v19  ;;  %v21109_v21 = vcombine.high %v21087_v42, %v21087_v42 }
0x1f53   :  { %v21078_v49 = vsub.f32 %v21076_v13, %v21077_v24 }
0x1f54   :  { %v21119_v20 = vcombine.high %v21094_v54, %v21094_v54  ;;  %v21127_v25 = vcombine.high %v21101_v3, %v21101_v3  ;;  %v21116_v8 = vrot.slane %v21109_v21, %v23709_v19  ;;  %v21108_v60 = vrot.slane %v21094_v54, %v23709_v19 }
0x1f55   :  { %v21141_v56 = vsub.f32 %v29654_v14, %v21101_v3  ;;  %v21145_v27 = vadd.f32 1e-05, %v21078_v49 }
0x1f56   :  { %v21126_v30 = vrot.slane %v21119_v20, %v23709_v19  ;;  %v21143_v43 = vsub.f32 %v29707_v7, %v21127_v25  ;;  %v21138_v38 = vsub.f32 %v29577_v62, %v21116_v8  ;;  %v21117_v37 = vcombine.high %v21108_v60, %v21108_v60 }
0x1f57   :  { %v21118_v40 = vcombine.high %v21116_v8, %v21116_v8  ;;  %23544 = vrsqrt.f32 %v21145_v27  ;;  %v21232_v7 = vrot.slane %v21218_v46, %v23709_v19  ;;  %v21295_v62 = vrot.slane %v21286_v58, %v23709_v19 }
0x1f58   :  { %v21128_v34 = vcombine.high %v21126_v30, %v21126_v30  ;;  %v21142_v2 = vsub.f32 %v29665_v50, %v21126_v30  ;;  %v21139_v48 = vsub.f32 %v29585_v9, %v21117_v37  ;;  %v21327_v9 = vcombine.high %v21302_v23, %v21302_v23 }
0x1f59   :  { %v21140_v10 = vsub.f32 %v29624_v33, %v21118_v40  ;;  %v21257_v50 = vcombine.high %v21232_v7, %v21232_v7  ;;  %v21317_v55 = vcombine.high %v21295_v62, %v21295_v62  ;;  %v21246_v33 = vrot.slane %v21232_v7, %v23709_v19 }
0x1f5a   :  { %v21144_v14 = vsub.f32 %v29714_v61, %v21128_v34  ;;  %v21309_v61 = vrot.slane %v21295_v62, %v23709_v19  ;;  %v21334_v5 = vrot.slane %v21327_v9, %v23709_v19  ;;  %v21137_v31 = vsub.f32 %v29539_v6, %v21108_v60  ;;  %v21450_v6 = vld [vmem:[%s29854_s9 + $0x78] sm:$0xff]  ;;  %s23590_s9 = smov 32  }
0x1f5b   :  { %v21264_v45 = vrot.slane %v21257_v50, %v23709_v19  ;;  %v21324_v15 = vrot.slane %v21317_v55, %v23709_v19  ;;  %v21255_v18 = vcombine.high %v21246_v33, %v21246_v33  ;;  %v23219_v46 = vpack.c.bf16 %v21450_v6, %v21449_v57 }
0x1f5c   :  { %v21335_v28 = vcombine.high %v21309_v61, %v21309_v61 }
0x1f5d   :  { %v21266_v21 = vcombine.high %v21264_v45, %v21264_v45  ;;  %23220 = vmatpush3.bf16.msra.mxu0 %v23219_v46 }
0x1f61   :  { %v23545_v16 = vpop.eup %23544 }
0x1f62   :  { %v21155_v47 = vrot.slane %v23545_v16, %v23709_v19  ;;  %v21148_v22 = vcombine.high %v23545_v16, %v23545_v16 }
0x1f64   :  { %v21169_v29 = vrot.slane %v21155_v47, %v23709_v19  ;;  %v21162_v59 = vrot.slane %v21148_v22, %v23709_v19  ;;  %v21177_v39 = vcombine.high %v21155_v47, %v21155_v47 }
0x1f66   :  { %v21195_v11 = vcombine.high %v21169_v29, %v21169_v29  ;;  %v21184_v41 = vrot.slane %v21177_v39, %v23709_v19  ;;  %v21187_v44 = vcombine.high %v21162_v59, %v21162_v59  ;;  %v21176_v4 = vrot.slane %v21162_v59, %v23709_v19 }
0x1f67   :  { %v21209_v24 = vmul.f32 %v21169_v29, %v21141_v56  ;;  %v21326_v56 = vcombine.high %v21324_v15, %v21324_v15 }
0x1f68   :  { %v21211_v53 = vmul.f32 %v21195_v11, %v21143_v43  ;;  %v21194_v42 = vrot.slane %v21187_v44, %v23709_v19  ;;  %v21206_v13 = vmul.f32 %v21184_v41, %v21138_v38  ;;  %v21185_v54 = vcombine.high %v21176_v4, %v21176_v4 }
0x1f69   :  { %v21186_v3 = vcombine.high %v21184_v41, %v21184_v41  ;;  %v21279_v49 = vmul.f32 %v21239_v1, %v21209_v24  ;;  %v21205_v20 = vmul.f32 %v21176_v4, %v21137_v31  ;;  %v21336_v38 = vcombine.high %v21334_v5, %v21334_v5 }
0x1f6a   :  { %v21210_v25 = vmul.f32 %v21194_v42, %v21142_v2  ;;  %v21276_v8 = vmul.f32 %v21254_v36, %v21206_v13  ;;  %v21207_v17 = vmul.f32 %v21185_v54, %v21139_v48  ;;  %v21281_v51 = vmul.f32 %v21265_v35, %v21211_v53 }
0x1f6b   :  { %v21196_v58 = vcombine.high %v21194_v42, %v21194_v42  ;;  %v21208_v60 = vmul.f32 %v21186_v3, %v21140_v10  ;;  %v21275_v30 = vmul.f32 %v21246_v33, %v21205_v20  ;;  %v21349_v37 = vadd.f32 %v21309_v61, %v21279_v49 }
0x1f6c   :  { %v21280_v43 = vmul.f32 %v21264_v45, %v21210_v25  ;;  %v21277_v27 = vmul.f32 %v21255_v18, %v21207_v17  ;;  %v21346_v48 = vadd.f32 %v21324_v15, %v21276_v8  ;;  %v21351_v7 = vadd.f32 %v21335_v28, %v21281_v51  ;;  %v21885_v15 = vld [vmem:[%s29855_s10] ss:$0 sm:$0xff] }
0x1f6d   :  { %v21212_v40 = vmul.f32 %v21196_v58, %v21144_v14  ;;  %v21278_v34 = vmul.f32 %v21256_v12, %v21208_v60  ;;  %v21345_v2 = vadd.f32 %v21316_v63, %v21275_v30 }
0x1f6e   :  { %v21350_v52 = vadd.f32 %v21334_v5, %v21280_v43  ;;  %v21347_v26 = vadd.f32 %v21325_v0, %v21277_v27 }
0x1f6f   :  { %v21282_v62 = vmul.f32 %v21266_v21, %v21212_v40  ;;  %v21355_v23 = vcombine.low %v21345_v2, %v21349_v37  ;;  %v21348_v10 = vadd.f32 %v21326_v56, %v21278_v34 }
0x1f70   :  { %v21373_v32 = vcombine.low %v21346_v48, %v21350_v52  ;;  %v21393_v1 = vcombine.low %v21347_v26, %v21351_v7 }
0x1f71   :  { %v21352_v50 = vadd.f32 %v21336_v38, %v21282_v62  ;;  %v21362_v22 = vrot.slane %v21355_v23, %v23709_v19 }
0x1f72   :  { %v21380_v16 = vrot.slane %v21373_v32, %v23709_v19  ;;  %v21400_v55 = vrot.slane %v21393_v1, %v23709_v19 }
0x1f73   :  { %v21413_v9 = vcombine.low %v21348_v10, %v21352_v50  ;;  %v21369_v36 = vrot.slane %v21362_v22, %v23709_v19 }
0x1f74   :  { %v21387_v14 = vrot.slane %v21380_v16, %v23709_v19  ;;  %v21407_v33 = vrot.slane %v21400_v55, %v23709_v19 }
0x1f75   :  { %v21420_v61 = vrot.slane %v21413_v9, %v23709_v19 }
0x1f76   :  { %21388 = vrot.lane.b32.xlu0 %v21387_v14, %s23590_s9  ;;  %21408 = vrot.lane.b32.xlu1 %v21407_v33, %s23577_s20 }
0x1f77   :  { %v21427_v47 = vrot.slane %v21420_v61, %v23709_v19 }
0x1f7a   :  { %21428 = vrot.lane.b32.xlu0 %v21427_v47, %s23576_s19  ;;  %s21536_s19 = sshll.u32 %s23591_s29, 4  ;;  %s21537_s19 = int_to_ptr.vmem [resolvable:$true] %s21536_s19 }
0x1f7b   :  { %s23548_s30 = scalar_lea.vmem %s21537_s19, 32  ;;  %p23553_p1 = scmp.lt.s32.totalorder %s21537_s19, %s21537_s19 }
0x1f7c   :  { %p23549_p0 = scmp.ne.s32.totalorder %s21537_s19, %s23548_s30  ;;  %p23554_p2 = scmp.lt.s32.totalorder %s23548_s30, %s23548_s30 }
0x1f7e   :  { %p23555_p3 = por %p23554_p2, %p23553_p1 }
0x1f80   :  { %p23556_p4 = pnand %p23555_p3, %p23549_p0 }
0x1fe8   :  { %v21389_v35 = vpop.permute.xlu0 %21388  ;;  %v21409_v29 = vpop.permute.xlu1 %21408 }
0x1fe9   :  { %v21431_v63 = vsel %vm832_vm3, %v21369_v36, %v21389_v35 }
0x1fea   :  { %v21432_v59 = vsel %vm9485_vm10, %v21431_v63, %v21409_v29 }
0x1fec   :  { %v21429_v39 = vpop.permute.xlu0 %21428 }
0x1fed   :  { %v21434_v45 = vsel %vm21433_vm11, %v21432_v59, %v21429_v39 }
0x1fee   :  { %23135 = vmatmul.mubr.f32.vlgmr.msra.gmra.mrb[170].mxu0 %v21434_v45 }
0x20c1   :  { %v21524_v5 = vpop.f32.mrb[170].mxu0 }
0x20c2   :  { %v21525_v18 = vadd.f32 %v21885_v15, %v21524_v5  ;;  %v23136_v19 = vpop.f32.mrb[171].mxu0 }
0x20c4   :  { %21529 = vst.msk [vmem:[#allocation3] sm:$0x3] %vm21528_vm12, %v21525_v18 }
0x20c5   :  { %23559 = shalt.err (!%p23556_p4)
}
0x20c6   :  { %s23560_s0 = scalar_lea.hbm %s29856_s11, 32 }
0x20c7   :  { %p23561_p5 = scmp.ne.s32.totalorder %s29856_s11, %s23560_s0  ;;  %p23564_p6 = scmp.lt.u32.totalorder %s23560_s0, %s29856_s11 }
0x20c9   :  { %p23566_p7 = pnand %p23564_p6, %p23561_p5 }
0x20cb   :  { %23569 = shalt.err (!%p23566_p7)
}
0x20cc   :  { %21539 = dma.vmem_to_hbm [thread:$0]  %s21537_s19, 32, %s29856_s11, [#allocation4]  }
0x20cd   :  { %23570 = dma.done.wait [#allocation4], 32  }
0x20ce   :  { %23571 = vsyncadd [#allocation4], 4294967264 }
0x20cf   :  { %21543 = vsyncpa [#allocation4], 1 }

</bundles_post_ra>
